<compile_context>
chip_gen: v6e
topology: v6e:2x2x1
jax: 0.10.0
libtpu: 0.0.40
codegen_flags: <defaults>
</compile_context>

<pallas_src>
import math

import jax
import jax.numpy as jnp
from jax.experimental import pallas as pl
from jax.experimental.pallas import tpu as pltpu  # noqa: F401  (TPU backend; no pltpu-specific calls needed)

# Small, module-consistent synthetic sizes.
D_MODEL = 32
NHEAD = 4
HEAD_DIM = D_MODEL // NHEAD
DIM_FF = 64
NUM_LAYERS = 3
VOCAB = 128          # multiple of 128 -> lane-dense logits store
LN_EPS = 1e-5
NEG_INF = -1e9       # additive mask value (stands in for -inf)
VEC_W = 96           # packed bias/LN row width (max row = fused qkv bias)


# ----------------------------------------------------------------------------------
# Kernel
# ----------------------------------------------------------------------------------
def seq2seq_kernel(src_ids_ref, tgt_ids_ref, src_add_ref, tgt_add_ref, emb_ref,
                   enc_w_ref, enc_w2_ref, enc_v_ref,
                   dec_w_ref, dec_w2_ref, dec_v_ref,
                   fc_w_ref, tail_v_ref, out_ref):
    f32 = jnp.float32
    B, S_src = src_add_ref.shape
    S_tgt = tgt_add_ref.shape[1]
    D, H, DH, F = D_MODEL, NHEAD, HEAD_DIM, DIM_FF

    emb = emb_ref[...]                     # (V, D), already scaled by sqrt(d_model)

    # ---- embedding: one-hot matmul (lane-dense (N,128)x(128,32) MXU op) ----
    def embed(ids_ref):
        ids = ids_ref[...]                 # (N, 1) int32
        n = ids.shape[0]
        vocab_iota = jax.lax.broadcasted_iota(jnp.int32, (n, VOCAB), 1)
        onehot = (vocab_iota == ids).astype(f32)
        return jnp.dot(onehot, emb, preferred_element_type=f32)      # (N, D)

    def layernorm(x, g, b):
        mu = jnp.mean(x, axis=-1, keepdims=True)
        xc = x - mu
        var = jnp.mean(xc * xc, axis=-1, keepdims=True)
        return xc * jax.lax.rsqrt(var + LN_EPS) * g + b

    def dense(x, w, b):
        return jnp.dot(x, w, preferred_element_type=f32) + b

    # ---- attention biases, built ONCE (hoisted out of all layer loops) ----
    src_add = src_add_ref[...]             # (B, S_src)   0 / -1e9 per key
    tgt_add = tgt_add_ref[...]             # (B, S_tgt)
    row = jax.lax.broadcasted_iota(jnp.int32, (S_tgt, S_tgt), 0)
    col = jax.lax.broadcasted_iota(jnp.int32, (S_tgt, S_tgt), 1)
    causal = jnp.where(col > row, f32(NEG_INF), f32(0.0))            # (S_tgt, S_tgt)

    def tile_heads(bias):                  # (B, q, k) -> (H*B, q, k), head-major
        return jnp.concatenate([bias] * H, axis=0)

    enc_bias = tile_heads(jnp.broadcast_to(src_add[:, None, :], (B, S_src, S_src)))
    self_bias = tile_heads(causal[None, :, :] + tgt_add[:, None, :])
    cross_bias = tile_heads(jnp.broadcast_to(src_add[:, None, :], (B, S_tgt, S_src)))

    # ---- head-batched attention core ----
    def split_heads(x2, s):                # (B*s, H*DH) -> (H*B, s, DH), head-major
        parts = [x2[:, h * DH:(h + 1) * DH].reshape(B, s, DH) for h in range(H)]
        return jnp.concatenate(parts, axis=0)

    def merge_heads(xhb, s):               # (H*B, s, DH) -> (B*s, H*DH)
        parts = [xhb[h * B:(h + 1) * B].reshape(B * s, DH) for h in range(H)]
        return jnp.concatenate(parts, axis=-1)

    def attention(q2, k2, v2, bias, s_q, s_kv):
        qh = split_heads(q2, s_q)          # (H*B, s_q, DH)  (scale folded into Wq)
        kh = split_heads(k2, s_kv)
        vh = split_heads(v2, s_kv)
        s = jnp.einsum("bqd,bkd->bqk", qh, kh, preferred_element_type=f32) + bias
        s = s - jnp.max(s, axis=-1, keepdims=True)
        p = jnp.exp(s)
        p = p * pl.reciprocal(jnp.sum(p, axis=-1, keepdims=True), approx=True)
        ctx = jnp.einsum("bqk,bkd->bqd", p, vh, preferred_element_type=f32)
        return merge_heads(ctx, s_q)       # (B*s_q, D)

    # ---- encoder layer (post-norm, ReLU FFN) ----
    # enc_w[l] columns: [wqkv 0:96 | wo 96:128 | w1 128:192]
    # enc_v[l] rows:    0 bqkv, 1 bo, 2 b1, 3 b2, 4 ln1_g, 5 ln1_b, 6 ln2_g, 7 ln2_b
    def encoder_layer(x2, l):
        w = enc_w_ref[l]                   # (32, 192)
        v = enc_v_ref[l]                   # (8, 96)
        qkv = dense(x2, w[:, 0:3 * D], v[0:1, 0:3 * D])
        attn = attention(qkv[:, 0:D], qkv[:, D:2 * D], qkv[:, 2 * D:3 * D],
                         enc_bias, S_src, S_src)
        attn = dense(attn, w[:, 3 * D:4 * D], v[1:2, 0:D])
        x2 = layernorm(x2 + attn, v[4:5, 0:D], v[5:6, 0:D])
        h1 = jnp.maximum(dense(x2, w[:, 4 * D:4 * D + F], v[2:3, 0:F]), 0.0)
        ff = dense(h1, enc_w2_ref[l], v[3:4, 0:D])
        return layernorm(x2 + ff, v[6:7, 0:D], v[7:8, 0:D])

    # ---- decoder layer ----
    # dec_w[l] cols: [sa_wqkv 0:96 | sa_wo 96:128 | ca_wq 128:160 | ca_wkv 160:224 |
    #                 ca_wo 224:256 | w1 256:320]
    # dec_v[l] rows: 0 sa_bqkv, 1 sa_bo, 2 ca_bq, 3 ca_bkv, 4 ca_bo, 5 b1, 6 b2,
    #                7 ln1_g, 8 ln1_b, 9 ln2_g, 10 ln2_b, 11 ln3_g, 12 ln3_b
    def decoder_layer(y2, mem2, l):
        w = dec_w_ref[l]                   # (32, 320)
        v = dec_v_ref[l]                   # (13, 96)
        qkv = dense(y2, w[:, 0:3 * D], v[0:1, 0:3 * D])
        sa = attention(qkv[:, 0:D], qkv[:, D:2 * D], qkv[:, 2 * D:3 * D],
                       self_bias, S_tgt, S_tgt)
        sa = dense(sa, w[:, 3 * D:4 * D], v[1:2, 0:D])
        y2 = layernorm(y2 + sa, v[7:8, 0:D], v[8:9, 0:D])

        q = dense(y2, w[:, 4 * D:5 * D], v[2:3, 0:D])
        kv = dense(mem2, w[:, 5 * D:7 * D], v[3:4, 0:2 * D])
        ca = attention(q, kv[:, 0:D], kv[:, D:2 * D], cross_bias, S_tgt, S_src)
        ca = dense(ca, w[:, 7 * D:8 * D], v[4:5, 0:D])
        y2 = layernorm(y2 + ca, v[9:10, 0:D], v[10:11, 0:D])

        h1 = jnp.maximum(dense(y2, w[:, 8 * D:8 * D + F], v[5:6, 0:F]), 0.0)
        ff = dense(h1, dec_w2_ref[l], v[6:7, 0:D])
        return layernorm(y2 + ff, v[11:12, 0:D], v[12:13, 0:D])

    # ---- encoder stack (tokens flattened onto sublanes) ----
    tv = tail_v_ref[...]                   # (5, 128): enc_g, enc_b, dec_g, dec_b, fc_b
    x2 = embed(src_ids_ref)                # (B*S_src, D)
    for l in range(NUM_LAYERS):
        x2 = encoder_layer(x2, l)
    mem2 = layernorm(x2, tv[0:1, 0:D], tv[1:2, 0:D])

    # ---- decoder stack ----
    y2 = embed(tgt_ids_ref)                # (B*S_tgt, D)
    for l in range(NUM_LAYERS):
        y2 = decoder_layer(y2, mem2, l)
    y2 = layernorm(y2, tv[2:3, 0:D], tv[3:4, 0:D])

    # ---- output projection (lane-dense: VOCAB == 128) ----
    logits = dense(y2, fc_w_ref[...], tv[4:5, :])       # (B*S_tgt, V)
    out_ref[...] = logits.reshape(out_ref.shape)


# ----------------------------------------------------------------------------------
# Wrapper
# ----------------------------------------------------------------------------------
def seq2seq_forward(packed, src_ids, tgt_ids, src_key_padding_mask, tgt_key_padding_mask):
    B, S_src = src_ids.shape
    S_tgt = tgt_ids.shape[1]

    # Additive key-padding rows (0 = attend, NEG_INF = masked); (B,S,S) biases + causal
    # mask are built inside the kernel.
    src_add = jnp.where(src_key_padding_mask, NEG_INF, 0.0).astype(jnp.float32)
    tgt_add = jnp.where(tgt_key_padding_mask, NEG_INF, 0.0).astype(jnp.float32)
    src_ids2 = src_ids.reshape(B * S_src, 1).astype(jnp.int32)
    tgt_ids2 = tgt_ids.reshape(B * S_tgt, 1).astype(jnp.int32)

    return pl.pallas_call(
        seq2seq_kernel,
        out_shape=jax.ShapeDtypeStruct((B, S_tgt, VOCAB), jnp.float32),
    )(src_ids2, tgt_ids2, src_add, tgt_add,
      packed["emb"], packed["enc_w"], packed["enc_w2"], packed["enc_v"],
      packed["dec_w"], packed["dec_w2"], packed["dec_v"],
      packed["fc_w"], packed["tail_v"])


# ----------------------------------------------------------------------------------
# Parameters (torch-like layout) and one-time host-side packing
# ----------------------------------------------------------------------------------
def init_params(key):
    ks = iter(jax.random.split(key, 64))
    L, D, F, V = NUM_LAYERS, D_MODEL, DIM_FF, VOCAB

    def rnd(shape, scale=0.05):
        return jax.random.normal(next(ks), shape, jnp.float32) * scale

    def attn(prefix=""):
        # torch MultiheadAttention layout: in_proj_weight (3D, D) = [q; k; v], (out, in)
        return {prefix + "in_w": rnd((L, 3 * D, D)), prefix + "in_b": rnd((L, 3 * D), 0.02),
                prefix + "out_w": rnd((L, D, D)), prefix + "out_b": rnd((L, D), 0.02)}

    def ln(name):
        return {name + "_g": jnp.ones((L, D), jnp.float32),
                name + "_b": jnp.zeros((L, D), jnp.float32)}

    ffn = lambda: {"lin1_w": rnd((L, F, D)), "lin1_b": rnd((L, F), 0.02),
                   "lin2_w": rnd((L, D, F)), "lin2_b": rnd((L, D), 0.02)}

    enc = {**attn(), **ln("n1"), **ln("n2"), **ffn()}
    dec = {**attn("sa_"), **attn("ca_"), **ln("n1"), **ln("n2"), **ln("n3"), **ffn()}

    return {"embedding": rnd((V, D), 0.02), "enc": enc, "dec": dec,
            "enc_norm_g": jnp.ones((D,), jnp.float32), "enc_norm_b": jnp.zeros((D,), jnp.float32),
            "dec_norm_g": jnp.ones((D,), jnp.float32), "dec_norm_b": jnp.zeros((D,), jnp.float32),
            "fc_w": rnd((V, D)), "fc_b": rnd((V,), 0.02)}


def pack_params(p):
    """One-time host-side prep: transpose to (in,out), fuse QKV, fold 1/sqrt(head_dim)
    into Wq/bq, fold sqrt(d_model) into the embedding table, and pack everything into
    a handful of VMEM-friendly slabs (13 kernel operands total)."""
    D = D_MODEL
    sc = 1.0 / math.sqrt(HEAD_DIM)

    def T(w):                                   # (L, out, in) -> (L, in, out)
        return jnp.swapaxes(w, 1, 2)

    def qkv_pack(in_w, in_b):                   # fused (L, D, 3D) / (L, 3D), q scaled
        wq = jnp.swapaxes(in_w[:, :D, :], 1, 2) * sc
        wkv = jnp.swapaxes(in_w[:, D:, :], 1, 2)
        bq = in_b[:, :D] * sc
        bkv = in_b[:, D:]
        return jnp.concatenate([wq, wkv], axis=2), jnp.concatenate([bq, bkv], axis=1)

    def vec_rows(rows):                         # list of (L, k) -> (L, n_rows, VEC_W)
        padded = [jnp.pad(r, ((0, 0), (0, VEC_W - r.shape[1])))[:, None, :] for r in rows]
        return jnp.concatenate(padded, axis=1)

    e = p["enc"]
    enc_wqkv, enc_bqkv = qkv_pack(e["in_w"], e["in_b"])
    enc_w = jnp.concatenate([enc_wqkv, T(e["out_w"]), T(e["lin1_w"])], axis=2)   # (L,32,192)
    enc_w2 = T(e["lin2_w"])                                                      # (L,64,32)
    enc_v = vec_rows([enc_bqkv, e["out_b"], e["lin1_b"], e["lin2_b"],
                      e["n1_g"], e["n1_b"], e["n2_g"], e["n2_b"]])               # (L,8,96)

    d = p["dec"]
    sa_wqkv, sa_bqkv = qkv_pack(d["sa_in_w"], d["sa_in_b"])
    ca_wq = T(d["ca_in_w"][:, :D, :]) * sc
    ca_wkv = T(d["ca_in_w"][:, D:, :])
    ca_bq = d["ca_in_b"][:, :D] * sc
    ca_bkv = d["ca_in_b"][:, D:]
    dec_w = jnp.concatenate([sa_wqkv, T(d["sa_out_w"]), ca_wq, ca_wkv,
                             T(d["ca_out_w"]), T(d["lin1_w"])], axis=2)          # (L,32,320)
    dec_w2 = T(d["lin2_w"])                                                      # (L,64,32)
    dec_v = vec_rows([sa_bqkv, d["sa_out_b"], ca_bq, ca_bkv, d["ca_out_b"],
                      d["lin1_b"], d["lin2_b"],
                      d["n1_g"], d["n1_b"], d["n2_g"], d["n2_b"],
                      d["n3_g"], d["n3_b"]])                                     # (L,13,96)

    def row128(v):
        v = v.reshape(-1)
        return jnp.pad(v, (0, VOCAB - v.shape[0]))[None, :]

    tail_v = jnp.concatenate([row128(p["enc_norm_g"]), row128(p["enc_norm_b"]),
                              row128(p["dec_norm_g"]), row128(p["dec_norm_b"]),
                              p["fc_b"].reshape(1, VOCAB)], axis=0)              # (5,128)

    return {"emb": p["embedding"] * math.sqrt(D_MODEL),
            "enc_w": enc_w, "enc_w2": enc_w2, "enc_v": enc_v,
            "dec_w": dec_w, "dec_w2": dec_w2, "dec_v": dec_v,
            "fc_w": p["fc_w"].T, "tail_v": tail_v}


# ----------------------------------------------------------------------------------
if __name__ == "__main__":
    key = jax.random.PRNGKey(0)
    k_param, k_src, k_tgt = jax.random.split(key, 3)
    params = init_params(k_param)
    packed = jax.tree_util.tree_map(jax.block_until_ready, pack_params(params))  # host-side, once

    B, S_SRC, S_TGT = 2, 8, 8
    src_ids = jax.random.randint(k_src, (B, S_SRC), 0, VOCAB, dtype=jnp.int32)
    tgt_ids = jax.random.randint(k_tgt, (B, S_TGT), 0, VOCAB, dtype=jnp.int32)
    # key-padding masks (True = padded); every query row keeps at least one valid key.
    src_kpm = jnp.array([[False] * S_SRC,
                         [False] * (S_SRC - 2) + [True] * 2])
    tgt_kpm = jnp.array([[False] * S_TGT,
                         [False] * (S_TGT - 1) + [True]])

    fwd = jax.jit(seq2seq_forward)
    logits = jax.block_until_ready(fwd(packed, src_ids, tgt_ids, src_kpm, tgt_kpm))

    assert logits.shape == (B, S_TGT, VOCAB)
    assert bool(jnp.all(jnp.isfinite(logits)))
    print("KERNEL_OK")
</pallas_src>

<mosaic_0001>
module attributes {stable_mosaic.version = 11 : i64} {
  func.func @seq2seq_kernel(%arg0: memref<16x1xi32, #tpu.memory_space<vmem>>, %arg1: memref<16x1xi32, #tpu.memory_space<vmem>>, %arg2: memref<2x8xf32, #tpu.memory_space<vmem>>, %arg3: memref<2x8xf32, #tpu.memory_space<vmem>>, %arg4: memref<128x32xf32, #tpu.memory_space<vmem>>, %arg5: memref<3x32x192xf32, #tpu.memory_space<vmem>>, %arg6: memref<3x64x32xf32, #tpu.memory_space<vmem>>, %arg7: memref<3x8x96xf32, #tpu.memory_space<vmem>>, %arg8: memref<3x32x320xf32, #tpu.memory_space<vmem>>, %arg9: memref<3x64x32xf32, #tpu.memory_space<vmem>>, %arg10: memref<3x13x96xf32, #tpu.memory_space<vmem>>, %arg11: memref<32x128xf32, #tpu.memory_space<vmem>>, %arg12: memref<5x128xf32, #tpu.memory_space<vmem>>, %arg13: memref<2x8x128xf32, #tpu.memory_space<vmem>>) attributes {dimension_semantics = [], scalar_prefetch = 0 : i64, scratch_operands = 0 : i64, tpu.core_type = #tpu.core_type<tc>} {
    %c0 = arith.constant 0 : index
    %c0_0 = arith.constant 0 : index
    %0 = vector.load %arg4[%c0, %c0_0] : memref<128x32xf32, #tpu.memory_space<vmem>>, vector<128x32xf32>
    %c0_1 = arith.constant 0 : index
    %c0_2 = arith.constant 0 : index
    %1 = vector.load %arg2[%c0_1, %c0_2] : memref<2x8xf32, #tpu.memory_space<vmem>>, vector<2x8xf32>
    %c0_3 = arith.constant 0 : index
    %c0_4 = arith.constant 0 : index
    %2 = vector.load %arg3[%c0_3, %c0_4] : memref<2x8xf32, #tpu.memory_space<vmem>>, vector<2x8xf32>
    %3 = tpu.iota {dimensions = array<i32: 0>} : vector<8x8xi32>
    %4 = tpu.iota {dimensions = array<i32: 1>} : vector<8x8xi32>
    %5 = arith.cmpi sgt, %4, %3 : vector<8x8xi32>
    %cst = arith.constant -1.000000e+09 : f32
    %cst_5 = arith.constant 0.000000e+00 : f32
    %6 = vector.broadcast %cst : f32 to vector<8x8xf32>
    %7 = vector.broadcast %cst_5 : f32 to vector<8x8xf32>
    %8 = arith.select %5, %6, %7 : vector<8x8xi1>, vector<8x8xf32>
    %9 = vector.shape_cast %1 : vector<2x8xf32> to vector<2x1x8xf32>
    %10 = vector.shape_cast %9 : vector<2x1x8xf32> to vector<2x1x8xf32>
    %11 = vector.broadcast %10 : vector<2x1x8xf32> to vector<2x8x8xf32>
    %12 = tpu.concatenate %11, %11, %11, %11 in 0 : vector<2x8x8xf32>, vector<2x8x8xf32>, vector<2x8x8xf32>, vector<2x8x8xf32> -> vector<8x8x8xf32>
    %13 = vector.shape_cast %8 : vector<8x8xf32> to vector<1x8x8xf32>
    %14 = vector.shape_cast %2 : vector<2x8xf32> to vector<2x1x8xf32>
    %15 = vector.broadcast %13 : vector<1x8x8xf32> to vector<2x8x8xf32>
    %16 = vector.broadcast %14 : vector<2x1x8xf32> to vector<2x8x8xf32>
    %17 = arith.addf %15, %16 : vector<2x8x8xf32>
    %18 = tpu.concatenate %17, %17, %17, %17 in 0 : vector<2x8x8xf32>, vector<2x8x8xf32>, vector<2x8x8xf32>, vector<2x8x8xf32> -> vector<8x8x8xf32>
    %19 = vector.shape_cast %1 : vector<2x8xf32> to vector<2x1x8xf32>
    %20 = vector.shape_cast %19 : vector<2x1x8xf32> to vector<2x1x8xf32>
    %21 = vector.broadcast %20 : vector<2x1x8xf32> to vector<2x8x8xf32>
    %22 = tpu.concatenate %21, %21, %21, %21 in 0 : vector<2x8x8xf32>, vector<2x8x8xf32>, vector<2x8x8xf32>, vector<2x8x8xf32> -> vector<8x8x8xf32>
    %c0_6 = arith.constant 0 : index
    %c0_7 = arith.constant 0 : index
    %23 = vector.load %arg12[%c0_6, %c0_7] : memref<5x128xf32, #tpu.memory_space<vmem>>, vector<5x128xf32>
    %c0_8 = arith.constant 0 : index
    %c0_9 = arith.constant 0 : index
    %24 = vector.load %arg0[%c0_8, %c0_9] : memref<16x1xi32, #tpu.memory_space<vmem>>, vector<16x1xi32>
    %25 = tpu.iota {dimensions = array<i32: 1>} : vector<16x128xi32>
    %26 = vector.broadcast %24 : vector<16x1xi32> to vector<16x128xi32>
    %27 = arith.cmpi eq, %25, %26 : vector<16x128xi32>
    %28 = arith.extui %27 : vector<16x128xi1> to vector<16x128xi32>
    %29 = arith.sitofp %28 : vector<16x128xi32> to vector<16x128xf32>
    %cst_10 = arith.constant dense<0.000000e+00> : vector<16x32xf32>
    %30 = tpu.matmul %29, %0, %cst_10 {dimension_numbers = #tpu.dot_dimension_numbers<[1], [0], [0], [1], [0, 0, 1, 1], [], []>} : vector<16x128xf32>, vector<128x32xf32>, vector<16x32xf32> -> vector<16x32xf32>
    %c0_11 = arith.constant 0 : index
    %c0_12 = arith.constant 0 : index
    %c0_13 = arith.constant 0 : index
    %31 = vector.load %arg5[%c0_11, %c0_12, %c0_13] : memref<3x32x192xf32, #tpu.memory_space<vmem>>, vector<1x32x192xf32>
    %32 = vector.shape_cast %31 : vector<1x32x192xf32> to vector<32x192xf32>
    %c0_14 = arith.constant 0 : index
    %c0_15 = arith.constant 0 : index
    %c0_16 = arith.constant 0 : index
    %33 = vector.load %arg7[%c0_14, %c0_15, %c0_16] : memref<3x8x96xf32, #tpu.memory_space<vmem>>, vector<1x8x96xf32>
    %34 = vector.shape_cast %33 : vector<1x8x96xf32> to vector<8x96xf32>
    %35 = vector.extract_strided_slice %32 {offsets = [0, 0], sizes = [32, 96], strides = [1, 1]} : vector<32x192xf32> to vector<32x96xf32>
    %36 = vector.extract_strided_slice %34 {offsets = [0, 0], sizes = [1, 96], strides = [1, 1]} : vector<8x96xf32> to vector<1x96xf32>
    %cst_17 = arith.constant dense<0.000000e+00> : vector<16x96xf32>
    %37 = tpu.matmul %30, %35, %cst_17 {dimension_numbers = #tpu.dot_dimension_numbers<[1], [0], [0], [1], [0, 0, 1, 1], [], []>} : vector<16x32xf32>, vector<32x96xf32>, vector<16x96xf32> -> vector<16x96xf32>
    %38 = vector.broadcast %36 : vector<1x96xf32> to vector<16x96xf32>
    %39 = arith.addf %37, %38 : vector<16x96xf32>
    %40 = vector.extract_strided_slice %39 {offsets = [0, 0], sizes = [16, 32], strides = [1, 1]} : vector<16x96xf32> to vector<16x32xf32>
    %41 = vector.extract_strided_slice %39 {offsets = [0, 32], sizes = [16, 32], strides = [1, 1]} : vector<16x96xf32> to vector<16x32xf32>
    %42 = vector.extract_strided_slice %39 {offsets = [0, 64], sizes = [16, 32], strides = [1, 1]} : vector<16x96xf32> to vector<16x32xf32>
    %43 = vector.extract_strided_slice %40 {offsets = [0, 0], sizes = [16, 8], strides = [1, 1]} : vector<16x32xf32> to vector<16x8xf32>
    %44 = vector.shape_cast %43 : vector<16x8xf32> to vector<2x8x8xf32>
    %45 = vector.extract_strided_slice %40 {offsets = [0, 8], sizes = [16, 8], strides = [1, 1]} : vector<16x32xf32> to vector<16x8xf32>
    %46 = vector.shape_cast %45 : vector<16x8xf32> to vector<2x8x8xf32>
    %47 = vector.extract_strided_slice %40 {offsets = [0, 16], sizes = [16, 8], strides = [1, 1]} : vector<16x32xf32> to vector<16x8xf32>
    %48 = vector.shape_cast %47 : vector<16x8xf32> to vector<2x8x8xf32>
    %49 = vector.extract_strided_slice %40 {offsets = [0, 24], sizes = [16, 8], strides = [1, 1]} : vector<16x32xf32> to vector<16x8xf32>
    %50 = vector.shape_cast %49 : vector<16x8xf32> to vector<2x8x8xf32>
    %51 = tpu.concatenate %44, %46, %48, %50 in 0 : vector<2x8x8xf32>, vector<2x8x8xf32>, vector<2x8x8xf32>, vector<2x8x8xf32> -> vector<8x8x8xf32>
    %52 = vector.extract_strided_slice %41 {offsets = [0, 0], sizes = [16, 8], strides = [1, 1]} : vector<16x32xf32> to vector<16x8xf32>
    %53 = vector.shape_cast %52 : vector<16x8xf32> to vector<2x8x8xf32>
    %54 = vector.extract_strided_slice %41 {offsets = [0, 8], sizes = [16, 8], strides = [1, 1]} : vector<16x32xf32> to vector<16x8xf32>
    %55 = vector.shape_cast %54 : vector<16x8xf32> to vector<2x8x8xf32>
    %56 = vector.extract_strided_slice %41 {offsets = [0, 16], sizes = [16, 8], strides = [1, 1]} : vector<16x32xf32> to vector<16x8xf32>
    %57 = vector.shape_cast %56 : vector<16x8xf32> to vector<2x8x8xf32>
    %58 = vector.extract_strided_slice %41 {offsets = [0, 24], sizes = [16, 8], strides = [1, 1]} : vector<16x32xf32> to vector<16x8xf32>
    %59 = vector.shape_cast %58 : vector<16x8xf32> to vector<2x8x8xf32>
    %60 = tpu.concatenate %53, %55, %57, %59 in 0 : vector<2x8x8xf32>, vector<2x8x8xf32>, vector<2x8x8xf32>, vector<2x8x8xf32> -> vector<8x8x8xf32>
    %61 = vector.extract_strided_slice %42 {offsets = [0, 0], sizes = [16, 8], strides = [1, 1]} : vector<16x32xf32> to vector<16x8xf32>
    %62 = vector.shape_cast %61 : vector<16x8xf32> to vector<2x8x8xf32>
    %63 = vector.extract_strided_slice %42 {offsets = [0, 8], sizes = [16, 8], strides = [1, 1]} : vector<16x32xf32> to vector<16x8xf32>
    %64 = vector.shape_cast %63 : vector<16x8xf32> to vector<2x8x8xf32>
    %65 = vector.extract_strided_slice %42 {offsets = [0, 16], sizes = [16, 8], strides = [1, 1]} : vector<16x32xf32> to vector<16x8xf32>
    %66 = vector.shape_cast %65 : vector<16x8xf32> to vector<2x8x8xf32>
    %67 = vector.extract_strided_slice %42 {offsets = [0, 24], sizes = [16, 8], strides = [1, 1]} : vector<16x32xf32> to vector<16x8xf32>
    %68 = vector.shape_cast %67 : vector<16x8xf32> to vector<2x8x8xf32>
    %69 = tpu.concatenate %62, %64, %66, %68 in 0 : vector<2x8x8xf32>, vector<2x8x8xf32>, vector<2x8x8xf32>, vector<2x8x8xf32> -> vector<8x8x8xf32>
    "tpu.trace_start"() <{level = 10 : i32, message = "bqd,bkd->bqk"}> : () -> ()
    %cst_18 = arith.constant dense<0.000000e+00> : vector<8x8x8xf32>
    %70 = tpu.matmul %51, %60, %cst_18 {dimension_numbers = #tpu.dot_dimension_numbers<[2], [2], [1], [1], [0, 0, 0, 1, 1, 1], [0], [0]>} : vector<8x8x8xf32>, vector<8x8x8xf32>, vector<8x8x8xf32> -> vector<8x8x8xf32>
    "tpu.trace_stop"() : () -> ()
    %71 = arith.addf %70, %12 : vector<8x8x8xf32>
    %cst_19 = arith.constant dense<0xFF800000> : vector<8x8xf32>
    %72 = vector.multi_reduction <maximumf>, %71, %cst_19 [2] : vector<8x8x8xf32> to vector<8x8xf32>
    %73 = vector.shape_cast %72 : vector<8x8xf32> to vector<8x8x1xf32>
    %74 = vector.broadcast %73 : vector<8x8x1xf32> to vector<8x8x8xf32>
    %75 = arith.subf %71, %74 : vector<8x8x8xf32>
    %76 = math.exp %75 : vector<8x8x8xf32>
    %cst_20 = arith.constant dense<0.000000e+00> : vector<8x8xf32>
    %77 = vector.multi_reduction <add>, %76, %cst_20 [2] : vector<8x8x8xf32> to vector<8x8xf32>
    %78 = vector.shape_cast %77 : vector<8x8xf32> to vector<8x8x1xf32>
    %79 = tpu.reciprocal %78 {approx = true} : vector<8x8x1xf32> -> vector<8x8x1xf32>
    %80 = vector.broadcast %79 : vector<8x8x1xf32> to vector<8x8x8xf32>
    %81 = arith.mulf %76, %80 : vector<8x8x8xf32>
    "tpu.trace_start"() <{level = 10 : i32, message = "bqk,bkd->bqd"}> : () -> ()
    %cst_21 = arith.constant dense<0.000000e+00> : vector<8x8x8xf32>
    %82 = tpu.matmul %81, %69, %cst_21 {dimension_numbers = #tpu.dot_dimension_numbers<[2], [1], [1], [2], [0, 0, 0, 1, 1, 2], [0], [0]>} : vector<8x8x8xf32>, vector<8x8x8xf32>, vector<8x8x8xf32> -> vector<8x8x8xf32>
    "tpu.trace_stop"() : () -> ()
    %83 = vector.extract_strided_slice %82 {offsets = [0, 0, 0], sizes = [2, 8, 8], strides = [1, 1, 1]} : vector<8x8x8xf32> to vector<2x8x8xf32>
    %84 = vector.shape_cast %83 : vector<2x8x8xf32> to vector<16x8xf32>
    %85 = vector.extract_strided_slice %82 {offsets = [2, 0, 0], sizes = [2, 8, 8], strides = [1, 1, 1]} : vector<8x8x8xf32> to vector<2x8x8xf32>
    %86 = vector.shape_cast %85 : vector<2x8x8xf32> to vector<16x8xf32>
    %87 = vector.extract_strided_slice %82 {offsets = [4, 0, 0], sizes = [2, 8, 8], strides = [1, 1, 1]} : vector<8x8x8xf32> to vector<2x8x8xf32>
    %88 = vector.shape_cast %87 : vector<2x8x8xf32> to vector<16x8xf32>
    %89 = vector.extract_strided_slice %82 {offsets = [6, 0, 0], sizes = [2, 8, 8], strides = [1, 1, 1]} : vector<8x8x8xf32> to vector<2x8x8xf32>
    %90 = vector.shape_cast %89 : vector<2x8x8xf32> to vector<16x8xf32>
    %91 = tpu.concatenate %84, %86, %88, %90 in 1 : vector<16x8xf32>, vector<16x8xf32>, vector<16x8xf32>, vector<16x8xf32> -> vector<16x32xf32>
    %92 = vector.extract_strided_slice %32 {offsets = [0, 96], sizes = [32, 32], strides = [1, 1]} : vector<32x192xf32> to vector<32x32xf32>
    %93 = vector.extract_strided_slice %34 {offsets = [1, 0], sizes = [1, 32], strides = [1, 1]} : vector<8x96xf32> to vector<1x32xf32>
    %cst_22 = arith.constant dense<0.000000e+00> : vector<16x32xf32>
    %94 = tpu.matmul %91, %92, %cst_22 {dimension_numbers = #tpu.dot_dimension_numbers<[1], [0], [0], [1], [0, 0, 1, 1], [], []>} : vector<16x32xf32>, vector<32x32xf32>, vector<16x32xf32> -> vector<16x32xf32>
    %95 = vector.broadcast %93 : vector<1x32xf32> to vector<16x32xf32>
    %96 = arith.addf %94, %95 : vector<16x32xf32>
    %97 = arith.addf %30, %96 : vector<16x32xf32>
    %98 = vector.extract_strided_slice %34 {offsets = [4, 0], sizes = [1, 32], strides = [1, 1]} : vector<8x96xf32> to vector<1x32xf32>
    %99 = vector.extract_strided_slice %34 {offsets = [5, 0], sizes = [1, 32], strides = [1, 1]} : vector<8x96xf32> to vector<1x32xf32>
    %cst_23 = arith.constant dense<0.000000e+00> : vector<16xf32>
    %100 = vector.multi_reduction <add>, %97, %cst_23 [1] : vector<16x32xf32> to vector<16xf32>
    %101 = vector.shape_cast %100 : vector<16xf32> to vector<16x1xf32>
    %cst_24 = arith.constant 3.200000e+01 : f32
    %102 = vector.broadcast %cst_24 : f32 to vector<16x1xf32>
    %103 = arith.divf %101, %102 : vector<16x1xf32>
    %104 = vector.broadcast %103 : vector<16x1xf32> to vector<16x32xf32>
    %105 = arith.subf %97, %104 : vector<16x32xf32>
    %106 = arith.mulf %105, %105 : vector<16x32xf32>
    %cst_25 = arith.constant dense<0.000000e+00> : vector<16xf32>
    %107 = vector.multi_reduction <add>, %106, %cst_25 [1] : vector<16x32xf32> to vector<16xf32>
    %108 = vector.shape_cast %107 : vector<16xf32> to vector<16x1xf32>
    %cst_26 = arith.constant 3.200000e+01 : f32
    %109 = vector.broadcast %cst_26 : f32 to vector<16x1xf32>
    %110 = arith.divf %108, %109 : vector<16x1xf32>
    %cst_27 = arith.constant 9.99999974E-6 : f32
    %111 = vector.broadcast %cst_27 : f32 to vector<16x1xf32>
    %112 = arith.addf %110, %111 : vector<16x1xf32>
    %113 = math.rsqrt %112 : vector<16x1xf32>
    %114 = vector.broadcast %113 : vector<16x1xf32> to vector<16x32xf32>
    %115 = arith.mulf %105, %114 : vector<16x32xf32>
    %116 = vector.broadcast %98 : vector<1x32xf32> to vector<16x32xf32>
    %117 = arith.mulf %115, %116 : vector<16x32xf32>
    %118 = vector.broadcast %99 : vector<1x32xf32> to vector<16x32xf32>
    %119 = arith.addf %117, %118 : vector<16x32xf32>
    %120 = vector.extract_strided_slice %32 {offsets = [0, 128], sizes = [32, 64], strides = [1, 1]} : vector<32x192xf32> to vector<32x64xf32>
    %121 = vector.extract_strided_slice %34 {offsets = [2, 0], sizes = [1, 64], strides = [1, 1]} : vector<8x96xf32> to vector<1x64xf32>
    %cst_28 = arith.constant dense<0.000000e+00> : vector<16x64xf32>
    %122 = tpu.matmul %119, %120, %cst_28 {dimension_numbers = #tpu.dot_dimension_numbers<[1], [0], [0], [1], [0, 0, 1, 1], [], []>} : vector<16x32xf32>, vector<32x64xf32>, vector<16x64xf32> -> vector<16x64xf32>
    %123 = vector.broadcast %121 : vector<1x64xf32> to vector<16x64xf32>
    %124 = arith.addf %122, %123 : vector<16x64xf32>
    %cst_29 = arith.constant 0.000000e+00 : f32
    %125 = vector.broadcast %cst_29 : f32 to vector<16x64xf32>
    %126 = arith.maximumf %124, %125 : vector<16x64xf32>
    %c0_30 = arith.constant 0 : index
    %c0_31 = arith.constant 0 : index
    %c0_32 = arith.constant 0 : index
    %127 = vector.load %arg6[%c0_30, %c0_31, %c0_32] : memref<3x64x32xf32, #tpu.memory_space<vmem>>, vector<1x64x32xf32>
    %128 = vector.shape_cast %127 : vector<1x64x32xf32> to vector<64x32xf32>
    %129 = vector.extract_strided_slice %34 {offsets = [3, 0], sizes = [1, 32], strides = [1, 1]} : vector<8x96xf32> to vector<1x32xf32>
    %cst_33 = arith.constant dense<0.000000e+00> : vector<16x32xf32>
    %130 = tpu.matmul %126, %128, %cst_33 {dimension_numbers = #tpu.dot_dimension_numbers<[1], [0], [0], [1], [0, 0, 1, 1], [], []>} : vector<16x64xf32>, vector<64x32xf32>, vector<16x32xf32> -> vector<16x32xf32>
    %131 = vector.broadcast %129 : vector<1x32xf32> to vector<16x32xf32>
    %132 = arith.addf %130, %131 : vector<16x32xf32>
    %133 = arith.addf %119, %132 : vector<16x32xf32>
    %134 = vector.extract_strided_slice %34 {offsets = [6, 0], sizes = [1, 32], strides = [1, 1]} : vector<8x96xf32> to vector<1x32xf32>
    %135 = vector.extract_strided_slice %34 {offsets = [7, 0], sizes = [1, 32], strides = [1, 1]} : vector<8x96xf32> to vector<1x32xf32>
    %cst_34 = arith.constant dense<0.000000e+00> : vector<16xf32>
    %136 = vector.multi_reduction <add>, %133, %cst_34 [1] : vector<16x32xf32> to vector<16xf32>
    %137 = vector.shape_cast %136 : vector<16xf32> to vector<16x1xf32>
    %cst_35 = arith.constant 3.200000e+01 : f32
    %138 = vector.broadcast %cst_35 : f32 to vector<16x1xf32>
    %139 = arith.divf %137, %138 : vector<16x1xf32>
    %140 = vector.broadcast %139 : vector<16x1xf32> to vector<16x32xf32>
    %141 = arith.subf %133, %140 : vector<16x32xf32>
    %142 = arith.mulf %141, %141 : vector<16x32xf32>
    %cst_36 = arith.constant dense<0.000000e+00> : vector<16xf32>
    %143 = vector.multi_reduction <add>, %142, %cst_36 [1] : vector<16x32xf32> to vector<16xf32>
    %144 = vector.shape_cast %143 : vector<16xf32> to vector<16x1xf32>
    %cst_37 = arith.constant 3.200000e+01 : f32
    %145 = vector.broadcast %cst_37 : f32 to vector<16x1xf32>
    %146 = arith.divf %144, %145 : vector<16x1xf32>
    %cst_38 = arith.constant 9.99999974E-6 : f32
    %147 = vector.broadcast %cst_38 : f32 to vector<16x1xf32>
    %148 = arith.addf %146, %147 : vector<16x1xf32>
    %149 = math.rsqrt %148 : vector<16x1xf32>
    %150 = vector.broadcast %149 : vector<16x1xf32> to vector<16x32xf32>
    %151 = arith.mulf %141, %150 : vector<16x32xf32>
    %152 = vector.broadcast %134 : vector<1x32xf32> to vector<16x32xf32>
    %153 = arith.mulf %151, %152 : vector<16x32xf32>
    %154 = vector.broadcast %135 : vector<1x32xf32> to vector<16x32xf32>
    %155 = arith.addf %153, %154 : vector<16x32xf32>
    %c1 = arith.constant 1 : index
    %c0_39 = arith.constant 0 : index
    %c0_40 = arith.constant 0 : index
    %156 = vector.load %arg5[%c1, %c0_39, %c0_40] : memref<3x32x192xf32, #tpu.memory_space<vmem>>, vector<1x32x192xf32>
    %157 = vector.shape_cast %156 : vector<1x32x192xf32> to vector<32x192xf32>
    %c1_41 = arith.constant 1 : index
    %c0_42 = arith.constant 0 : index
    %c0_43 = arith.constant 0 : index
    %158 = vector.load %arg7[%c1_41, %c0_42, %c0_43] : memref<3x8x96xf32, #tpu.memory_space<vmem>>, vector<1x8x96xf32>
    %159 = vector.shape_cast %158 : vector<1x8x96xf32> to vector<8x96xf32>
    %160 = vector.extract_strided_slice %157 {offsets = [0, 0], sizes = [32, 96], strides = [1, 1]} : vector<32x192xf32> to vector<32x96xf32>
    %161 = vector.extract_strided_slice %159 {offsets = [0, 0], sizes = [1, 96], strides = [1, 1]} : vector<8x96xf32> to vector<1x96xf32>
    %cst_44 = arith.constant dense<0.000000e+00> : vector<16x96xf32>
    %162 = tpu.matmul %155, %160, %cst_44 {dimension_numbers = #tpu.dot_dimension_numbers<[1], [0], [0], [1], [0, 0, 1, 1], [], []>} : vector<16x32xf32>, vector<32x96xf32>, vector<16x96xf32> -> vector<16x96xf32>
    %163 = vector.broadcast %161 : vector<1x96xf32> to vector<16x96xf32>
    %164 = arith.addf %162, %163 : vector<16x96xf32>
    %165 = vector.extract_strided_slice %164 {offsets = [0, 0], sizes = [16, 32], strides = [1, 1]} : vector<16x96xf32> to vector<16x32xf32>
    %166 = vector.extract_strided_slice %164 {offsets = [0, 32], sizes = [16, 32], strides = [1, 1]} : vector<16x96xf32> to vector<16x32xf32>
    %167 = vector.extract_strided_slice %164 {offsets = [0, 64], sizes = [16, 32], strides = [1, 1]} : vector<16x96xf32> to vector<16x32xf32>
    %168 = vector.extract_strided_slice %165 {offsets = [0, 0], sizes = [16, 8], strides = [1, 1]} : vector<16x32xf32> to vector<16x8xf32>
    %169 = vector.shape_cast %168 : vector<16x8xf32> to vector<2x8x8xf32>
    %170 = vector.extract_strided_slice %165 {offsets = [0, 8], sizes = [16, 8], strides = [1, 1]} : vector<16x32xf32> to vector<16x8xf32>
    %171 = vector.shape_cast %170 : vector<16x8xf32> to vector<2x8x8xf32>
    %172 = vector.extract_strided_slice %165 {offsets = [0, 16], sizes = [16, 8], strides = [1, 1]} : vector<16x32xf32> to vector<16x8xf32>
    %173 = vector.shape_cast %172 : vector<16x8xf32> to vector<2x8x8xf32>
    %174 = vector.extract_strided_slice %165 {offsets = [0, 24], sizes = [16, 8], strides = [1, 1]} : vector<16x32xf32> to vector<16x8xf32>
    %175 = vector.shape_cast %174 : vector<16x8xf32> to vector<2x8x8xf32>
    %176 = tpu.concatenate %169, %171, %173, %175 in 0 : vector<2x8x8xf32>, vector<2x8x8xf32>, vector<2x8x8xf32>, vector<2x8x8xf32> -> vector<8x8x8xf32>
    %177 = vector.extract_strided_slice %166 {offsets = [0, 0], sizes = [16, 8], strides = [1, 1]} : vector<16x32xf32> to vector<16x8xf32>
    %178 = vector.shape_cast %177 : vector<16x8xf32> to vector<2x8x8xf32>
    %179 = vector.extract_strided_slice %166 {offsets = [0, 8], sizes = [16, 8], strides = [1, 1]} : vector<16x32xf32> to vector<16x8xf32>
    %180 = vector.shape_cast %179 : vector<16x8xf32> to vector<2x8x8xf32>
    %181 = vector.extract_strided_slice %166 {offsets = [0, 16], sizes = [16, 8], strides = [1, 1]} : vector<16x32xf32> to vector<16x8xf32>
    %182 = vector.shape_cast %181 : vector<16x8xf32> to vector<2x8x8xf32>
    %183 = vector.extract_strided_slice %166 {offsets = [0, 24], sizes = [16, 8], strides = [1, 1]} : vector<16x32xf32> to vector<16x8xf32>
    %184 = vector.shape_cast %183 : vector<16x8xf32> to vector<2x8x8xf32>
    %185 = tpu.concatenate %178, %180, %182, %184 in 0 : vector<2x8x8xf32>, vector<2x8x8xf32>, vector<2x8x8xf32>, vector<2x8x8xf32> -> vector<8x8x8xf32>
    %186 = vector.extract_strided_slice %167 {offsets = [0, 0], sizes = [16, 8], strides = [1, 1]} : vector<16x32xf32> to vector<16x8xf32>
    %187 = vector.shape_cast %186 : vector<16x8xf32> to vector<2x8x8xf32>
    %188 = vector.extract_strided_slice %167 {offsets = [0, 8], sizes = [16, 8], strides = [1, 1]} : vector<16x32xf32> to vector<16x8xf32>
    %189 = vector.shape_cast %188 : vector<16x8xf32> to vector<2x8x8xf32>
    %190 = vector.extract_strided_slice %167 {offsets = [0, 16], sizes = [16, 8], strides = [1, 1]} : vector<16x32xf32> to vector<16x8xf32>
    %191 = vector.shape_cast %190 : vector<16x8xf32> to vector<2x8x8xf32>
    %192 = vector.extract_strided_slice %167 {offsets = [0, 24], sizes = [16, 8], strides = [1, 1]} : vector<16x32xf32> to vector<16x8xf32>
    %193 = vector.shape_cast %192 : vector<16x8xf32> to vector<2x8x8xf32>
    %194 = tpu.concatenate %187, %189, %191, %193 in 0 : vector<2x8x8xf32>, vector<2x8x8xf32>, vector<2x8x8xf32>, vector<2x8x8xf32> -> vector<8x8x8xf32>
    "tpu.trace_start"() <{level = 10 : i32, message = "bqd,bkd->bqk"}> : () -> ()
    %cst_45 = arith.constant dense<0.000000e+00> : vector<8x8x8xf32>
    %195 = tpu.matmul %176, %185, %cst_45 {dimension_numbers = #tpu.dot_dimension_numbers<[2], [2], [1], [1], [0, 0, 0, 1, 1, 1], [0], [0]>} : vector<8x8x8xf32>, vector<8x8x8xf32>, vector<8x8x8xf32> -> vector<8x8x8xf32>
    "tpu.trace_stop"() : () -> ()
    %196 = arith.addf %195, %12 : vector<8x8x8xf32>
    %cst_46 = arith.constant dense<0xFF800000> : vector<8x8xf32>
    %197 = vector.multi_reduction <maximumf>, %196, %cst_46 [2] : vector<8x8x8xf32> to vector<8x8xf32>
    %198 = vector.shape_cast %197 : vector<8x8xf32> to vector<8x8x1xf32>
    %199 = vector.broadcast %198 : vector<8x8x1xf32> to vector<8x8x8xf32>
    %200 = arith.subf %196, %199 : vector<8x8x8xf32>
    %201 = math.exp %200 : vector<8x8x8xf32>
    %cst_47 = arith.constant dense<0.000000e+00> : vector<8x8xf32>
    %202 = vector.multi_reduction <add>, %201, %cst_47 [2] : vector<8x8x8xf32> to vector<8x8xf32>
    %203 = vector.shape_cast %202 : vector<8x8xf32> to vector<8x8x1xf32>
    %204 = tpu.reciprocal %203 {approx = true} : vector<8x8x1xf32> -> vector<8x8x1xf32>
    %205 = vector.broadcast %204 : vector<8x8x1xf32> to vector<8x8x8xf32>
    %206 = arith.mulf %201, %205 : vector<8x8x8xf32>
    "tpu.trace_start"() <{level = 10 : i32, message = "bqk,bkd->bqd"}> : () -> ()
    %cst_48 = arith.constant dense<0.000000e+00> : vector<8x8x8xf32>
    %207 = tpu.matmul %206, %194, %cst_48 {dimension_numbers = #tpu.dot_dimension_numbers<[2], [1], [1], [2], [0, 0, 0, 1, 1, 2], [0], [0]>} : vector<8x8x8xf32>, vector<8x8x8xf32>, vector<8x8x8xf32> -> vector<8x8x8xf32>
    "tpu.trace_stop"() : () -> ()
    %208 = vector.extract_strided_slice %207 {offsets = [0, 0, 0], sizes = [2, 8, 8], strides = [1, 1, 1]} : vector<8x8x8xf32> to vector<2x8x8xf32>
    %209 = vector.shape_cast %208 : vector<2x8x8xf32> to vector<16x8xf32>
    %210 = vector.extract_strided_slice %207 {offsets = [2, 0, 0], sizes = [2, 8, 8], strides = [1, 1, 1]} : vector<8x8x8xf32> to vector<2x8x8xf32>
    %211 = vector.shape_cast %210 : vector<2x8x8xf32> to vector<16x8xf32>
    %212 = vector.extract_strided_slice %207 {offsets = [4, 0, 0], sizes = [2, 8, 8], strides = [1, 1, 1]} : vector<8x8x8xf32> to vector<2x8x8xf32>
    %213 = vector.shape_cast %212 : vector<2x8x8xf32> to vector<16x8xf32>
    %214 = vector.extract_strided_slice %207 {offsets = [6, 0, 0], sizes = [2, 8, 8], strides = [1, 1, 1]} : vector<8x8x8xf32> to vector<2x8x8xf32>
    %215 = vector.shape_cast %214 : vector<2x8x8xf32> to vector<16x8xf32>
    %216 = tpu.concatenate %209, %211, %213, %215 in 1 : vector<16x8xf32>, vector<16x8xf32>, vector<16x8xf32>, vector<16x8xf32> -> vector<16x32xf32>
    %217 = vector.extract_strided_slice %157 {offsets = [0, 96], sizes = [32, 32], strides = [1, 1]} : vector<32x192xf32> to vector<32x32xf32>
    %218 = vector.extract_strided_slice %159 {offsets = [1, 0], sizes = [1, 32], strides = [1, 1]} : vector<8x96xf32> to vector<1x32xf32>
    %cst_49 = arith.constant dense<0.000000e+00> : vector<16x32xf32>
    %219 = tpu.matmul %216, %217, %cst_49 {dimension_numbers = #tpu.dot_dimension_numbers<[1], [0], [0], [1], [0, 0, 1, 1], [], []>} : vector<16x32xf32>, vector<32x32xf32>, vector<16x32xf32> -> vector<16x32xf32>
    %220 = vector.broadcast %218 : vector<1x32xf32> to vector<16x32xf32>
    %221 = arith.addf %219, %220 : vector<16x32xf32>
    %222 = arith.addf %155, %221 : vector<16x32xf32>
    %223 = vector.extract_strided_slice %159 {offsets = [4, 0], sizes = [1, 32], strides = [1, 1]} : vector<8x96xf32> to vector<1x32xf32>
    %224 = vector.extract_strided_slice %159 {offsets = [5, 0], sizes = [1, 32], strides = [1, 1]} : vector<8x96xf32> to vector<1x32xf32>
    %cst_50 = arith.constant dense<0.000000e+00> : vector<16xf32>
    %225 = vector.multi_reduction <add>, %222, %cst_50 [1] : vector<16x32xf32> to vector<16xf32>
    %226 = vector.shape_cast %225 : vector<16xf32> to vector<16x1xf32>
    %cst_51 = arith.constant 3.200000e+01 : f32
    %227 = vector.broadcast %cst_51 : f32 to vector<16x1xf32>
    %228 = arith.divf %226, %227 : vector<16x1xf32>
    %229 = vector.broadcast %228 : vector<16x1xf32> to vector<16x32xf32>
    %230 = arith.subf %222, %229 : vector<16x32xf32>
    %231 = arith.mulf %230, %230 : vector<16x32xf32>
    %cst_52 = arith.constant dense<0.000000e+00> : vector<16xf32>
    %232 = vector.multi_reduction <add>, %231, %cst_52 [1] : vector<16x32xf32> to vector<16xf32>
    %233 = vector.shape_cast %232 : vector<16xf32> to vector<16x1xf32>
    %cst_53 = arith.constant 3.200000e+01 : f32
    %234 = vector.broadcast %cst_53 : f32 to vector<16x1xf32>
    %235 = arith.divf %233, %234 : vector<16x1xf32>
    %cst_54 = arith.constant 9.99999974E-6 : f32
    %236 = vector.broadcast %cst_54 : f32 to vector<16x1xf32>
    %237 = arith.addf %235, %236 : vector<16x1xf32>
    %238 = math.rsqrt %237 : vector<16x1xf32>
    %239 = vector.broadcast %238 : vector<16x1xf32> to vector<16x32xf32>
    %240 = arith.mulf %230, %239 : vector<16x32xf32>
    %241 = vector.broadcast %223 : vector<1x32xf32> to vector<16x32xf32>
    %242 = arith.mulf %240, %241 : vector<16x32xf32>
    %243 = vector.broadcast %224 : vector<1x32xf32> to vector<16x32xf32>
    %244 = arith.addf %242, %243 : vector<16x32xf32>
    %245 = vector.extract_strided_slice %157 {offsets = [0, 128], sizes = [32, 64], strides = [1, 1]} : vector<32x192xf32> to vector<32x64xf32>
    %246 = vector.extract_strided_slice %159 {offsets = [2, 0], sizes = [1, 64], strides = [1, 1]} : vector<8x96xf32> to vector<1x64xf32>
    %cst_55 = arith.constant dense<0.000000e+00> : vector<16x64xf32>
    %247 = tpu.matmul %244, %245, %cst_55 {dimension_numbers = #tpu.dot_dimension_numbers<[1], [0], [0], [1], [0, 0, 1, 1], [], []>} : vector<16x32xf32>, vector<32x64xf32>, vector<16x64xf32> -> vector<16x64xf32>
    %248 = vector.broadcast %246 : vector<1x64xf32> to vector<16x64xf32>
    %249 = arith.addf %247, %248 : vector<16x64xf32>
    %cst_56 = arith.constant 0.000000e+00 : f32
    %250 = vector.broadcast %cst_56 : f32 to vector<16x64xf32>
    %251 = arith.maximumf %249, %250 : vector<16x64xf32>
    %c1_57 = arith.constant 1 : index
    %c0_58 = arith.constant 0 : index
    %c0_59 = arith.constant 0 : index
    %252 = vector.load %arg6[%c1_57, %c0_58, %c0_59] : memref<3x64x32xf32, #tpu.memory_space<vmem>>, vector<1x64x32xf32>
    %253 = vector.shape_cast %252 : vector<1x64x32xf32> to vector<64x32xf32>
    %254 = vector.extract_strided_slice %159 {offsets = [3, 0], sizes = [1, 32], strides = [1, 1]} : vector<8x96xf32> to vector<1x32xf32>
    %cst_60 = arith.constant dense<0.000000e+00> : vector<16x32xf32>
    %255 = tpu.matmul %251, %253, %cst_60 {dimension_numbers = #tpu.dot_dimension_numbers<[1], [0], [0], [1], [0, 0, 1, 1], [], []>} : vector<16x64xf32>, vector<64x32xf32>, vector<16x32xf32> -> vector<16x32xf32>
    %256 = vector.broadcast %254 : vector<1x32xf32> to vector<16x32xf32>
    %257 = arith.addf %255, %256 : vector<16x32xf32>
    %258 = arith.addf %244, %257 : vector<16x32xf32>
    %259 = vector.extract_strided_slice %159 {offsets = [6, 0], sizes = [1, 32], strides = [1, 1]} : vector<8x96xf32> to vector<1x32xf32>
    %260 = vector.extract_strided_slice %159 {offsets = [7, 0], sizes = [1, 32], strides = [1, 1]} : vector<8x96xf32> to vector<1x32xf32>
    %cst_61 = arith.constant dense<0.000000e+00> : vector<16xf32>
    %261 = vector.multi_reduction <add>, %258, %cst_61 [1] : vector<16x32xf32> to vector<16xf32>
    %262 = vector.shape_cast %261 : vector<16xf32> to vector<16x1xf32>
    %cst_62 = arith.constant 3.200000e+01 : f32
    %263 = vector.broadcast %cst_62 : f32 to vector<16x1xf32>
    %264 = arith.divf %262, %263 : vector<16x1xf32>
    %265 = vector.broadcast %264 : vector<16x1xf32> to vector<16x32xf32>
    %266 = arith.subf %258, %265 : vector<16x32xf32>
    %267 = arith.mulf %266, %266 : vector<16x32xf32>
    %cst_63 = arith.constant dense<0.000000e+00> : vector<16xf32>
    %268 = vector.multi_reduction <add>, %267, %cst_63 [1] : vector<16x32xf32> to vector<16xf32>
    %269 = vector.shape_cast %268 : vector<16xf32> to vector<16x1xf32>
    %cst_64 = arith.constant 3.200000e+01 : f32
    %270 = vector.broadcast %cst_64 : f32 to vector<16x1xf32>
    %271 = arith.divf %269, %270 : vector<16x1xf32>
    %cst_65 = arith.constant 9.99999974E-6 : f32
    %272 = vector.broadcast %cst_65 : f32 to vector<16x1xf32>
    %273 = arith.addf %271, %272 : vector<16x1xf32>
    %274 = math.rsqrt %273 : vector<16x1xf32>
    %275 = vector.broadcast %274 : vector<16x1xf32> to vector<16x32xf32>
    %276 = arith.mulf %266, %275 : vector<16x32xf32>
    %277 = vector.broadcast %259 : vector<1x32xf32> to vector<16x32xf32>
    %278 = arith.mulf %276, %277 : vector<16x32xf32>
    %279 = vector.broadcast %260 : vector<1x32xf32> to vector<16x32xf32>
    %280 = arith.addf %278, %279 : vector<16x32xf32>
    %c2 = arith.constant 2 : index
    %c0_66 = arith.constant 0 : index
    %c0_67 = arith.constant 0 : index
    %281 = vector.load %arg5[%c2, %c0_66, %c0_67] : memref<3x32x192xf32, #tpu.memory_space<vmem>>, vector<1x32x192xf32>
    %282 = vector.shape_cast %281 : vector<1x32x192xf32> to vector<32x192xf32>
    %c2_68 = arith.constant 2 : index
    %c0_69 = arith.constant 0 : index
    %c0_70 = arith.constant 0 : index
    %283 = vector.load %arg7[%c2_68, %c0_69, %c0_70] : memref<3x8x96xf32, #tpu.memory_space<vmem>>, vector<1x8x96xf32>
    %284 = vector.shape_cast %283 : vector<1x8x96xf32> to vector<8x96xf32>
    %285 = vector.extract_strided_slice %282 {offsets = [0, 0], sizes = [32, 96], strides = [1, 1]} : vector<32x192xf32> to vector<32x96xf32>
    %286 = vector.extract_strided_slice %284 {offsets = [0, 0], sizes = [1, 96], strides = [1, 1]} : vector<8x96xf32> to vector<1x96xf32>
    %cst_71 = arith.constant dense<0.000000e+00> : vector<16x96xf32>
    %287 = tpu.matmul %280, %285, %cst_71 {dimension_numbers = #tpu.dot_dimension_numbers<[1], [0], [0], [1], [0, 0, 1, 1], [], []>} : vector<16x32xf32>, vector<32x96xf32>, vector<16x96xf32> -> vector<16x96xf32>
    %288 = vector.broadcast %286 : vector<1x96xf32> to vector<16x96xf32>
    %289 = arith.addf %287, %288 : vector<16x96xf32>
    %290 = vector.extract_strided_slice %289 {offsets = [0, 0], sizes = [16, 32], strides = [1, 1]} : vector<16x96xf32> to vector<16x32xf32>
    %291 = vector.extract_strided_slice %289 {offsets = [0, 32], sizes = [16, 32], strides = [1, 1]} : vector<16x96xf32> to vector<16x32xf32>
    %292 = vector.extract_strided_slice %289 {offsets = [0, 64], sizes = [16, 32], strides = [1, 1]} : vector<16x96xf32> to vector<16x32xf32>
    %293 = vector.extract_strided_slice %290 {offsets = [0, 0], sizes = [16, 8], strides = [1, 1]} : vector<16x32xf32> to vector<16x8xf32>
    %294 = vector.shape_cast %293 : vector<16x8xf32> to vector<2x8x8xf32>
    %295 = vector.extract_strided_slice %290 {offsets = [0, 8], sizes = [16, 8], strides = [1, 1]} : vector<16x32xf32> to vector<16x8xf32>
    %296 = vector.shape_cast %295 : vector<16x8xf32> to vector<2x8x8xf32>
    %297 = vector.extract_strided_slice %290 {offsets = [0, 16], sizes = [16, 8], strides = [1, 1]} : vector<16x32xf32> to vector<16x8xf32>
    %298 = vector.shape_cast %297 : vector<16x8xf32> to vector<2x8x8xf32>
    %299 = vector.extract_strided_slice %290 {offsets = [0, 24], sizes = [16, 8], strides = [1, 1]} : vector<16x32xf32> to vector<16x8xf32>
    %300 = vector.shape_cast %299 : vector<16x8xf32> to vector<2x8x8xf32>
    %301 = tpu.concatenate %294, %296, %298, %300 in 0 : vector<2x8x8xf32>, vector<2x8x8xf32>, vector<2x8x8xf32>, vector<2x8x8xf32> -> vector<8x8x8xf32>
    %302 = vector.extract_strided_slice %291 {offsets = [0, 0], sizes = [16, 8], strides = [1, 1]} : vector<16x32xf32> to vector<16x8xf32>
    %303 = vector.shape_cast %302 : vector<16x8xf32> to vector<2x8x8xf32>
    %304 = vector.extract_strided_slice %291 {offsets = [0, 8], sizes = [16, 8], strides = [1, 1]} : vector<16x32xf32> to vector<16x8xf32>
    %305 = vector.shape_cast %304 : vector<16x8xf32> to vector<2x8x8xf32>
    %306 = vector.extract_strided_slice %291 {offsets = [0, 16], sizes = [16, 8], strides = [1, 1]} : vector<16x32xf32> to vector<16x8xf32>
    %307 = vector.shape_cast %306 : vector<16x8xf32> to vector<2x8x8xf32>
    %308 = vector.extract_strided_slice %291 {offsets = [0, 24], sizes = [16, 8], strides = [1, 1]} : vector<16x32xf32> to vector<16x8xf32>
    %309 = vector.shape_cast %308 : vector<16x8xf32> to vector<2x8x8xf32>
    %310 = tpu.concatenate %303, %305, %307, %309 in 0 : vector<2x8x8xf32>, vector<2x8x8xf32>, vector<2x8x8xf32>, vector<2x8x8xf32> -> vector<8x8x8xf32>
    %311 = vector.extract_strided_slice %292 {offsets = [0, 0], sizes = [16, 8], strides = [1, 1]} : vector<16x32xf32> to vector<16x8xf32>
    %312 = vector.shape_cast %311 : vector<16x8xf32> to vector<2x8x8xf32>
    %313 = vector.extract_strided_slice %292 {offsets = [0, 8], sizes = [16, 8], strides = [1, 1]} : vector<16x32xf32> to vector<16x8xf32>
    %314 = vector.shape_cast %313 : vector<16x8xf32> to vector<2x8x8xf32>
    %315 = vector.extract_strided_slice %292 {offsets = [0, 16], sizes = [16, 8], strides = [1, 1]} : vector<16x32xf32> to vector<16x8xf32>
    %316 = vector.shape_cast %315 : vector<16x8xf32> to vector<2x8x8xf32>
    %317 = vector.extract_strided_slice %292 {offsets = [0, 24], sizes = [16, 8], strides = [1, 1]} : vector<16x32xf32> to vector<16x8xf32>
    %318 = vector.shape_cast %317 : vector<16x8xf32> to vector<2x8x8xf32>
    %319 = tpu.concatenate %312, %314, %316, %318 in 0 : vector<2x8x8xf32>, vector<2x8x8xf32>, vector<2x8x8xf32>, vector<2x8x8xf32> -> vector<8x8x8xf32>
    "tpu.trace_start"() <{level = 10 : i32, message = "bqd,bkd->bqk"}> : () -> ()
    %cst_72 = arith.constant dense<0.000000e+00> : vector<8x8x8xf32>
    %320 = tpu.matmul %301, %310, %cst_72 {dimension_numbers = #tpu.dot_dimension_numbers<[2], [2], [1], [1], [0, 0, 0, 1, 1, 1], [0], [0]>} : vector<8x8x8xf32>, vector<8x8x8xf32>, vector<8x8x8xf32> -> vector<8x8x8xf32>
    "tpu.trace_stop"() : () -> ()
    %321 = arith.addf %320, %12 : vector<8x8x8xf32>
    %cst_73 = arith.constant dense<0xFF800000> : vector<8x8xf32>
    %322 = vector.multi_reduction <maximumf>, %321, %cst_73 [2] : vector<8x8x8xf32> to vector<8x8xf32>
    %323 = vector.shape_cast %322 : vector<8x8xf32> to vector<8x8x1xf32>
    %324 = vector.broadcast %323 : vector<8x8x1xf32> to vector<8x8x8xf32>
    %325 = arith.subf %321, %324 : vector<8x8x8xf32>
    %326 = math.exp %325 : vector<8x8x8xf32>
    %cst_74 = arith.constant dense<0.000000e+00> : vector<8x8xf32>
    %327 = vector.multi_reduction <add>, %326, %cst_74 [2] : vector<8x8x8xf32> to vector<8x8xf32>
    %328 = vector.shape_cast %327 : vector<8x8xf32> to vector<8x8x1xf32>
    %329 = tpu.reciprocal %328 {approx = true} : vector<8x8x1xf32> -> vector<8x8x1xf32>
    %330 = vector.broadcast %329 : vector<8x8x1xf32> to vector<8x8x8xf32>
    %331 = arith.mulf %326, %330 : vector<8x8x8xf32>
    "tpu.trace_start"() <{level = 10 : i32, message = "bqk,bkd->bqd"}> : () -> ()
    %cst_75 = arith.constant dense<0.000000e+00> : vector<8x8x8xf32>
    %332 = tpu.matmul %331, %319, %cst_75 {dimension_numbers = #tpu.dot_dimension_numbers<[2], [1], [1], [2], [0, 0, 0, 1, 1, 2], [0], [0]>} : vector<8x8x8xf32>, vector<8x8x8xf32>, vector<8x8x8xf32> -> vector<8x8x8xf32>
    "tpu.trace_stop"() : () -> ()
    %333 = vector.extract_strided_slice %332 {offsets = [0, 0, 0], sizes = [2, 8, 8], strides = [1, 1, 1]} : vector<8x8x8xf32> to vector<2x8x8xf32>
    %334 = vector.shape_cast %333 : vector<2x8x8xf32> to vector<16x8xf32>
    %335 = vector.extract_strided_slice %332 {offsets = [2, 0, 0], sizes = [2, 8, 8], strides = [1, 1, 1]} : vector<8x8x8xf32> to vector<2x8x8xf32>
    %336 = vector.shape_cast %335 : vector<2x8x8xf32> to vector<16x8xf32>
    %337 = vector.extract_strided_slice %332 {offsets = [4, 0, 0], sizes = [2, 8, 8], strides = [1, 1, 1]} : vector<8x8x8xf32> to vector<2x8x8xf32>
    %338 = vector.shape_cast %337 : vector<2x8x8xf32> to vector<16x8xf32>
    %339 = vector.extract_strided_slice %332 {offsets = [6, 0, 0], sizes = [2, 8, 8], strides = [1, 1, 1]} : vector<8x8x8xf32> to vector<2x8x8xf32>
    %340 = vector.shape_cast %339 : vector<2x8x8xf32> to vector<16x8xf32>
    %341 = tpu.concatenate %334, %336, %338, %340 in 1 : vector<16x8xf32>, vector<16x8xf32>, vector<16x8xf32>, vector<16x8xf32> -> vector<16x32xf32>
    %342 = vector.extract_strided_slice %282 {offsets = [0, 96], sizes = [32, 32], strides = [1, 1]} : vector<32x192xf32> to vector<32x32xf32>
    %343 = vector.extract_strided_slice %284 {offsets = [1, 0], sizes = [1, 32], strides = [1, 1]} : vector<8x96xf32> to vector<1x32xf32>
    %cst_76 = arith.constant dense<0.000000e+00> : vector<16x32xf32>
    %344 = tpu.matmul %341, %342, %cst_76 {dimension_numbers = #tpu.dot_dimension_numbers<[1], [0], [0], [1], [0, 0, 1, 1], [], []>} : vector<16x32xf32>, vector<32x32xf32>, vector<16x32xf32> -> vector<16x32xf32>
    %345 = vector.broadcast %343 : vector<1x32xf32> to vector<16x32xf32>
    %346 = arith.addf %344, %345 : vector<16x32xf32>
    %347 = arith.addf %280, %346 : vector<16x32xf32>
    %348 = vector.extract_strided_slice %284 {offsets = [4, 0], sizes = [1, 32], strides = [1, 1]} : vector<8x96xf32> to vector<1x32xf32>
    %349 = vector.extract_strided_slice %284 {offsets = [5, 0], sizes = [1, 32], strides = [1, 1]} : vector<8x96xf32> to vector<1x32xf32>
    %cst_77 = arith.constant dense<0.000000e+00> : vector<16xf32>
    %350 = vector.multi_reduction <add>, %347, %cst_77 [1] : vector<16x32xf32> to vector<16xf32>
    %351 = vector.shape_cast %350 : vector<16xf32> to vector<16x1xf32>
    %cst_78 = arith.constant 3.200000e+01 : f32
    %352 = vector.broadcast %cst_78 : f32 to vector<16x1xf32>
    %353 = arith.divf %351, %352 : vector<16x1xf32>
    %354 = vector.broadcast %353 : vector<16x1xf32> to vector<16x32xf32>
    %355 = arith.subf %347, %354 : vector<16x32xf32>
    %356 = arith.mulf %355, %355 : vector<16x32xf32>
    %cst_79 = arith.constant dense<0.000000e+00> : vector<16xf32>
    %357 = vector.multi_reduction <add>, %356, %cst_79 [1] : vector<16x32xf32> to vector<16xf32>
    %358 = vector.shape_cast %357 : vector<16xf32> to vector<16x1xf32>
    %cst_80 = arith.constant 3.200000e+01 : f32
    %359 = vector.broadcast %cst_80 : f32 to vector<16x1xf32>
    %360 = arith.divf %358, %359 : vector<16x1xf32>
    %cst_81 = arith.constant 9.99999974E-6 : f32
    %361 = vector.broadcast %cst_81 : f32 to vector<16x1xf32>
    %362 = arith.addf %360, %361 : vector<16x1xf32>
    %363 = math.rsqrt %362 : vector<16x1xf32>
    %364 = vector.broadcast %363 : vector<16x1xf32> to vector<16x32xf32>
    %365 = arith.mulf %355, %364 : vector<16x32xf32>
    %366 = vector.broadcast %348 : vector<1x32xf32> to vector<16x32xf32>
    %367 = arith.mulf %365, %366 : vector<16x32xf32>
    %368 = vector.broadcast %349 : vector<1x32xf32> to vector<16x32xf32>
    %369 = arith.addf %367, %368 : vector<16x32xf32>
    %370 = vector.extract_strided_slice %282 {offsets = [0, 128], sizes = [32, 64], strides = [1, 1]} : vector<32x192xf32> to vector<32x64xf32>
    %371 = vector.extract_strided_slice %284 {offsets = [2, 0], sizes = [1, 64], strides = [1, 1]} : vector<8x96xf32> to vector<1x64xf32>
    %cst_82 = arith.constant dense<0.000000e+00> : vector<16x64xf32>
    %372 = tpu.matmul %369, %370, %cst_82 {dimension_numbers = #tpu.dot_dimension_numbers<[1], [0], [0], [1], [0, 0, 1, 1], [], []>} : vector<16x32xf32>, vector<32x64xf32>, vector<16x64xf32> -> vector<16x64xf32>
    %373 = vector.broadcast %371 : vector<1x64xf32> to vector<16x64xf32>
    %374 = arith.addf %372, %373 : vector<16x64xf32>
    %cst_83 = arith.constant 0.000000e+00 : f32
    %375 = vector.broadcast %cst_83 : f32 to vector<16x64xf32>
    %376 = arith.maximumf %374, %375 : vector<16x64xf32>
    %c2_84 = arith.constant 2 : index
    %c0_85 = arith.constant 0 : index
    %c0_86 = arith.constant 0 : index
    %377 = vector.load %arg6[%c2_84, %c0_85, %c0_86] : memref<3x64x32xf32, #tpu.memory_space<vmem>>, vector<1x64x32xf32>
    %378 = vector.shape_cast %377 : vector<1x64x32xf32> to vector<64x32xf32>
    %379 = vector.extract_strided_slice %284 {offsets = [3, 0], sizes = [1, 32], strides = [1, 1]} : vector<8x96xf32> to vector<1x32xf32>
    %cst_87 = arith.constant dense<0.000000e+00> : vector<16x32xf32>
    %380 = tpu.matmul %376, %378, %cst_87 {dimension_numbers = #tpu.dot_dimension_numbers<[1], [0], [0], [1], [0, 0, 1, 1], [], []>} : vector<16x64xf32>, vector<64x32xf32>, vector<16x32xf32> -> vector<16x32xf32>
    %381 = vector.broadcast %379 : vector<1x32xf32> to vector<16x32xf32>
    %382 = arith.addf %380, %381 : vector<16x32xf32>
    %383 = arith.addf %369, %382 : vector<16x32xf32>
    %384 = vector.extract_strided_slice %284 {offsets = [6, 0], sizes = [1, 32], strides = [1, 1]} : vector<8x96xf32> to vector<1x32xf32>
    %385 = vector.extract_strided_slice %284 {offsets = [7, 0], sizes = [1, 32], strides = [1, 1]} : vector<8x96xf32> to vector<1x32xf32>
    %cst_88 = arith.constant dense<0.000000e+00> : vector<16xf32>
    %386 = vector.multi_reduction <add>, %383, %cst_88 [1] : vector<16x32xf32> to vector<16xf32>
    %387 = vector.shape_cast %386 : vector<16xf32> to vector<16x1xf32>
    %cst_89 = arith.constant 3.200000e+01 : f32
    %388 = vector.broadcast %cst_89 : f32 to vector<16x1xf32>
    %389 = arith.divf %387, %388 : vector<16x1xf32>
    %390 = vector.broadcast %389 : vector<16x1xf32> to vector<16x32xf32>
    %391 = arith.subf %383, %390 : vector<16x32xf32>
    %392 = arith.mulf %391, %391 : vector<16x32xf32>
    %cst_90 = arith.constant dense<0.000000e+00> : vector<16xf32>
    %393 = vector.multi_reduction <add>, %392, %cst_90 [1] : vector<16x32xf32> to vector<16xf32>
    %394 = vector.shape_cast %393 : vector<16xf32> to vector<16x1xf32>
    %cst_91 = arith.constant 3.200000e+01 : f32
    %395 = vector.broadcast %cst_91 : f32 to vector<16x1xf32>
    %396 = arith.divf %394, %395 : vector<16x1xf32>
    %cst_92 = arith.constant 9.99999974E-6 : f32
    %397 = vector.broadcast %cst_92 : f32 to vector<16x1xf32>
    %398 = arith.addf %396, %397 : vector<16x1xf32>
    %399 = math.rsqrt %398 : vector<16x1xf32>
    %400 = vector.broadcast %399 : vector<16x1xf32> to vector<16x32xf32>
    %401 = arith.mulf %391, %400 : vector<16x32xf32>
    %402 = vector.broadcast %384 : vector<1x32xf32> to vector<16x32xf32>
    %403 = arith.mulf %401, %402 : vector<16x32xf32>
    %404 = vector.broadcast %385 : vector<1x32xf32> to vector<16x32xf32>
    %405 = arith.addf %403, %404 : vector<16x32xf32>
    %406 = vector.extract_strided_slice %23 {offsets = [0, 0], sizes = [1, 32], strides = [1, 1]} : vector<5x128xf32> to vector<1x32xf32>
    %407 = vector.extract_strided_slice %23 {offsets = [1, 0], sizes = [1, 32], strides = [1, 1]} : vector<5x128xf32> to vector<1x32xf32>
    %cst_93 = arith.constant dense<0.000000e+00> : vector<16xf32>
    %408 = vector.multi_reduction <add>, %405, %cst_93 [1] : vector<16x32xf32> to vector<16xf32>
    %409 = vector.shape_cast %408 : vector<16xf32> to vector<16x1xf32>
    %cst_94 = arith.constant 3.200000e+01 : f32
    %410 = vector.broadcast %cst_94 : f32 to vector<16x1xf32>
    %411 = arith.divf %409, %410 : vector<16x1xf32>
    %412 = vector.broadcast %411 : vector<16x1xf32> to vector<16x32xf32>
    %413 = arith.subf %405, %412 : vector<16x32xf32>
    %414 = arith.mulf %413, %413 : vector<16x32xf32>
    %cst_95 = arith.constant dense<0.000000e+00> : vector<16xf32>
    %415 = vector.multi_reduction <add>, %414, %cst_95 [1] : vector<16x32xf32> to vector<16xf32>
    %416 = vector.shape_cast %415 : vector<16xf32> to vector<16x1xf32>
    %cst_96 = arith.constant 3.200000e+01 : f32
    %417 = vector.broadcast %cst_96 : f32 to vector<16x1xf32>
    %418 = arith.divf %416, %417 : vector<16x1xf32>
    %cst_97 = arith.constant 9.99999974E-6 : f32
    %419 = vector.broadcast %cst_97 : f32 to vector<16x1xf32>
    %420 = arith.addf %418, %419 : vector<16x1xf32>
    %421 = math.rsqrt %420 : vector<16x1xf32>
    %422 = vector.broadcast %421 : vector<16x1xf32> to vector<16x32xf32>
    %423 = arith.mulf %413, %422 : vector<16x32xf32>
    %424 = vector.broadcast %406 : vector<1x32xf32> to vector<16x32xf32>
    %425 = arith.mulf %423, %424 : vector<16x32xf32>
    %426 = vector.broadcast %407 : vector<1x32xf32> to vector<16x32xf32>
    %427 = arith.addf %425, %426 : vector<16x32xf32>
    %c0_98 = arith.constant 0 : index
    %c0_99 = arith.constant 0 : index
    %428 = vector.load %arg1[%c0_98, %c0_99] : memref<16x1xi32, #tpu.memory_space<vmem>>, vector<16x1xi32>
    %429 = tpu.iota {dimensions = array<i32: 1>} : vector<16x128xi32>
    %430 = vector.broadcast %428 : vector<16x1xi32> to vector<16x128xi32>
    %431 = arith.cmpi eq, %429, %430 : vector<16x128xi32>
    %432 = arith.extui %431 : vector<16x128xi1> to vector<16x128xi32>
    %433 = arith.sitofp %432 : vector<16x128xi32> to vector<16x128xf32>
    %cst_100 = arith.constant dense<0.000000e+00> : vector<16x32xf32>
    %434 = tpu.matmul %433, %0, %cst_100 {dimension_numbers = #tpu.dot_dimension_numbers<[1], [0], [0], [1], [0, 0, 1, 1], [], []>} : vector<16x128xf32>, vector<128x32xf32>, vector<16x32xf32> -> vector<16x32xf32>
    %c0_101 = arith.constant 0 : index
    %c0_102 = arith.constant 0 : index
    %c0_103 = arith.constant 0 : index
    %435 = vector.load %arg8[%c0_101, %c0_102, %c0_103] : memref<3x32x320xf32, #tpu.memory_space<vmem>>, vector<1x32x320xf32>
    %436 = vector.shape_cast %435 : vector<1x32x320xf32> to vector<32x320xf32>
    %c0_104 = arith.constant 0 : index
    %c0_105 = arith.constant 0 : index
    %c0_106 = arith.constant 0 : index
    %437 = vector.load %arg10[%c0_104, %c0_105, %c0_106] : memref<3x13x96xf32, #tpu.memory_space<vmem>>, vector<1x13x96xf32>
    %438 = vector.shape_cast %437 : vector<1x13x96xf32> to vector<13x96xf32>
    %439 = vector.extract_strided_slice %436 {offsets = [0, 0], sizes = [32, 96], strides = [1, 1]} : vector<32x320xf32> to vector<32x96xf32>
    %440 = vector.extract_strided_slice %438 {offsets = [0, 0], sizes = [1, 96], strides = [1, 1]} : vector<13x96xf32> to vector<1x96xf32>
    %cst_107 = arith.constant dense<0.000000e+00> : vector<16x96xf32>
    %441 = tpu.matmul %434, %439, %cst_107 {dimension_numbers = #tpu.dot_dimension_numbers<[1], [0], [0], [1], [0, 0, 1, 1], [], []>} : vector<16x32xf32>, vector<32x96xf32>, vector<16x96xf32> -> vector<16x96xf32>
    %442 = vector.broadcast %440 : vector<1x96xf32> to vector<16x96xf32>
    %443 = arith.addf %441, %442 : vector<16x96xf32>
    %444 = vector.extract_strided_slice %443 {offsets = [0, 0], sizes = [16, 32], strides = [1, 1]} : vector<16x96xf32> to vector<16x32xf32>
    %445 = vector.extract_strided_slice %443 {offsets = [0, 32], sizes = [16, 32], strides = [1, 1]} : vector<16x96xf32> to vector<16x32xf32>
    %446 = vector.extract_strided_slice %443 {offsets = [0, 64], sizes = [16, 32], strides = [1, 1]} : vector<16x96xf32> to vector<16x32xf32>
    %447 = vector.extract_strided_slice %444 {offsets = [0, 0], sizes = [16, 8], strides = [1, 1]} : vector<16x32xf32> to vector<16x8xf32>
    %448 = vector.shape_cast %447 : vector<16x8xf32> to vector<2x8x8xf32>
    %449 = vector.extract_strided_slice %444 {offsets = [0, 8], sizes = [16, 8], strides = [1, 1]} : vector<16x32xf32> to vector<16x8xf32>
    %450 = vector.shape_cast %449 : vector<16x8xf32> to vector<2x8x8xf32>
    %451 = vector.extract_strided_slice %444 {offsets = [0, 16], sizes = [16, 8], strides = [1, 1]} : vector<16x32xf32> to vector<16x8xf32>
    %452 = vector.shape_cast %451 : vector<16x8xf32> to vector<2x8x8xf32>
    %453 = vector.extract_strided_slice %444 {offsets = [0, 24], sizes = [16, 8], strides = [1, 1]} : vector<16x32xf32> to vector<16x8xf32>
    %454 = vector.shape_cast %453 : vector<16x8xf32> to vector<2x8x8xf32>
    %455 = tpu.concatenate %448, %450, %452, %454 in 0 : vector<2x8x8xf32>, vector<2x8x8xf32>, vector<2x8x8xf32>, vector<2x8x8xf32> -> vector<8x8x8xf32>
    %456 = vector.extract_strided_slice %445 {offsets = [0, 0], sizes = [16, 8], strides = [1, 1]} : vector<16x32xf32> to vector<16x8xf32>
    %457 = vector.shape_cast %456 : vector<16x8xf32> to vector<2x8x8xf32>
    %458 = vector.extract_strided_slice %445 {offsets = [0, 8], sizes = [16, 8], strides = [1, 1]} : vector<16x32xf32> to vector<16x8xf32>
    %459 = vector.shape_cast %458 : vector<16x8xf32> to vector<2x8x8xf32>
    %460 = vector.extract_strided_slice %445 {offsets = [0, 16], sizes = [16, 8], strides = [1, 1]} : vector<16x32xf32> to vector<16x8xf32>
    %461 = vector.shape_cast %460 : vector<16x8xf32> to vector<2x8x8xf32>
    %462 = vector.extract_strided_slice %445 {offsets = [0, 24], sizes = [16, 8], strides = [1, 1]} : vector<16x32xf32> to vector<16x8xf32>
    %463 = vector.shape_cast %462 : vector<16x8xf32> to vector<2x8x8xf32>
    %464 = tpu.concatenate %457, %459, %461, %463 in 0 : vector<2x8x8xf32>, vector<2x8x8xf32>, vector<2x8x8xf32>, vector<2x8x8xf32> -> vector<8x8x8xf32>
    %465 = vector.extract_strided_slice %446 {offsets = [0, 0], sizes = [16, 8], strides = [1, 1]} : vector<16x32xf32> to vector<16x8xf32>
    %466 = vector.shape_cast %465 : vector<16x8xf32> to vector<2x8x8xf32>
    %467 = vector.extract_strided_slice %446 {offsets = [0, 8], sizes = [16, 8], strides = [1, 1]} : vector<16x32xf32> to vector<16x8xf32>
    %468 = vector.shape_cast %467 : vector<16x8xf32> to vector<2x8x8xf32>
    %469 = vector.extract_strided_slice %446 {offsets = [0, 16], sizes = [16, 8], strides = [1, 1]} : vector<16x32xf32> to vector<16x8xf32>
    %470 = vector.shape_cast %469 : vector<16x8xf32> to vector<2x8x8xf32>
    %471 = vector.extract_strided_slice %446 {offsets = [0, 24], sizes = [16, 8], strides = [1, 1]} : vector<16x32xf32> to vector<16x8xf32>
    %472 = vector.shape_cast %471 : vector<16x8xf32> to vector<2x8x8xf32>
    %473 = tpu.concatenate %466, %468, %470, %472 in 0 : vector<2x8x8xf32>, vector<2x8x8xf32>, vector<2x8x8xf32>, vector<2x8x8xf32> -> vector<8x8x8xf32>
    "tpu.trace_start"() <{level = 10 : i32, message = "bqd,bkd->bqk"}> : () -> ()
    %cst_108 = arith.constant dense<0.000000e+00> : vector<8x8x8xf32>
    %474 = tpu.matmul %455, %464, %cst_108 {dimension_numbers = #tpu.dot_dimension_numbers<[2], [2], [1], [1], [0, 0, 0, 1, 1, 1], [0], [0]>} : vector<8x8x8xf32>, vector<8x8x8xf32>, vector<8x8x8xf32> -> vector<8x8x8xf32>
    "tpu.trace_stop"() : () -> ()
    %475 = arith.addf %474, %18 : vector<8x8x8xf32>
    %cst_109 = arith.constant dense<0xFF800000> : vector<8x8xf32>
    %476 = vector.multi_reduction <maximumf>, %475, %cst_109 [2] : vector<8x8x8xf32> to vector<8x8xf32>
    %477 = vector.shape_cast %476 : vector<8x8xf32> to vector<8x8x1xf32>
    %478 = vector.broadcast %477 : vector<8x8x1xf32> to vector<8x8x8xf32>
    %479 = arith.subf %475, %478 : vector<8x8x8xf32>
    %480 = math.exp %479 : vector<8x8x8xf32>
    %cst_110 = arith.constant dense<0.000000e+00> : vector<8x8xf32>
    %481 = vector.multi_reduction <add>, %480, %cst_110 [2] : vector<8x8x8xf32> to vector<8x8xf32>
    %482 = vector.shape_cast %481 : vector<8x8xf32> to vector<8x8x1xf32>
    %483 = tpu.reciprocal %482 {approx = true} : vector<8x8x1xf32> -> vector<8x8x1xf32>
    %484 = vector.broadcast %483 : vector<8x8x1xf32> to vector<8x8x8xf32>
    %485 = arith.mulf %480, %484 : vector<8x8x8xf32>
    "tpu.trace_start"() <{level = 10 : i32, message = "bqk,bkd->bqd"}> : () -> ()
    %cst_111 = arith.constant dense<0.000000e+00> : vector<8x8x8xf32>
    %486 = tpu.matmul %485, %473, %cst_111 {dimension_numbers = #tpu.dot_dimension_numbers<[2], [1], [1], [2], [0, 0, 0, 1, 1, 2], [0], [0]>} : vector<8x8x8xf32>, vector<8x8x8xf32>, vector<8x8x8xf32> -> vector<8x8x8xf32>
    "tpu.trace_stop"() : () -> ()
    %487 = vector.extract_strided_slice %486 {offsets = [0, 0, 0], sizes = [2, 8, 8], strides = [1, 1, 1]} : vector<8x8x8xf32> to vector<2x8x8xf32>
    %488 = vector.shape_cast %487 : vector<2x8x8xf32> to vector<16x8xf32>
    %489 = vector.extract_strided_slice %486 {offsets = [2, 0, 0], sizes = [2, 8, 8], strides = [1, 1, 1]} : vector<8x8x8xf32> to vector<2x8x8xf32>
    %490 = vector.shape_cast %489 : vector<2x8x8xf32> to vector<16x8xf32>
    %491 = vector.extract_strided_slice %486 {offsets = [4, 0, 0], sizes = [2, 8, 8], strides = [1, 1, 1]} : vector<8x8x8xf32> to vector<2x8x8xf32>
    %492 = vector.shape_cast %491 : vector<2x8x8xf32> to vector<16x8xf32>
    %493 = vector.extract_strided_slice %486 {offsets = [6, 0, 0], sizes = [2, 8, 8], strides = [1, 1, 1]} : vector<8x8x8xf32> to vector<2x8x8xf32>
    %494 = vector.shape_cast %493 : vector<2x8x8xf32> to vector<16x8xf32>
    %495 = tpu.concatenate %488, %490, %492, %494 in 1 : vector<16x8xf32>, vector<16x8xf32>, vector<16x8xf32>, vector<16x8xf32> -> vector<16x32xf32>
    %496 = vector.extract_strided_slice %436 {offsets = [0, 96], sizes = [32, 32], strides = [1, 1]} : vector<32x320xf32> to vector<32x32xf32>
    %497 = vector.extract_strided_slice %438 {offsets = [1, 0], sizes = [1, 32], strides = [1, 1]} : vector<13x96xf32> to vector<1x32xf32>
    %cst_112 = arith.constant dense<0.000000e+00> : vector<16x32xf32>
    %498 = tpu.matmul %495, %496, %cst_112 {dimension_numbers = #tpu.dot_dimension_numbers<[1], [0], [0], [1], [0, 0, 1, 1], [], []>} : vector<16x32xf32>, vector<32x32xf32>, vector<16x32xf32> -> vector<16x32xf32>
    %499 = vector.broadcast %497 : vector<1x32xf32> to vector<16x32xf32>
    %500 = arith.addf %498, %499 : vector<16x32xf32>
    %501 = arith.addf %434, %500 : vector<16x32xf32>
    %502 = vector.extract_strided_slice %438 {offsets = [7, 0], sizes = [1, 32], strides = [1, 1]} : vector<13x96xf32> to vector<1x32xf32>
    %503 = vector.extract_strided_slice %438 {offsets = [8, 0], sizes = [1, 32], strides = [1, 1]} : vector<13x96xf32> to vector<1x32xf32>
    %cst_113 = arith.constant dense<0.000000e+00> : vector<16xf32>
    %504 = vector.multi_reduction <add>, %501, %cst_113 [1] : vector<16x32xf32> to vector<16xf32>
    %505 = vector.shape_cast %504 : vector<16xf32> to vector<16x1xf32>
    %cst_114 = arith.constant 3.200000e+01 : f32
    %506 = vector.broadcast %cst_114 : f32 to vector<16x1xf32>
    %507 = arith.divf %505, %506 : vector<16x1xf32>
    %508 = vector.broadcast %507 : vector<16x1xf32> to vector<16x32xf32>
    %509 = arith.subf %501, %508 : vector<16x32xf32>
    %510 = arith.mulf %509, %509 : vector<16x32xf32>
    %cst_115 = arith.constant dense<0.000000e+00> : vector<16xf32>
    %511 = vector.multi_reduction <add>, %510, %cst_115 [1] : vector<16x32xf32> to vector<16xf32>
    %512 = vector.shape_cast %511 : vector<16xf32> to vector<16x1xf32>
    %cst_116 = arith.constant 3.200000e+01 : f32
    %513 = vector.broadcast %cst_116 : f32 to vector<16x1xf32>
    %514 = arith.divf %512, %513 : vector<16x1xf32>
    %cst_117 = arith.constant 9.99999974E-6 : f32
    %515 = vector.broadcast %cst_117 : f32 to vector<16x1xf32>
    %516 = arith.addf %514, %515 : vector<16x1xf32>
    %517 = math.rsqrt %516 : vector<16x1xf32>
    %518 = vector.broadcast %517 : vector<16x1xf32> to vector<16x32xf32>
    %519 = arith.mulf %509, %518 : vector<16x32xf32>
    %520 = vector.broadcast %502 : vector<1x32xf32> to vector<16x32xf32>
    %521 = arith.mulf %519, %520 : vector<16x32xf32>
    %522 = vector.broadcast %503 : vector<1x32xf32> to vector<16x32xf32>
    %523 = arith.addf %521, %522 : vector<16x32xf32>
    %524 = vector.extract_strided_slice %436 {offsets = [0, 128], sizes = [32, 32], strides = [1, 1]} : vector<32x320xf32> to vector<32x32xf32>
    %525 = vector.extract_strided_slice %438 {offsets = [2, 0], sizes = [1, 32], strides = [1, 1]} : vector<13x96xf32> to vector<1x32xf32>
    %cst_118 = arith.constant dense<0.000000e+00> : vector<16x32xf32>
    %526 = tpu.matmul %523, %524, %cst_118 {dimension_numbers = #tpu.dot_dimension_numbers<[1], [0], [0], [1], [0, 0, 1, 1], [], []>} : vector<16x32xf32>, vector<32x32xf32>, vector<16x32xf32> -> vector<16x32xf32>
    %527 = vector.broadcast %525 : vector<1x32xf32> to vector<16x32xf32>
    %528 = arith.addf %526, %527 : vector<16x32xf32>
    %529 = vector.extract_strided_slice %436 {offsets = [0, 160], sizes = [32, 64], strides = [1, 1]} : vector<32x320xf32> to vector<32x64xf32>
    %530 = vector.extract_strided_slice %438 {offsets = [3, 0], sizes = [1, 64], strides = [1, 1]} : vector<13x96xf32> to vector<1x64xf32>
    %cst_119 = arith.constant dense<0.000000e+00> : vector<16x64xf32>
    %531 = tpu.matmul %427, %529, %cst_119 {dimension_numbers = #tpu.dot_dimension_numbers<[1], [0], [0], [1], [0, 0, 1, 1], [], []>} : vector<16x32xf32>, vector<32x64xf32>, vector<16x64xf32> -> vector<16x64xf32>
    %532 = vector.broadcast %530 : vector<1x64xf32> to vector<16x64xf32>
    %533 = arith.addf %531, %532 : vector<16x64xf32>
    %534 = vector.extract_strided_slice %533 {offsets = [0, 0], sizes = [16, 32], strides = [1, 1]} : vector<16x64xf32> to vector<16x32xf32>
    %535 = vector.extract_strided_slice %533 {offsets = [0, 32], sizes = [16, 32], strides = [1, 1]} : vector<16x64xf32> to vector<16x32xf32>
    %536 = vector.extract_strided_slice %528 {offsets = [0, 0], sizes = [16, 8], strides = [1, 1]} : vector<16x32xf32> to vector<16x8xf32>
    %537 = vector.shape_cast %536 : vector<16x8xf32> to vector<2x8x8xf32>
    %538 = vector.extract_strided_slice %528 {offsets = [0, 8], sizes = [16, 8], strides = [1, 1]} : vector<16x32xf32> to vector<16x8xf32>
    %539 = vector.shape_cast %538 : vector<16x8xf32> to vector<2x8x8xf32>
    %540 = vector.extract_strided_slice %528 {offsets = [0, 16], sizes = [16, 8], strides = [1, 1]} : vector<16x32xf32> to vector<16x8xf32>
    %541 = vector.shape_cast %540 : vector<16x8xf32> to vector<2x8x8xf32>
    %542 = vector.extract_strided_slice %528 {offsets = [0, 24], sizes = [16, 8], strides = [1, 1]} : vector<16x32xf32> to vector<16x8xf32>
    %543 = vector.shape_cast %542 : vector<16x8xf32> to vector<2x8x8xf32>
    %544 = tpu.concatenate %537, %539, %541, %543 in 0 : vector<2x8x8xf32>, vector<2x8x8xf32>, vector<2x8x8xf32>, vector<2x8x8xf32> -> vector<8x8x8xf32>
    %545 = vector.extract_strided_slice %534 {offsets = [0, 0], sizes = [16, 8], strides = [1, 1]} : vector<16x32xf32> to vector<16x8xf32>
    %546 = vector.shape_cast %545 : vector<16x8xf32> to vector<2x8x8xf32>
    %547 = vector.extract_strided_slice %534 {offsets = [0, 8], sizes = [16, 8], strides = [1, 1]} : vector<16x32xf32> to vector<16x8xf32>
    %548 = vector.shape_cast %547 : vector<16x8xf32> to vector<2x8x8xf32>
    %549 = vector.extract_strided_slice %534 {offsets = [0, 16], sizes = [16, 8], strides = [1, 1]} : vector<16x32xf32> to vector<16x8xf32>
    %550 = vector.shape_cast %549 : vector<16x8xf32> to vector<2x8x8xf32>
    %551 = vector.extract_strided_slice %534 {offsets = [0, 24], sizes = [16, 8], strides = [1, 1]} : vector<16x32xf32> to vector<16x8xf32>
    %552 = vector.shape_cast %551 : vector<16x8xf32> to vector<2x8x8xf32>
    %553 = tpu.concatenate %546, %548, %550, %552 in 0 : vector<2x8x8xf32>, vector<2x8x8xf32>, vector<2x8x8xf32>, vector<2x8x8xf32> -> vector<8x8x8xf32>
    %554 = vector.extract_strided_slice %535 {offsets = [0, 0], sizes = [16, 8], strides = [1, 1]} : vector<16x32xf32> to vector<16x8xf32>
    %555 = vector.shape_cast %554 : vector<16x8xf32> to vector<2x8x8xf32>
    %556 = vector.extract_strided_slice %535 {offsets = [0, 8], sizes = [16, 8], strides = [1, 1]} : vector<16x32xf32> to vector<16x8xf32>
    %557 = vector.shape_cast %556 : vector<16x8xf32> to vector<2x8x8xf32>
    %558 = vector.extract_strided_slice %535 {offsets = [0, 16], sizes = [16, 8], strides = [1, 1]} : vector<16x32xf32> to vector<16x8xf32>
    %559 = vector.shape_cast %558 : vector<16x8xf32> to vector<2x8x8xf32>
    %560 = vector.extract_strided_slice %535 {offsets = [0, 24], sizes = [16, 8], strides = [1, 1]} : vector<16x32xf32> to vector<16x8xf32>
    %561 = vector.shape_cast %560 : vector<16x8xf32> to vector<2x8x8xf32>
    %562 = tpu.concatenate %555, %557, %559, %561 in 0 : vector<2x8x8xf32>, vector<2x8x8xf32>, vector<2x8x8xf32>, vector<2x8x8xf32> -> vector<8x8x8xf32>
    "tpu.trace_start"() <{level = 10 : i32, message = "bqd,bkd->bqk"}> : () -> ()
    %cst_120 = arith.constant dense<0.000000e+00> : vector<8x8x8xf32>
    %563 = tpu.matmul %544, %553, %cst_120 {dimension_numbers = #tpu.dot_dimension_numbers<[2], [2], [1], [1], [0, 0, 0, 1, 1, 1], [0], [0]>} : vector<8x8x8xf32>, vector<8x8x8xf32>, vector<8x8x8xf32> -> vector<8x8x8xf32>
    "tpu.trace_stop"() : () -> ()
    %564 = arith.addf %563, %22 : vector<8x8x8xf32>
    %cst_121 = arith.constant dense<0xFF800000> : vector<8x8xf32>
    %565 = vector.multi_reduction <maximumf>, %564, %cst_121 [2] : vector<8x8x8xf32> to vector<8x8xf32>
    %566 = vector.shape_cast %565 : vector<8x8xf32> to vector<8x8x1xf32>
    %567 = vector.broadcast %566 : vector<8x8x1xf32> to vector<8x8x8xf32>
    %568 = arith.subf %564, %567 : vector<8x8x8xf32>
    %569 = math.exp %568 : vector<8x8x8xf32>
    %cst_122 = arith.constant dense<0.000000e+00> : vector<8x8xf32>
    %570 = vector.multi_reduction <add>, %569, %cst_122 [2] : vector<8x8x8xf32> to vector<8x8xf32>
    %571 = vector.shape_cast %570 : vector<8x8xf32> to vector<8x8x1xf32>
    %572 = tpu.reciprocal %571 {approx = true} : vector<8x8x1xf32> -> vector<8x8x1xf32>
    %573 = vector.broadcast %572 : vector<8x8x1xf32> to vector<8x8x8xf32>
    %574 = arith.mulf %569, %573 : vector<8x8x8xf32>
    "tpu.trace_start"() <{level = 10 : i32, message = "bqk,bkd->bqd"}> : () -> ()
    %cst_123 = arith.constant dense<0.000000e+00> : vector<8x8x8xf32>
    %575 = tpu.matmul %574, %562, %cst_123 {dimension_numbers = #tpu.dot_dimension_numbers<[2], [1], [1], [2], [0, 0, 0, 1, 1, 2], [0], [0]>} : vector<8x8x8xf32>, vector<8x8x8xf32>, vector<8x8x8xf32> -> vector<8x8x8xf32>
    "tpu.trace_stop"() : () -> ()
    %576 = vector.extract_strided_slice %575 {offsets = [0, 0, 0], sizes = [2, 8, 8], strides = [1, 1, 1]} : vector<8x8x8xf32> to vector<2x8x8xf32>
    %577 = vector.shape_cast %576 : vector<2x8x8xf32> to vector<16x8xf32>
    %578 = vector.extract_strided_slice %575 {offsets = [2, 0, 0], sizes = [2, 8, 8], strides = [1, 1, 1]} : vector<8x8x8xf32> to vector<2x8x8xf32>
    %579 = vector.shape_cast %578 : vector<2x8x8xf32> to vector<16x8xf32>
    %580 = vector.extract_strided_slice %575 {offsets = [4, 0, 0], sizes = [2, 8, 8], strides = [1, 1, 1]} : vector<8x8x8xf32> to vector<2x8x8xf32>
    %581 = vector.shape_cast %580 : vector<2x8x8xf32> to vector<16x8xf32>
    %582 = vector.extract_strided_slice %575 {offsets = [6, 0, 0], sizes = [2, 8, 8], strides = [1, 1, 1]} : vector<8x8x8xf32> to vector<2x8x8xf32>
    %583 = vector.shape_cast %582 : vector<2x8x8xf32> to vector<16x8xf32>
    %584 = tpu.concatenate %577, %579, %581, %583 in 1 : vector<16x8xf32>, vector<16x8xf32>, vector<16x8xf32>, vector<16x8xf32> -> vector<16x32xf32>
    %585 = vector.extract_strided_slice %436 {offsets = [0, 224], sizes = [32, 32], strides = [1, 1]} : vector<32x320xf32> to vector<32x32xf32>
    %586 = vector.extract_strided_slice %438 {offsets = [4, 0], sizes = [1, 32], strides = [1, 1]} : vector<13x96xf32> to vector<1x32xf32>
    %cst_124 = arith.constant dense<0.000000e+00> : vector<16x32xf32>
    %587 = tpu.matmul %584, %585, %cst_124 {dimension_numbers = #tpu.dot_dimension_numbers<[1], [0], [0], [1], [0, 0, 1, 1], [], []>} : vector<16x32xf32>, vector<32x32xf32>, vector<16x32xf32> -> vector<16x32xf32>
    %588 = vector.broadcast %586 : vector<1x32xf32> to vector<16x32xf32>
    %589 = arith.addf %587, %588 : vector<16x32xf32>
    %590 = arith.addf %523, %589 : vector<16x32xf32>
    %591 = vector.extract_strided_slice %438 {offsets = [9, 0], sizes = [1, 32], strides = [1, 1]} : vector<13x96xf32> to vector<1x32xf32>
    %592 = vector.extract_strided_slice %438 {offsets = [10, 0], sizes = [1, 32], strides = [1, 1]} : vector<13x96xf32> to vector<1x32xf32>
    %cst_125 = arith.constant dense<0.000000e+00> : vector<16xf32>
    %593 = vector.multi_reduction <add>, %590, %cst_125 [1] : vector<16x32xf32> to vector<16xf32>
    %594 = vector.shape_cast %593 : vector<16xf32> to vector<16x1xf32>
    %cst_126 = arith.constant 3.200000e+01 : f32
    %595 = vector.broadcast %cst_126 : f32 to vector<16x1xf32>
    %596 = arith.divf %594, %595 : vector<16x1xf32>
    %597 = vector.broadcast %596 : vector<16x1xf32> to vector<16x32xf32>
    %598 = arith.subf %590, %597 : vector<16x32xf32>
    %599 = arith.mulf %598, %598 : vector<16x32xf32>
    %cst_127 = arith.constant dense<0.000000e+00> : vector<16xf32>
    %600 = vector.multi_reduction <add>, %599, %cst_127 [1] : vector<16x32xf32> to vector<16xf32>
    %601 = vector.shape_cast %600 : vector<16xf32> to vector<16x1xf32>
    %cst_128 = arith.constant 3.200000e+01 : f32
    %602 = vector.broadcast %cst_128 : f32 to vector<16x1xf32>
    %603 = arith.divf %601, %602 : vector<16x1xf32>
    %cst_129 = arith.constant 9.99999974E-6 : f32
    %604 = vector.broadcast %cst_129 : f32 to vector<16x1xf32>
    %605 = arith.addf %603, %604 : vector<16x1xf32>
    %606 = math.rsqrt %605 : vector<16x1xf32>
    %607 = vector.broadcast %606 : vector<16x1xf32> to vector<16x32xf32>
    %608 = arith.mulf %598, %607 : vector<16x32xf32>
    %609 = vector.broadcast %591 : vector<1x32xf32> to vector<16x32xf32>
    %610 = arith.mulf %608, %609 : vector<16x32xf32>
    %611 = vector.broadcast %592 : vector<1x32xf32> to vector<16x32xf32>
    %612 = arith.addf %610, %611 : vector<16x32xf32>
    %613 = vector.extract_strided_slice %436 {offsets = [0, 256], sizes = [32, 64], strides = [1, 1]} : vector<32x320xf32> to vector<32x64xf32>
    %614 = vector.extract_strided_slice %438 {offsets = [5, 0], sizes = [1, 64], strides = [1, 1]} : vector<13x96xf32> to vector<1x64xf32>
    %cst_130 = arith.constant dense<0.000000e+00> : vector<16x64xf32>
    %615 = tpu.matmul %612, %613, %cst_130 {dimension_numbers = #tpu.dot_dimension_numbers<[1], [0], [0], [1], [0, 0, 1, 1], [], []>} : vector<16x32xf32>, vector<32x64xf32>, vector<16x64xf32> -> vector<16x64xf32>
    %616 = vector.broadcast %614 : vector<1x64xf32> to vector<16x64xf32>
    %617 = arith.addf %615, %616 : vector<16x64xf32>
    %cst_131 = arith.constant 0.000000e+00 : f32
    %618 = vector.broadcast %cst_131 : f32 to vector<16x64xf32>
    %619 = arith.maximumf %617, %618 : vector<16x64xf32>
    %c0_132 = arith.constant 0 : index
    %c0_133 = arith.constant 0 : index
    %c0_134 = arith.constant 0 : index
    %620 = vector.load %arg9[%c0_132, %c0_133, %c0_134] : memref<3x64x32xf32, #tpu.memory_space<vmem>>, vector<1x64x32xf32>
    %621 = vector.shape_cast %620 : vector<1x64x32xf32> to vector<64x32xf32>
    %622 = vector.extract_strided_slice %438 {offsets = [6, 0], sizes = [1, 32], strides = [1, 1]} : vector<13x96xf32> to vector<1x32xf32>
    %cst_135 = arith.constant dense<0.000000e+00> : vector<16x32xf32>
    %623 = tpu.matmul %619, %621, %cst_135 {dimension_numbers = #tpu.dot_dimension_numbers<[1], [0], [0], [1], [0, 0, 1, 1], [], []>} : vector<16x64xf32>, vector<64x32xf32>, vector<16x32xf32> -> vector<16x32xf32>
    %624 = vector.broadcast %622 : vector<1x32xf32> to vector<16x32xf32>
    %625 = arith.addf %623, %624 : vector<16x32xf32>
    %626 = arith.addf %612, %625 : vector<16x32xf32>
    %627 = vector.extract_strided_slice %438 {offsets = [11, 0], sizes = [1, 32], strides = [1, 1]} : vector<13x96xf32> to vector<1x32xf32>
    %628 = vector.extract_strided_slice %438 {offsets = [12, 0], sizes = [1, 32], strides = [1, 1]} : vector<13x96xf32> to vector<1x32xf32>
    %cst_136 = arith.constant dense<0.000000e+00> : vector<16xf32>
    %629 = vector.multi_reduction <add>, %626, %cst_136 [1] : vector<16x32xf32> to vector<16xf32>
    %630 = vector.shape_cast %629 : vector<16xf32> to vector<16x1xf32>
    %cst_137 = arith.constant 3.200000e+01 : f32
    %631 = vector.broadcast %cst_137 : f32 to vector<16x1xf32>
    %632 = arith.divf %630, %631 : vector<16x1xf32>
    %633 = vector.broadcast %632 : vector<16x1xf32> to vector<16x32xf32>
    %634 = arith.subf %626, %633 : vector<16x32xf32>
    %635 = arith.mulf %634, %634 : vector<16x32xf32>
    %cst_138 = arith.constant dense<0.000000e+00> : vector<16xf32>
    %636 = vector.multi_reduction <add>, %635, %cst_138 [1] : vector<16x32xf32> to vector<16xf32>
    %637 = vector.shape_cast %636 : vector<16xf32> to vector<16x1xf32>
    %cst_139 = arith.constant 3.200000e+01 : f32
    %638 = vector.broadcast %cst_139 : f32 to vector<16x1xf32>
    %639 = arith.divf %637, %638 : vector<16x1xf32>
    %cst_140 = arith.constant 9.99999974E-6 : f32
    %640 = vector.broadcast %cst_140 : f32 to vector<16x1xf32>
    %641 = arith.addf %639, %640 : vector<16x1xf32>
    %642 = math.rsqrt %641 : vector<16x1xf32>
    %643 = vector.broadcast %642 : vector<16x1xf32> to vector<16x32xf32>
    %644 = arith.mulf %634, %643 : vector<16x32xf32>
    %645 = vector.broadcast %627 : vector<1x32xf32> to vector<16x32xf32>
    %646 = arith.mulf %644, %645 : vector<16x32xf32>
    %647 = vector.broadcast %628 : vector<1x32xf32> to vector<16x32xf32>
    %648 = arith.addf %646, %647 : vector<16x32xf32>
    %c1_141 = arith.constant 1 : index
    %c0_142 = arith.constant 0 : index
    %c0_143 = arith.constant 0 : index
    %649 = vector.load %arg8[%c1_141, %c0_142, %c0_143] : memref<3x32x320xf32, #tpu.memory_space<vmem>>, vector<1x32x320xf32>
    %650 = vector.shape_cast %649 : vector<1x32x320xf32> to vector<32x320xf32>
    %c1_144 = arith.constant 1 : index
    %c0_145 = arith.constant 0 : index
    %c0_146 = arith.constant 0 : index
    %651 = vector.load %arg10[%c1_144, %c0_145, %c0_146] : memref<3x13x96xf32, #tpu.memory_space<vmem>>, vector<1x13x96xf32>
    %652 = vector.shape_cast %651 : vector<1x13x96xf32> to vector<13x96xf32>
    %653 = vector.extract_strided_slice %650 {offsets = [0, 0], sizes = [32, 96], strides = [1, 1]} : vector<32x320xf32> to vector<32x96xf32>
    %654 = vector.extract_strided_slice %652 {offsets = [0, 0], sizes = [1, 96], strides = [1, 1]} : vector<13x96xf32> to vector<1x96xf32>
    %cst_147 = arith.constant dense<0.000000e+00> : vector<16x96xf32>
    %655 = tpu.matmul %648, %653, %cst_147 {dimension_numbers = #tpu.dot_dimension_numbers<[1], [0], [0], [1], [0, 0, 1, 1], [], []>} : vector<16x32xf32>, vector<32x96xf32>, vector<16x96xf32> -> vector<16x96xf32>
    %656 = vector.broadcast %654 : vector<1x96xf32> to vector<16x96xf32>
    %657 = arith.addf %655, %656 : vector<16x96xf32>
    %658 = vector.extract_strided_slice %657 {offsets = [0, 0], sizes = [16, 32], strides = [1, 1]} : vector<16x96xf32> to vector<16x32xf32>
    %659 = vector.extract_strided_slice %657 {offsets = [0, 32], sizes = [16, 32], strides = [1, 1]} : vector<16x96xf32> to vector<16x32xf32>
    %660 = vector.extract_strided_slice %657 {offsets = [0, 64], sizes = [16, 32], strides = [1, 1]} : vector<16x96xf32> to vector<16x32xf32>
    %661 = vector.extract_strided_slice %658 {offsets = [0, 0], sizes = [16, 8], strides = [1, 1]} : vector<16x32xf32> to vector<16x8xf32>
    %662 = vector.shape_cast %661 : vector<16x8xf32> to vector<2x8x8xf32>
    %663 = vector.extract_strided_slice %658 {offsets = [0, 8], sizes = [16, 8], strides = [1, 1]} : vector<16x32xf32> to vector<16x8xf32>
    %664 = vector.shape_cast %663 : vector<16x8xf32> to vector<2x8x8xf32>
    %665 = vector.extract_strided_slice %658 {offsets = [0, 16], sizes = [16, 8], strides = [1, 1]} : vector<16x32xf32> to vector<16x8xf32>
    %666 = vector.shape_cast %665 : vector<16x8xf32> to vector<2x8x8xf32>
    %667 = vector.extract_strided_slice %658 {offsets = [0, 24], sizes = [16, 8], strides = [1, 1]} : vector<16x32xf32> to vector<16x8xf32>
    %668 = vector.shape_cast %667 : vector<16x8xf32> to vector<2x8x8xf32>
    %669 = tpu.concatenate %662, %664, %666, %668 in 0 : vector<2x8x8xf32>, vector<2x8x8xf32>, vector<2x8x8xf32>, vector<2x8x8xf32> -> vector<8x8x8xf32>
    %670 = vector.extract_strided_slice %659 {offsets = [0, 0], sizes = [16, 8], strides = [1, 1]} : vector<16x32xf32> to vector<16x8xf32>
    %671 = vector.shape_cast %670 : vector<16x8xf32> to vector<2x8x8xf32>
    %672 = vector.extract_strided_slice %659 {offsets = [0, 8], sizes = [16, 8], strides = [1, 1]} : vector<16x32xf32> to vector<16x8xf32>
    %673 = vector.shape_cast %672 : vector<16x8xf32> to vector<2x8x8xf32>
    %674 = vector.extract_strided_slice %659 {offsets = [0, 16], sizes = [16, 8], strides = [1, 1]} : vector<16x32xf32> to vector<16x8xf32>
    %675 = vector.shape_cast %674 : vector<16x8xf32> to vector<2x8x8xf32>
    %676 = vector.extract_strided_slice %659 {offsets = [0, 24], sizes = [16, 8], strides = [1, 1]} : vector<16x32xf32> to vector<16x8xf32>
    %677 = vector.shape_cast %676 : vector<16x8xf32> to vector<2x8x8xf32>
    %678 = tpu.concatenate %671, %673, %675, %677 in 0 : vector<2x8x8xf32>, vector<2x8x8xf32>, vector<2x8x8xf32>, vector<2x8x8xf32> -> vector<8x8x8xf32>
    %679 = vector.extract_strided_slice %660 {offsets = [0, 0], sizes = [16, 8], strides = [1, 1]} : vector<16x32xf32> to vector<16x8xf32>
    %680 = vector.shape_cast %679 : vector<16x8xf32> to vector<2x8x8xf32>
    %681 = vector.extract_strided_slice %660 {offsets = [0, 8], sizes = [16, 8], strides = [1, 1]} : vector<16x32xf32> to vector<16x8xf32>
    %682 = vector.shape_cast %681 : vector<16x8xf32> to vector<2x8x8xf32>
    %683 = vector.extract_strided_slice %660 {offsets = [0, 16], sizes = [16, 8], strides = [1, 1]} : vector<16x32xf32> to vector<16x8xf32>
    %684 = vector.shape_cast %683 : vector<16x8xf32> to vector<2x8x8xf32>
    %685 = vector.extract_strided_slice %660 {offsets = [0, 24], sizes = [16, 8], strides = [1, 1]} : vector<16x32xf32> to vector<16x8xf32>
    %686 = vector.shape_cast %685 : vector<16x8xf32> to vector<2x8x8xf32>
    %687 = tpu.concatenate %680, %682, %684, %686 in 0 : vector<2x8x8xf32>, vector<2x8x8xf32>, vector<2x8x8xf32>, vector<2x8x8xf32> -> vector<8x8x8xf32>
    "tpu.trace_start"() <{level = 10 : i32, message = "bqd,bkd->bqk"}> : () -> ()
    %cst_148 = arith.constant dense<0.000000e+00> : vector<8x8x8xf32>
    %688 = tpu.matmul %669, %678, %cst_148 {dimension_numbers = #tpu.dot_dimension_numbers<[2], [2], [1], [1], [0, 0, 0, 1, 1, 1], [0], [0]>} : vector<8x8x8xf32>, vector<8x8x8xf32>, vector<8x8x8xf32> -> vector<8x8x8xf32>
    "tpu.trace_stop"() : () -> ()
    %689 = arith.addf %688, %18 : vector<8x8x8xf32>
    %cst_149 = arith.constant dense<0xFF800000> : vector<8x8xf32>
    %690 = vector.multi_reduction <maximumf>, %689, %cst_149 [2] : vector<8x8x8xf32> to vector<8x8xf32>
    %691 = vector.shape_cast %690 : vector<8x8xf32> to vector<8x8x1xf32>
    %692 = vector.broadcast %691 : vector<8x8x1xf32> to vector<8x8x8xf32>
    %693 = arith.subf %689, %692 : vector<8x8x8xf32>
    %694 = math.exp %693 : vector<8x8x8xf32>
    %cst_150 = arith.constant dense<0.000000e+00> : vector<8x8xf32>
    %695 = vector.multi_reduction <add>, %694, %cst_150 [2] : vector<8x8x8xf32> to vector<8x8xf32>
    %696 = vector.shape_cast %695 : vector<8x8xf32> to vector<8x8x1xf32>
    %697 = tpu.reciprocal %696 {approx = true} : vector<8x8x1xf32> -> vector<8x8x1xf32>
    %698 = vector.broadcast %697 : vector<8x8x1xf32> to vector<8x8x8xf32>
    %699 = arith.mulf %694, %698 : vector<8x8x8xf32>
    "tpu.trace_start"() <{level = 10 : i32, message = "bqk,bkd->bqd"}> : () -> ()
    %cst_151 = arith.constant dense<0.000000e+00> : vector<8x8x8xf32>
    %700 = tpu.matmul %699, %687, %cst_151 {dimension_numbers = #tpu.dot_dimension_numbers<[2], [1], [1], [2], [0, 0, 0, 1, 1, 2], [0], [0]>} : vector<8x8x8xf32>, vector<8x8x8xf32>, vector<8x8x8xf32> -> vector<8x8x8xf32>
    "tpu.trace_stop"() : () -> ()
    %701 = vector.extract_strided_slice %700 {offsets = [0, 0, 0], sizes = [2, 8, 8], strides = [1, 1, 1]} : vector<8x8x8xf32> to vector<2x8x8xf32>
    %702 = vector.shape_cast %701 : vector<2x8x8xf32> to vector<16x8xf32>
    %703 = vector.extract_strided_slice %700 {offsets = [2, 0, 0], sizes = [2, 8, 8], strides = [1, 1, 1]} : vector<8x8x8xf32> to vector<2x8x8xf32>
    %704 = vector.shape_cast %703 : vector<2x8x8xf32> to vector<16x8xf32>
    %705 = vector.extract_strided_slice %700 {offsets = [4, 0, 0], sizes = [2, 8, 8], strides = [1, 1, 1]} : vector<8x8x8xf32> to vector<2x8x8xf32>
    %706 = vector.shape_cast %705 : vector<2x8x8xf32> to vector<16x8xf32>
    %707 = vector.extract_strided_slice %700 {offsets = [6, 0, 0], sizes = [2, 8, 8], strides = [1, 1, 1]} : vector<8x8x8xf32> to vector<2x8x8xf32>
    %708 = vector.shape_cast %707 : vector<2x8x8xf32> to vector<16x8xf32>
    %709 = tpu.concatenate %702, %704, %706, %708 in 1 : vector<16x8xf32>, vector<16x8xf32>, vector<16x8xf32>, vector<16x8xf32> -> vector<16x32xf32>
    %710 = vector.extract_strided_slice %650 {offsets = [0, 96], sizes = [32, 32], strides = [1, 1]} : vector<32x320xf32> to vector<32x32xf32>
    %711 = vector.extract_strided_slice %652 {offsets = [1, 0], sizes = [1, 32], strides = [1, 1]} : vector<13x96xf32> to vector<1x32xf32>
    %cst_152 = arith.constant dense<0.000000e+00> : vector<16x32xf32>
    %712 = tpu.matmul %709, %710, %cst_152 {dimension_numbers = #tpu.dot_dimension_numbers<[1], [0], [0], [1], [0, 0, 1, 1], [], []>} : vector<16x32xf32>, vector<32x32xf32>, vector<16x32xf32> -> vector<16x32xf32>
    %713 = vector.broadcast %711 : vector<1x32xf32> to vector<16x32xf32>
    %714 = arith.addf %712, %713 : vector<16x32xf32>
    %715 = arith.addf %648, %714 : vector<16x32xf32>
    %716 = vector.extract_strided_slice %652 {offsets = [7, 0], sizes = [1, 32], strides = [1, 1]} : vector<13x96xf32> to vector<1x32xf32>
    %717 = vector.extract_strided_slice %652 {offsets = [8, 0], sizes = [1, 32], strides = [1, 1]} : vector<13x96xf32> to vector<1x32xf32>
    %cst_153 = arith.constant dense<0.000000e+00> : vector<16xf32>
    %718 = vector.multi_reduction <add>, %715, %cst_153 [1] : vector<16x32xf32> to vector<16xf32>
    %719 = vector.shape_cast %718 : vector<16xf32> to vector<16x1xf32>
    %cst_154 = arith.constant 3.200000e+01 : f32
    %720 = vector.broadcast %cst_154 : f32 to vector<16x1xf32>
    %721 = arith.divf %719, %720 : vector<16x1xf32>
    %722 = vector.broadcast %721 : vector<16x1xf32> to vector<16x32xf32>
    %723 = arith.subf %715, %722 : vector<16x32xf32>
    %724 = arith.mulf %723, %723 : vector<16x32xf32>
    %cst_155 = arith.constant dense<0.000000e+00> : vector<16xf32>
    %725 = vector.multi_reduction <add>, %724, %cst_155 [1] : vector<16x32xf32> to vector<16xf32>
    %726 = vector.shape_cast %725 : vector<16xf32> to vector<16x1xf32>
    %cst_156 = arith.constant 3.200000e+01 : f32
    %727 = vector.broadcast %cst_156 : f32 to vector<16x1xf32>
    %728 = arith.divf %726, %727 : vector<16x1xf32>
    %cst_157 = arith.constant 9.99999974E-6 : f32
    %729 = vector.broadcast %cst_157 : f32 to vector<16x1xf32>
    %730 = arith.addf %728, %729 : vector<16x1xf32>
    %731 = math.rsqrt %730 : vector<16x1xf32>
    %732 = vector.broadcast %731 : vector<16x1xf32> to vector<16x32xf32>
    %733 = arith.mulf %723, %732 : vector<16x32xf32>
    %734 = vector.broadcast %716 : vector<1x32xf32> to vector<16x32xf32>
    %735 = arith.mulf %733, %734 : vector<16x32xf32>
    %736 = vector.broadcast %717 : vector<1x32xf32> to vector<16x32xf32>
    %737 = arith.addf %735, %736 : vector<16x32xf32>
    %738 = vector.extract_strided_slice %650 {offsets = [0, 128], sizes = [32, 32], strides = [1, 1]} : vector<32x320xf32> to vector<32x32xf32>
    %739 = vector.extract_strided_slice %652 {offsets = [2, 0], sizes = [1, 32], strides = [1, 1]} : vector<13x96xf32> to vector<1x32xf32>
    %cst_158 = arith.constant dense<0.000000e+00> : vector<16x32xf32>
    %740 = tpu.matmul %737, %738, %cst_158 {dimension_numbers = #tpu.dot_dimension_numbers<[1], [0], [0], [1], [0, 0, 1, 1], [], []>} : vector<16x32xf32>, vector<32x32xf32>, vector<16x32xf32> -> vector<16x32xf32>
    %741 = vector.broadcast %739 : vector<1x32xf32> to vector<16x32xf32>
    %742 = arith.addf %740, %741 : vector<16x32xf32>
    %743 = vector.extract_strided_slice %650 {offsets = [0, 160], sizes = [32, 64], strides = [1, 1]} : vector<32x320xf32> to vector<32x64xf32>
    %744 = vector.extract_strided_slice %652 {offsets = [3, 0], sizes = [1, 64], strides = [1, 1]} : vector<13x96xf32> to vector<1x64xf32>
    %cst_159 = arith.constant dense<0.000000e+00> : vector<16x64xf32>
    %745 = tpu.matmul %427, %743, %cst_159 {dimension_numbers = #tpu.dot_dimension_numbers<[1], [0], [0], [1], [0, 0, 1, 1], [], []>} : vector<16x32xf32>, vector<32x64xf32>, vector<16x64xf32> -> vector<16x64xf32>
    %746 = vector.broadcast %744 : vector<1x64xf32> to vector<16x64xf32>
    %747 = arith.addf %745, %746 : vector<16x64xf32>
    %748 = vector.extract_strided_slice %747 {offsets = [0, 0], sizes = [16, 32], strides = [1, 1]} : vector<16x64xf32> to vector<16x32xf32>
    %749 = vector.extract_strided_slice %747 {offsets = [0, 32], sizes = [16, 32], strides = [1, 1]} : vector<16x64xf32> to vector<16x32xf32>
    %750 = vector.extract_strided_slice %742 {offsets = [0, 0], sizes = [16, 8], strides = [1, 1]} : vector<16x32xf32> to vector<16x8xf32>
    %751 = vector.shape_cast %750 : vector<16x8xf32> to vector<2x8x8xf32>
    %752 = vector.extract_strided_slice %742 {offsets = [0, 8], sizes = [16, 8], strides = [1, 1]} : vector<16x32xf32> to vector<16x8xf32>
    %753 = vector.shape_cast %752 : vector<16x8xf32> to vector<2x8x8xf32>
    %754 = vector.extract_strided_slice %742 {offsets = [0, 16], sizes = [16, 8], strides = [1, 1]} : vector<16x32xf32> to vector<16x8xf32>
    %755 = vector.shape_cast %754 : vector<16x8xf32> to vector<2x8x8xf32>
    %756 = vector.extract_strided_slice %742 {offsets = [0, 24], sizes = [16, 8], strides = [1, 1]} : vector<16x32xf32> to vector<16x8xf32>
    %757 = vector.shape_cast %756 : vector<16x8xf32> to vector<2x8x8xf32>
    %758 = tpu.concatenate %751, %753, %755, %757 in 0 : vector<2x8x8xf32>, vector<2x8x8xf32>, vector<2x8x8xf32>, vector<2x8x8xf32> -> vector<8x8x8xf32>
    %759 = vector.extract_strided_slice %748 {offsets = [0, 0], sizes = [16, 8], strides = [1, 1]} : vector<16x32xf32> to vector<16x8xf32>
    %760 = vector.shape_cast %759 : vector<16x8xf32> to vector<2x8x8xf32>
    %761 = vector.extract_strided_slice %748 {offsets = [0, 8], sizes = [16, 8], strides = [1, 1]} : vector<16x32xf32> to vector<16x8xf32>
    %762 = vector.shape_cast %761 : vector<16x8xf32> to vector<2x8x8xf32>
    %763 = vector.extract_strided_slice %748 {offsets = [0, 16], sizes = [16, 8], strides = [1, 1]} : vector<16x32xf32> to vector<16x8xf32>
    %764 = vector.shape_cast %763 : vector<16x8xf32> to vector<2x8x8xf32>
    %765 = vector.extract_strided_slice %748 {offsets = [0, 24], sizes = [16, 8], strides = [1, 1]} : vector<16x32xf32> to vector<16x8xf32>
    %766 = vector.shape_cast %765 : vector<16x8xf32> to vector<2x8x8xf32>
    %767 = tpu.concatenate %760, %762, %764, %766 in 0 : vector<2x8x8xf32>, vector<2x8x8xf32>, vector<2x8x8xf32>, vector<2x8x8xf32> -> vector<8x8x8xf32>
    %768 = vector.extract_strided_slice %749 {offsets = [0, 0], sizes = [16, 8], strides = [1, 1]} : vector<16x32xf32> to vector<16x8xf32>
    %769 = vector.shape_cast %768 : vector<16x8xf32> to vector<2x8x8xf32>
    %770 = vector.extract_strided_slice %749 {offsets = [0, 8], sizes = [16, 8], strides = [1, 1]} : vector<16x32xf32> to vector<16x8xf32>
    %771 = vector.shape_cast %770 : vector<16x8xf32> to vector<2x8x8xf32>
    %772 = vector.extract_strided_slice %749 {offsets = [0, 16], sizes = [16, 8], strides = [1, 1]} : vector<16x32xf32> to vector<16x8xf32>
    %773 = vector.shape_cast %772 : vector<16x8xf32> to vector<2x8x8xf32>
    %774 = vector.extract_strided_slice %749 {offsets = [0, 24], sizes = [16, 8], strides = [1, 1]} : vector<16x32xf32> to vector<16x8xf32>
    %775 = vector.shape_cast %774 : vector<16x8xf32> to vector<2x8x8xf32>
    %776 = tpu.concatenate %769, %771, %773, %775 in 0 : vector<2x8x8xf32>, vector<2x8x8xf32>, vector<2x8x8xf32>, vector<2x8x8xf32> -> vector<8x8x8xf32>
    "tpu.trace_start"() <{level = 10 : i32, message = "bqd,bkd->bqk"}> : () -> ()
    %cst_160 = arith.constant dense<0.000000e+00> : vector<8x8x8xf32>
    %777 = tpu.matmul %758, %767, %cst_160 {dimension_numbers = #tpu.dot_dimension_numbers<[2], [2], [1], [1], [0, 0, 0, 1, 1, 1], [0], [0]>} : vector<8x8x8xf32>, vector<8x8x8xf32>, vector<8x8x8xf32> -> vector<8x8x8xf32>
    "tpu.trace_stop"() : () -> ()
    %778 = arith.addf %777, %22 : vector<8x8x8xf32>
    %cst_161 = arith.constant dense<0xFF800000> : vector<8x8xf32>
    %779 = vector.multi_reduction <maximumf>, %778, %cst_161 [2] : vector<8x8x8xf32> to vector<8x8xf32>
    %780 = vector.shape_cast %779 : vector<8x8xf32> to vector<8x8x1xf32>
    %781 = vector.broadcast %780 : vector<8x8x1xf32> to vector<8x8x8xf32>
    %782 = arith.subf %778, %781 : vector<8x8x8xf32>
    %783 = math.exp %782 : vector<8x8x8xf32>
    %cst_162 = arith.constant dense<0.000000e+00> : vector<8x8xf32>
    %784 = vector.multi_reduction <add>, %783, %cst_162 [2] : vector<8x8x8xf32> to vector<8x8xf32>
    %785 = vector.shape_cast %784 : vector<8x8xf32> to vector<8x8x1xf32>
    %786 = tpu.reciprocal %785 {approx = true} : vector<8x8x1xf32> -> vector<8x8x1xf32>
    %787 = vector.broadcast %786 : vector<8x8x1xf32> to vector<8x8x8xf32>
    %788 = arith.mulf %783, %787 : vector<8x8x8xf32>
    "tpu.trace_start"() <{level = 10 : i32, message = "bqk,bkd->bqd"}> : () -> ()
    %cst_163 = arith.constant dense<0.000000e+00> : vector<8x8x8xf32>
    %789 = tpu.matmul %788, %776, %cst_163 {dimension_numbers = #tpu.dot_dimension_numbers<[2], [1], [1], [2], [0, 0, 0, 1, 1, 2], [0], [0]>} : vector<8x8x8xf32>, vector<8x8x8xf32>, vector<8x8x8xf32> -> vector<8x8x8xf32>
    "tpu.trace_stop"() : () -> ()
    %790 = vector.extract_strided_slice %789 {offsets = [0, 0, 0], sizes = [2, 8, 8], strides = [1, 1, 1]} : vector<8x8x8xf32> to vector<2x8x8xf32>
    %791 = vector.shape_cast %790 : vector<2x8x8xf32> to vector<16x8xf32>
    %792 = vector.extract_strided_slice %789 {offsets = [2, 0, 0], sizes = [2, 8, 8], strides = [1, 1, 1]} : vector<8x8x8xf32> to vector<2x8x8xf32>
    %793 = vector.shape_cast %792 : vector<2x8x8xf32> to vector<16x8xf32>
    %794 = vector.extract_strided_slice %789 {offsets = [4, 0, 0], sizes = [2, 8, 8], strides = [1, 1, 1]} : vector<8x8x8xf32> to vector<2x8x8xf32>
    %795 = vector.shape_cast %794 : vector<2x8x8xf32> to vector<16x8xf32>
    %796 = vector.extract_strided_slice %789 {offsets = [6, 0, 0], sizes = [2, 8, 8], strides = [1, 1, 1]} : vector<8x8x8xf32> to vector<2x8x8xf32>
    %797 = vector.shape_cast %796 : vector<2x8x8xf32> to vector<16x8xf32>
    %798 = tpu.concatenate %791, %793, %795, %797 in 1 : vector<16x8xf32>, vector<16x8xf32>, vector<16x8xf32>, vector<16x8xf32> -> vector<16x32xf32>
    %799 = vector.extract_strided_slice %650 {offsets = [0, 224], sizes = [32, 32], strides = [1, 1]} : vector<32x320xf32> to vector<32x32xf32>
    %800 = vector.extract_strided_slice %652 {offsets = [4, 0], sizes = [1, 32], strides = [1, 1]} : vector<13x96xf32> to vector<1x32xf32>
    %cst_164 = arith.constant dense<0.000000e+00> : vector<16x32xf32>
    %801 = tpu.matmul %798, %799, %cst_164 {dimension_numbers = #tpu.dot_dimension_numbers<[1], [0], [0], [1], [0, 0, 1, 1], [], []>} : vector<16x32xf32>, vector<32x32xf32>, vector<16x32xf32> -> vector<16x32xf32>
    %802 = vector.broadcast %800 : vector<1x32xf32> to vector<16x32xf32>
    %803 = arith.addf %801, %802 : vector<16x32xf32>
    %804 = arith.addf %737, %803 : vector<16x32xf32>
    %805 = vector.extract_strided_slice %652 {offsets = [9, 0], sizes = [1, 32], strides = [1, 1]} : vector<13x96xf32> to vector<1x32xf32>
    %806 = vector.extract_strided_slice %652 {offsets = [10, 0], sizes = [1, 32], strides = [1, 1]} : vector<13x96xf32> to vector<1x32xf32>
    %cst_165 = arith.constant dense<0.000000e+00> : vector<16xf32>
    %807 = vector.multi_reduction <add>, %804, %cst_165 [1] : vector<16x32xf32> to vector<16xf32>
    %808 = vector.shape_cast %807 : vector<16xf32> to vector<16x1xf32>
    %cst_166 = arith.constant 3.200000e+01 : f32
    %809 = vector.broadcast %cst_166 : f32 to vector<16x1xf32>
    %810 = arith.divf %808, %809 : vector<16x1xf32>
    %811 = vector.broadcast %810 : vector<16x1xf32> to vector<16x32xf32>
    %812 = arith.subf %804, %811 : vector<16x32xf32>
    %813 = arith.mulf %812, %812 : vector<16x32xf32>
    %cst_167 = arith.constant dense<0.000000e+00> : vector<16xf32>
    %814 = vector.multi_reduction <add>, %813, %cst_167 [1] : vector<16x32xf32> to vector<16xf32>
    %815 = vector.shape_cast %814 : vector<16xf32> to vector<16x1xf32>
    %cst_168 = arith.constant 3.200000e+01 : f32
    %816 = vector.broadcast %cst_168 : f32 to vector<16x1xf32>
    %817 = arith.divf %815, %816 : vector<16x1xf32>
    %cst_169 = arith.constant 9.99999974E-6 : f32
    %818 = vector.broadcast %cst_169 : f32 to vector<16x1xf32>
    %819 = arith.addf %817, %818 : vector<16x1xf32>
    %820 = math.rsqrt %819 : vector<16x1xf32>
    %821 = vector.broadcast %820 : vector<16x1xf32> to vector<16x32xf32>
    %822 = arith.mulf %812, %821 : vector<16x32xf32>
    %823 = vector.broadcast %805 : vector<1x32xf32> to vector<16x32xf32>
    %824 = arith.mulf %822, %823 : vector<16x32xf32>
    %825 = vector.broadcast %806 : vector<1x32xf32> to vector<16x32xf32>
    %826 = arith.addf %824, %825 : vector<16x32xf32>
    %827 = vector.extract_strided_slice %650 {offsets = [0, 256], sizes = [32, 64], strides = [1, 1]} : vector<32x320xf32> to vector<32x64xf32>
    %828 = vector.extract_strided_slice %652 {offsets = [5, 0], sizes = [1, 64], strides = [1, 1]} : vector<13x96xf32> to vector<1x64xf32>
    %cst_170 = arith.constant dense<0.000000e+00> : vector<16x64xf32>
    %829 = tpu.matmul %826, %827, %cst_170 {dimension_numbers = #tpu.dot_dimension_numbers<[1], [0], [0], [1], [0, 0, 1, 1], [], []>} : vector<16x32xf32>, vector<32x64xf32>, vector<16x64xf32> -> vector<16x64xf32>
    %830 = vector.broadcast %828 : vector<1x64xf32> to vector<16x64xf32>
    %831 = arith.addf %829, %830 : vector<16x64xf32>
    %cst_171 = arith.constant 0.000000e+00 : f32
    %832 = vector.broadcast %cst_171 : f32 to vector<16x64xf32>
    %833 = arith.maximumf %831, %832 : vector<16x64xf32>
    %c1_172 = arith.constant 1 : index
    %c0_173 = arith.constant 0 : index
    %c0_174 = arith.constant 0 : index
    %834 = vector.load %arg9[%c1_172, %c0_173, %c0_174] : memref<3x64x32xf32, #tpu.memory_space<vmem>>, vector<1x64x32xf32>
    %835 = vector.shape_cast %834 : vector<1x64x32xf32> to vector<64x32xf32>
    %836 = vector.extract_strided_slice %652 {offsets = [6, 0], sizes = [1, 32], strides = [1, 1]} : vector<13x96xf32> to vector<1x32xf32>
    %cst_175 = arith.constant dense<0.000000e+00> : vector<16x32xf32>
    %837 = tpu.matmul %833, %835, %cst_175 {dimension_numbers = #tpu.dot_dimension_numbers<[1], [0], [0], [1], [0, 0, 1, 1], [], []>} : vector<16x64xf32>, vector<64x32xf32>, vector<16x32xf32> -> vector<16x32xf32>
    %838 = vector.broadcast %836 : vector<1x32xf32> to vector<16x32xf32>
    %839 = arith.addf %837, %838 : vector<16x32xf32>
    %840 = arith.addf %826, %839 : vector<16x32xf32>
    %841 = vector.extract_strided_slice %652 {offsets = [11, 0], sizes = [1, 32], strides = [1, 1]} : vector<13x96xf32> to vector<1x32xf32>
    %842 = vector.extract_strided_slice %652 {offsets = [12, 0], sizes = [1, 32], strides = [1, 1]} : vector<13x96xf32> to vector<1x32xf32>
    %cst_176 = arith.constant dense<0.000000e+00> : vector<16xf32>
    %843 = vector.multi_reduction <add>, %840, %cst_176 [1] : vector<16x32xf32> to vector<16xf32>
    %844 = vector.shape_cast %843 : vector<16xf32> to vector<16x1xf32>
    %cst_177 = arith.constant 3.200000e+01 : f32
    %845 = vector.broadcast %cst_177 : f32 to vector<16x1xf32>
    %846 = arith.divf %844, %845 : vector<16x1xf32>
    %847 = vector.broadcast %846 : vector<16x1xf32> to vector<16x32xf32>
    %848 = arith.subf %840, %847 : vector<16x32xf32>
    %849 = arith.mulf %848, %848 : vector<16x32xf32>
    %cst_178 = arith.constant dense<0.000000e+00> : vector<16xf32>
    %850 = vector.multi_reduction <add>, %849, %cst_178 [1] : vector<16x32xf32> to vector<16xf32>
    %851 = vector.shape_cast %850 : vector<16xf32> to vector<16x1xf32>
    %cst_179 = arith.constant 3.200000e+01 : f32
    %852 = vector.broadcast %cst_179 : f32 to vector<16x1xf32>
    %853 = arith.divf %851, %852 : vector<16x1xf32>
    %cst_180 = arith.constant 9.99999974E-6 : f32
    %854 = vector.broadcast %cst_180 : f32 to vector<16x1xf32>
    %855 = arith.addf %853, %854 : vector<16x1xf32>
    %856 = math.rsqrt %855 : vector<16x1xf32>
    %857 = vector.broadcast %856 : vector<16x1xf32> to vector<16x32xf32>
    %858 = arith.mulf %848, %857 : vector<16x32xf32>
    %859 = vector.broadcast %841 : vector<1x32xf32> to vector<16x32xf32>
    %860 = arith.mulf %858, %859 : vector<16x32xf32>
    %861 = vector.broadcast %842 : vector<1x32xf32> to vector<16x32xf32>
    %862 = arith.addf %860, %861 : vector<16x32xf32>
    %c2_181 = arith.constant 2 : index
    %c0_182 = arith.constant 0 : index
    %c0_183 = arith.constant 0 : index
    %863 = vector.load %arg8[%c2_181, %c0_182, %c0_183] : memref<3x32x320xf32, #tpu.memory_space<vmem>>, vector<1x32x320xf32>
    %864 = vector.shape_cast %863 : vector<1x32x320xf32> to vector<32x320xf32>
    %c2_184 = arith.constant 2 : index
    %c0_185 = arith.constant 0 : index
    %c0_186 = arith.constant 0 : index
    %865 = vector.load %arg10[%c2_184, %c0_185, %c0_186] : memref<3x13x96xf32, #tpu.memory_space<vmem>>, vector<1x13x96xf32>
    %866 = vector.shape_cast %865 : vector<1x13x96xf32> to vector<13x96xf32>
    %867 = vector.extract_strided_slice %864 {offsets = [0, 0], sizes = [32, 96], strides = [1, 1]} : vector<32x320xf32> to vector<32x96xf32>
    %868 = vector.extract_strided_slice %866 {offsets = [0, 0], sizes = [1, 96], strides = [1, 1]} : vector<13x96xf32> to vector<1x96xf32>
    %cst_187 = arith.constant dense<0.000000e+00> : vector<16x96xf32>
    %869 = tpu.matmul %862, %867, %cst_187 {dimension_numbers = #tpu.dot_dimension_numbers<[1], [0], [0], [1], [0, 0, 1, 1], [], []>} : vector<16x32xf32>, vector<32x96xf32>, vector<16x96xf32> -> vector<16x96xf32>
    %870 = vector.broadcast %868 : vector<1x96xf32> to vector<16x96xf32>
    %871 = arith.addf %869, %870 : vector<16x96xf32>
    %872 = vector.extract_strided_slice %871 {offsets = [0, 0], sizes = [16, 32], strides = [1, 1]} : vector<16x96xf32> to vector<16x32xf32>
    %873 = vector.extract_strided_slice %871 {offsets = [0, 32], sizes = [16, 32], strides = [1, 1]} : vector<16x96xf32> to vector<16x32xf32>
    %874 = vector.extract_strided_slice %871 {offsets = [0, 64], sizes = [16, 32], strides = [1, 1]} : vector<16x96xf32> to vector<16x32xf32>
    %875 = vector.extract_strided_slice %872 {offsets = [0, 0], sizes = [16, 8], strides = [1, 1]} : vector<16x32xf32> to vector<16x8xf32>
    %876 = vector.shape_cast %875 : vector<16x8xf32> to vector<2x8x8xf32>
    %877 = vector.extract_strided_slice %872 {offsets = [0, 8], sizes = [16, 8], strides = [1, 1]} : vector<16x32xf32> to vector<16x8xf32>
    %878 = vector.shape_cast %877 : vector<16x8xf32> to vector<2x8x8xf32>
    %879 = vector.extract_strided_slice %872 {offsets = [0, 16], sizes = [16, 8], strides = [1, 1]} : vector<16x32xf32> to vector<16x8xf32>
    %880 = vector.shape_cast %879 : vector<16x8xf32> to vector<2x8x8xf32>
    %881 = vector.extract_strided_slice %872 {offsets = [0, 24], sizes = [16, 8], strides = [1, 1]} : vector<16x32xf32> to vector<16x8xf32>
    %882 = vector.shape_cast %881 : vector<16x8xf32> to vector<2x8x8xf32>
    %883 = tpu.concatenate %876, %878, %880, %882 in 0 : vector<2x8x8xf32>, vector<2x8x8xf32>, vector<2x8x8xf32>, vector<2x8x8xf32> -> vector<8x8x8xf32>
    %884 = vector.extract_strided_slice %873 {offsets = [0, 0], sizes = [16, 8], strides = [1, 1]} : vector<16x32xf32> to vector<16x8xf32>
    %885 = vector.shape_cast %884 : vector<16x8xf32> to vector<2x8x8xf32>
    %886 = vector.extract_strided_slice %873 {offsets = [0, 8], sizes = [16, 8], strides = [1, 1]} : vector<16x32xf32> to vector<16x8xf32>
    %887 = vector.shape_cast %886 : vector<16x8xf32> to vector<2x8x8xf32>
    %888 = vector.extract_strided_slice %873 {offsets = [0, 16], sizes = [16, 8], strides = [1, 1]} : vector<16x32xf32> to vector<16x8xf32>
    %889 = vector.shape_cast %888 : vector<16x8xf32> to vector<2x8x8xf32>
    %890 = vector.extract_strided_slice %873 {offsets = [0, 24], sizes = [16, 8], strides = [1, 1]} : vector<16x32xf32> to vector<16x8xf32>
    %891 = vector.shape_cast %890 : vector<16x8xf32> to vector<2x8x8xf32>
    %892 = tpu.concatenate %885, %887, %889, %891 in 0 : vector<2x8x8xf32>, vector<2x8x8xf32>, vector<2x8x8xf32>, vector<2x8x8xf32> -> vector<8x8x8xf32>
    %893 = vector.extract_strided_slice %874 {offsets = [0, 0], sizes = [16, 8], strides = [1, 1]} : vector<16x32xf32> to vector<16x8xf32>
    %894 = vector.shape_cast %893 : vector<16x8xf32> to vector<2x8x8xf32>
    %895 = vector.extract_strided_slice %874 {offsets = [0, 8], sizes = [16, 8], strides = [1, 1]} : vector<16x32xf32> to vector<16x8xf32>
    %896 = vector.shape_cast %895 : vector<16x8xf32> to vector<2x8x8xf32>
    %897 = vector.extract_strided_slice %874 {offsets = [0, 16], sizes = [16, 8], strides = [1, 1]} : vector<16x32xf32> to vector<16x8xf32>
    %898 = vector.shape_cast %897 : vector<16x8xf32> to vector<2x8x8xf32>
    %899 = vector.extract_strided_slice %874 {offsets = [0, 24], sizes = [16, 8], strides = [1, 1]} : vector<16x32xf32> to vector<16x8xf32>
    %900 = vector.shape_cast %899 : vector<16x8xf32> to vector<2x8x8xf32>
    %901 = tpu.concatenate %894, %896, %898, %900 in 0 : vector<2x8x8xf32>, vector<2x8x8xf32>, vector<2x8x8xf32>, vector<2x8x8xf32> -> vector<8x8x8xf32>
    "tpu.trace_start"() <{level = 10 : i32, message = "bqd,bkd->bqk"}> : () -> ()
    %cst_188 = arith.constant dense<0.000000e+00> : vector<8x8x8xf32>
    %902 = tpu.matmul %883, %892, %cst_188 {dimension_numbers = #tpu.dot_dimension_numbers<[2], [2], [1], [1], [0, 0, 0, 1, 1, 1], [0], [0]>} : vector<8x8x8xf32>, vector<8x8x8xf32>, vector<8x8x8xf32> -> vector<8x8x8xf32>
    "tpu.trace_stop"() : () -> ()
    %903 = arith.addf %902, %18 : vector<8x8x8xf32>
    %cst_189 = arith.constant dense<0xFF800000> : vector<8x8xf32>
    %904 = vector.multi_reduction <maximumf>, %903, %cst_189 [2] : vector<8x8x8xf32> to vector<8x8xf32>
    %905 = vector.shape_cast %904 : vector<8x8xf32> to vector<8x8x1xf32>
    %906 = vector.broadcast %905 : vector<8x8x1xf32> to vector<8x8x8xf32>
    %907 = arith.subf %903, %906 : vector<8x8x8xf32>
    %908 = math.exp %907 : vector<8x8x8xf32>
    %cst_190 = arith.constant dense<0.000000e+00> : vector<8x8xf32>
    %909 = vector.multi_reduction <add>, %908, %cst_190 [2] : vector<8x8x8xf32> to vector<8x8xf32>
    %910 = vector.shape_cast %909 : vector<8x8xf32> to vector<8x8x1xf32>
    %911 = tpu.reciprocal %910 {approx = true} : vector<8x8x1xf32> -> vector<8x8x1xf32>
    %912 = vector.broadcast %911 : vector<8x8x1xf32> to vector<8x8x8xf32>
    %913 = arith.mulf %908, %912 : vector<8x8x8xf32>
    "tpu.trace_start"() <{level = 10 : i32, message = "bqk,bkd->bqd"}> : () -> ()
    %cst_191 = arith.constant dense<0.000000e+00> : vector<8x8x8xf32>
    %914 = tpu.matmul %913, %901, %cst_191 {dimension_numbers = #tpu.dot_dimension_numbers<[2], [1], [1], [2], [0, 0, 0, 1, 1, 2], [0], [0]>} : vector<8x8x8xf32>, vector<8x8x8xf32>, vector<8x8x8xf32> -> vector<8x8x8xf32>
    "tpu.trace_stop"() : () -> ()
    %915 = vector.extract_strided_slice %914 {offsets = [0, 0, 0], sizes = [2, 8, 8], strides = [1, 1, 1]} : vector<8x8x8xf32> to vector<2x8x8xf32>
    %916 = vector.shape_cast %915 : vector<2x8x8xf32> to vector<16x8xf32>
    %917 = vector.extract_strided_slice %914 {offsets = [2, 0, 0], sizes = [2, 8, 8], strides = [1, 1, 1]} : vector<8x8x8xf32> to vector<2x8x8xf32>
    %918 = vector.shape_cast %917 : vector<2x8x8xf32> to vector<16x8xf32>
    %919 = vector.extract_strided_slice %914 {offsets = [4, 0, 0], sizes = [2, 8, 8], strides = [1, 1, 1]} : vector<8x8x8xf32> to vector<2x8x8xf32>
    %920 = vector.shape_cast %919 : vector<2x8x8xf32> to vector<16x8xf32>
    %921 = vector.extract_strided_slice %914 {offsets = [6, 0, 0], sizes = [2, 8, 8], strides = [1, 1, 1]} : vector<8x8x8xf32> to vector<2x8x8xf32>
    %922 = vector.shape_cast %921 : vector<2x8x8xf32> to vector<16x8xf32>
    %923 = tpu.concatenate %916, %918, %920, %922 in 1 : vector<16x8xf32>, vector<16x8xf32>, vector<16x8xf32>, vector<16x8xf32> -> vector<16x32xf32>
    %924 = vector.extract_strided_slice %864 {offsets = [0, 96], sizes = [32, 32], strides = [1, 1]} : vector<32x320xf32> to vector<32x32xf32>
    %925 = vector.extract_strided_slice %866 {offsets = [1, 0], sizes = [1, 32], strides = [1, 1]} : vector<13x96xf32> to vector<1x32xf32>
    %cst_192 = arith.constant dense<0.000000e+00> : vector<16x32xf32>
    %926 = tpu.matmul %923, %924, %cst_192 {dimension_numbers = #tpu.dot_dimension_numbers<[1], [0], [0], [1], [0, 0, 1, 1], [], []>} : vector<16x32xf32>, vector<32x32xf32>, vector<16x32xf32> -> vector<16x32xf32>
    %927 = vector.broadcast %925 : vector<1x32xf32> to vector<16x32xf32>
    %928 = arith.addf %926, %927 : vector<16x32xf32>
    %929 = arith.addf %862, %928 : vector<16x32xf32>
    %930 = vector.extract_strided_slice %866 {offsets = [7, 0], sizes = [1, 32], strides = [1, 1]} : vector<13x96xf32> to vector<1x32xf32>
    %931 = vector.extract_strided_slice %866 {offsets = [8, 0], sizes = [1, 32], strides = [1, 1]} : vector<13x96xf32> to vector<1x32xf32>
    %cst_193 = arith.constant dense<0.000000e+00> : vector<16xf32>
    %932 = vector.multi_reduction <add>, %929, %cst_193 [1] : vector<16x32xf32> to vector<16xf32>
    %933 = vector.shape_cast %932 : vector<16xf32> to vector<16x1xf32>
    %cst_194 = arith.constant 3.200000e+01 : f32
    %934 = vector.broadcast %cst_194 : f32 to vector<16x1xf32>
    %935 = arith.divf %933, %934 : vector<16x1xf32>
    %936 = vector.broadcast %935 : vector<16x1xf32> to vector<16x32xf32>
    %937 = arith.subf %929, %936 : vector<16x32xf32>
    %938 = arith.mulf %937, %937 : vector<16x32xf32>
    %cst_195 = arith.constant dense<0.000000e+00> : vector<16xf32>
    %939 = vector.multi_reduction <add>, %938, %cst_195 [1] : vector<16x32xf32> to vector<16xf32>
    %940 = vector.shape_cast %939 : vector<16xf32> to vector<16x1xf32>
    %cst_196 = arith.constant 3.200000e+01 : f32
    %941 = vector.broadcast %cst_196 : f32 to vector<16x1xf32>
    %942 = arith.divf %940, %941 : vector<16x1xf32>
    %cst_197 = arith.constant 9.99999974E-6 : f32
    %943 = vector.broadcast %cst_197 : f32 to vector<16x1xf32>
    %944 = arith.addf %942, %943 : vector<16x1xf32>
    %945 = math.rsqrt %944 : vector<16x1xf32>
    %946 = vector.broadcast %945 : vector<16x1xf32> to vector<16x32xf32>
    %947 = arith.mulf %937, %946 : vector<16x32xf32>
    %948 = vector.broadcast %930 : vector<1x32xf32> to vector<16x32xf32>
    %949 = arith.mulf %947, %948 : vector<16x32xf32>
    %950 = vector.broadcast %931 : vector<1x32xf32> to vector<16x32xf32>
    %951 = arith.addf %949, %950 : vector<16x32xf32>
    %952 = vector.extract_strided_slice %864 {offsets = [0, 128], sizes = [32, 32], strides = [1, 1]} : vector<32x320xf32> to vector<32x32xf32>
    %953 = vector.extract_strided_slice %866 {offsets = [2, 0], sizes = [1, 32], strides = [1, 1]} : vector<13x96xf32> to vector<1x32xf32>
    %cst_198 = arith.constant dense<0.000000e+00> : vector<16x32xf32>
    %954 = tpu.matmul %951, %952, %cst_198 {dimension_numbers = #tpu.dot_dimension_numbers<[1], [0], [0], [1], [0, 0, 1, 1], [], []>} : vector<16x32xf32>, vector<32x32xf32>, vector<16x32xf32> -> vector<16x32xf32>
    %955 = vector.broadcast %953 : vector<1x32xf32> to vector<16x32xf32>
    %956 = arith.addf %954, %955 : vector<16x32xf32>
    %957 = vector.extract_strided_slice %864 {offsets = [0, 160], sizes = [32, 64], strides = [1, 1]} : vector<32x320xf32> to vector<32x64xf32>
    %958 = vector.extract_strided_slice %866 {offsets = [3, 0], sizes = [1, 64], strides = [1, 1]} : vector<13x96xf32> to vector<1x64xf32>
    %cst_199 = arith.constant dense<0.000000e+00> : vector<16x64xf32>
    %959 = tpu.matmul %427, %957, %cst_199 {dimension_numbers = #tpu.dot_dimension_numbers<[1], [0], [0], [1], [0, 0, 1, 1], [], []>} : vector<16x32xf32>, vector<32x64xf32>, vector<16x64xf32> -> vector<16x64xf32>
    %960 = vector.broadcast %958 : vector<1x64xf32> to vector<16x64xf32>
    %961 = arith.addf %959, %960 : vector<16x64xf32>
    %962 = vector.extract_strided_slice %961 {offsets = [0, 0], sizes = [16, 32], strides = [1, 1]} : vector<16x64xf32> to vector<16x32xf32>
    %963 = vector.extract_strided_slice %961 {offsets = [0, 32], sizes = [16, 32], strides = [1, 1]} : vector<16x64xf32> to vector<16x32xf32>
    %964 = vector.extract_strided_slice %956 {offsets = [0, 0], sizes = [16, 8], strides = [1, 1]} : vector<16x32xf32> to vector<16x8xf32>
    %965 = vector.shape_cast %964 : vector<16x8xf32> to vector<2x8x8xf32>
    %966 = vector.extract_strided_slice %956 {offsets = [0, 8], sizes = [16, 8], strides = [1, 1]} : vector<16x32xf32> to vector<16x8xf32>
    %967 = vector.shape_cast %966 : vector<16x8xf32> to vector<2x8x8xf32>
    %968 = vector.extract_strided_slice %956 {offsets = [0, 16], sizes = [16, 8], strides = [1, 1]} : vector<16x32xf32> to vector<16x8xf32>
    %969 = vector.shape_cast %968 : vector<16x8xf32> to vector<2x8x8xf32>
    %970 = vector.extract_strided_slice %956 {offsets = [0, 24], sizes = [16, 8], strides = [1, 1]} : vector<16x32xf32> to vector<16x8xf32>
    %971 = vector.shape_cast %970 : vector<16x8xf32> to vector<2x8x8xf32>
    %972 = tpu.concatenate %965, %967, %969, %971 in 0 : vector<2x8x8xf32>, vector<2x8x8xf32>, vector<2x8x8xf32>, vector<2x8x8xf32> -> vector<8x8x8xf32>
    %973 = vector.extract_strided_slice %962 {offsets = [0, 0], sizes = [16, 8], strides = [1, 1]} : vector<16x32xf32> to vector<16x8xf32>
    %974 = vector.shape_cast %973 : vector<16x8xf32> to vector<2x8x8xf32>
    %975 = vector.extract_strided_slice %962 {offsets = [0, 8], sizes = [16, 8], strides = [1, 1]} : vector<16x32xf32> to vector<16x8xf32>
    %976 = vector.shape_cast %975 : vector<16x8xf32> to vector<2x8x8xf32>
    %977 = vector.extract_strided_slice %962 {offsets = [0, 16], sizes = [16, 8], strides = [1, 1]} : vector<16x32xf32> to vector<16x8xf32>
    %978 = vector.shape_cast %977 : vector<16x8xf32> to vector<2x8x8xf32>
    %979 = vector.extract_strided_slice %962 {offsets = [0, 24], sizes = [16, 8], strides = [1, 1]} : vector<16x32xf32> to vector<16x8xf32>
    %980 = vector.shape_cast %979 : vector<16x8xf32> to vector<2x8x8xf32>
    %981 = tpu.concatenate %974, %976, %978, %980 in 0 : vector<2x8x8xf32>, vector<2x8x8xf32>, vector<2x8x8xf32>, vector<2x8x8xf32> -> vector<8x8x8xf32>
    %982 = vector.extract_strided_slice %963 {offsets = [0, 0], sizes = [16, 8], strides = [1, 1]} : vector<16x32xf32> to vector<16x8xf32>
    %983 = vector.shape_cast %982 : vector<16x8xf32> to vector<2x8x8xf32>
    %984 = vector.extract_strided_slice %963 {offsets = [0, 8], sizes = [16, 8], strides = [1, 1]} : vector<16x32xf32> to vector<16x8xf32>
    %985 = vector.shape_cast %984 : vector<16x8xf32> to vector<2x8x8xf32>
    %986 = vector.extract_strided_slice %963 {offsets = [0, 16], sizes = [16, 8], strides = [1, 1]} : vector<16x32xf32> to vector<16x8xf32>
    %987 = vector.shape_cast %986 : vector<16x8xf32> to vector<2x8x8xf32>
    %988 = vector.extract_strided_slice %963 {offsets = [0, 24], sizes = [16, 8], strides = [1, 1]} : vector<16x32xf32> to vector<16x8xf32>
    %989 = vector.shape_cast %988 : vector<16x8xf32> to vector<2x8x8xf32>
    %990 = tpu.concatenate %983, %985, %987, %989 in 0 : vector<2x8x8xf32>, vector<2x8x8xf32>, vector<2x8x8xf32>, vector<2x8x8xf32> -> vector<8x8x8xf32>
    "tpu.trace_start"() <{level = 10 : i32, message = "bqd,bkd->bqk"}> : () -> ()
    %cst_200 = arith.constant dense<0.000000e+00> : vector<8x8x8xf32>
    %991 = tpu.matmul %972, %981, %cst_200 {dimension_numbers = #tpu.dot_dimension_numbers<[2], [2], [1], [1], [0, 0, 0, 1, 1, 1], [0], [0]>} : vector<8x8x8xf32>, vector<8x8x8xf32>, vector<8x8x8xf32> -> vector<8x8x8xf32>
    "tpu.trace_stop"() : () -> ()
    %992 = arith.addf %991, %22 : vector<8x8x8xf32>
    %cst_201 = arith.constant dense<0xFF800000> : vector<8x8xf32>
    %993 = vector.multi_reduction <maximumf>, %992, %cst_201 [2] : vector<8x8x8xf32> to vector<8x8xf32>
    %994 = vector.shape_cast %993 : vector<8x8xf32> to vector<8x8x1xf32>
    %995 = vector.broadcast %994 : vector<8x8x1xf32> to vector<8x8x8xf32>
    %996 = arith.subf %992, %995 : vector<8x8x8xf32>
    %997 = math.exp %996 : vector<8x8x8xf32>
    %cst_202 = arith.constant dense<0.000000e+00> : vector<8x8xf32>
    %998 = vector.multi_reduction <add>, %997, %cst_202 [2] : vector<8x8x8xf32> to vector<8x8xf32>
    %999 = vector.shape_cast %998 : vector<8x8xf32> to vector<8x8x1xf32>
    %1000 = tpu.reciprocal %999 {approx = true} : vector<8x8x1xf32> -> vector<8x8x1xf32>
    %1001 = vector.broadcast %1000 : vector<8x8x1xf32> to vector<8x8x8xf32>
    %1002 = arith.mulf %997, %1001 : vector<8x8x8xf32>
    "tpu.trace_start"() <{level = 10 : i32, message = "bqk,bkd->bqd"}> : () -> ()
    %cst_203 = arith.constant dense<0.000000e+00> : vector<8x8x8xf32>
    %1003 = tpu.matmul %1002, %990, %cst_203 {dimension_numbers = #tpu.dot_dimension_numbers<[2], [1], [1], [2], [0, 0, 0, 1, 1, 2], [0], [0]>} : vector<8x8x8xf32>, vector<8x8x8xf32>, vector<8x8x8xf32> -> vector<8x8x8xf32>
    "tpu.trace_stop"() : () -> ()
    %1004 = vector.extract_strided_slice %1003 {offsets = [0, 0, 0], sizes = [2, 8, 8], strides = [1, 1, 1]} : vector<8x8x8xf32> to vector<2x8x8xf32>
    %1005 = vector.shape_cast %1004 : vector<2x8x8xf32> to vector<16x8xf32>
    %1006 = vector.extract_strided_slice %1003 {offsets = [2, 0, 0], sizes = [2, 8, 8], strides = [1, 1, 1]} : vector<8x8x8xf32> to vector<2x8x8xf32>
    %1007 = vector.shape_cast %1006 : vector<2x8x8xf32> to vector<16x8xf32>
    %1008 = vector.extract_strided_slice %1003 {offsets = [4, 0, 0], sizes = [2, 8, 8], strides = [1, 1, 1]} : vector<8x8x8xf32> to vector<2x8x8xf32>
    %1009 = vector.shape_cast %1008 : vector<2x8x8xf32> to vector<16x8xf32>
    %1010 = vector.extract_strided_slice %1003 {offsets = [6, 0, 0], sizes = [2, 8, 8], strides = [1, 1, 1]} : vector<8x8x8xf32> to vector<2x8x8xf32>
    %1011 = vector.shape_cast %1010 : vector<2x8x8xf32> to vector<16x8xf32>
    %1012 = tpu.concatenate %1005, %1007, %1009, %1011 in 1 : vector<16x8xf32>, vector<16x8xf32>, vector<16x8xf32>, vector<16x8xf32> -> vector<16x32xf32>
    %1013 = vector.extract_strided_slice %864 {offsets = [0, 224], sizes = [32, 32], strides = [1, 1]} : vector<32x320xf32> to vector<32x32xf32>
    %1014 = vector.extract_strided_slice %866 {offsets = [4, 0], sizes = [1, 32], strides = [1, 1]} : vector<13x96xf32> to vector<1x32xf32>
    %cst_204 = arith.constant dense<0.000000e+00> : vector<16x32xf32>
    %1015 = tpu.matmul %1012, %1013, %cst_204 {dimension_numbers = #tpu.dot_dimension_numbers<[1], [0], [0], [1], [0, 0, 1, 1], [], []>} : vector<16x32xf32>, vector<32x32xf32>, vector<16x32xf32> -> vector<16x32xf32>
    %1016 = vector.broadcast %1014 : vector<1x32xf32> to vector<16x32xf32>
    %1017 = arith.addf %1015, %1016 : vector<16x32xf32>
    %1018 = arith.addf %951, %1017 : vector<16x32xf32>
    %1019 = vector.extract_strided_slice %866 {offsets = [9, 0], sizes = [1, 32], strides = [1, 1]} : vector<13x96xf32> to vector<1x32xf32>
    %1020 = vector.extract_strided_slice %866 {offsets = [10, 0], sizes = [1, 32], strides = [1, 1]} : vector<13x96xf32> to vector<1x32xf32>
    %cst_205 = arith.constant dense<0.000000e+00> : vector<16xf32>
    %1021 = vector.multi_reduction <add>, %1018, %cst_205 [1] : vector<16x32xf32> to vector<16xf32>
    %1022 = vector.shape_cast %1021 : vector<16xf32> to vector<16x1xf32>
    %cst_206 = arith.constant 3.200000e+01 : f32
    %1023 = vector.broadcast %cst_206 : f32 to vector<16x1xf32>
    %1024 = arith.divf %1022, %1023 : vector<16x1xf32>
    %1025 = vector.broadcast %1024 : vector<16x1xf32> to vector<16x32xf32>
    %1026 = arith.subf %1018, %1025 : vector<16x32xf32>
    %1027 = arith.mulf %1026, %1026 : vector<16x32xf32>
    %cst_207 = arith.constant dense<0.000000e+00> : vector<16xf32>
    %1028 = vector.multi_reduction <add>, %1027, %cst_207 [1] : vector<16x32xf32> to vector<16xf32>
    %1029 = vector.shape_cast %1028 : vector<16xf32> to vector<16x1xf32>
    %cst_208 = arith.constant 3.200000e+01 : f32
    %1030 = vector.broadcast %cst_208 : f32 to vector<16x1xf32>
    %1031 = arith.divf %1029, %1030 : vector<16x1xf32>
    %cst_209 = arith.constant 9.99999974E-6 : f32
    %1032 = vector.broadcast %cst_209 : f32 to vector<16x1xf32>
    %1033 = arith.addf %1031, %1032 : vector<16x1xf32>
    %1034 = math.rsqrt %1033 : vector<16x1xf32>
    %1035 = vector.broadcast %1034 : vector<16x1xf32> to vector<16x32xf32>
    %1036 = arith.mulf %1026, %1035 : vector<16x32xf32>
    %1037 = vector.broadcast %1019 : vector<1x32xf32> to vector<16x32xf32>
    %1038 = arith.mulf %1036, %1037 : vector<16x32xf32>
    %1039 = vector.broadcast %1020 : vector<1x32xf32> to vector<16x32xf32>
    %1040 = arith.addf %1038, %1039 : vector<16x32xf32>
    %1041 = vector.extract_strided_slice %864 {offsets = [0, 256], sizes = [32, 64], strides = [1, 1]} : vector<32x320xf32> to vector<32x64xf32>
    %1042 = vector.extract_strided_slice %866 {offsets = [5, 0], sizes = [1, 64], strides = [1, 1]} : vector<13x96xf32> to vector<1x64xf32>
    %cst_210 = arith.constant dense<0.000000e+00> : vector<16x64xf32>
    %1043 = tpu.matmul %1040, %1041, %cst_210 {dimension_numbers = #tpu.dot_dimension_numbers<[1], [0], [0], [1], [0, 0, 1, 1], [], []>} : vector<16x32xf32>, vector<32x64xf32>, vector<16x64xf32> -> vector<16x64xf32>
    %1044 = vector.broadcast %1042 : vector<1x64xf32> to vector<16x64xf32>
    %1045 = arith.addf %1043, %1044 : vector<16x64xf32>
    %cst_211 = arith.constant 0.000000e+00 : f32
    %1046 = vector.broadcast %cst_211 : f32 to vector<16x64xf32>
    %1047 = arith.maximumf %1045, %1046 : vector<16x64xf32>
    %c2_212 = arith.constant 2 : index
    %c0_213 = arith.constant 0 : index
    %c0_214 = arith.constant 0 : index
    %1048 = vector.load %arg9[%c2_212, %c0_213, %c0_214] : memref<3x64x32xf32, #tpu.memory_space<vmem>>, vector<1x64x32xf32>
    %1049 = vector.shape_cast %1048 : vector<1x64x32xf32> to vector<64x32xf32>
    %1050 = vector.extract_strided_slice %866 {offsets = [6, 0], sizes = [1, 32], strides = [1, 1]} : vector<13x96xf32> to vector<1x32xf32>
    %cst_215 = arith.constant dense<0.000000e+00> : vector<16x32xf32>
    %1051 = tpu.matmul %1047, %1049, %cst_215 {dimension_numbers = #tpu.dot_dimension_numbers<[1], [0], [0], [1], [0, 0, 1, 1], [], []>} : vector<16x64xf32>, vector<64x32xf32>, vector<16x32xf32> -> vector<16x32xf32>
    %1052 = vector.broadcast %1050 : vector<1x32xf32> to vector<16x32xf32>
    %1053 = arith.addf %1051, %1052 : vector<16x32xf32>
    %1054 = arith.addf %1040, %1053 : vector<16x32xf32>
    %1055 = vector.extract_strided_slice %866 {offsets = [11, 0], sizes = [1, 32], strides = [1, 1]} : vector<13x96xf32> to vector<1x32xf32>
    %1056 = vector.extract_strided_slice %866 {offsets = [12, 0], sizes = [1, 32], strides = [1, 1]} : vector<13x96xf32> to vector<1x32xf32>
    %cst_216 = arith.constant dense<0.000000e+00> : vector<16xf32>
    %1057 = vector.multi_reduction <add>, %1054, %cst_216 [1] : vector<16x32xf32> to vector<16xf32>
    %1058 = vector.shape_cast %1057 : vector<16xf32> to vector<16x1xf32>
    %cst_217 = arith.constant 3.200000e+01 : f32
    %1059 = vector.broadcast %cst_217 : f32 to vector<16x1xf32>
    %1060 = arith.divf %1058, %1059 : vector<16x1xf32>
    %1061 = vector.broadcast %1060 : vector<16x1xf32> to vector<16x32xf32>
    %1062 = arith.subf %1054, %1061 : vector<16x32xf32>
    %1063 = arith.mulf %1062, %1062 : vector<16x32xf32>
    %cst_218 = arith.constant dense<0.000000e+00> : vector<16xf32>
    %1064 = vector.multi_reduction <add>, %1063, %cst_218 [1] : vector<16x32xf32> to vector<16xf32>
    %1065 = vector.shape_cast %1064 : vector<16xf32> to vector<16x1xf32>
    %cst_219 = arith.constant 3.200000e+01 : f32
    %1066 = vector.broadcast %cst_219 : f32 to vector<16x1xf32>
    %1067 = arith.divf %1065, %1066 : vector<16x1xf32>
    %cst_220 = arith.constant 9.99999974E-6 : f32
    %1068 = vector.broadcast %cst_220 : f32 to vector<16x1xf32>
    %1069 = arith.addf %1067, %1068 : vector<16x1xf32>
    %1070 = math.rsqrt %1069 : vector<16x1xf32>
    %1071 = vector.broadcast %1070 : vector<16x1xf32> to vector<16x32xf32>
    %1072 = arith.mulf %1062, %1071 : vector<16x32xf32>
    %1073 = vector.broadcast %1055 : vector<1x32xf32> to vector<16x32xf32>
    %1074 = arith.mulf %1072, %1073 : vector<16x32xf32>
    %1075 = vector.broadcast %1056 : vector<1x32xf32> to vector<16x32xf32>
    %1076 = arith.addf %1074, %1075 : vector<16x32xf32>
    %1077 = vector.extract_strided_slice %23 {offsets = [2, 0], sizes = [1, 32], strides = [1, 1]} : vector<5x128xf32> to vector<1x32xf32>
    %1078 = vector.extract_strided_slice %23 {offsets = [3, 0], sizes = [1, 32], strides = [1, 1]} : vector<5x128xf32> to vector<1x32xf32>
    %cst_221 = arith.constant dense<0.000000e+00> : vector<16xf32>
    %1079 = vector.multi_reduction <add>, %1076, %cst_221 [1] : vector<16x32xf32> to vector<16xf32>
    %1080 = vector.shape_cast %1079 : vector<16xf32> to vector<16x1xf32>
    %cst_222 = arith.constant 3.200000e+01 : f32
    %1081 = vector.broadcast %cst_222 : f32 to vector<16x1xf32>
    %1082 = arith.divf %1080, %1081 : vector<16x1xf32>
    %1083 = vector.broadcast %1082 : vector<16x1xf32> to vector<16x32xf32>
    %1084 = arith.subf %1076, %1083 : vector<16x32xf32>
    %1085 = arith.mulf %1084, %1084 : vector<16x32xf32>
    %cst_223 = arith.constant dense<0.000000e+00> : vector<16xf32>
    %1086 = vector.multi_reduction <add>, %1085, %cst_223 [1] : vector<16x32xf32> to vector<16xf32>
    %1087 = vector.shape_cast %1086 : vector<16xf32> to vector<16x1xf32>
    %cst_224 = arith.constant 3.200000e+01 : f32
    %1088 = vector.broadcast %cst_224 : f32 to vector<16x1xf32>
    %1089 = arith.divf %1087, %1088 : vector<16x1xf32>
    %cst_225 = arith.constant 9.99999974E-6 : f32
    %1090 = vector.broadcast %cst_225 : f32 to vector<16x1xf32>
    %1091 = arith.addf %1089, %1090 : vector<16x1xf32>
    %1092 = math.rsqrt %1091 : vector<16x1xf32>
    %1093 = vector.broadcast %1092 : vector<16x1xf32> to vector<16x32xf32>
    %1094 = arith.mulf %1084, %1093 : vector<16x32xf32>
    %1095 = vector.broadcast %1077 : vector<1x32xf32> to vector<16x32xf32>
    %1096 = arith.mulf %1094, %1095 : vector<16x32xf32>
    %1097 = vector.broadcast %1078 : vector<1x32xf32> to vector<16x32xf32>
    %1098 = arith.addf %1096, %1097 : vector<16x32xf32>
    %c0_226 = arith.constant 0 : index
    %c0_227 = arith.constant 0 : index
    %1099 = vector.load %arg11[%c0_226, %c0_227] : memref<32x128xf32, #tpu.memory_space<vmem>>, vector<32x128xf32>
    %1100 = vector.extract_strided_slice %23 {offsets = [4, 0], sizes = [1, 128], strides = [1, 1]} : vector<5x128xf32> to vector<1x128xf32>
    %cst_228 = arith.constant dense<0.000000e+00> : vector<16x128xf32>
    %1101 = tpu.matmul %1098, %1099, %cst_228 {dimension_numbers = #tpu.dot_dimension_numbers<[1], [0], [0], [1], [0, 0, 1, 1], [], []>} : vector<16x32xf32>, vector<32x128xf32>, vector<16x128xf32> -> vector<16x128xf32>
    %1102 = vector.broadcast %1100 : vector<1x128xf32> to vector<16x128xf32>
    %1103 = arith.addf %1101, %1102 : vector<16x128xf32>
    %1104 = vector.shape_cast %1103 : vector<16x128xf32> to vector<2x8x128xf32>
    %c0_229 = arith.constant 0 : index
    %c0_230 = arith.constant 0 : index
    %c0_231 = arith.constant 0 : index
    %1105 = vector.load %arg13[%c0_229, %c0_230, %c0_231] : memref<2x8x128xf32, #tpu.memory_space<vmem>>, vector<2x8x128xf32>
    tpu.vector_store %arg13[%c0_229, %c0_230, %c0_231], %1104 {strides = array<i32>} : memref<2x8x128xf32, #tpu.memory_space<vmem>>, vector<2x8x128xf32>,
    return
  }
}

</mosaic_0001>

<bundles_post_ra>
// kernel: seq2seq_forward.1
= control target key start
LH: loop header
LB: loop body
LE: loop exit
PB: predicated region body
PF: predicated region fallthrough
CT: control target
= control target key end

     0   :  { %18 = vsyncpa [#allocation3], 0  ;;  %s21962_s0 = inlined_call_operand.vmem [shape: s32[16,1], index: 0, kind: input, shape index: {}]   ;;  %s21963_s1 = inlined_call_operand.vmem [shape: s32[16,1], index: 1, kind: input, shape index: {}]   ;;  %s21964_s2 = inlined_call_operand.vmem [shape: f32[2,8], index: 2, kind: input, shape index: {}]   ;;  %s21965_s3 = inlined_call_operand.vmem [shape: f32[2,8], index: 3, kind: input, shape index: {}]   ;;  %s21966_s4 = inlined_call_operand.vmem [shape: f32[128,32], index: 4, kind: input, shape index: {}]   ;;  %s21967_s5 = inlined_call_operand.vmem [shape: f32[3,32,192], index: 5, kind: input, shape index: {}]   ;;  %s21968_s6 = inlined_call_operand.vmem [shape: f32[3,64,32], index: 6, kind: input, shape index: {}]   ;;  %s21969_s7 = inlined_call_operand.hbm [shape: f32[3,8,96], index: 7, kind: input, shape index: {}]   ;;  %s21970_s8 = inlined_call_operand.vmem [shape: f32[3,32,320], index: 8, kind: input, shape index: {}]   ;;  %s21971_s9 = inlined_call_operand.vmem [shape: f32[3,64,32], index: 9, kind: input, shape index: {}]   ;;  %s21972_s10 = inlined_call_operand.vmem [shape: f32[3,13,96], index: 10, kind: input, shape index: {}]   ;;  %s21973_s11 = inlined_call_operand.vmem [shape: f32[32,128], index: 11, kind: input, shape index: {}]   ;;  %s21974_s12 = inlined_call_operand.hbm [shape: f32[5,128], index: 12, kind: input, shape index: {}]   ;;  %s21975_s13 = inlined_call_operand.hbm [shape: f32[2,8,128], index: 13, kind: output, shape index: {}]  }
   0x1   :  { %19 = vsyncpa [#allocation6], 0 }
   0x2   :  { %20 = vsyncpa [#allocation4], 0  ;;  %s18970_s25 = smov [#allocation2]  }
   0x3   :  { %s40_s26 = sshll.u32 %s18970_s25, 4  ;;  %s41_s26 = int_to_ptr.vmem [resolvable:$true] %s40_s26 }
   0x4   :  { %s18912_s27 = scalar_lea.vmem %s41_s26, 384  ;;  %p18917_p1 = scmp.lt.s32.totalorder %s41_s26, %s41_s26 }
   0x5   :  { %p18913_p0 = scmp.ne.s32.totalorder %s41_s26, %s18912_s27  ;;  %p18918_p2 = scmp.lt.s32.totalorder %s18912_s27, %s18912_s27 }
   0x7   :  { %p18919_p3 = por %p18918_p2, %p18917_p1 }
   0x9   :  { %p18920_p4 = pnand %p18919_p3, %p18913_p0 }
   0xb   :  { %18923 = shalt.err (!%p18920_p4)
}
   0xc   :  { %s18971_s28 = smov 128   ;;  %s18972_s29 = smov 8  }
   0xd   :  { %46 = dma.hbm_to_vmem [thread:$0]  %s21969_s7, 384, %s41_s26, [#allocation3], %s18971_s28, %s18971_s28, %s18972_s29  }
   0xe   :  { %s18973_s15 = smov [#allocation5]  }
   0xf   :  { %s61_s16 = sshll.u32 %s18973_s15, 4  ;;  %s62_s16 = int_to_ptr.vmem [resolvable:$true] %s61_s16 }
  0x10   :  { %s18932_s17 = scalar_lea.vmem %s62_s16, 128  ;;  %p18937_p6 = scmp.lt.s32.totalorder %s62_s16, %s62_s16 }
  0x11   :  { %p18933_p5 = scmp.ne.s32.totalorder %s62_s16, %s18932_s17  ;;  %p18938_p7 = scmp.lt.s32.totalorder %s18932_s17, %s18932_s17 }
  0x13   :  { %p18939_p8 = por %p18938_p7, %p18937_p6 }
  0x15   :  { %p18940_p9 = pnand %p18939_p8, %p18933_p5 }
  0x17   :  { %18943 = shalt.err (!%p18940_p9)
}
  0x18   :  { %64 = dma.hbm_to_vmem [thread:$0]  %s21974_s12, 128, %s62_s16, [#allocation6]  }
  0x19   :  { %18964 = dma.done.wait [#allocation3], 384  }
  0x1a   :  { %18965 = vsyncadd [#allocation3], 4294966912 }
  0x1b   :  { %18966 = dma.done.wait [#allocation6], 128  }
  0x1c   :  { %18967 = vsyncadd [#allocation6], 4294967168  ;;  %v18974_v0 = vmov 0   ;;  %v164_v1 = vld [vmem:[%s21962_s0] sm:$0xff]  ;;  %v86_v2 = vld [vmem:[%s21966_s4 + $0x78] sm:$0xff]  ;;  %v18975_v21 = vmov 0.0   ;;  %v89_v22 = vlaneseq }
  0x1d   :  { %18525 = vset.pattern.permute.xlu0 %v18974_v0  ;;  %18526 = vset.pattern.permute.xlu1 %v18974_v0  ;;  %v85_v3 = vld [vmem:[%s21966_s4 + $0x70] sm:$0xff]  ;;  %v165_v4 = vld [vmem:[%s21962_s0 + $0x8] sm:$0xff]  ;;  %v83_v6 = vld [vmem:[%s21966_s4 + $0x60] sm:$0xff]  ;;  %v18976_v25 = vmov 1.0   ;;  %vm266_vm2 = vcmask 261120   ;;  %vm18977_vm3 = vmmov 0  }
  0x1e   :  { %167 = vperm.xlu0 %18525, %v164_v1   ;;  %17295 = vmatprep.subr.mxu0 %v86_v2  ;;  %v84_v5 = vld [vmem:[%s21966_s4 + $0x68] sm:$0xff]  ;;  %v82_v7 = vld [vmem:[%s21966_s4 + $0x58] sm:$0xff]  ;;  %v19091_v8 = vld [vmem:[%s21967_s5 + $0x30] sm:$0xff]  ;;  %v19136_v23 = vand.u32 127, %v89_v22  ;;  %v19165_v31 = vshrl.u32 %v89_v22, 7  ;;  %s18978_s26 = smov 112  }
  0x1f   :  { %17296 = vmatpush3.msra.mxu0 %v86_v2  ;;  %17330 = vmatprep.subr.mxu1 %v19091_v8  ;;  %v19097_v9 = vld [vmem:[%s21967_s5 + $0x20] sm:$0xff]  ;;  %v81_v10 = vld [vmem:[%s21966_s4 + $0x50] sm:$0xff]  ;;  %v80_v11 = vld [vmem:[%s21966_s4 + $0x48] sm:$0xff]  ;;  %s18979_s27 = smov 120   ;;  %s18980_s30 = smov 104   ;;  %vm364_vm4 = vcmask 64512  }
  0x20   :  { %17297 = vmatprep.subr.mxu0 %v85_v3  ;;  %17331 = vmatpush3.msra.mxu1 %v19091_v8  ;;  %v79_v12 = vld [vmem:[%s21966_s4 + $0x40] sm:$0xff]  ;;  %v78_v13 = vld [vmem:[%s21966_s4 + $0x38] sm:$0xff]  ;;  %v77_v14 = vld [vmem:[%s21966_s4 + $0x30] sm:$0xff]  ;;  %v19168_v32 = vsub.s32 0, %v19165_v31  ;;  %s18981_s14 = smov 96   ;;  %s18984_s17 = smov 32   ;;  %vm93_vm10 = vcmp.gt.s32.totalorder %v19136_v23, %v19165_v31 }
  0x21   :  { %17298 = vmatpush3.msra.mxu0 %v85_v3  ;;  %17332 = vmatprep.subr.mxu1 %v19097_v9  ;;  %v76_v15 = vld [vmem:[%s21966_s4 + $0x28] sm:$0xff]  ;;  %v75_v16 = vld [vmem:[%s21966_s4 + $0x20] sm:$0xff]  ;;  %v74_v17 = vld [vmem:[%s21966_s4 + $0x18] sm:$0xff]  ;;  %v18982_v53 = vmov 1966171168   ;;  %s18985_s0 = smov 16  }
  0x22   :  { %170 = vperm.xlu0 %18525, %v165_v4   ;;  %17299 = vmatprep.subr.mxu0 %v84_v5  ;;  %v73_v18 = vld [vmem:[%s21966_s4 + $0x10] sm:$0xff]  ;;  %v72_v19 = vld [vmem:[%s21966_s4 + $0x8] sm:$0xff]  ;;  %v71_v20 = vld [vmem:[%s21966_s4] sm:$0xff]  ;;  %v105_v54 = vunpack.c.l.s4 %v18982_v53  ;;  %s18986_s18 = smov 24   ;;  %vm1693_vm5 = vcmask 130048   ;;  %vm1696_vm6 = vcmask 195584  }
  0x23   :  { %17300 = vmatpush3.msra.mxu0 %v84_v5  ;;  %17333 = vmatpush3.msra.mxu1 %v19097_v9  ;;  %v19145_v27 = vld [vmem:[%s21967_s5 + $0x10] sm:$0xff]  ;;  %v19152_v28 = vld [vmem:[%s21967_s5] sm:$0xff]  ;;  %vm1940_vm7 = vcmask 523264  }
  0x24   :  { %17301 = vmatprep.subr.mxu0 %v83_v6  ;;  %17334 = vmatprep.subr.mxu1 %v19145_v27  ;;  %v19170_v33 = vld [vmem:[#allocation2] sm:$0xff]  ;;  %v106_v55 = vunpack.c.0.s8 %v105_v54 }
  0x25   :  { %17302 = vmatpush3.msra.mxu0 %v83_v6  ;;  %17335 = vmatpush3.msra.mxu1 %v19145_v27  ;;  %v265_v35 = vrot.slane %v19170_v33, %v19168_v32  ;;  %v16373_v57 = vld.sshfl [vmem:[%s21964_s2] sm:$0x11 pattern:$0x75316420]  ;;  %s18983_s2 = smov 64  }
  0x26   :  { %17303 = vmatprep.subr.mxu0 %v82_v7  ;;  %17336 = vmatprep.subr.mxu1 %v19152_v28  ;;  %v19271_v56 = vsub.s32 %v106_v55, %v19165_v31  ;;  %v103_v59 = vcombine.high %v16373_v57, %v16373_v57 }
  0x27   :  { %17304 = vmatpush3.msra.mxu0 %v82_v7  ;;  %17337 = vmatpush3.msra.mxu1 %v19152_v28 }
  0x28   :  { %17305 = vmatprep.subr.mxu0 %v81_v10  ;;  %17341 = vmatprep.subr.mxu1 %v18975_v21  ;;  %v110_v58 = vrot.slane %v16373_v57, %v19271_v56  ;;  %v117_v62 = vrot.slane %v103_v59, %v19271_v56 }
  0x29   :  { %17306 = vmatpush3.msra.mxu0 %v81_v10 }
  0x2a   :  { %17307 = vmatprep.subr.mxu0 %v80_v11  ;;  %v19278_v60 = vrot.slane %v110_v58, %v19168_v32  ;;  %v19284_v2 = vrot.slane %v117_v62, %v19168_v32 }
  0x2b   :  { %17308 = vmatpush3.msra.mxu0 %v80_v11 }
  0x2c   :  { %17309 = vmatprep.subr.mxu0 %v79_v12 }
  0x2d   :  { %17310 = vmatpush3.msra.mxu0 %v79_v12 }
  0x2e   :  { %17311 = vmatprep.subr.mxu0 %v78_v13 }
  0x2f   :  { %17312 = vmatpush3.msra.mxu0 %v78_v13 }
  0x30   :  { %17313 = vmatprep.subr.mxu0 %v77_v14 }
  0x31   :  { %17314 = vmatpush3.msra.mxu0 %v77_v14 }
  0x32   :  { %17315 = vmatprep.subr.mxu0 %v76_v15 }
  0x33   :  { %17316 = vmatpush3.msra.mxu0 %v76_v15 }
  0x34   :  { %17317 = vmatprep.subr.mxu0 %v75_v16 }
  0x35   :  { %17318 = vmatpush3.msra.mxu0 %v75_v16 }
  0x36   :  { %17319 = vmatprep.subr.mxu0 %v74_v17 }
  0x37   :  { %17320 = vmatpush3.msra.mxu0 %v74_v17 }
  0x38   :  { %17321 = vmatprep.subr.mxu0 %v73_v18 }
  0x39   :  { %17322 = vmatpush3.msra.mxu0 %v73_v18 }
  0x3a   :  { %17323 = vmatprep.subr.mxu0 %v72_v19 }
  0x3b   :  { %17324 = vmatpush3.msra.mxu0 %v72_v19 }
  0x3c   :  { %17325 = vmatprep.subr.mxu0 %v71_v20 }
  0x3d   :  { %17326 = vmatpush3.msra.mxu0 %v71_v20 }
  0x3e   :  { %17381 = vmatprep.subr.mxu0 %v18975_v21 }
  0x99   :  { %v168_v24 = vpop.permute.xlu0 %167 }
  0x9a   :  { %vm172_vm0 = vcmp.eq.s32.totalorder %v19136_v23, %v168_v24 }
  0x9b   :  { %17327 = vmatprep.mubr.msk.f32.mxu0 %vm172_vm0, %v18976_v25 }
  0x9d   :  { %v171_v26 = vpop.permute.xlu0 %170 }
  0x9e   :  { %vm173_vm1 = vcmp.eq.s32.totalorder %v19136_v23, %v171_v26 }
  0x9f   :  { %17328 = vmatmul.mubr.msk.f32.vlgmr.msra.gmra.mxu0 %vm173_vm1, %v18976_v25 }
  0xa0   :  { %17383 = vmatprep.mubr.msk.f32.mxu0 %vm18977_vm3, %v18975_v21 }
 0x15f   :  { %v19157_v29 = vpop.f32.mrf.mxu0 }
 0x161   :  { %v19159_v30 = vpop.f32.mrf.mxu0 }
 0x162   :  { %17338 = vmatprep.mubr.msk.f32.mxu1 %vm266_vm2, %v19159_v30 }
 0x163   :  { %17339 = vmatmul.mubr.msk.f32.vlgmr.msra.gmra.mxu1 %vm266_vm2, %v19157_v29 }
 0x164   :  { %17343 = vmatprep.mubr.msk.f32.mxu1 %vm18977_vm3, %v18975_v21 }
 0x223   :  { %v17340_v34 = vpop.f32.mrf.mxu1 }
 0x224   :  { %v19184_v38 = vadd.f32 %v17340_v34, %v265_v35 }
 0x225   :  { %v339_v36 = vpop.f32.mrf.mxu1 }
 0x226   :  { %v19178_v37 = vadd.f32 %v339_v36, %v265_v35 }
 0x228   :  { %354 = vrot.lane.b32.xlu0 %v19178_v37, %s18978_s26  ;;  %350 = vrot.lane.b32.xlu1 %v19178_v37, %s18979_s27 }
 0x22c   :  { %358 = vrot.lane.b32.xlu0 %v19178_v37, %s18980_s30  ;;  %352 = vrot.lane.b32.xlu1 %v19184_v38, %s18979_s27 }
 0x230   :  { %362 = vrot.lane.b32.xlu0 %v19178_v37, %s18981_s14  ;;  %356 = vrot.lane.b32.xlu1 %v19184_v38, %s18978_s26 }
 0x234   :  { %360 = vrot.lane.b32.xlu1 %v19184_v38, %s18980_s30 }
 0x238   :  { %439 = vrot.lane.b32.xlu1 %v19184_v38, %s18981_s14 }
 0x29a   :  { %v19198_v39 = vpop.permute.xlu0 %354  ;;  %v19200_v40 = vpop.permute.xlu1 %350 }
 0x29b   :  { %515 = vrot.lane.b32.xlu0 %v19200_v40, %s18981_s14 }
 0x29e   :  { %v19204_v41 = vpop.permute.xlu0 %358  ;;  %v19206_v42 = vpop.permute.xlu1 %352 }
 0x29f   :  { %667 = vrot.lane.b32.xlu0 %v19198_v39, %s18981_s14  ;;  %591 = vrot.lane.b32.xlu1 %v19206_v42, %s18981_s14 }
 0x2a2   :  { %v363_v43 = vpop.permute.xlu0 %362  ;;  %v19212_v44 = vpop.permute.xlu1 %356 }
 0x2a3   :  { %17342 = vmatpush3.xpose.msk.msra.mxu1 %vm364_vm4, %v363_v43  ;;  %819 = vrot.lane.b32.xlu0 %v19204_v41, %s18981_s14 }
 0x2a4   :  { %743 = vrot.lane.b32.xlu1 %v19212_v44, %s18981_s14  ;;  %17346 = vmatprep.subr.mxu1 %v18975_v21 }
 0x2a6   :  { %17344 = vmatmul.mubr.msk.f32.vlgmr.msra.gmra.mxu1 %vm364_vm4, %v19178_v37  ;;  %v19222_v45 = vpop.permute.xlu1 %360 }
 0x2a7   :  { %17348 = vmatprep.mubr.msk.f32.mxu1 %vm18977_vm3, %v18975_v21 }
 0x2a8   :  { %895 = vrot.lane.b32.xlu1 %v19222_v45, %s18981_s14 }
 0x2aa   :  { %v440_v46 = vpop.permute.xlu1 %439 }
 0x2ab   :  { %17347 = vmatpush3.xpose.msk.msra.mxu1 %vm364_vm4, %v440_v46 }
 0x2ac   :  { %17351 = vmatprep.subr.mxu1 %v18975_v21 }
 0x2ae   :  { %17349 = vmatmul.mubr.msk.f32.vlgmr.msra.gmra.mxu1 %vm364_vm4, %v19184_v38 }
 0x2af   :  { %17353 = vmatprep.mubr.msk.f32.mxu1 %vm18977_vm3, %v18975_v21 }
 0x30d   :  { %v516_v47 = vpop.permute.xlu0 %515 }
 0x30e   :  { %17352 = vmatpush3.xpose.msk.msra.mxu1 %vm364_vm4, %v516_v47 }
 0x30f   :  { %17356 = vmatprep.subr.mxu1 %v18975_v21 }
 0x311   :  { %17354 = vmatmul.mubr.msk.f32.vlgmr.msra.gmra.mxu1 %vm364_vm4, %v19200_v40  ;;  %v592_v48 = vpop.permute.xlu1 %591  ;;  %v668_v49 = vpop.permute.xlu0 %667 }
 0x312   :  { %17357 = vmatpush3.xpose.msk.msra.mxu1 %vm364_vm4, %v592_v48  ;;  %17358 = vmatprep.mubr.msk.f32.mxu1 %vm18977_vm3, %v18975_v21 }
 0x313   :  { %17361 = vmatprep.subr.mxu1 %v18975_v21 }
 0x315   :  { %17359 = vmatmul.mubr.msk.f32.vlgmr.msra.gmra.mxu1 %vm364_vm4, %v19206_v42  ;;  %v820_v51 = vpop.permute.xlu0 %819 }
 0x316   :  { %17362 = vmatpush3.xpose.msk.msra.mxu1 %vm364_vm4, %v668_v49  ;;  %17363 = vmatprep.mubr.msk.f32.mxu1 %vm18977_vm3, %v18975_v21  ;;  %v744_v50 = vpop.permute.xlu1 %743 }
 0x317   :  { %17366 = vmatprep.subr.mxu1 %v18975_v21 }
 0x319   :  { %17364 = vmatmul.mubr.msk.f32.vlgmr.msra.gmra.mxu1 %vm364_vm4, %v19198_v39 }
 0x31a   :  { %17367 = vmatpush3.xpose.msk.msra.mxu1 %vm364_vm4, %v744_v50  ;;  %17368 = vmatprep.mubr.msk.f32.mxu1 %vm18977_vm3, %v18975_v21  ;;  %v896_v52 = vpop.permute.xlu1 %895 }
 0x31b   :  { %17371 = vmatprep.subr.mxu1 %v18975_v21 }
 0x31d   :  { %17369 = vmatmul.mubr.msk.f32.vlgmr.msra.gmra.mxu1 %vm364_vm4, %v19212_v44 }
 0x31e   :  { %17372 = vmatpush3.xpose.msk.msra.mxu1 %vm364_vm4, %v820_v51  ;;  %17373 = vmatprep.mubr.msk.f32.mxu1 %vm18977_vm3, %v18975_v21 }
 0x31f   :  { %17376 = vmatprep.subr.mxu1 %v18975_v21 }
 0x321   :  { %17374 = vmatmul.mubr.msk.f32.vlgmr.msra.gmra.mxu1 %vm364_vm4, %v19204_v41 }
 0x322   :  { %17377 = vmatpush3.xpose.msk.msra.mxu1 %vm364_vm4, %v896_v52  ;;  %17378 = vmatprep.mubr.msk.f32.mxu1 %vm18977_vm3, %v18975_v21 }
 0x323   :  { %17386 = vmatprep.subr.mxu1 %v18975_v21 }
 0x325   :  { %17379 = vmatmul.mubr.msk.f32.vlgmr.msra.gmra.mxu1 %vm364_vm4, %v19222_v45 }
 0x326   :  { %17388 = vmatprep.mubr.msk.f32.mxu1 %vm18977_vm3, %v18975_v21 }
 0x366   :  { %v435_v61 = vpop.f32.mrf.mxu1 }
 0x367   :  { %v436_v63 = vadd.f32 %v435_v61, %v19278_v60 }
 0x368   :  { %v17345_v0 = vpop.f32.mrf.mxu1 }
 0x369   :  { %v971_v1 = vsel %vm364_vm4, %v436_v63, -inf }
 0x36a   :  { %972 = vmax.xlane.f32.xlu0 %v971_v1 }
 0x36e   :  { %v511_v3 = vpop.f32.mrf.mxu1 }
 0x36f   :  { %v512_v4 = vadd.f32 %v511_v3, %v19284_v2 }
 0x370   :  { %v17350_v5 = vpop.f32.mrf.mxu1 }
 0x371   :  { %v974_v6 = vsel %vm364_vm4, %v512_v4, -inf }
 0x372   :  { %975 = vmax.xlane.f32.xlu1 %v974_v6 }
 0x3d1   :  { %v587_v7 = vpop.f32.mrf.mxu1 }
 0x3d2   :  { %v588_v10 = vadd.f32 %v587_v7, %v19278_v60 }
 0x3d3   :  { %v17355_v11 = vpop.f32.mrf.mxu1 }
 0x3d4   :  { %v977_v12 = vsel %vm364_vm4, %v588_v10, -inf }
 0x3d5   :  { %978 = vmax.xlane.f32.xlu0 %v977_v12  ;;  %v663_v13 = vpop.f32.mrf.mxu1 }
 0x3d6   :  { %v664_v14 = vadd.f32 %v663_v13, %v19284_v2 }
 0x3d7   :  { %v17360_v15 = vpop.f32.mrf.mxu1 }
 0x3d8   :  { %v980_v16 = vsel %vm364_vm4, %v664_v14, -inf }
 0x3d9   :  { %981 = vmax.xlane.f32.xlu0 %v980_v16  ;;  %v739_v17 = vpop.f32.mrf.mxu1 }
 0x3da   :  { %v740_v18 = vadd.f32 %v739_v17, %v19278_v60 }
 0x3db   :  { %v17365_v19 = vpop.f32.mrf.mxu1 }
 0x3dc   :  { %v983_v20 = vsel %vm364_vm4, %v740_v18, -inf }
 0x3dd   :  { %984 = vmax.xlane.f32.xlu1 %v983_v20  ;;  %v815_v22 = vpop.f32.mrf.mxu1 }
 0x3de   :  { %v816_v24 = vadd.f32 %v815_v22, %v19284_v2 }
 0x3df   :  { %v17370_v26 = vpop.f32.mrf.mxu1 }
 0x3e0   :  { %v986_v34 = vsel %vm364_vm4, %v816_v24, -inf }
 0x3e1   :  { %987 = vmax.xlane.f32.xlu0 %v986_v34  ;;  %v891_v35 = vpop.f32.mrf.mxu1 }
 0x3e2   :  { %v892_v36 = vadd.f32 %v891_v35, %v19278_v60 }
 0x3e3   :  { %v17375_v43 = vpop.f32.mrf.mxu1 }
 0x3e4   :  { %v989_v46 = vsel %vm364_vm4, %v892_v36, -inf }
 0x3e5   :  { %990 = vmax.xlane.f32.xlu1 %v989_v46  ;;  %v967_v47 = vpop.f32.mrf.mxu1 }
 0x3e6   :  { %v968_v48 = vadd.f32 %v967_v47, %v19284_v2 }
 0x3e7   :  { %v17380_v49 = vpop.f32.mrf.mxu1 }
 0x3e8   :  { %v992_v50 = vsel %vm364_vm4, %v968_v48, -inf }
 0x3e9   :  { %993 = vmax.xlane.f32.xlu0 %v992_v50 }
 0x3f3   :  { %v973_v53 = vpop.xlane.xlu0 %972 }
 0x3f4   :  { %v995_v54 = vsub.f32 %v436_v63, %v973_v53 }
 0x3f6   :  { %1059 = vrot.lane.b32.xlu1 %v19178_v37, %s18983_s2  ;;  %v1003_v55 = vmul.f32 1.442695, %v995_v54 }
 0x3fa   :  { %1211 = vrot.lane.b32.xlu1 %v19200_v40, %s18983_s2 }
 0x3fb   :  { %v976_v51 = vpop.xlane.xlu1 %975 }
 0x3fc   :  { %v996_v52 = vsub.f32 %v512_v4, %v976_v51 }
 0x3fe   :  { %1287 = vrot.lane.b32.xlu1 %v19206_v42, %s18983_s2  ;;  %v1005_v37 = vmul.f32 1.442695, %v996_v52 }
 0x3ff   :  { %1135 = vrot.lane.b32.xlu0 %v19184_v38, %s18983_s2 }
 0x400   :  { %18527 = vpow2.f32 %v1005_v37 }
 0x401   :  { %18529 = vpow2.f32 %v1003_v55 }
 0x402   :  { %1439 = vrot.lane.b32.xlu1 %v19212_v44, %s18983_s2 }
 0x403   :  { %1363 = vrot.lane.b32.xlu0 %v19198_v39, %s18983_s2 }
 0x40d   :  { %v19312_v40 = vpop.eup %18527 }
 0x40e   :  { %v1022_v42 = vsel %vm364_vm4, %v19312_v40, 0.0  ;;  %v19316_v38 = vpop.eup %18529 }
 0x40f   :  { %v1019_v44 = vsel %vm364_vm4, %v19316_v38, 0.0 }
 0x422   :  { %1023 = vadd.xlane.f32.xlu0 %v1022_v42 }
 0x426   :  { %1020 = vadd.xlane.f32.xlu1 %v1019_v44 }
 0x45e   :  { %v979_v39 = vpop.xlane.xlu0 %978 }
 0x45f   :  { %v997_v57 = vsub.f32 %v588_v10, %v979_v39 }
 0x461   :  { %v1007_v58 = vmul.f32 1.442695, %v997_v57 }
 0x462   :  { %v982_v59 = vpop.xlane.xlu0 %981 }
 0x463   :  { %18531 = vpow2.f32 %v1007_v58  ;;  %v998_v61 = vsub.f32 %v664_v14, %v982_v59 }
 0x465   :  { %v1009_v62 = vmul.f32 1.442695, %v998_v61 }
 0x466   :  { %v985_v63 = vpop.xlane.xlu1 %984 }
 0x467   :  { %18533 = vpow2.f32 %v1009_v62  ;;  %v999_v0 = vsub.f32 %v740_v18, %v985_v63 }
 0x469   :  { %v1011_v1 = vmul.f32 1.442695, %v999_v0 }
 0x46a   :  { %v988_v3 = vpop.xlane.xlu0 %987 }
 0x46b   :  { %18535 = vpow2.f32 %v1011_v1  ;;  %v1000_v4 = vsub.f32 %v816_v24, %v988_v3 }
 0x46d   :  { %v1013_v5 = vmul.f32 1.442695, %v1000_v4 }
 0x46e   :  { %v991_v6 = vpop.xlane.xlu1 %990 }
 0x46f   :  { %18537 = vpow2.f32 %v1013_v5  ;;  %v1001_v7 = vsub.f32 %v892_v36, %v991_v6 }
 0x470   :  { %v19320_v11 = vpop.eup %18531 }
 0x471   :  { %v1015_v12 = vmul.f32 1.442695, %v1001_v7  ;;  %v1025_v10 = vsel %vm364_vm4, %v19320_v11, 0.0 }
 0x472   :  { %1026 = vadd.xlane.f32.xlu1 %v1025_v10  ;;  %v994_v13 = vpop.xlane.xlu0 %993  ;;  %v1060_v14 = vpop.permute.xlu1 %1059 }
 0x473   :  { %18539 = vpow2.f32 %v1015_v12  ;;  %v1002_v15 = vsub.f32 %v968_v48, %v994_v13  ;;  %17382 = vmatpush3.msra.mxu0 %v1060_v14 }
 0x474   :  { %v19324_v16 = vpop.eup %18533  ;;  %17391 = vmatprep.subr.mxu0 %v18975_v21 }
 0x475   :  { %v1017_v17 = vmul.f32 1.442695, %v1002_v15  ;;  %v1028_v18 = vsel %vm364_vm4, %v19324_v16, 0.0 }
 0x476   :  { %v1136_v19 = vpop.permute.xlu0 %1135  ;;  %1029 = vadd.xlane.f32.xlu0 %v1028_v18  ;;  %v1212_v46 = vpop.permute.xlu1 %1211 }
 0x477   :  { %18541 = vpow2.f32 %v1017_v17  ;;  %17387 = vmatpush3.msra.mxu1 %v1136_v19 }
 0x478   :  { %v19329_v20 = vpop.eup %18535  ;;  %17396 = vmatprep.subr.mxu1 %v18975_v21 }
 0x479   :  { %v1031_v22 = vsel %vm364_vm4, %v19329_v20, 0.0 }
 0x47a   :  { %1032 = vadd.xlane.f32.xlu1 %v1031_v22  ;;  %v1288_v47 = vpop.permute.xlu1 %1287  ;;  %v1364_v48 = vpop.permute.xlu0 %1363 }
 0x47c   :  { %v19334_v24 = vpop.eup %18537 }
 0x47d   :  { %v1034_v26 = vsel %vm364_vm4, %v19334_v24, 0.0 }
 0x47e   :  { %1035 = vadd.xlane.f32.xlu0 %v1034_v26  ;;  %v1440_v49 = vpop.permute.xlu1 %1439 }
 0x480   :  { %v19338_v34 = vpop.eup %18539 }
 0x481   :  { %v1037_v35 = vsel %vm364_vm4, %v19338_v34, 0.0 }
 0x482   :  { %1038 = vadd.xlane.f32.xlu1 %v1037_v35 }
 0x484   :  { %v19342_v36 = vpop.eup %18541 }
 0x485   :  { %v1040_v43 = vsel %vm364_vm4, %v19342_v36, 0.0 }
 0x486   :  { %1041 = vadd.xlane.f32.xlu0 %v1040_v43 }
 0x493   :  { %1591 = vrot.lane.b32.xlu1 %v19222_v45, %s18983_s2 }
 0x497   :  { %1711 = vrot.lane.b32.xlu1 %v19097_v9, %s18984_s17 }
 0x49b   :  { %1709 = vrot.lane.b32.xlu1 %v19145_v27, %s18984_s17 }
 0x49c   :  { %1515 = vrot.lane.b32.xlu0 %v19204_v41, %s18983_s2 }
 0x4a0   :  { %1713 = vrot.lane.b32.xlu0 %v19091_v8, %s18984_s17 }
 0x4ab   :  { %v1024_v50 = vpop.xlane.xlu0 %1023 }
 0x4ac   :  { %18543 = vrcp.f32 %v1024_v50 }
 0x4af   :  { %v1021_v51 = vpop.xlane.xlu1 %1020 }
 0x4b0   :  { %18545 = vrcp.f32 %v1021_v51 }
 0x4b9   :  { %v18544_v52 = vpop.eup %18543 }
 0x4ba   :  { %v1052_v53 = vmul.f32 %v18544_v52, %v19312_v40 }
 0x4bc   :  { %17389 = vmatmul.mubr.msk.f32.vlgmr.msra.gmra.mxu1 %vm364_vm4, %v1052_v53 }
 0x4bd   :  { %v18546_v54 = vpop.eup %18545  ;;  %17397 = vmatpush3.msra.mxu1 %v1288_v47  ;;  %17398 = vmatprep.mubr.msk.f32.mxu1 %vm18977_vm3, %v18975_v21 }
 0x4be   :  { %v1051_v41 = vmul.f32 %v18546_v54, %v19316_v38  ;;  %17406 = vmatprep.subr.mxu1 %v18975_v21 }
 0x4c0   :  { %17384 = vmatmul.mubr.msk.f32.vlgmr.msra.gmra.mxu0 %vm364_vm4, %v1051_v41  ;;  %v19405_v41 = vsub.s32 1, %v19165_v31 }
 0x4c1   :  { %17392 = vmatpush3.msra.mxu0 %v1212_v46  ;;  %17393 = vmatprep.mubr.msk.f32.mxu0 %vm18977_vm3, %v18975_v21 }
 0x4c2   :  { %17401 = vmatprep.subr.mxu0 %v18975_v21 }
 0x4fb   :  { %v1027_v45 = vpop.xlane.xlu1 %1026 }
 0x4fc   :  { %18547 = vrcp.f32 %v1027_v45  ;;  %v1702_v45 = vrot.slane %v19170_v33, %v19405_v41 }
 0x4ff   :  { %v1030_v37 = vpop.xlane.xlu0 %1029 }
 0x500   :  { %18549 = vrcp.f32 %v1030_v37 }
 0x503   :  { %v1033_v55 = vpop.xlane.xlu1 %1032 }
 0x504   :  { %18551 = vrcp.f32 %v1033_v55 }
 0x507   :  { %v1036_v40 = vpop.xlane.xlu0 %1035 }
 0x508   :  { %18553 = vrcp.f32 %v1036_v40 }
 0x509   :  { %v18548_v42 = vpop.eup %18547 }
 0x50a   :  { %v1053_v38 = vmul.f32 %v18548_v42, %v19320_v11 }
 0x50b   :  { %v1039_v44 = vpop.xlane.xlu1 %1038 }
 0x50c   :  { %18555 = vrcp.f32 %v1039_v44  ;;  %17394 = vmatmul.mubr.msk.f32.vlgmr.msra.gmra.mxu0 %vm364_vm4, %v1053_v38 }
 0x50d   :  { %v18550_v39 = vpop.eup %18549  ;;  %17402 = vmatpush3.msra.mxu0 %v1364_v48  ;;  %17403 = vmatprep.mubr.msk.f32.mxu0 %vm18977_vm3, %v18975_v21 }
 0x50e   :  { %v1054_v8 = vmul.f32 %v18550_v39, %v19324_v16  ;;  %17411 = vmatprep.subr.mxu0 %v18975_v21 }
 0x50f   :  { %v1042_v9 = vpop.xlane.xlu0 %1041  ;;  %v1592_v62 = vpop.permute.xlu1 %1591 }
 0x510   :  { %18557 = vrcp.f32 %v1042_v9  ;;  %17399 = vmatmul.mubr.msk.f32.vlgmr.msra.gmra.mxu1 %vm364_vm4, %v1054_v8 }
 0x511   :  { %v18552_v27 = vpop.eup %18551  ;;  %17407 = vmatpush3.msra.mxu1 %v1440_v49  ;;  %17408 = vmatprep.mubr.msk.f32.mxu1 %vm18977_vm3, %v18975_v21 }
 0x512   :  { %v1055_v57 = vmul.f32 %v18552_v27, %v19329_v20  ;;  %17416 = vmatprep.subr.mxu1 %v18975_v21 }
 0x513   :  { %v1516_v58 = vpop.permute.xlu0 %1515  ;;  %v1712_v12 = vpop.permute.xlu1 %1711 }
 0x514   :  { %17404 = vmatmul.mubr.msk.f32.vlgmr.msra.gmra.mxu0 %vm364_vm4, %v1055_v57 }
 0x515   :  { %v18554_v59 = vpop.eup %18553  ;;  %17412 = vmatpush3.msra.mxu0 %v1516_v58  ;;  %17413 = vmatprep.mubr.msk.f32.mxu0 %vm18977_vm3, %v18975_v21 }
 0x516   :  { %v1056_v61 = vmul.f32 %v18554_v59, %v19334_v24 }
 0x517   :  { %v1714_v4 = vpop.permute.xlu0 %1713  ;;  %v1710_v10 = vpop.permute.xlu1 %1709 }
 0x518   :  { %17409 = vmatmul.mubr.msk.f32.vlgmr.msra.gmra.mxu1 %vm364_vm4, %v1056_v61  ;;  %17421 = vmatprep.subr.mxu0 %v1714_v4 }
 0x519   :  { %v18556_v63 = vpop.eup %18555  ;;  %17417 = vmatpush3.msra.mxu1 %v1592_v62  ;;  %17418 = vmatprep.mubr.msk.f32.mxu1 %vm18977_vm3, %v18975_v21 }
 0x51a   :  { %v1057_v0 = vmul.f32 %v18556_v63, %v19338_v34 }
 0x51c   :  { %17414 = vmatmul.mubr.msk.f32.vlgmr.msra.gmra.mxu0 %vm364_vm4, %v1057_v0 }
 0x51d   :  { %v18558_v1 = vpop.eup %18557  ;;  %17422 = vmatpush3.msra.mxu0 %v1714_v4  ;;  %v254_v4 = vld [vmem:[%s21967_s5 + $0x8] sm:$0xff] }
 0x51e   :  { %v1058_v3 = vmul.f32 %v18558_v1, %v19342_v36  ;;  %17423 = vmatprep.subr.mxu0 %v1712_v12  ;;  %v258_v1 = vld [vmem:[%s21967_s5 + $0x28] sm:$0xff] }
 0x51f   :  { %17424 = vmatpush3.msra.mxu0 %v1712_v12 }
 0x520   :  { %17419 = vmatmul.mubr.msk.f32.vlgmr.msra.gmra.mxu1 %vm364_vm4, %v1058_v3  ;;  %17425 = vmatprep.subr.mxu0 %v1710_v10  ;;  %v256_v3 = vld [vmem:[%s21967_s5 + $0x18] sm:$0xff] }
 0x521   :  { %17426 = vmatpush3.msra.mxu0 %v1710_v10 }
 0x57c   :  { %v1207_v5 = vpop.f32.mrf.mxu1 }
 0x57e   :  { %v17390_v6 = vpop.f32.mrf.mxu1 }
 0x57f   :  { %v1934_v6 = vld [vmem:[%s21968_s6 + $0x30] sm:$0xff] }
 0x580   :  { %v1131_v7 = vpop.f32.mrf.mxu0 }
 0x582   :  { %v17385_v11 = vpop.f32.mrf.mxu0 }
 0x583   :  { %v1932_v11 = vld [vmem:[%s21968_s6 + $0x20] sm:$0xff] }
 0x5cc   :  { %v1283_v13 = vpop.f32.mrf.mxu0 }
 0x5cd   :  { %1669 = vrot.lane.b32.xlu0 %v1283_v13, %s18972_s29 }
 0x5ce   :  { %v17395_v14 = vpop.f32.mrf.mxu0 }
 0x5d0   :  { %v1359_v15 = vpop.f32.mrf.mxu1 }
 0x5d1   :  { %1671 = vrot.lane.b32.xlu0 %v1359_v15, %s18972_s29 }
 0x5d2   :  { %v17400_v16 = vpop.f32.mrf.mxu1 }
 0x5d4   :  { %v1435_v17 = vpop.f32.mrf.mxu0 }
 0x5d5   :  { %1677 = vrot.lane.b32.xlu1 %v1435_v17, %s18985_s0  ;;  %v19440_v17 = vsub.s32 4, %v19165_v31 }
 0x5d6   :  { %v17405_v18 = vpop.f32.mrf.mxu0 }
 0x5d7   :  { %v19443_v18 = vsub.s32 5, %v19165_v31 }
 0x5d8   :  { %v1511_v19 = vpop.f32.mrf.mxu1 }
 0x5d9   :  { %1679 = vrot.lane.b32.xlu0 %v1511_v19, %s18985_s0  ;;  %v1832_v19 = vrot.slane %v19170_v33, %v19440_v17 }
 0x5da   :  { %v17410_v20 = vpop.f32.mrf.mxu1 }
 0x5dc   :  { %v1587_v22 = vpop.f32.mrf.mxu0 }
 0x5dd   :  { %1685 = vrot.lane.b32.xlu1 %v1587_v22, %s18986_s18  ;;  %1707 = vrot.lane.b32.xlu0 %v19152_v28, %s18984_s17 }
 0x5de   :  { %v17415_v24 = vpop.f32.mrf.mxu0 }
 0x5df   :  { %v1838_v24 = vrot.slane %v19170_v33, %v19443_v18 }
 0x5e0   :  { %v1663_v26 = vpop.f32.mrf.mxu1 }
 0x5e1   :  { %1687 = vrot.lane.b32.xlu1 %v1663_v26, %s18986_s18 }
 0x5e2   :  { %v17420_v34 = vpop.f32.mrf.mxu1 }
 0x63f   :  { %v1670_v35 = vpop.permute.xlu0 %1669 }
 0x640   :  { %v1691_v47 = vsel %vm364_vm4, %v1131_v7, %v1670_v35  ;;  %v1933_v7 = vld [vmem:[%s21968_s6 + $0x28] sm:$0xff] }
 0x643   :  { %v1672_v36 = vpop.permute.xlu0 %1671 }
 0x644   :  { %v1692_v28 = vsel %vm364_vm4, %v1207_v5, %v1672_v36  ;;  %v1935_v5 = vld [vmem:[%s21968_s6 + $0x38] sm:$0xff] }
 0x647   :  { %v1678_v43 = vpop.permute.xlu1 %1677 }
 0x648   :  { %v1694_v48 = vsel %vm1693_vm5, %v1691_v47, %v1678_v43  ;;  %v1931_v47 = vld [vmem:[%s21968_s6 + $0x18] sm:$0xff] }
 0x64b   :  { %v1680_v46 = vpop.permute.xlu0 %1679 }
 0x64c   :  { %v1695_v52 = vsel %vm1693_vm5, %v1692_v28, %v1680_v46 }
 0x64f   :  { %v1686_v49 = vpop.permute.xlu1 %1685  ;;  %v1708_v50 = vpop.permute.xlu0 %1707 }
 0x650   :  { %v1697_v51 = vsel %vm1696_vm6, %v1694_v48, %v1686_v49  ;;  %17427 = vmatprep.subr.mxu0 %v1708_v50  ;;  %v1930_v48 = vld [vmem:[%s21968_s6 + $0x10] sm:$0xff]  ;;  %v1929_v49 = vld [vmem:[%s21968_s6 + $0x8] sm:$0xff] }
 0x651   :  { %17429 = vmatprep.mubr.msk.f32.mxu0 %vm266_vm2, %v1697_v51  ;;  %17428 = vmatpush3.msra.mxu0 %v1708_v50  ;;  %v1928_v50 = vld [vmem:[%s21968_s6] sm:$0xff]  ;;  %v19465_v51 = vsub.s32 2, %v19165_v31 }
 0x652   :  { %17443 = vmatprep.subr.mxu0 %v1935_v5 }
 0x653   :  { %v1688_v53 = vpop.permute.xlu1 %1687  ;;  %v1844_v28 = vrot.slane %v19170_v33, %v19465_v51 }
 0x654   :  { %v1698_v54 = vsel %vm1696_vm6, %v1695_v52, %v1688_v53 }
 0x655   :  { %17430 = vmatmul.mubr.msk.f32.vlgmr.msra.gmra.mxu0 %vm266_vm2, %v1698_v54 }
 0x656   :  { %17444 = vmatpush3.msra.mxu0 %v1935_v5  ;;  %v19485_v5 = vld [vmem:[%s21967_s5 + $0x70] sm:$0xff] }
 0x657   :  { %17445 = vmatprep.subr.mxu0 %v1934_v6 }
 0x658   :  { %17446 = vmatpush3.msra.mxu0 %v1934_v6  ;;  %v19490_v6 = vld [vmem:[%s21967_s5 + $0x60] sm:$0xff] }
 0x659   :  { %17447 = vmatprep.subr.mxu0 %v1933_v7 }
 0x65a   :  { %17448 = vmatpush3.msra.mxu0 %v1933_v7  ;;  %v19497_v7 = vld [vmem:[%s21967_s5 + $0x50] sm:$0xff] }
 0x65b   :  { %17449 = vmatprep.subr.mxu0 %v1932_v11 }
 0x65c   :  { %17450 = vmatpush3.msra.mxu0 %v1932_v11  ;;  %v19504_v11 = vld [vmem:[%s21967_s5 + $0x40] sm:$0xff] }
 0x65d   :  { %17451 = vmatprep.subr.mxu0 %v1931_v47 }
 0x65e   :  { %17452 = vmatpush3.msra.mxu0 %v1931_v47 }
 0x65f   :  { %17453 = vmatprep.subr.mxu0 %v1930_v48 }
 0x660   :  { %17454 = vmatpush3.msra.mxu0 %v1930_v48 }
 0x661   :  { %17455 = vmatprep.subr.mxu0 %v1929_v49 }
 0x662   :  { %17456 = vmatpush3.msra.mxu0 %v1929_v49  ;;  %v19531_v49 = vld [vmem:[#allocation2 + $0x8] sm:$0xff] }
 0x663   :  { %17457 = vmatprep.subr.mxu0 %v1928_v50 }
 0x664   :  { %17458 = vmatpush3.msra.mxu0 %v1928_v50  ;;  %v2076_v50 = vrot.slane %v19531_v49, %v19168_v32 }
 0x665   :  { %17483 = vmatprep.subr.mxu0 %v18975_v21 }
 0x715   :  { %v17431_v37 = vpop.f32.mrf.mxu0 }
 0x716   :  { %v1797_v55 = vadd.f32 %v17431_v37, %v1702_v45 }
 0x717   :  { %v1791_v40 = vpop.f32.mrf.mxu0 }
 0x718   :  { %v1792_v42 = vadd.f32 %v1791_v40, %v1702_v45  ;;  %v1801_v38 = vadd.f32 %v19157_v29, %v1797_v55  ;;  %v19474_v40 = vsub.s32 3, %v19165_v31 }
 0x71a   :  { %v1805_v44 = vsel %vm266_vm2, %v1801_v38, 0.0  ;;  %v1800_v39 = vadd.f32 %v1792_v42, %v19159_v30  ;;  %v260_v30 = vld [vmem:[%s21967_s5 + $0x38] sm:$0xff]  ;;  %v1939_v42 = vrot.slane %v19170_v33, %v19474_v40 }
 0x71b   :  { %1806 = vadd.xlane.f32.xlu1 %v1805_v44  ;;  %17432 = vmatprep.subr.mxu1 %v260_v30 }
 0x71c   :  { %v1802_v8 = vsel %vm266_vm2, %v1800_v39, 0.0  ;;  %17433 = vmatpush3.msra.mxu1 %v260_v30 }
 0x71d   :  { %1803 = vadd.xlane.f32.xlu0 %v1802_v8  ;;  %17434 = vmatprep.subr.mxu1 %v258_v1 }
 0x71e   :  { %17435 = vmatpush3.msra.mxu1 %v258_v1 }
 0x71f   :  { %17436 = vmatprep.subr.mxu1 %v256_v3 }
 0x720   :  { %17437 = vmatpush3.msra.mxu1 %v256_v3 }
 0x721   :  { %17438 = vmatprep.subr.mxu1 %v254_v4 }
 0x722   :  { %17439 = vmatpush3.msra.mxu1 %v254_v4 }
 0x723   :  { %17462 = vmatprep.subr.mxu1 %v19485_v5 }
 0x7a4   :  { %v1807_v9 = vpop.xlane.xlu1 %1806 }
 0x7a5   :  { %v1810_v27 = vmul.f32 0.03125, %v1807_v9 }
 0x7a6   :  { %v1804_v57 = vpop.xlane.xlu0 %1803 }
 0x7a7   :  { %v1809_v58 = vmul.f32 0.03125, %v1804_v57  ;;  %v1812_v59 = vsub.f32 %v1801_v38, %v1810_v27 }
 0x7a9   :  { %v1811_v61 = vsub.f32 %v1800_v39, %v1809_v58  ;;  %v1814_v0 = vmul.f32 %v1812_v59, %v1812_v59 }
 0x7ab   :  { %v1813_v62 = vmul.f32 %v1811_v61, %v1811_v61  ;;  %v1818_v29 = vsel %vm266_vm2, %v1814_v0, 0.0 }
 0x7ad   :  { %v1815_v63 = vsel %vm266_vm2, %v1813_v62, 0.0 }
 0x7ae   :  { %1816 = vadd.xlane.f32.xlu0 %v1815_v63 }
 0x7b2   :  { %1819 = vadd.xlane.f32.xlu0 %v1818_v29 }
 0x837   :  { %v1817_v12 = vpop.xlane.xlu0 %1816 }
 0x838   :  { %v1821_v10 = vmul.f32 0.03125, %v1817_v12 }
 0x83a   :  { %v1823_v13 = vadd.f32 1e-05, %v1821_v10 }
 0x83b   :  { %v1820_v14 = vpop.xlane.xlu0 %1819 }
 0x83c   :  { %18559 = vrsqrt.f32 %v1823_v13  ;;  %v1822_v15 = vmul.f32 0.03125, %v1820_v14 }
 0x83e   :  { %v1824_v16 = vadd.f32 1e-05, %v1822_v15 }
 0x840   :  { %18561 = vrsqrt.f32 %v1824_v16 }
 0x849   :  { %v18560_v20 = vpop.eup %18559 }
 0x84a   :  { %v1827_v22 = vmul.f32 %v18560_v20, %v1811_v61 }
 0x84c   :  { %v1833_v26 = vmul.f32 %v1832_v19, %v1827_v22 }
 0x84d   :  { %v18562_v34 = vpop.eup %18561 }
 0x84e   :  { %v1828_v35 = vmul.f32 %v18562_v34, %v1812_v59  ;;  %v1839_v36 = vadd.f32 %v1838_v24, %v1833_v26 }
 0x850   :  { %v1834_v43 = vmul.f32 %v1832_v19, %v1828_v35  ;;  %17440 = vmatprep.mubr.msk.f32.mxu1 %vm266_vm2, %v1839_v36  ;;  %v19512_v19 = vsub.s32 6, %v19165_v31 }
 0x852   :  { %v1840_v46 = vadd.f32 %v1838_v24, %v1834_v43  ;;  %v2053_v22 = vrot.slane %v19170_v33, %v19512_v19  ;;  %v19517_v24 = vsub.s32 7, %v19165_v31 }
 0x854   :  { %17441 = vmatmul.mubr.msk.f32.vlgmr.msra.gmra.mxu1 %vm266_vm2, %v1840_v46  ;;  %v2059_v43 = vrot.slane %v19170_v33, %v19517_v24 }
 0x855   :  { %17463 = vmatpush3.msra.mxu1 %v19485_v5 }
 0x856   :  { %17464 = vmatprep.subr.mxu1 %v19490_v6 }
 0x857   :  { %17465 = vmatpush3.msra.mxu1 %v19490_v6 }
 0x858   :  { %17466 = vmatprep.subr.mxu1 %v19497_v7 }
 0x859   :  { %17467 = vmatpush3.msra.mxu1 %v19497_v7 }
 0x85a   :  { %17468 = vmatprep.subr.mxu1 %v19504_v11 }
 0x85b   :  { %17469 = vmatpush3.msra.mxu1 %v19504_v11 }
 0x85c   :  { %17473 = vmatprep.subr.mxu1 %v18975_v21 }
 0x914   :  { %v17442_v52 = vpop.f32.mrf.mxu1 }
 0x915   :  { %v1923_v53 = vadd.f32 %v17442_v52, %v1844_v28 }
 0x916   :  { %v1917_v54 = vpop.f32.mrf.mxu1 }
 0x917   :  { %v1918_v45 = vadd.f32 %v1917_v54, %v1844_v28  ;;  %v1927_v55 = vmax.f32 %v1923_v53, 0.0 }
 0x919   :  { %v1926_v37 = vmax.f32 %v1918_v45, 0.0 }
 0x91b   :  { %17459 = vmatprep.mubr.msk.f32.mxu0 %vm1940_vm7, %v1926_v37 }
 0x91c   :  { %17460 = vmatmul.mubr.msk.f32.vlgmr.msra.gmra.mxu0 %vm1940_vm7, %v1927_v55 }
 0x91d   :  { %17485 = vmatprep.mubr.msk.f32.mxu0 %vm18977_vm3, %v18975_v21 }
 0x9dc   :  { %v17461_v38 = vpop.f32.mrf.mxu0 }
 0x9dd   :  { %v2019_v44 = vadd.f32 %v17461_v38, %v1939_v42 }
 0x9de   :  { %v2013_v39 = vpop.f32.mrf.mxu0 }
 0x9df   :  { %v2014_v8 = vadd.f32 %v2013_v39, %v1939_v42  ;;  %v2023_v9 = vadd.f32 %v2019_v44, %v1840_v46 }
 0x9e1   :  { %v2027_v27 = vsel %vm266_vm2, %v2023_v9, 0.0  ;;  %v2022_v57 = vadd.f32 %v2014_v8, %v1839_v36 }
 0x9e2   :  { %2028 = vadd.xlane.f32.xlu0 %v2027_v27 }
 0x9e3   :  { %v2024_v58 = vsel %vm266_vm2, %v2022_v57, 0.0 }
 0x9e4   :  { %2025 = vadd.xlane.f32.xlu1 %v2024_v58 }
 0xa6b   :  { %v2029_v59 = vpop.xlane.xlu0 %2028 }
 0xa6c   :  { %v2031_v61 = vmul.f32 0.03125, %v2029_v59 }
 0xa6d   :  { %v2026_v62 = vpop.xlane.xlu1 %2025 }
 0xa6e   :  { %v2033_v63 = vsub.f32 %v2023_v9, %v2031_v61  ;;  %v2030_v0 = vmul.f32 0.03125, %v2026_v62 }
 0xa70   :  { %v2032_v29 = vsub.f32 %v2022_v57, %v2030_v0  ;;  %v2035_v30 = vmul.f32 %v2033_v63, %v2033_v63 }
 0xa72   :  { %v2039_v1 = vsel %vm266_vm2, %v2035_v30, 0.0  ;;  %v2034_v3 = vmul.f32 %v2032_v29, %v2032_v29 }
 0xa73   :  { %2040 = vadd.xlane.f32.xlu0 %v2039_v1 }
 0xa74   :  { %v2036_v4 = vsel %vm266_vm2, %v2034_v3, 0.0 }
 0xa75   :  { %2037 = vadd.xlane.f32.xlu1 %v2036_v4 }
 0xafc   :  { %v2041_v12 = vpop.xlane.xlu0 %2040 }
 0xafd   :  { %v2043_v10 = vmul.f32 0.03125, %v2041_v12 }
 0xafe   :  { %v2038_v13 = vpop.xlane.xlu1 %2037 }
 0xaff   :  { %v2045_v14 = vadd.f32 1e-05, %v2043_v10  ;;  %v2042_v15 = vmul.f32 0.03125, %v2038_v13 }
 0xb01   :  { %18563 = vrsqrt.f32 %v2045_v14  ;;  %v2044_v16 = vadd.f32 1e-05, %v2042_v15 }
 0xb03   :  { %18565 = vrsqrt.f32 %v2044_v16 }
 0xb0e   :  { %v18564_v20 = vpop.eup %18563 }
 0xb0f   :  { %v2049_v26 = vmul.f32 %v18564_v20, %v2033_v63 }
 0xb10   :  { %v18566_v34 = vpop.eup %18565 }
 0xb11   :  { %v2048_v35 = vmul.f32 %v18566_v34, %v2032_v29  ;;  %v2055_v36 = vmul.f32 %v2053_v22, %v2049_v26 }
 0xb13   :  { %v2054_v46 = vmul.f32 %v2053_v22, %v2048_v35  ;;  %v19523_v48 = vadd.f32 %v2059_v43, %v2055_v36 }
 0xb15   :  { %v19521_v47 = vadd.f32 %v2059_v43, %v2054_v46 }
 0xb17   :  { %17470 = vmatprep.mubr.msk.f32.mxu1 %vm266_vm2, %v19521_v47 }
 0xb18   :  { %17471 = vmatmul.mubr.msk.f32.vlgmr.msra.gmra.mxu1 %vm266_vm2, %v19523_v48 }
 0xb19   :  { %17475 = vmatprep.mubr.msk.f32.mxu1 %vm18977_vm3, %v18975_v21 }
 0xbd8   :  { %v17472_v33 = vpop.f32.mrf.mxu1 }
 0xbd9   :  { %v19535_v28 = vadd.f32 %v17472_v33, %v2076_v50 }
 0xbda   :  { %v2149_v52 = vpop.f32.mrf.mxu1 }
 0xbdb   :  { %v19537_v53 = vadd.f32 %v2149_v52, %v2076_v50  ;;  %2162 = vrot.lane.b32.xlu0 %v19535_v28, %s18979_s27 }
 0xbdd   :  { %2160 = vrot.lane.b32.xlu1 %v19537_v53, %s18979_s27 }
 0xbdf   :  { %2168 = vrot.lane.b32.xlu0 %v19537_v53, %s18980_s30 }
 0xbe1   :  { %2164 = vrot.lane.b32.xlu1 %v19537_v53, %s18978_s26 }
 0xbe3   :  { %2172 = vrot.lane.b32.xlu0 %v19537_v53, %s18981_s14 }
 0xbe5   :  { %2166 = vrot.lane.b32.xlu1 %v19535_v28, %s18978_s26 }
 0xbe9   :  { %2170 = vrot.lane.b32.xlu1 %v19535_v28, %s18980_s30 }
 0xbed   :  { %2248 = vrot.lane.b32.xlu1 %v19535_v28, %s18981_s14 }
 0xc4d   :  { %v19555_v54 = vpop.permute.xlu0 %2162 }
 0xc4e   :  { %2400 = vrot.lane.b32.xlu1 %v19555_v54, %s18981_s14 }
 0xc4f   :  { %v19559_v45 = vpop.permute.xlu1 %2160 }
 0xc50   :  { %2324 = vrot.lane.b32.xlu0 %v19559_v45, %s18981_s14 }
 0xc51   :  { %v19563_v37 = vpop.permute.xlu0 %2168 }
 0xc53   :  { %v19565_v55 = vpop.permute.xlu1 %2164 }
 0xc54   :  { %2476 = vrot.lane.b32.xlu0 %v19565_v55, %s18981_s14 }
 0xc55   :  { %v2173_v42 = vpop.permute.xlu0 %2172 }
 0xc56   :  { %17474 = vmatpush3.xpose.msk.msra.mxu1 %vm364_vm4, %v2173_v42 }
 0xc57   :  { %v19570_v38 = vpop.permute.xlu1 %2166  ;;  %17478 = vmatprep.subr.mxu1 %v18975_v21 }
 0xc58   :  { %2628 = vrot.lane.b32.xlu0 %v19563_v37, %s18981_s14  ;;  %2552 = vrot.lane.b32.xlu1 %v19570_v38, %s18981_s14 }
 0xc59   :  { %17476 = vmatmul.mubr.msk.f32.vlgmr.msra.gmra.mxu1 %vm364_vm4, %v19537_v53 }
 0xc5a   :  { %17480 = vmatprep.mubr.msk.f32.mxu1 %vm18977_vm3, %v18975_v21 }
 0xc5b   :  { %v19581_v44 = vpop.permute.xlu1 %2170 }
 0xc5c   :  { %2704 = vrot.lane.b32.xlu1 %v19581_v44, %s18981_s14 }
 0xc5f   :  { %v2249_v39 = vpop.permute.xlu1 %2248 }
 0xc60   :  { %17479 = vmatpush3.xpose.msk.msra.mxu1 %vm364_vm4, %v2249_v39 }
 0xc61   :  { %17488 = vmatprep.subr.mxu1 %v18975_v21 }
 0xc63   :  { %17481 = vmatmul.mubr.msk.f32.vlgmr.msra.gmra.mxu1 %vm364_vm4, %v19535_v28 }
 0xc64   :  { %17490 = vmatprep.mubr.msk.f32.mxu1 %vm18977_vm3, %v18975_v21 }
 0xcc0   :  { %v2401_v8 = vpop.permute.xlu1 %2400 }
 0xcc1   :  { %17489 = vmatpush3.xpose.msk.msra.mxu1 %vm364_vm4, %v2401_v8 }
 0xcc2   :  { %v2325_v9 = vpop.permute.xlu0 %2324  ;;  %17498 = vmatprep.subr.mxu1 %v18975_v21 }
 0xcc3   :  { %17484 = vmatpush3.xpose.msk.msra.mxu0 %vm364_vm4, %v2325_v9 }
 0xcc4   :  { %17491 = vmatmul.mubr.msk.f32.vlgmr.msra.gmra.mxu1 %vm364_vm4, %v19555_v54  ;;  %17493 = vmatprep.subr.mxu0 %v18975_v21 }
 0xcc5   :  { %17500 = vmatprep.mubr.msk.f32.mxu1 %vm18977_vm3, %v18975_v21 }
 0xcc6   :  { %17486 = vmatmul.mubr.msk.f32.vlgmr.msra.gmra.mxu0 %vm364_vm4, %v19559_v45  ;;  %v2477_v27 = vpop.permute.xlu0 %2476 }
 0xcc7   :  { %17494 = vmatpush3.xpose.msk.msra.mxu0 %vm364_vm4, %v2477_v27  ;;  %17495 = vmatprep.mubr.msk.f32.mxu0 %vm18977_vm3, %v18975_v21 }
 0xcc8   :  { %17503 = vmatprep.subr.mxu0 %v18975_v21 }
 0xcca   :  { %17496 = vmatmul.mubr.msk.f32.vlgmr.msra.gmra.mxu0 %vm364_vm4, %v19565_v55  ;;  %v2629_v57 = vpop.permute.xlu0 %2628  ;;  %v2553_v58 = vpop.permute.xlu1 %2552 }
 0xccb   :  { %17499 = vmatpush3.xpose.msk.msra.mxu1 %vm364_vm4, %v2553_v58  ;;  %17504 = vmatpush3.xpose.msk.msra.mxu0 %vm364_vm4, %v2629_v57 }
 0xccc   :  { %17505 = vmatprep.mubr.msk.f32.mxu0 %vm18977_vm3, %v18975_v21  ;;  %17508 = vmatprep.subr.mxu1 %v18975_v21 }
 0xccd   :  { %17513 = vmatprep.subr.mxu0 %v18975_v21 }
 0xcce   :  { %17501 = vmatmul.mubr.msk.f32.vlgmr.msra.gmra.mxu1 %vm364_vm4, %v19570_v38  ;;  %17506 = vmatmul.mubr.msk.f32.vlgmr.msra.gmra.mxu0 %vm364_vm4, %v19563_v37  ;;  %v2705_v59 = vpop.permute.xlu1 %2704 }
 0xccf   :  { %17509 = vmatpush3.xpose.msk.msra.mxu1 %vm364_vm4, %v2705_v59  ;;  %17510 = vmatprep.mubr.msk.f32.mxu1 %vm18977_vm3, %v18975_v21 }
 0xcd0   :  { %17518 = vmatprep.subr.mxu1 %v18975_v21  ;;  %17515 = vmatprep.mubr.msk.f32.mxu0 %vm18977_vm3, %v18975_v21 }
 0xcd2   :  { %17511 = vmatmul.mubr.msk.f32.vlgmr.msra.gmra.mxu1 %vm364_vm4, %v19581_v44 }
 0xcd3   :  { %17520 = vmatprep.mubr.msk.f32.mxu1 %vm18977_vm3, %v18975_v21 }
 0xd19   :  { %v2244_v61 = vpop.f32.mrf.mxu1 }
 0xd1a   :  { %v2245_v62 = vadd.f32 %v2244_v61, %v19278_v60 }
 0xd1b   :  { %v17477_v63 = vpop.f32.mrf.mxu1 }
 0xd1c   :  { %v2780_v0 = vsel %vm364_vm4, %v2245_v62, -inf }
 0xd1d   :  { %2781 = vmax.xlane.f32.xlu0 %v2780_v0 }
 0xd23   :  { %v2320_v29 = vpop.f32.mrf.mxu1 }
 0xd24   :  { %v2321_v30 = vadd.f32 %v2320_v29, %v19284_v2 }
 0xd25   :  { %v17482_v1 = vpop.f32.mrf.mxu1 }
 0xd26   :  { %v2783_v3 = vsel %vm364_vm4, %v2321_v30, -inf }
 0xd27   :  { %2784 = vmax.xlane.f32.xlu1 %v2783_v3 }
 0xd84   :  { %v2472_v4 = vpop.f32.mrf.mxu1 }
 0xd85   :  { %v2473_v15 = vadd.f32 %v2472_v4, %v19284_v2 }
 0xd86   :  { %v2396_v12 = vpop.f32.mrf.mxu0  ;;  %v17492_v10 = vpop.f32.mrf.mxu1 }
 0xd87   :  { %v2397_v13 = vadd.f32 %v2396_v12, %v19278_v60  ;;  %v2789_v35 = vsel %vm364_vm4, %v2473_v15, -inf }
 0xd88   :  { %v17487_v14 = vpop.f32.mrf.mxu0 }
 0xd89   :  { %v2786_v16 = vsel %vm364_vm4, %v2397_v13, -inf }
 0xd8a   :  { %2787 = vmax.xlane.f32.xlu0 %v2786_v16  ;;  %v2548_v20 = vpop.f32.mrf.mxu0 }
 0xd8b   :  { %v2549_v22 = vadd.f32 %v2548_v20, %v19278_v60 }
 0xd8c   :  { %v17497_v26 = vpop.f32.mrf.mxu0 }
 0xd8d   :  { %v2792_v34 = vsel %vm364_vm4, %v2549_v22, -inf }
 0xd8e   :  { %v2700_v36 = vpop.f32.mrf.mxu0  ;;  %2793 = vmax.xlane.f32.xlu1 %v2792_v34  ;;  %2790 = vmax.xlane.f32.xlu0 %v2789_v35  ;;  %v2624_v43 = vpop.f32.mrf.mxu1 }
 0xd8f   :  { %v2701_v46 = vadd.f32 %v2700_v36, %v19278_v60  ;;  %v2625_v50 = vadd.f32 %v2624_v43, %v19284_v2 }
 0xd90   :  { %v17502_v33 = vpop.f32.mrf.mxu1  ;;  %v17507_v52 = vpop.f32.mrf.mxu0 }
 0xd91   :  { %v2798_v42 = vsel %vm364_vm4, %v2701_v46, -inf  ;;  %v2795_v39 = vsel %vm364_vm4, %v2625_v50, -inf }
 0xd92   :  { %2799 = vmax.xlane.f32.xlu1 %v2798_v42  ;;  %2796 = vmax.xlane.f32.xlu0 %v2795_v39  ;;  %v2776_v8 = vpop.f32.mrf.mxu1 }
 0xd93   :  { %v2777_v9 = vadd.f32 %v2776_v8, %v19284_v2 }
 0xd94   :  { %v17512_v27 = vpop.f32.mrf.mxu1 }
 0xd95   :  { %v2801_v57 = vsel %vm364_vm4, %v2777_v9, -inf }
 0xd96   :  { %2802 = vmax.xlane.f32.xlu0 %v2801_v57 }
 0xda3   :  { %2868 = vrot.lane.b32.xlu1 %v19537_v53, %s18983_s2 }
 0xda6   :  { %v2782_v61 = vpop.xlane.xlu0 %2781 }
 0xda7   :  { %3020 = vrot.lane.b32.xlu1 %v19559_v45, %s18983_s2  ;;  %v2804_v63 = vsub.f32 %v2245_v62, %v2782_v61 }
 0xda9   :  { %v2812_v0 = vmul.f32 1.442695, %v2804_v63 }
 0xdab   :  { %3096 = vrot.lane.b32.xlu1 %v19555_v54, %s18983_s2 }
 0xdac   :  { %2944 = vrot.lane.b32.xlu0 %v19535_v28, %s18983_s2 }
 0xdaf   :  { %3248 = vrot.lane.b32.xlu1 %v19570_v38, %s18983_s2 }
 0xdb0   :  { %3172 = vrot.lane.b32.xlu0 %v19565_v55, %s18983_s2  ;;  %v2785_v58 = vpop.xlane.xlu1 %2784 }
 0xdb1   :  { %v2805_v59 = vsub.f32 %v2321_v30, %v2785_v58 }
 0xdb3   :  { %v2814_v53 = vmul.f32 1.442695, %v2805_v59 }
 0xdb5   :  { %18567 = vpow2.f32 %v2814_v53 }
 0xdb6   :  { %18569 = vpow2.f32 %v2812_v0 }
 0xdc2   :  { %v19655_v45 = vpop.eup %18567 }
 0xdc3   :  { %v2831_v54 = vsel %vm364_vm4, %v19655_v45, 0.0  ;;  %v19659_v28 = vpop.eup %18569 }
 0xdc4   :  { %v2828_v38 = vsel %vm364_vm4, %v19659_v28, 0.0 }
 0xdcf   :  { %2832 = vadd.xlane.f32.xlu0 %v2831_v54 }
 0xdd3   :  { %2829 = vadd.xlane.f32.xlu1 %v2828_v38 }
 0xe13   :  { %v2788_v55 = vpop.xlane.xlu0 %2787 }
 0xe14   :  { %v2806_v29 = vsub.f32 %v2397_v13, %v2788_v55 }
 0xe16   :  { %v2816_v30 = vmul.f32 1.442695, %v2806_v29 }
 0xe17   :  { %v2791_v62 = vpop.xlane.xlu0 %2790  ;;  %v2794_v1 = vpop.xlane.xlu1 %2793 }
 0xe18   :  { %18571 = vpow2.f32 %v2816_v30  ;;  %v2807_v3 = vsub.f32 %v2473_v15, %v2791_v62  ;;  %v2808_v4 = vsub.f32 %v2549_v22, %v2794_v1 }
 0xe1a   :  { %v2818_v12 = vmul.f32 1.442695, %v2807_v3  ;;  %v2820_v10 = vmul.f32 1.442695, %v2808_v4 }
 0xe1b   :  { %v2797_v14 = vpop.xlane.xlu0 %2796  ;;  %v2800_v16 = vpop.xlane.xlu1 %2799 }
 0xe1c   :  { %18573 = vpow2.f32 %v2818_v12  ;;  %v2809_v20 = vsub.f32 %v2625_v50, %v2797_v14  ;;  %v2810_v26 = vsub.f32 %v2701_v46, %v2800_v16 }
 0xe1d   :  { %18575 = vpow2.f32 %v2820_v10 }
 0xe1e   :  { %v2822_v34 = vmul.f32 1.442695, %v2809_v20  ;;  %v2824_v35 = vmul.f32 1.442695, %v2810_v26 }
 0xe1f   :  { %v2803_v36 = vpop.xlane.xlu0 %2802  ;;  %v2869_v43 = vpop.permute.xlu1 %2868 }
 0xe20   :  { %18577 = vpow2.f32 %v2822_v34  ;;  %v2811_v13 = vsub.f32 %v2777_v9, %v2803_v36  ;;  %17514 = vmatpush3.msra.mxu0 %v2869_v43 }
 0xe21   :  { %18579 = vpow2.f32 %v2824_v35  ;;  %17523 = vmatprep.subr.mxu0 %v18975_v21 }
 0xe22   :  { %v2826_v15 = vmul.f32 1.442695, %v2811_v13 }
 0xe23   :  { %v2945_v22 = vpop.permute.xlu0 %2944  ;;  %v3021_v61 = vpop.permute.xlu1 %3020 }
 0xe24   :  { %18581 = vpow2.f32 %v2826_v15  ;;  %17519 = vmatpush3.msra.mxu1 %v2945_v22 }
 0xe25   :  { %v18572_v33 = vpop.eup %18571  ;;  %17528 = vmatprep.subr.mxu1 %v18975_v21 }
 0xe26   :  { %v2834_v46 = vsel %vm364_vm4, %v18572_v33, 0.0 }
 0xe27   :  { %2835 = vadd.xlane.f32.xlu1 %v2834_v46  ;;  %v3097_v63 = vpop.permute.xlu1 %3096  ;;  %v3173_v53 = vpop.permute.xlu0 %3172 }
 0xe29   :  { %v18574_v50 = vpop.eup %18573 }
 0xe2a   :  { %v18576_v52 = vpop.eup %18575  ;;  %v2837_v42 = vsel %vm364_vm4, %v18574_v50, 0.0 }
 0xe2b   :  { %2838 = vadd.xlane.f32.xlu0 %v2837_v42  ;;  %v2840_v39 = vsel %vm364_vm4, %v18576_v52, 0.0  ;;  %v3249_v0 = vpop.permute.xlu1 %3248 }
 0xe2c   :  { %2841 = vadd.xlane.f32.xlu1 %v2840_v39 }
 0xe2d   :  { %v19668_v8 = vpop.eup %18577 }
 0xe2e   :  { %v19670_v9 = vpop.eup %18579  ;;  %v2843_v27 = vsel %vm364_vm4, %v19668_v8, 0.0 }
 0xe2f   :  { %2844 = vadd.xlane.f32.xlu0 %v2843_v27  ;;  %v2846_v57 = vsel %vm364_vm4, %v19670_v9, 0.0 }
 0xe30   :  { %2847 = vadd.xlane.f32.xlu1 %v2846_v57 }
 0xe31   :  { %v19676_v58 = vpop.eup %18581 }
 0xe32   :  { %v2849_v59 = vsel %vm364_vm4, %v19676_v58, 0.0 }
 0xe33   :  { %2850 = vadd.xlane.f32.xlu0 %v2849_v59 }
 0xe41   :  { %3400 = vrot.lane.b32.xlu1 %v19581_v44, %s18983_s2 }
 0xe45   :  { %3518 = vrot.lane.b32.xlu1 %v19490_v6, %s18984_s17 }
 0xe49   :  { %3324 = vrot.lane.b32.xlu0 %v19563_v37, %s18983_s2  ;;  %3516 = vrot.lane.b32.xlu1 %v19497_v7, %s18984_s17 }
 0xe4d   :  { %3520 = vrot.lane.b32.xlu0 %v19485_v5, %s18984_s17 }
 0xe58   :  { %v2833_v54 = vpop.xlane.xlu0 %2832 }
 0xe59   :  { %18583 = vrcp.f32 %v2833_v54 }
 0xe5c   :  { %v2830_v38 = vpop.xlane.xlu1 %2829 }
 0xe5d   :  { %18585 = vrcp.f32 %v2830_v38 }
 0xe66   :  { %v18584_v44 = vpop.eup %18583 }
 0xe67   :  { %v2861_v6 = vmul.f32 %v18584_v44, %v19655_v45 }
 0xe69   :  { %17521 = vmatmul.mubr.msk.f32.vlgmr.msra.gmra.mxu1 %vm364_vm4, %v2861_v6 }
 0xe6a   :  { %v18586_v37 = vpop.eup %18585  ;;  %17529 = vmatpush3.msra.mxu1 %v3097_v63  ;;  %17530 = vmatprep.mubr.msk.f32.mxu1 %vm18977_vm3, %v18975_v21 }
 0xe6b   :  { %v2860_v7 = vmul.f32 %v18586_v37, %v19659_v28  ;;  %17538 = vmatprep.subr.mxu1 %v18975_v21 }
 0xe6d   :  { %17516 = vmatmul.mubr.msk.f32.vlgmr.msra.gmra.mxu0 %vm364_vm4, %v2860_v7 }
 0xe6e   :  { %17524 = vmatpush3.msra.mxu0 %v3021_v61  ;;  %17525 = vmatprep.mubr.msk.f32.mxu0 %vm18977_vm3, %v18975_v21 }
 0xe6f   :  { %17533 = vmatprep.subr.mxu0 %v18975_v21 }
 0xeb0   :  { %v2836_v5 = vpop.xlane.xlu1 %2835 }
 0xeb1   :  { %18587 = vrcp.f32 %v2836_v5 }
 0xeb4   :  { %v2839_v45 = vpop.xlane.xlu0 %2838 }
 0xeb5   :  { %18589 = vrcp.f32 %v2839_v45  ;;  %v2842_v55 = vpop.xlane.xlu1 %2841 }
 0xeb6   :  { %18591 = vrcp.f32 %v2842_v55 }
 0xeb8   :  { %v2845_v29 = vpop.xlane.xlu0 %2844 }
 0xeb9   :  { %18593 = vrcp.f32 %v2845_v29  ;;  %v2848_v30 = vpop.xlane.xlu1 %2847 }
 0xeba   :  { %18595 = vrcp.f32 %v2848_v30 }
 0xebc   :  { %v2851_v28 = vpop.xlane.xlu0 %2850 }
 0xebd   :  { %18597 = vrcp.f32 %v2851_v28  ;;  %v3401_v35 = vpop.permute.xlu1 %3400 }
 0xebe   :  { %v18588_v62 = vpop.eup %18587 }
 0xebf   :  { %v2862_v1 = vmul.f32 %v18588_v62, %v18572_v33  ;;  %v3509_v62 = vrot.slane %v19531_v49, %v19405_v41 }
 0xec0   :  { %v3325_v16 = vpop.permute.xlu0 %3324 }
 0xec1   :  { %17526 = vmatmul.mubr.msk.f32.vlgmr.msra.gmra.mxu0 %vm364_vm4, %v2862_v1  ;;  %v3519_v13 = vpop.permute.xlu1 %3518 }
 0xec2   :  { %v18590_v3 = vpop.eup %18589  ;;  %17534 = vmatpush3.msra.mxu0 %v3173_v53  ;;  %17535 = vmatprep.mubr.msk.f32.mxu0 %vm18977_vm3, %v18975_v21 }
 0xec3   :  { %v18592_v4 = vpop.eup %18591  ;;  %17543 = vmatprep.subr.mxu0 %v18975_v21  ;;  %v2863_v12 = vmul.f32 %v18590_v3, %v18574_v50 }
 0xec4   :  { %v2864_v10 = vmul.f32 %v18592_v4, %v18576_v52  ;;  %v3521_v15 = vpop.permute.xlu0 %3520 }
 0xec5   :  { %17531 = vmatmul.mubr.msk.f32.vlgmr.msra.gmra.mxu1 %vm364_vm4, %v2863_v12  ;;  %v3517_v22 = vpop.permute.xlu1 %3516 }
 0xec6   :  { %v18594_v14 = vpop.eup %18593  ;;  %17536 = vmatmul.mubr.msk.f32.vlgmr.msra.gmra.mxu0 %vm364_vm4, %v2864_v10  ;;  %17539 = vmatpush3.msra.mxu1 %v3249_v0 }
 0xec7   :  { %v18596_v20 = vpop.eup %18595  ;;  %17544 = vmatpush3.msra.mxu0 %v3325_v16  ;;  %17540 = vmatprep.mubr.msk.f32.mxu1 %vm18977_vm3, %v18975_v21  ;;  %v2865_v26 = vmul.f32 %v18594_v14, %v19668_v8 }
 0xec8   :  { %17545 = vmatprep.mubr.msk.f32.mxu0 %vm18977_vm3, %v18975_v21  ;;  %17548 = vmatprep.subr.mxu1 %v18975_v21  ;;  %v2866_v34 = vmul.f32 %v18596_v20, %v19670_v9 }
 0xec9   :  { %17541 = vmatmul.mubr.msk.f32.vlgmr.msra.gmra.mxu1 %vm364_vm4, %v2865_v26  ;;  %17553 = vmatprep.subr.mxu0 %v3521_v15 }
 0xeca   :  { %v18598_v36 = vpop.eup %18597  ;;  %17546 = vmatmul.mubr.msk.f32.vlgmr.msra.gmra.mxu0 %vm364_vm4, %v2866_v34  ;;  %17549 = vmatpush3.msra.mxu1 %v3401_v35 }
 0xecb   :  { %17550 = vmatprep.mubr.msk.f32.mxu1 %vm18977_vm3, %v18975_v21  ;;  %v2867_v43 = vmul.f32 %v18598_v36, %v19676_v58  ;;  %17554 = vmatpush3.msra.mxu0 %v3521_v15 }
 0xecc   :  { %17555 = vmatprep.subr.mxu0 %v3519_v13 }
 0xecd   :  { %17551 = vmatmul.mubr.msk.f32.vlgmr.msra.gmra.mxu1 %vm364_vm4, %v2867_v43  ;;  %17556 = vmatpush3.msra.mxu0 %v3519_v13 }
 0xece   :  { %17557 = vmatprep.subr.mxu0 %v3517_v22 }
 0xecf   :  { %17558 = vmatpush3.msra.mxu0 %v3517_v22 }
 0xf29   :  { %v3016_v33 = vpop.f32.mrf.mxu1 }
 0xf2b   :  { %v17522_v46 = vpop.f32.mrf.mxu1 }
 0xf2c   :  { %v16416_v46 = vld [vmem:[%s21967_s5 + $0x68] sm:$0xff] }
 0xf2d   :  { %v2940_v50 = vpop.f32.mrf.mxu0 }
 0xf2f   :  { %v17517_v52 = vpop.f32.mrf.mxu0 }
 0xf30   :  { %v16412_v52 = vld [vmem:[%s21967_s5 + $0x48] sm:$0xff] }
 0xf81   :  { %v3092_v42 = vpop.f32.mrf.mxu0 }
 0xf83   :  { %v17527_v39 = vpop.f32.mrf.mxu0 }
 0xf84   :  { %v16455_v39 = vld [vmem:[%s21968_s6 + $0x70] sm:$0xff] }
 0xf85   :  { %v3168_v8 = vpop.f32.mrf.mxu1 }
 0xf86   :  { %v3244_v9 = vpop.f32.mrf.mxu0  ;;  %3480 = vrot.lane.b32.xlu0 %v3168_v8, %s18972_s29  ;;  %v16454_v8 = vld [vmem:[%s21968_s6 + $0x68] sm:$0xff] }
 0xf87   :  { %3486 = vrot.lane.b32.xlu1 %v3244_v9, %s18985_s0  ;;  %v17532_v27 = vpop.f32.mrf.mxu1  ;;  %v16453_v9 = vld [vmem:[%s21968_s6 + $0x60] sm:$0xff] }
 0xf88   :  { %v17537_v57 = vpop.f32.mrf.mxu0 }
 0xf89   :  { %v3320_v58 = vpop.f32.mrf.mxu1 }
 0xf8a   :  { %v3396_v59 = vpop.f32.mrf.mxu0  ;;  %3478 = vrot.lane.b32.xlu0 %v3092_v42, %s18972_s29  ;;  %v16456_v42 = vld [vmem:[%s21968_s6 + $0x78] sm:$0xff] }
 0xf8b   :  { %3494 = vrot.lane.b32.xlu1 %v3396_v59, %s18986_s18  ;;  %v17542_v61 = vpop.f32.mrf.mxu1 }
 0xf8c   :  { %v17547_v63 = vpop.f32.mrf.mxu0 }
 0xf8d   :  { %v3472_v53 = vpop.f32.mrf.mxu1 }
 0xf8e   :  { %3488 = vrot.lane.b32.xlu0 %v3320_v58, %s18985_s0 }
 0xf8f   :  { %3496 = vrot.lane.b32.xlu1 %v3472_v53, %s18986_s18  ;;  %v17552_v0 = vpop.f32.mrf.mxu1  ;;  %v3638_v53 = vrot.slane %v19531_v49, %v19440_v17 }
 0xf92   :  { %3514 = vrot.lane.b32.xlu0 %v19504_v11, %s18984_s17 }
 0xff8   :  { %v3481_v54 = vpop.permute.xlu0 %3480 }
 0xff9   :  { %v3487_v38 = vpop.permute.xlu1 %3486  ;;  %v3501_v55 = vsel %vm364_vm4, %v3016_v33, %v3481_v54 }
 0xffc   :  { %v3479_v44 = vpop.permute.xlu0 %3478 }
 0xffd   :  { %v3500_v6 = vsel %vm364_vm4, %v2940_v50, %v3479_v44  ;;  %v3495_v37 = vpop.permute.xlu1 %3494  ;;  %v16414_v50 = vld [vmem:[%s21967_s5 + $0x58] sm:$0xff] }
 0xffe   :  { %v3502_v7 = vsel %vm1693_vm5, %v3500_v6, %v3487_v38  ;;  %v3644_v38 = vrot.slane %v19531_v49, %v19443_v18 }
 0xfff   :  { %v3504_v5 = vsel %vm1696_vm6, %v3502_v7, %v3495_v37 }
0x1000   :  { %v3489_v45 = vpop.permute.xlu0 %3488  ;;  %17561 = vmatprep.mubr.msk.f32.mxu0 %vm266_vm2, %v3504_v5 }
0x1001   :  { %v3503_v29 = vsel %vm1693_vm5, %v3501_v55, %v3489_v45  ;;  %v3497_v30 = vpop.permute.xlu1 %3496  ;;  %v16452_v55 = vld [vmem:[%s21968_s6 + $0x58] sm:$0xff] }
0x1002   :  { %v3505_v11 = vsel %vm1696_vm6, %v3503_v29, %v3497_v30  ;;  %v16451_v29 = vld [vmem:[%s21968_s6 + $0x50] sm:$0xff]  ;;  %v16450_v30 = vld [vmem:[%s21968_s6 + $0x48] sm:$0xff] }
0x1004   :  { %v3515_v28 = vpop.permute.xlu0 %3514 }
0x1005   :  { %17559 = vmatprep.subr.mxu0 %v3515_v28 }
0x1006   :  { %17560 = vmatpush3.msra.mxu0 %v3515_v28  ;;  %v16449_v28 = vld [vmem:[%s21968_s6 + $0x40] sm:$0xff] }
0x1007   :  { %17562 = vmatmul.mubr.msk.f32.vlgmr.msra.gmra.mxu0 %vm266_vm2, %v3505_v11  ;;  %17575 = vmatprep.subr.mxu0 %v16456_v42  ;;  %v3650_v11 = vrot.slane %v19531_v49, %v19465_v51 }
0x1008   :  { %17576 = vmatpush3.msra.mxu0 %v16456_v42 }
0x1009   :  { %17577 = vmatprep.subr.mxu0 %v16455_v39 }
0x100a   :  { %17578 = vmatpush3.msra.mxu0 %v16455_v39 }
0x100b   :  { %17579 = vmatprep.subr.mxu0 %v16454_v8 }
0x100c   :  { %17580 = vmatpush3.msra.mxu0 %v16454_v8  ;;  %v19801_v8 = vld [vmem:[%s21967_s5 + $0xb0] sm:$0xff] }
0x100d   :  { %17581 = vmatprep.subr.mxu0 %v16453_v9 }
0x100e   :  { %17582 = vmatpush3.msra.mxu0 %v16453_v9  ;;  %v19806_v9 = vld [vmem:[%s21967_s5 + $0xa0] sm:$0xff] }
0x100f   :  { %17583 = vmatprep.subr.mxu0 %v16452_v55 }
0x1010   :  { %17584 = vmatpush3.msra.mxu0 %v16452_v55 }
0x1011   :  { %17585 = vmatprep.subr.mxu0 %v16451_v29 }
0x1012   :  { %17586 = vmatpush3.msra.mxu0 %v16451_v29 }
0x1013   :  { %17587 = vmatprep.subr.mxu0 %v16450_v30 }
0x1014   :  { %17588 = vmatpush3.msra.mxu0 %v16450_v30  ;;  %v19841_v30 = vld [vmem:[#allocation2 + $0x10] sm:$0xff] }
0x1015   :  { %17589 = vmatprep.subr.mxu0 %v16449_v28 }
0x1016   :  { %17590 = vmatpush3.msra.mxu0 %v16449_v28  ;;  %v3882_v28 = vrot.slane %v19841_v30, %v19168_v32 }
0x1017   :  { %17615 = vmatprep.subr.mxu0 %v18975_v21 }
0x10c7   :  { %v17563_v1 = vpop.f32.mrf.mxu0 }
0x10c8   :  { %v3604_v3 = vadd.f32 %v17563_v1, %v3509_v62 }
0x10c9   :  { %v3598_v4 = vpop.f32.mrf.mxu0 }
0x10ca   :  { %v3608_v12 = vadd.f32 %v3604_v3, %v19523_v48  ;;  %v3599_v10 = vadd.f32 %v3598_v4, %v3509_v62 }
0x10cc   :  { %v3612_v14 = vsel %vm266_vm2, %v3608_v12, 0.0  ;;  %v3607_v16 = vadd.f32 %v3599_v10, %v19521_v47  ;;  %v16418_v47 = vld [vmem:[%s21967_s5 + $0x78] sm:$0xff] }
0x10cd   :  { %3613 = vadd.xlane.f32.xlu1 %v3612_v14  ;;  %17564 = vmatprep.subr.mxu1 %v16418_v47  ;;  %v3746_v14 = vrot.slane %v19531_v49, %v19474_v40 }
0x10ce   :  { %v3609_v20 = vsel %vm266_vm2, %v3607_v16, 0.0  ;;  %17565 = vmatpush3.msra.mxu1 %v16418_v47 }
0x10cf   :  { %3610 = vadd.xlane.f32.xlu0 %v3609_v20  ;;  %17566 = vmatprep.subr.mxu1 %v16416_v46 }
0x10d0   :  { %17567 = vmatpush3.msra.mxu1 %v16416_v46 }
0x10d1   :  { %17568 = vmatprep.subr.mxu1 %v16414_v50 }
0x10d2   :  { %17569 = vmatpush3.msra.mxu1 %v16414_v50 }
0x10d3   :  { %17570 = vmatprep.subr.mxu1 %v16412_v52 }
0x10d4   :  { %17571 = vmatpush3.msra.mxu1 %v16412_v52 }
0x10d5   :  { %17594 = vmatprep.subr.mxu1 %v19801_v8 }
0x1156   :  { %v3614_v26 = vpop.xlane.xlu1 %3613 }
0x1157   :  { %v3616_v34 = vmul.f32 0.03125, %v3614_v26 }
0x1158   :  { %v3611_v35 = vpop.xlane.xlu0 %3610 }
0x1159   :  { %v3615_v36 = vmul.f32 0.03125, %v3611_v35  ;;  %v3618_v43 = vsub.f32 %v3608_v12, %v3616_v34 }
0x115b   :  { %v3617_v13 = vsub.f32 %v3607_v16, %v3615_v36  ;;  %v3620_v33 = vmul.f32 %v3618_v43, %v3618_v43 }
0x115d   :  { %v3619_v15 = vmul.f32 %v3617_v13, %v3617_v13  ;;  %v3624_v48 = vsel %vm266_vm2, %v3620_v33, 0.0 }
0x115f   :  { %v3621_v22 = vsel %vm266_vm2, %v3619_v15, 0.0 }
0x1160   :  { %3622 = vadd.xlane.f32.xlu0 %v3621_v22 }
0x1164   :  { %3625 = vadd.xlane.f32.xlu0 %v3624_v48 }
0x11e9   :  { %v3623_v27 = vpop.xlane.xlu0 %3622 }
0x11ea   :  { %v3627_v57 = vmul.f32 0.03125, %v3623_v27  ;;  %v19813_v27 = vld [vmem:[%s21967_s5 + $0x90] sm:$0xff] }
0x11ec   :  { %v3629_v58 = vadd.f32 1e-05, %v3627_v57  ;;  %v19820_v57 = vld [vmem:[%s21967_s5 + $0x80] sm:$0xff] }
0x11ed   :  { %v3626_v59 = vpop.xlane.xlu0 %3625 }
0x11ee   :  { %18599 = vrsqrt.f32 %v3629_v58  ;;  %v3628_v61 = vmul.f32 0.03125, %v3626_v59 }
0x11f0   :  { %v3630_v63 = vadd.f32 1e-05, %v3628_v61 }
0x11f2   :  { %18601 = vrsqrt.f32 %v3630_v63 }
0x11fb   :  { %v18600_v0 = vpop.eup %18599 }
0x11fc   :  { %v3633_v54 = vmul.f32 %v18600_v0, %v3617_v13 }
0x11fe   :  { %v3639_v44 = vmul.f32 %v3638_v53, %v3633_v54 }
0x11ff   :  { %v18602_v6 = vpop.eup %18601 }
0x1200   :  { %v3634_v37 = vmul.f32 %v18602_v6, %v3618_v43  ;;  %v3645_v7 = vadd.f32 %v3644_v38, %v3639_v44 }
0x1202   :  { %v3640_v5 = vmul.f32 %v3638_v53, %v3634_v37  ;;  %17572 = vmatprep.mubr.msk.f32.mxu1 %vm266_vm2, %v3645_v7 }
0x1204   :  { %v3646_v45 = vadd.f32 %v3644_v38, %v3640_v5  ;;  %v3859_v38 = vrot.slane %v19531_v49, %v19512_v19  ;;  %v3865_v5 = vrot.slane %v19531_v49, %v19517_v24 }
0x1206   :  { %17573 = vmatmul.mubr.msk.f32.vlgmr.msra.gmra.mxu1 %vm266_vm2, %v3646_v45 }
0x1207   :  { %17595 = vmatpush3.msra.mxu1 %v19801_v8 }
0x1208   :  { %17596 = vmatprep.subr.mxu1 %v19806_v9 }
0x1209   :  { %17597 = vmatpush3.msra.mxu1 %v19806_v9 }
0x120a   :  { %17598 = vmatprep.subr.mxu1 %v19813_v27 }
0x120b   :  { %17599 = vmatpush3.msra.mxu1 %v19813_v27 }
0x120c   :  { %17600 = vmatprep.subr.mxu1 %v19820_v57 }
0x120d   :  { %17601 = vmatpush3.msra.mxu1 %v19820_v57 }
0x120e   :  { %17605 = vmatprep.subr.mxu1 %v18975_v21 }
0x12c6   :  { %v17574_v62 = vpop.f32.mrf.mxu1 }
0x12c7   :  { %v3729_v1 = vadd.f32 %v17574_v62, %v3650_v11 }
0x12c8   :  { %v3723_v3 = vpop.f32.mrf.mxu1 }
0x12c9   :  { %v3724_v4 = vadd.f32 %v3723_v3, %v3650_v11  ;;  %v3733_v10 = vmax.f32 %v3729_v1, 0.0 }
0x12cb   :  { %v3732_v12 = vmax.f32 %v3724_v4, 0.0 }
0x12cd   :  { %17591 = vmatprep.mubr.msk.f32.mxu0 %vm1940_vm7, %v3732_v12 }
0x12ce   :  { %17592 = vmatmul.mubr.msk.f32.vlgmr.msra.gmra.mxu0 %vm1940_vm7, %v3733_v10 }
0x12cf   :  { %17617 = vmatprep.mubr.msk.f32.mxu0 %vm18977_vm3, %v18975_v21 }
0x138e   :  { %v17593_v16 = vpop.f32.mrf.mxu0 }
0x138f   :  { %v3825_v20 = vadd.f32 %v17593_v16, %v3746_v14 }
0x1390   :  { %v3819_v26 = vpop.f32.mrf.mxu0 }
0x1391   :  { %v3829_v34 = vadd.f32 %v3825_v20, %v3646_v45  ;;  %v3820_v35 = vadd.f32 %v3819_v26, %v3746_v14 }
0x1393   :  { %v3833_v36 = vsel %vm266_vm2, %v3829_v34, 0.0  ;;  %v3828_v43 = vadd.f32 %v3820_v35, %v3645_v7 }
0x1394   :  { %3834 = vadd.xlane.f32.xlu0 %v3833_v36 }
0x1395   :  { %v3830_v13 = vsel %vm266_vm2, %v3828_v43, 0.0 }
0x1396   :  { %3831 = vadd.xlane.f32.xlu1 %v3830_v13 }
0x141d   :  { %v3835_v15 = vpop.xlane.xlu0 %3834 }
0x141e   :  { %v3837_v22 = vmul.f32 0.03125, %v3835_v15 }
0x141f   :  { %v3832_v33 = vpop.xlane.xlu1 %3831 }
0x1420   :  { %v3839_v48 = vsub.f32 %v3829_v34, %v3837_v22  ;;  %v3836_v47 = vmul.f32 0.03125, %v3832_v33 }
0x1422   :  { %v3838_v46 = vsub.f32 %v3828_v43, %v3836_v47  ;;  %v3841_v50 = vmul.f32 %v3839_v48, %v3839_v48 }
0x1424   :  { %v3845_v52 = vsel %vm266_vm2, %v3841_v50, 0.0  ;;  %v3840_v42 = vmul.f32 %v3838_v46, %v3838_v46 }
0x1425   :  { %3846 = vadd.xlane.f32.xlu0 %v3845_v52 }
0x1426   :  { %v3842_v39 = vsel %vm266_vm2, %v3840_v42, 0.0 }
0x1427   :  { %3843 = vadd.xlane.f32.xlu1 %v3842_v39 }
0x14ae   :  { %v3847_v58 = vpop.xlane.xlu0 %3846 }
0x14af   :  { %v3849_v59 = vmul.f32 0.03125, %v3847_v58 }
0x14b0   :  { %v3844_v61 = vpop.xlane.xlu1 %3843 }
0x14b1   :  { %v3851_v63 = vadd.f32 1e-05, %v3849_v59  ;;  %v3848_v53 = vmul.f32 0.03125, %v3844_v61 }
0x14b3   :  { %18603 = vrsqrt.f32 %v3851_v63  ;;  %v3850_v0 = vadd.f32 1e-05, %v3848_v53 }
0x14b5   :  { %18605 = vrsqrt.f32 %v3850_v0 }
0x14c0   :  { %v18604_v54 = vpop.eup %18603 }
0x14c1   :  { %v3855_v44 = vmul.f32 %v18604_v54, %v3839_v48 }
0x14c2   :  { %v18606_v6 = vpop.eup %18605 }
0x14c3   :  { %v3854_v37 = vmul.f32 %v18606_v6, %v3838_v46  ;;  %v3861_v7 = vmul.f32 %v3859_v38, %v3855_v44 }
0x14c5   :  { %v3860_v45 = vmul.f32 %v3859_v38, %v3854_v37  ;;  %v19833_v29 = vadd.f32 %v3865_v5, %v3861_v7 }
0x14c7   :  { %v19831_v55 = vadd.f32 %v3865_v5, %v3860_v45 }
0x14c9   :  { %17602 = vmatprep.mubr.msk.f32.mxu1 %vm266_vm2, %v19831_v55 }
0x14ca   :  { %17603 = vmatmul.mubr.msk.f32.vlgmr.msra.gmra.mxu1 %vm266_vm2, %v19833_v29 }
0x14cb   :  { %17607 = vmatprep.mubr.msk.f32.mxu1 %vm18977_vm3, %v18975_v21 }
0x158a   :  { %v17604_v49 = vpop.f32.mrf.mxu1 }
0x158b   :  { %v19845_v11 = vadd.f32 %v17604_v49, %v3882_v28 }
0x158c   :  { %v3955_v62 = vpop.f32.mrf.mxu1 }
0x158d   :  { %v19847_v1 = vadd.f32 %v3955_v62, %v3882_v28  ;;  %3968 = vrot.lane.b32.xlu0 %v19845_v11, %s18979_s27 }
0x158f   :  { %3966 = vrot.lane.b32.xlu1 %v19847_v1, %s18979_s27 }
0x1591   :  { %3974 = vrot.lane.b32.xlu0 %v19847_v1, %s18980_s30 }
0x1593   :  { %3970 = vrot.lane.b32.xlu1 %v19847_v1, %s18978_s26 }
0x1595   :  { %3978 = vrot.lane.b32.xlu0 %v19847_v1, %s18981_s14 }
0x1597   :  { %3972 = vrot.lane.b32.xlu1 %v19845_v11, %s18978_s26 }
0x159b   :  { %3976 = vrot.lane.b32.xlu1 %v19845_v11, %s18980_s30 }
0x159f   :  { %4054 = vrot.lane.b32.xlu1 %v19845_v11, %s18981_s14 }
0x15ff   :  { %v19865_v3 = vpop.permute.xlu0 %3968 }
0x1600   :  { %4206 = vrot.lane.b32.xlu1 %v19865_v3, %s18981_s14 }
0x1601   :  { %v19869_v4 = vpop.permute.xlu1 %3966 }
0x1602   :  { %4130 = vrot.lane.b32.xlu0 %v19869_v4, %s18981_s14 }
0x1603   :  { %v19873_v12 = vpop.permute.xlu0 %3974 }
0x1605   :  { %v19875_v10 = vpop.permute.xlu1 %3970 }
0x1606   :  { %4282 = vrot.lane.b32.xlu0 %v19875_v10, %s18981_s14 }
0x1607   :  { %v3979_v14 = vpop.permute.xlu0 %3978 }
0x1608   :  { %17606 = vmatpush3.xpose.msk.msra.mxu1 %vm364_vm4, %v3979_v14 }
0x1609   :  { %v19880_v16 = vpop.permute.xlu1 %3972  ;;  %17610 = vmatprep.subr.mxu1 %v18975_v21 }
0x160a   :  { %4434 = vrot.lane.b32.xlu0 %v19873_v12, %s18981_s14  ;;  %4358 = vrot.lane.b32.xlu1 %v19880_v16, %s18981_s14 }
0x160b   :  { %17608 = vmatmul.mubr.msk.f32.vlgmr.msra.gmra.mxu1 %vm364_vm4, %v19847_v1 }
0x160c   :  { %17612 = vmatprep.mubr.msk.f32.mxu1 %vm18977_vm3, %v18975_v21 }
0x160d   :  { %v19891_v20 = vpop.permute.xlu1 %3976 }
0x160e   :  { %4510 = vrot.lane.b32.xlu1 %v19891_v20, %s18981_s14 }
0x1611   :  { %v4055_v26 = vpop.permute.xlu1 %4054 }
0x1612   :  { %17611 = vmatpush3.xpose.msk.msra.mxu1 %vm364_vm4, %v4055_v26 }
0x1613   :  { %17620 = vmatprep.subr.mxu1 %v18975_v21 }
0x1615   :  { %17613 = vmatmul.mubr.msk.f32.vlgmr.msra.gmra.mxu1 %vm364_vm4, %v19845_v11 }
0x1616   :  { %17622 = vmatprep.mubr.msk.f32.mxu1 %vm18977_vm3, %v18975_v21 }
0x1672   :  { %v4207_v34 = vpop.permute.xlu1 %4206 }
0x1673   :  { %17621 = vmatpush3.xpose.msk.msra.mxu1 %vm364_vm4, %v4207_v34 }
0x1674   :  { %v4131_v35 = vpop.permute.xlu0 %4130  ;;  %17630 = vmatprep.subr.mxu1 %v18975_v21 }
0x1675   :  { %17616 = vmatpush3.xpose.msk.msra.mxu0 %vm364_vm4, %v4131_v35 }
0x1676   :  { %17623 = vmatmul.mubr.msk.f32.vlgmr.msra.gmra.mxu1 %vm364_vm4, %v19865_v3  ;;  %17625 = vmatprep.subr.mxu0 %v18975_v21 }
0x1677   :  { %17632 = vmatprep.mubr.msk.f32.mxu1 %vm18977_vm3, %v18975_v21 }
0x1678   :  { %17618 = vmatmul.mubr.msk.f32.vlgmr.msra.gmra.mxu0 %vm364_vm4, %v19869_v4  ;;  %v4283_v36 = vpop.permute.xlu0 %4282 }
0x1679   :  { %17626 = vmatpush3.xpose.msk.msra.mxu0 %vm364_vm4, %v4283_v36  ;;  %17627 = vmatprep.mubr.msk.f32.mxu0 %vm18977_vm3, %v18975_v21 }
0x167a   :  { %17635 = vmatprep.subr.mxu0 %v18975_v21 }
0x167c   :  { %17628 = vmatmul.mubr.msk.f32.vlgmr.msra.gmra.mxu0 %vm364_vm4, %v19875_v10  ;;  %v4435_v43 = vpop.permute.xlu0 %4434  ;;  %v4359_v13 = vpop.permute.xlu1 %4358 }
0x167d   :  { %17631 = vmatpush3.xpose.msk.msra.mxu1 %vm364_vm4, %v4359_v13  ;;  %17636 = vmatpush3.xpose.msk.msra.mxu0 %vm364_vm4, %v4435_v43 }
0x167e   :  { %17637 = vmatprep.mubr.msk.f32.mxu0 %vm18977_vm3, %v18975_v21  ;;  %17640 = vmatprep.subr.mxu1 %v18975_v21 }
0x167f   :  { %17645 = vmatprep.subr.mxu0 %v18975_v21 }
0x1680   :  { %17633 = vmatmul.mubr.msk.f32.vlgmr.msra.gmra.mxu1 %vm364_vm4, %v19880_v16  ;;  %17638 = vmatmul.mubr.msk.f32.vlgmr.msra.gmra.mxu0 %vm364_vm4, %v19873_v12  ;;  %v4511_v15 = vpop.permute.xlu1 %4510 }
0x1681   :  { %17641 = vmatpush3.xpose.msk.msra.mxu1 %vm364_vm4, %v4511_v15  ;;  %17642 = vmatprep.mubr.msk.f32.mxu1 %vm18977_vm3, %v18975_v21 }
0x1682   :  { %17650 = vmatprep.subr.mxu1 %v18975_v21  ;;  %17647 = vmatprep.mubr.msk.f32.mxu0 %vm18977_vm3, %v18975_v21 }
0x1684   :  { %17643 = vmatmul.mubr.msk.f32.vlgmr.msra.gmra.mxu1 %vm364_vm4, %v19891_v20 }
0x1685   :  { %17652 = vmatprep.mubr.msk.f32.mxu1 %vm18977_vm3, %v18975_v21 }
0x16cb   :  { %v4050_v22 = vpop.f32.mrf.mxu1 }
0x16cc   :  { %v4051_v33 = vadd.f32 %v4050_v22, %v19278_v60 }
0x16cd   :  { %v17609_v48 = vpop.f32.mrf.mxu1 }
0x16ce   :  { %v4586_v47 = vsel %vm364_vm4, %v4051_v33, -inf }
0x16cf   :  { %4587 = vmax.xlane.f32.xlu0 %v4586_v47 }
0x16d5   :  { %v4126_v46 = vpop.f32.mrf.mxu1 }
0x16d6   :  { %v4127_v50 = vadd.f32 %v4126_v46, %v19284_v2 }
0x16d7   :  { %v17614_v52 = vpop.f32.mrf.mxu1 }
0x16d8   :  { %v4589_v42 = vsel %vm364_vm4, %v4127_v50, -inf }
0x16d9   :  { %4590 = vmax.xlane.f32.xlu1 %v4589_v42 }
0x1736   :  { %v4278_v39 = vpop.f32.mrf.mxu1 }
0x1737   :  { %v4279_v53 = vadd.f32 %v4278_v39, %v19284_v2 }
0x1738   :  { %v4202_v58 = vpop.f32.mrf.mxu0  ;;  %v17624_v59 = vpop.f32.mrf.mxu1 }
0x1739   :  { %v4203_v61 = vadd.f32 %v4202_v58, %v19278_v60  ;;  %v4595_v37 = vsel %vm364_vm4, %v4279_v53, -inf }
0x173a   :  { %v17619_v63 = vpop.f32.mrf.mxu0 }
0x173b   :  { %v4592_v0 = vsel %vm364_vm4, %v4203_v61, -inf }
0x173c   :  { %4593 = vmax.xlane.f32.xlu0 %v4592_v0  ;;  %v4354_v54 = vpop.f32.mrf.mxu0 }
0x173d   :  { %v4355_v38 = vadd.f32 %v4354_v54, %v19278_v60 }
0x173e   :  { %v17629_v44 = vpop.f32.mrf.mxu0 }
0x173f   :  { %v4598_v6 = vsel %vm364_vm4, %v4355_v38, -inf }
0x1740   :  { %v4506_v7 = vpop.f32.mrf.mxu0  ;;  %4599 = vmax.xlane.f32.xlu1 %v4598_v6  ;;  %4596 = vmax.xlane.f32.xlu0 %v4595_v37  ;;  %v4430_v5 = vpop.f32.mrf.mxu1 }
0x1741   :  { %v4507_v45 = vadd.f32 %v4506_v7, %v19278_v60  ;;  %v4431_v28 = vadd.f32 %v4430_v5, %v19284_v2 }
0x1742   :  { %v17634_v49 = vpop.f32.mrf.mxu1  ;;  %v17639_v62 = vpop.f32.mrf.mxu0 }
0x1743   :  { %v4604_v14 = vsel %vm364_vm4, %v4507_v45, -inf  ;;  %v4601_v26 = vsel %vm364_vm4, %v4431_v28, -inf }
0x1744   :  { %4605 = vmax.xlane.f32.xlu1 %v4604_v14  ;;  %4602 = vmax.xlane.f32.xlu0 %v4601_v26  ;;  %v4582_v34 = vpop.f32.mrf.mxu1 }
0x1745   :  { %v4583_v35 = vadd.f32 %v4582_v34, %v19284_v2 }
0x1746   :  { %v17644_v36 = vpop.f32.mrf.mxu1 }
0x1747   :  { %v4607_v43 = vsel %vm364_vm4, %v4583_v35, -inf }
0x1748   :  { %4608 = vmax.xlane.f32.xlu0 %v4607_v43 }
0x1755   :  { %4674 = vrot.lane.b32.xlu1 %v19847_v1, %s18983_s2 }
0x1758   :  { %v4588_v22 = vpop.xlane.xlu0 %4587 }
0x1759   :  { %4826 = vrot.lane.b32.xlu1 %v19869_v4, %s18983_s2  ;;  %v4610_v48 = vsub.f32 %v4051_v33, %v4588_v22 }
0x175b   :  { %v4618_v47 = vmul.f32 1.442695, %v4610_v48 }
0x175d   :  { %4902 = vrot.lane.b32.xlu1 %v19865_v3, %s18983_s2 }
0x175e   :  { %4750 = vrot.lane.b32.xlu0 %v19845_v11, %s18983_s2 }
0x1761   :  { %5054 = vrot.lane.b32.xlu1 %v19880_v16, %s18983_s2 }
0x1762   :  { %4978 = vrot.lane.b32.xlu0 %v19875_v10, %s18983_s2  ;;  %v4591_v13 = vpop.xlane.xlu1 %4590 }
0x1763   :  { %v4611_v15 = vsub.f32 %v4127_v50, %v4591_v13 }
0x1765   :  { %v4620_v1 = vmul.f32 1.442695, %v4611_v15 }
0x1767   :  { %18607 = vpow2.f32 %v4620_v1 }
0x1768   :  { %18609 = vpow2.f32 %v4618_v47 }
0x1774   :  { %v19965_v4 = vpop.eup %18607 }
0x1775   :  { %v4637_v3 = vsel %vm364_vm4, %v19965_v4, 0.0  ;;  %v19969_v11 = vpop.eup %18609 }
0x1776   :  { %v4634_v16 = vsel %vm364_vm4, %v19969_v11, 0.0 }
0x1781   :  { %4638 = vadd.xlane.f32.xlu0 %v4637_v3 }
0x1785   :  { %4635 = vadd.xlane.f32.xlu1 %v4634_v16 }
0x17c5   :  { %v4594_v10 = vpop.xlane.xlu0 %4593 }
0x17c6   :  { %v4612_v46 = vsub.f32 %v4203_v61, %v4594_v10 }
0x17c8   :  { %v4622_v50 = vmul.f32 1.442695, %v4612_v46 }
0x17c9   :  { %v4597_v33 = vpop.xlane.xlu0 %4596  ;;  %v4600_v52 = vpop.xlane.xlu1 %4599 }
0x17ca   :  { %18611 = vpow2.f32 %v4622_v50  ;;  %v4613_v42 = vsub.f32 %v4279_v53, %v4597_v33  ;;  %v4614_v39 = vsub.f32 %v4355_v38, %v4600_v52 }
0x17cc   :  { %v4624_v58 = vmul.f32 1.442695, %v4613_v42  ;;  %v4626_v59 = vmul.f32 1.442695, %v4614_v39 }
0x17cd   :  { %v4603_v63 = vpop.xlane.xlu0 %4602  ;;  %v4606_v0 = vpop.xlane.xlu1 %4605 }
0x17ce   :  { %18613 = vpow2.f32 %v4624_v58  ;;  %v4615_v54 = vsub.f32 %v4431_v28, %v4603_v63  ;;  %v4616_v44 = vsub.f32 %v4507_v45, %v4606_v0 }
0x17cf   :  { %18615 = vpow2.f32 %v4626_v59 }
0x17d0   :  { %v4628_v6 = vmul.f32 1.442695, %v4615_v54  ;;  %v4630_v37 = vmul.f32 1.442695, %v4616_v44 }
0x17d1   :  { %v4609_v7 = vpop.xlane.xlu0 %4608  ;;  %v4675_v5 = vpop.permute.xlu1 %4674 }
0x17d2   :  { %18617 = vpow2.f32 %v4628_v6  ;;  %v4617_v61 = vsub.f32 %v4583_v35, %v4609_v7  ;;  %17646 = vmatpush3.msra.mxu0 %v4675_v5 }
0x17d3   :  { %18619 = vpow2.f32 %v4630_v37  ;;  %17655 = vmatprep.subr.mxu0 %v18975_v21 }
0x17d4   :  { %v4632_v53 = vmul.f32 1.442695, %v4617_v61 }
0x17d5   :  { %v4751_v38 = vpop.permute.xlu0 %4750  ;;  %v4827_v22 = vpop.permute.xlu1 %4826 }
0x17d6   :  { %18621 = vpow2.f32 %v4632_v53  ;;  %17651 = vmatpush3.msra.mxu1 %v4751_v38 }
0x17d7   :  { %v18612_v49 = vpop.eup %18611  ;;  %17660 = vmatprep.subr.mxu1 %v18975_v21 }
0x17d8   :  { %v4640_v45 = vsel %vm364_vm4, %v18612_v49, 0.0 }
0x17d9   :  { %4641 = vadd.xlane.f32.xlu1 %v4640_v45  ;;  %v4903_v48 = vpop.permute.xlu1 %4902  ;;  %v4979_v1 = vpop.permute.xlu0 %4978 }
0x17db   :  { %v18614_v28 = vpop.eup %18613 }
0x17dc   :  { %v18616_v62 = vpop.eup %18615  ;;  %v4643_v14 = vsel %vm364_vm4, %v18614_v28, 0.0 }
0x17dd   :  { %4644 = vadd.xlane.f32.xlu0 %v4643_v14  ;;  %v4646_v26 = vsel %vm364_vm4, %v18616_v62, 0.0  ;;  %v5055_v47 = vpop.permute.xlu1 %5054 }
0x17de   :  { %4647 = vadd.xlane.f32.xlu1 %v4646_v26 }
0x17df   :  { %v19978_v34 = vpop.eup %18617 }
0x17e0   :  { %v19980_v35 = vpop.eup %18619  ;;  %v4649_v36 = vsel %vm364_vm4, %v19978_v34, 0.0 }
0x17e1   :  { %4650 = vadd.xlane.f32.xlu0 %v4649_v36  ;;  %v4652_v43 = vsel %vm364_vm4, %v19980_v35, 0.0 }
0x17e2   :  { %4653 = vadd.xlane.f32.xlu1 %v4652_v43 }
0x17e3   :  { %v19986_v13 = vpop.eup %18621 }
0x17e4   :  { %v4655_v15 = vsel %vm364_vm4, %v19986_v13, 0.0 }
0x17e5   :  { %4656 = vadd.xlane.f32.xlu0 %v4655_v15 }
0x17f3   :  { %5206 = vrot.lane.b32.xlu1 %v19891_v20, %s18983_s2 }
0x17f7   :  { %5324 = vrot.lane.b32.xlu1 %v19806_v9, %s18984_s17 }
0x17fb   :  { %5130 = vrot.lane.b32.xlu0 %v19873_v12, %s18983_s2  ;;  %5322 = vrot.lane.b32.xlu1 %v19813_v27, %s18984_s17 }
0x17ff   :  { %5326 = vrot.lane.b32.xlu0 %v19801_v8, %s18984_s17 }
0x180a   :  { %v4639_v3 = vpop.xlane.xlu0 %4638 }
0x180b   :  { %18623 = vrcp.f32 %v4639_v3 }
0x180e   :  { %v4636_v16 = vpop.xlane.xlu1 %4635 }
0x180f   :  { %18625 = vrcp.f32 %v4636_v16 }
0x1818   :  { %v18624_v20 = vpop.eup %18623 }
0x1819   :  { %v4667_v9 = vmul.f32 %v18624_v20, %v19965_v4 }
0x181b   :  { %17653 = vmatmul.mubr.msk.f32.vlgmr.msra.gmra.mxu1 %vm364_vm4, %v4667_v9 }
0x181c   :  { %v18626_v12 = vpop.eup %18625  ;;  %17661 = vmatpush3.msra.mxu1 %v4903_v48  ;;  %17662 = vmatprep.mubr.msk.f32.mxu1 %vm18977_vm3, %v18975_v21 }
0x181d   :  { %v4666_v27 = vmul.f32 %v18626_v12, %v19969_v11  ;;  %17670 = vmatprep.subr.mxu1 %v18975_v21 }
0x181f   :  { %17648 = vmatmul.mubr.msk.f32.vlgmr.msra.gmra.mxu0 %vm364_vm4, %v4666_v27 }
0x1820   :  { %17656 = vmatpush3.msra.mxu0 %v4827_v22  ;;  %17657 = vmatprep.mubr.msk.f32.mxu0 %vm18977_vm3, %v18975_v21 }
0x1821   :  { %17665 = vmatprep.subr.mxu0 %v18975_v21 }
0x1862   :  { %v4642_v8 = vpop.xlane.xlu1 %4641 }
0x1863   :  { %18627 = vrcp.f32 %v4642_v8 }
0x1866   :  { %v4645_v4 = vpop.xlane.xlu0 %4644 }
0x1867   :  { %18629 = vrcp.f32 %v4645_v4  ;;  %v4648_v10 = vpop.xlane.xlu1 %4647 }
0x1868   :  { %18631 = vrcp.f32 %v4648_v10 }
0x186a   :  { %v4651_v46 = vpop.xlane.xlu0 %4650 }
0x186b   :  { %18633 = vrcp.f32 %v4651_v46  ;;  %v4654_v50 = vpop.xlane.xlu1 %4653 }
0x186c   :  { %18635 = vrcp.f32 %v4654_v50 }
0x186e   :  { %v4657_v11 = vpop.xlane.xlu0 %4656 }
0x186f   :  { %18637 = vrcp.f32 %v4657_v11  ;;  %v5207_v37 = vpop.permute.xlu1 %5206 }
0x1870   :  { %v18628_v33 = vpop.eup %18627 }
0x1871   :  { %v4668_v52 = vmul.f32 %v18628_v33, %v18612_v49  ;;  %v5315_v33 = vrot.slane %v19841_v30, %v19405_v41 }
0x1872   :  { %v5131_v0 = vpop.permute.xlu0 %5130 }
0x1873   :  { %17658 = vmatmul.mubr.msk.f32.vlgmr.msra.gmra.mxu0 %vm364_vm4, %v4668_v52  ;;  %v5325_v61 = vpop.permute.xlu1 %5324 }
0x1874   :  { %v18630_v42 = vpop.eup %18629  ;;  %17666 = vmatpush3.msra.mxu0 %v4979_v1  ;;  %17667 = vmatprep.mubr.msk.f32.mxu0 %vm18977_vm3, %v18975_v21 }
0x1875   :  { %v18632_v39 = vpop.eup %18631  ;;  %17675 = vmatprep.subr.mxu0 %v18975_v21  ;;  %v4669_v58 = vmul.f32 %v18630_v42, %v18614_v28 }
0x1876   :  { %v4670_v59 = vmul.f32 %v18632_v39, %v18616_v62  ;;  %v5327_v53 = vpop.permute.xlu0 %5326 }
0x1877   :  { %17663 = vmatmul.mubr.msk.f32.vlgmr.msra.gmra.mxu1 %vm364_vm4, %v4669_v58  ;;  %v5323_v38 = vpop.permute.xlu1 %5322 }
0x1878   :  { %v18634_v63 = vpop.eup %18633  ;;  %17668 = vmatmul.mubr.msk.f32.vlgmr.msra.gmra.mxu0 %vm364_vm4, %v4670_v59  ;;  %17671 = vmatpush3.msra.mxu1 %v5055_v47 }
0x1879   :  { %v18636_v54 = vpop.eup %18635  ;;  %17676 = vmatpush3.msra.mxu0 %v5131_v0  ;;  %17672 = vmatprep.mubr.msk.f32.mxu1 %vm18977_vm3, %v18975_v21  ;;  %v4671_v44 = vmul.f32 %v18634_v63, %v19978_v34 }
0x187a   :  { %17677 = vmatprep.mubr.msk.f32.mxu0 %vm18977_vm3, %v18975_v21  ;;  %17680 = vmatprep.subr.mxu1 %v18975_v21  ;;  %v4672_v6 = vmul.f32 %v18636_v54, %v19980_v35 }
0x187b   :  { %17673 = vmatmul.mubr.msk.f32.vlgmr.msra.gmra.mxu1 %vm364_vm4, %v4671_v44  ;;  %17685 = vmatprep.subr.mxu0 %v5327_v53  ;;  %v5712_v44 = vld [vmem:[%s21963_s1] sm:$0xff] }
0x187c   :  { %v18638_v7 = vpop.eup %18637  ;;  %17678 = vmatmul.mubr.msk.f32.vlgmr.msra.gmra.mxu0 %vm364_vm4, %v4672_v6  ;;  %17681 = vmatpush3.msra.mxu1 %v5207_v37 }
0x187d   :  { %17682 = vmatprep.mubr.msk.f32.mxu1 %vm18977_vm3, %v18975_v21  ;;  %v4673_v5 = vmul.f32 %v18638_v7, %v19986_v13  ;;  %17686 = vmatpush3.msra.mxu0 %v5327_v53 }
0x187e   :  { %17687 = vmatprep.subr.mxu0 %v5325_v61 }
0x187f   :  { %17683 = vmatmul.mubr.msk.f32.vlgmr.msra.gmra.mxu1 %vm364_vm4, %v4673_v5  ;;  %17688 = vmatpush3.msra.mxu0 %v5325_v61 }
0x1880   :  { %17689 = vmatprep.subr.mxu0 %v5323_v38 }
0x1881   :  { %17690 = vmatpush3.msra.mxu0 %v5323_v38 }
0x18db   :  { %v4822_v49 = vpop.f32.mrf.mxu1 }
0x18dd   :  { %v17654_v45 = vpop.f32.mrf.mxu1 }
0x18de   :  { %v16466_v45 = vld [vmem:[%s21967_s5 + $0xb8] sm:$0xff] }
0x18df   :  { %v4746_v28 = vpop.f32.mrf.mxu0  ;;  %17696 = vmatprep.subr.mxu1 %v16466_v45 }
0x18e0   :  { %17697 = vmatpush3.msra.mxu1 %v16466_v45 }
0x18e1   :  { %v17649_v62 = vpop.f32.mrf.mxu0 }
0x18e2   :  { %v5713_v62 = vld [vmem:[%s21963_s1 + $0x8] sm:$0xff] }
0x1933   :  { %v4898_v14 = vpop.f32.mrf.mxu0 }
0x1935   :  { %v17659_v26 = vpop.f32.mrf.mxu0 }
0x1936   :  { %v16460_v26 = vld [vmem:[%s21967_s5 + $0x88] sm:$0xff] }
0x1937   :  { %v4974_v34 = vpop.f32.mrf.mxu1 }
0x1938   :  { %v5050_v35 = vpop.f32.mrf.mxu0  ;;  %5286 = vrot.lane.b32.xlu0 %v4974_v34, %s18972_s29  ;;  %v18883_v34 = vld [vmem:[%s21966_s4 + $0x78] sm:$0xff] }
0x1939   :  { %5292 = vrot.lane.b32.xlu1 %v5050_v35, %s18985_s0  ;;  %v17664_v36 = vpop.f32.mrf.mxu1  ;;  %v16504_v35 = vld [vmem:[%s21968_s6 + $0xb8] sm:$0xff] }
0x193a   :  { %v17669_v43 = vpop.f32.mrf.mxu0  ;;  %v16503_v36 = vld [vmem:[%s21968_s6 + $0xb0] sm:$0xff] }
0x193b   :  { %v5126_v13 = vpop.f32.mrf.mxu1  ;;  %v16502_v43 = vld [vmem:[%s21968_s6 + $0xa8] sm:$0xff] }
0x193c   :  { %v5202_v15 = vpop.f32.mrf.mxu0  ;;  %5284 = vrot.lane.b32.xlu0 %v4898_v14, %s18972_s29  ;;  %v16462_v14 = vld [vmem:[%s21967_s5 + $0x98] sm:$0xff] }
0x193d   :  { %5300 = vrot.lane.b32.xlu1 %v5202_v15, %s18986_s18  ;;  %v17674_v22 = vpop.f32.mrf.mxu1 }
0x193e   :  { %v17679_v48 = vpop.f32.mrf.mxu0 }
0x193f   :  { %v5278_v1 = vpop.f32.mrf.mxu1 }
0x1940   :  { %5294 = vrot.lane.b32.xlu0 %v5126_v13, %s18985_s0  ;;  %v16501_v13 = vld [vmem:[%s21968_s6 + $0xa0] sm:$0xff] }
0x1941   :  { %5302 = vrot.lane.b32.xlu1 %v5278_v1, %s18986_s18  ;;  %v17684_v47 = vpop.f32.mrf.mxu1 }
0x1944   :  { %5320 = vrot.lane.b32.xlu0 %v19820_v57, %s18984_s17 }
0x19aa   :  { %v5287_v3 = vpop.permute.xlu0 %5286 }
0x19ab   :  { %v5293_v16 = vpop.permute.xlu1 %5292  ;;  %v5307_v10 = vsel %vm364_vm4, %v4822_v49, %v5287_v3 }
0x19ae   :  { %v5285_v20 = vpop.permute.xlu0 %5284 }
0x19af   :  { %v5306_v9 = vsel %vm364_vm4, %v4746_v28, %v5285_v20  ;;  %v5301_v12 = vpop.permute.xlu1 %5300  ;;  %v16464_v28 = vld [vmem:[%s21967_s5 + $0xa8] sm:$0xff] }
0x19b0   :  { %v5308_v27 = vsel %vm1693_vm5, %v5306_v9, %v5293_v16  ;;  %17698 = vmatprep.subr.mxu1 %v16464_v28  ;;  %v5444_v16 = vrot.slane %v19841_v30, %v19440_v17 }
0x19b1   :  { %v5310_v8 = vsel %vm1696_vm6, %v5308_v27, %v5301_v12  ;;  %17699 = vmatpush3.msra.mxu1 %v16464_v28  ;;  %v5450_v12 = vrot.slane %v19841_v30, %v19443_v18 }
0x19b2   :  { %v5295_v4 = vpop.permute.xlu0 %5294  ;;  %17693 = vmatprep.mubr.msk.f32.mxu0 %vm266_vm2, %v5310_v8  ;;  %17700 = vmatprep.subr.mxu1 %v16462_v14 }
0x19b3   :  { %v5309_v46 = vsel %vm1693_vm5, %v5307_v10, %v5295_v4  ;;  %v5303_v50 = vpop.permute.xlu1 %5302  ;;  %17701 = vmatpush3.msra.mxu1 %v16462_v14 }
0x19b4   :  { %v5311_v57 = vsel %vm1696_vm6, %v5309_v46, %v5303_v50  ;;  %17702 = vmatprep.subr.mxu1 %v16460_v26 }
0x19b5   :  { %17703 = vmatpush3.msra.mxu1 %v16460_v26 }
0x19b6   :  { %v5321_v11 = vpop.permute.xlu0 %5320  ;;  %17726 = vmatprep.subr.mxu1 %v18883_v34 }
0x19b7   :  { %17691 = vmatprep.subr.mxu0 %v5321_v11 }
0x19b8   :  { %17692 = vmatpush3.msra.mxu0 %v5321_v11 }
0x19b9   :  { %17694 = vmatmul.mubr.msk.f32.vlgmr.msra.gmra.mxu0 %vm266_vm2, %v5311_v57  ;;  %17707 = vmatprep.subr.mxu0 %v16504_v35  ;;  %v18884_v57 = vld [vmem:[%s21966_s4 + $0x70] sm:$0xff] }
0x19ba   :  { %17708 = vmatpush3.msra.mxu0 %v16504_v35  ;;  %v20174_v35 = vld [vmem:[%s21970_s8 + $0x30] sm:$0xff] }
0x19bb   :  { %17709 = vmatprep.subr.mxu0 %v16503_v36 }
0x19bc   :  { %17710 = vmatpush3.msra.mxu0 %v16503_v36  ;;  %v20188_v36 = vld [vmem:[%s21970_s8] sm:$0xff] }
0x19bd   :  { %17711 = vmatprep.subr.mxu0 %v16502_v43 }
0x19be   :  { %17712 = vmatpush3.msra.mxu0 %v16502_v43 }
0x19bf   :  { %17713 = vmatprep.subr.mxu0 %v16501_v13 }
0x19c0   :  { %17714 = vmatpush3.msra.mxu0 %v16501_v13 }
0x1a79   :  { %v17695_v52 = vpop.f32.mrf.mxu0 }
0x1a7a   :  { %v5410_v42 = vadd.f32 %v17695_v52, %v5315_v33  ;;  %v18886_v52 = vld [vmem:[%s21966_s4 + $0x60] sm:$0xff] }
0x1a7b   :  { %v5404_v39 = vpop.f32.mrf.mxu0 }
0x1a7c   :  { %v5414_v58 = vadd.f32 %v5410_v42, %v19833_v29  ;;  %v5405_v59 = vadd.f32 %v5404_v39, %v5315_v33  ;;  %v18885_v33 = vld [vmem:[%s21966_s4 + $0x68] sm:$0xff]  ;;  %v18887_v42 = vld [vmem:[%s21966_s4 + $0x58] sm:$0xff]  ;;  %v18888_v39 = vld [vmem:[%s21966_s4 + $0x50] sm:$0xff] }
0x1a7e   :  { %v5418_v63 = vsel %vm266_vm2, %v5414_v58, 0.0  ;;  %v5413_v0 = vadd.f32 %v5405_v59, %v19831_v55  ;;  %v18890_v59 = vld [vmem:[%s21966_s4 + $0x40] sm:$0xff] }
0x1a7f   :  { %5419 = vadd.xlane.f32.xlu1 %v5418_v63  ;;  %v18891_v63 = vld [vmem:[%s21966_s4 + $0x38] sm:$0xff] }
0x1a80   :  { %v5415_v54 = vsel %vm266_vm2, %v5413_v0, 0.0 }
0x1a81   :  { %5416 = vadd.xlane.f32.xlu0 %v5415_v54  ;;  %v18893_v54 = vld [vmem:[%s21966_s4 + $0x28] sm:$0xff] }
0x1a90   :  { %5715 = vperm.xlu1 %18526, %v5712_v44   ;;  %v18894_v44 = vld [vmem:[%s21966_s4 + $0x20] sm:$0xff] }
0x1b08   :  { %v5420_v6 = vpop.xlane.xlu1 %5419 }
0x1b09   :  { %v5422_v37 = vmul.f32 0.03125, %v5420_v6  ;;  %v18895_v6 = vld [vmem:[%s21966_s4 + $0x18] sm:$0xff] }
0x1b0a   :  { %v5417_v7 = vpop.xlane.xlu0 %5416 }
0x1b0b   :  { %v5421_v5 = vmul.f32 0.03125, %v5417_v7  ;;  %v5424_v61 = vsub.f32 %v5414_v58, %v5422_v37  ;;  %v18889_v58 = vld [vmem:[%s21966_s4 + $0x48] sm:$0xff]  ;;  %v18896_v37 = vld [vmem:[%s21966_s4 + $0x10] sm:$0xff] }
0x1b0c   :  { %v5716_v46 = vpop.permute.xlu1 %5715 }
0x1b0d   :  { %v5423_v29 = vsub.f32 %v5413_v0, %v5421_v5  ;;  %v5426_v49 = vmul.f32 %v5424_v61, %v5424_v61  ;;  %vm5720_vm8 = vcmp.eq.s32.totalorder %v19136_v23, %v5716_v46  ;;  %v18892_v0 = vld [vmem:[%s21966_s4 + $0x30] sm:$0xff]  ;;  %v18897_v5 = vld [vmem:[%s21966_s4 + $0x8] sm:$0xff] }
0x1b0f   :  { %v5425_v53 = vmul.f32 %v5423_v29, %v5423_v29  ;;  %v5430_v55 = vsel %vm266_vm2, %v5426_v49, 0.0  ;;  %v20165_v49 = vld [vmem:[%s21970_s8 + $0x48] sm:$0xff] }
0x1b11   :  { %v5427_v38 = vsel %vm266_vm2, %v5425_v53, 0.0  ;;  %v16499_v53 = vld [vmem:[%s21968_s6 + $0x90] sm:$0xff] }
0x1b12   :  { %5428 = vadd.xlane.f32.xlu0 %v5427_v38  ;;  %v16497_v38 = vld [vmem:[%s21968_s6 + $0x80] sm:$0xff] }
0x1b16   :  { %5431 = vadd.xlane.f32.xlu0 %v5430_v55  ;;  %v5456_v55 = vrot.slane %v19841_v30, %v19465_v51  ;;  %v20181_v30 = vld [vmem:[%s21970_s8 + $0x18] sm:$0xff] }
0x1b2c   :  { %5718 = vperm.xlu0 %18525, %v5713_v62  }
0x1b9b   :  { %v5429_v15 = vpop.xlane.xlu0 %5428 }
0x1b9c   :  { %v5433_v22 = vmul.f32 0.03125, %v5429_v15 }
0x1b9e   :  { %v5435_v48 = vadd.f32 1e-05, %v5433_v22 }
0x1b9f   :  { %v5432_v1 = vpop.xlane.xlu0 %5431 }
0x1ba0   :  { %18639 = vrsqrt.f32 %v5435_v48  ;;  %v5434_v47 = vmul.f32 0.03125, %v5432_v1  ;;  %v20212_v48 = vld [vmem:[%s21972_s10] sm:$0xff] }
0x1ba2   :  { %v5436_v3 = vadd.f32 1e-05, %v5434_v47  ;;  %v5818_v47 = vrot.slane %v20212_v48, %v19168_v32 }
0x1ba4   :  { %18641 = vrsqrt.f32 %v5436_v3 }
0x1ba7   :  { %v5719_v7 = vpop.permute.xlu0 %5718 }
0x1ba8   :  { %vm5721_vm9 = vcmp.eq.s32.totalorder %v19136_v23, %v5719_v7 }
0x1bad   :  { %v18640_v20 = vpop.eup %18639 }
0x1bae   :  { %v5439_v9 = vmul.f32 %v18640_v20, %v5423_v29  ;;  %v16500_v29 = vld [vmem:[%s21968_s6 + $0x98] sm:$0xff] }
0x1baf   :  { %17715 = vmatprep.subr.mxu0 %v16500_v29 }
0x1bb0   :  { %v5445_v27 = vmul.f32 %v5444_v16, %v5439_v9  ;;  %17716 = vmatpush3.msra.mxu0 %v16500_v29 }
0x1bb1   :  { %v18642_v8 = vpop.eup %18641  ;;  %17717 = vmatprep.subr.mxu0 %v16499_v53 }
0x1bb2   :  { %v5440_v4 = vmul.f32 %v18642_v8, %v5424_v61  ;;  %v20090_v10 = vadd.f32 %v5450_v12, %v5445_v27  ;;  %v18898_v61 = vld [vmem:[%s21966_s4] sm:$0xff]  ;;  %17718 = vmatpush3.msra.mxu0 %v16499_v53 }
0x1bb4   :  { %v5446_v50 = vmul.f32 %v5444_v16, %v5440_v4  ;;  %17704 = vmatprep.mubr.msk.f32.mxu1 %vm266_vm2, %v20090_v10 }
0x1bb6   :  { %v20094_v11 = vadd.f32 %v5450_v12, %v5446_v50 }
0x1bb8   :  { %17705 = vmatmul.mubr.msk.f32.vlgmr.msra.gmra.mxu1 %vm266_vm2, %v20094_v11 }
0x1bb9   :  { %17727 = vmatpush3.msra.mxu1 %v18883_v34  ;;  %17758 = vmatprep.mubr.msk.f32.mxu1 %vm5720_vm8, %v18976_v25 }
0x1bba   :  { %17728 = vmatprep.subr.mxu1 %v18884_v57 }
0x1bbb   :  { %17729 = vmatpush3.msra.mxu1 %v18884_v57 }
0x1bbc   :  { %17730 = vmatprep.subr.mxu1 %v18885_v33 }
0x1bbd   :  { %17731 = vmatpush3.msra.mxu1 %v18885_v33 }
0x1bbe   :  { %17732 = vmatprep.subr.mxu1 %v18886_v52 }
0x1bbf   :  { %17733 = vmatpush3.msra.mxu1 %v18886_v52 }
0x1bc0   :  { %17734 = vmatprep.subr.mxu1 %v18887_v42 }
0x1bc1   :  { %17735 = vmatpush3.msra.mxu1 %v18887_v42 }
0x1bc2   :  { %17736 = vmatprep.subr.mxu1 %v18888_v39 }
0x1bc3   :  { %17737 = vmatpush3.msra.mxu1 %v18888_v39 }
0x1bc4   :  { %17738 = vmatprep.subr.mxu1 %v18889_v58 }
0x1bc5   :  { %17739 = vmatpush3.msra.mxu1 %v18889_v58 }
0x1bc6   :  { %17740 = vmatprep.subr.mxu1 %v18890_v59 }
0x1bc7   :  { %17741 = vmatpush3.msra.mxu1 %v18890_v59 }
0x1bc8   :  { %17742 = vmatprep.subr.mxu1 %v18891_v63 }
0x1bc9   :  { %17743 = vmatpush3.msra.mxu1 %v18891_v63  ;;  %v16374_v63 = vld.sshfl [vmem:[%s21965_s3] sm:$0x11 pattern:$0x75316420] }
0x1bca   :  { %17744 = vmatprep.subr.mxu1 %v18892_v0 }
0x1bcb   :  { %17745 = vmatpush3.msra.mxu1 %v18892_v0  ;;  %v143_v0 = vrot.slane %v16374_v63, %v19271_v56 }
0x1bcc   :  { %17746 = vmatprep.subr.mxu1 %v18893_v54 }
0x1bcd   :  { %17747 = vmatpush3.msra.mxu1 %v18893_v54  ;;  %v136_v54 = vcombine.high %v16374_v63, %v16374_v63 }
0x1bce   :  { %17748 = vmatprep.subr.mxu1 %v18894_v44 }
0x1bcf   :  { %17749 = vmatpush3.msra.mxu1 %v18894_v44  ;;  %v154_v44 = vrot.slane %v143_v0, %v19168_v32 }
0x1bd0   :  { %17750 = vmatprep.subr.mxu1 %v18895_v6 }
0x1bd1   :  { %17751 = vmatpush3.msra.mxu1 %v18895_v6  ;;  %v94_v6 = vsel %vm93_vm10, -1e+09, %v18975_v21 }
0x1bd2   :  { %17752 = vmatprep.subr.mxu1 %v18896_v37  ;;  %v20317_v7 = vadd.f32 %v154_v44, %v94_v6 }
0x1bd3   :  { %17753 = vmatpush3.msra.mxu1 %v18896_v37  ;;  %v150_v37 = vrot.slane %v136_v54, %v19271_v56 }
0x1bd4   :  { %17754 = vmatprep.subr.mxu1 %v18897_v5 }
0x1bd5   :  { %17755 = vmatpush3.msra.mxu1 %v18897_v5 }
0x1bd6   :  { %17756 = vmatprep.subr.mxu1 %v18898_v61 }
0x1bd7   :  { %17757 = vmatpush3.msra.mxu1 %v18898_v61  ;;  %v158_v61 = vrot.slane %v150_v37, %v19168_v32 }
0x1bd8   :  { %17759 = vmatmul.mubr.msk.f32.vlgmr.msra.gmra.mxu1 %vm5721_vm9, %v18976_v25  ;;  %17787 = vmatprep.subr.mxu1 %v18975_v21  ;;  %v16498_v25 = vld [vmem:[%s21968_s6 + $0x88] sm:$0xff] }
0x1bd9   :  { %17789 = vmatprep.mubr.msk.f32.mxu1 %vm18977_vm3, %v18975_v21  ;;  %17719 = vmatprep.subr.mxu0 %v16498_v25 }
0x1bda   :  { %17720 = vmatpush3.msra.mxu0 %v16498_v25 }
0x1bdb   :  { %17721 = vmatprep.subr.mxu0 %v16497_v38 }
0x1bdc   :  { %17722 = vmatpush3.msra.mxu0 %v16497_v38  ;;  %v20322_v38 = vadd.f32 %v158_v61, %v94_v6 }
0x1bdd   :  { %17761 = vmatprep.subr.mxu0 %v20165_v49 }
0x1c78   :  { %v17706_v45 = vpop.f32.mrf.mxu1 }
0x1c79   :  { %v5535_v28 = vadd.f32 %v17706_v45, %v5456_v55 }
0x1c7a   :  { %v5529_v62 = vpop.f32.mrf.mxu1 }
0x1c7b   :  { %v5530_v14 = vadd.f32 %v5529_v62, %v5456_v55  ;;  %v5539_v34 = vmax.f32 %v5535_v28, 0.0 }
0x1c7d   :  { %v5538_v26 = vmax.f32 %v5530_v14, 0.0 }
0x1c7f   :  { %17723 = vmatprep.mubr.msk.f32.mxu0 %vm1940_vm7, %v5538_v26 }
0x1c80   :  { %17724 = vmatmul.mubr.msk.f32.vlgmr.msra.gmra.mxu0 %vm1940_vm7, %v5539_v34 }
0x1c81   :  { %17762 = vmatpush3.msra.mxu0 %v20165_v49 }
0x1c82   :  { %17763 = vmatprep.subr.mxu0 %v20174_v35 }
0x1c83   :  { %17764 = vmatpush3.msra.mxu0 %v20174_v35 }
0x1c84   :  { %17765 = vmatprep.subr.mxu0 %v20181_v30 }
0x1c85   :  { %17766 = vmatpush3.msra.mxu0 %v20181_v30 }
0x1c86   :  { %17767 = vmatprep.subr.mxu0 %v20188_v36 }
0x1c87   :  { %17768 = vmatpush3.msra.mxu0 %v20188_v36 }
0x1c88   :  { %17772 = vmatprep.subr.mxu0 %v18975_v21 }
0x1c98   :  { %v20195_v43 = vpop.f32.mrf.mxu1 }
0x1c9a   :  { %v20197_v13 = vpop.f32.mrf.mxu1 }
0x1c9b   :  { %17769 = vmatprep.mubr.msk.f32.mxu0 %vm266_vm2, %v20197_v13 }
0x1c9c   :  { %17770 = vmatmul.mubr.msk.f32.vlgmr.msra.gmra.mxu0 %vm266_vm2, %v20195_v43 }
0x1c9d   :  { %17774 = vmatprep.mubr.msk.f32.mxu0 %vm18977_vm3, %v18975_v21 }
0x1d40   :  { %v20205_v15 = vpop.f32.mrf.mxu0 }
0x1d42   :  { %v20207_v22 = vpop.f32.mrf.mxu0 }
0x1d5c   :  { %v17771_v1 = vpop.f32.mrf.mxu0 }
0x1d5d   :  { %v20222_v20 = vadd.f32 %v17771_v1, %v5818_v47 }
0x1d5e   :  { %v5891_v3 = vpop.f32.mrf.mxu0 }
0x1d5f   :  { %v20216_v16 = vadd.f32 %v5891_v3, %v5818_v47 }
0x1d61   :  { %5906 = vrot.lane.b32.xlu0 %v20216_v16, %s18978_s26  ;;  %5902 = vrot.lane.b32.xlu1 %v20216_v16, %s18979_s27 }
0x1d65   :  { %5910 = vrot.lane.b32.xlu0 %v20216_v16, %s18980_s30  ;;  %5904 = vrot.lane.b32.xlu1 %v20222_v20, %s18979_s27 }
0x1d69   :  { %5914 = vrot.lane.b32.xlu0 %v20216_v16, %s18981_s14  ;;  %5908 = vrot.lane.b32.xlu1 %v20222_v20, %s18978_s26 }
0x1d6d   :  { %5912 = vrot.lane.b32.xlu1 %v20222_v20, %s18980_s30 }
0x1d71   :  { %5990 = vrot.lane.b32.xlu1 %v20222_v20, %s18981_s14 }
0x1dd3   :  { %v20236_v9 = vpop.permute.xlu0 %5906  ;;  %v20238_v12 = vpop.permute.xlu1 %5902 }
0x1dd4   :  { %6066 = vrot.lane.b32.xlu0 %v20238_v12, %s18981_s14 }
0x1dd7   :  { %v20242_v27 = vpop.permute.xlu0 %5910  ;;  %v20244_v8 = vpop.permute.xlu1 %5904 }
0x1dd8   :  { %6218 = vrot.lane.b32.xlu0 %v20236_v9, %s18981_s14  ;;  %6142 = vrot.lane.b32.xlu1 %v20244_v8, %s18981_s14 }
0x1ddb   :  { %v5915_v4 = vpop.permute.xlu0 %5914  ;;  %v20250_v46 = vpop.permute.xlu1 %5908 }
0x1ddc   :  { %17773 = vmatpush3.xpose.msk.msra.mxu0 %vm364_vm4, %v5915_v4  ;;  %6370 = vrot.lane.b32.xlu0 %v20242_v27, %s18981_s14 }
0x1ddd   :  { %6294 = vrot.lane.b32.xlu1 %v20250_v46, %s18981_s14  ;;  %17777 = vmatprep.subr.mxu0 %v18975_v21 }
0x1ddf   :  { %17775 = vmatmul.mubr.msk.f32.vlgmr.msra.gmra.mxu0 %vm364_vm4, %v20216_v16  ;;  %v20260_v50 = vpop.permute.xlu1 %5912 }
0x1de0   :  { %17779 = vmatprep.mubr.msk.f32.mxu0 %vm18977_vm3, %v18975_v21 }
0x1de1   :  { %6446 = vrot.lane.b32.xlu1 %v20260_v50, %s18981_s14 }
0x1de3   :  { %v5991_v57 = vpop.permute.xlu1 %5990 }
0x1de4   :  { %17778 = vmatpush3.xpose.msk.msra.mxu0 %vm364_vm4, %v5991_v57 }
0x1de5   :  { %17782 = vmatprep.subr.mxu0 %v18975_v21 }
0x1de7   :  { %17780 = vmatmul.mubr.msk.f32.vlgmr.msra.gmra.mxu0 %vm364_vm4, %v20222_v20 }
0x1de8   :  { %17784 = vmatprep.mubr.msk.f32.mxu0 %vm18977_vm3, %v18975_v21 }
0x1e46   :  { %v6067_v33 = vpop.permute.xlu0 %6066 }
0x1e47   :  { %17783 = vmatpush3.xpose.msk.msra.mxu0 %vm364_vm4, %v6067_v33 }
0x1e48   :  { %17792 = vmatprep.subr.mxu0 %v18975_v21 }
0x1e4a   :  { %v6219_v52 = vpop.permute.xlu0 %6218  ;;  %17785 = vmatmul.mubr.msk.f32.vlgmr.msra.gmra.mxu0 %vm364_vm4, %v20238_v12  ;;  %v6143_v42 = vpop.permute.xlu1 %6142 }
0x1e4b   :  { %17788 = vmatpush3.xpose.msk.msra.mxu1 %vm364_vm4, %v6143_v42  ;;  %17793 = vmatpush3.xpose.msk.msra.mxu0 %vm364_vm4, %v6219_v52 }
0x1e4c   :  { %17794 = vmatprep.mubr.msk.f32.mxu0 %vm18977_vm3, %v18975_v21  ;;  %17797 = vmatprep.subr.mxu1 %v18975_v21 }
0x1e4d   :  { %17802 = vmatprep.subr.mxu0 %v18975_v21 }
0x1e4e   :  { %v6371_v39 = vpop.permute.xlu0 %6370  ;;  %17790 = vmatmul.mubr.msk.f32.vlgmr.msra.gmra.mxu1 %vm364_vm4, %v20244_v8  ;;  %17795 = vmatmul.mubr.msk.f32.vlgmr.msra.gmra.mxu0 %vm364_vm4, %v20236_v9 }
0x1e4f   :  { %v6295_v58 = vpop.permute.xlu1 %6294  ;;  %17803 = vmatpush3.xpose.msk.msra.mxu0 %vm364_vm4, %v6371_v39  ;;  %17799 = vmatprep.mubr.msk.f32.mxu1 %vm18977_vm3, %v18975_v21 }
0x1e50   :  { %17798 = vmatpush3.xpose.msk.msra.mxu1 %vm364_vm4, %v6295_v58  ;;  %17804 = vmatprep.mubr.msk.f32.mxu0 %vm18977_vm3, %v18975_v21 }
0x1e51   :  { %17807 = vmatprep.subr.mxu1 %v18975_v21  ;;  %17812 = vmatprep.subr.mxu0 %v18975_v21 }
0x1e52   :  { %17805 = vmatmul.mubr.msk.f32.vlgmr.msra.gmra.mxu0 %vm364_vm4, %v20242_v27 }
0x1e53   :  { %17800 = vmatmul.mubr.msk.f32.vlgmr.msra.gmra.mxu1 %vm364_vm4, %v20250_v46  ;;  %v6447_v59 = vpop.permute.xlu1 %6446  ;;  %17814 = vmatprep.mubr.msk.f32.mxu0 %vm18977_vm3, %v18975_v21 }
0x1e54   :  { %17808 = vmatpush3.xpose.msk.msra.mxu1 %vm364_vm4, %v6447_v59  ;;  %17809 = vmatprep.mubr.msk.f32.mxu1 %vm18977_vm3, %v18975_v21 }
0x1e55   :  { %17817 = vmatprep.subr.mxu1 %v18975_v21 }
0x1e57   :  { %17810 = vmatmul.mubr.msk.f32.vlgmr.msra.gmra.mxu1 %vm364_vm4, %v20260_v50 }
0x1e58   :  { %17819 = vmatprep.mubr.msk.f32.mxu1 %vm18977_vm3, %v18975_v21 }
0x1e9f   :  { %v5986_v5 = vpop.f32.mrf.mxu0 }
0x1ea0   :  { %v5987_v29 = vadd.f32 %v5986_v5, %v20317_v7 }
0x1ea1   :  { %v17776_v53 = vpop.f32.mrf.mxu0 }
0x1ea2   :  { %v6522_v25 = vsel %vm364_vm4, %v5987_v29, -inf }
0x1ea3   :  { %6523 = vmax.xlane.f32.xlu0 %v6522_v25 }
0x1ea7   :  { %v6062_v23 = vpop.f32.mrf.mxu0 }
0x1ea8   :  { %v6063_v31 = vadd.f32 %v6062_v23, %v20322_v38 }
0x1ea9   :  { %v17781_v55 = vpop.f32.mrf.mxu0 }
0x1eaa   :  { %v6525_v45 = vsel %vm364_vm4, %v6063_v31, -inf }
0x1eab   :  { %6526 = vmax.xlane.f32.xlu1 %v6525_v45 }
0x1f0a   :  { %v6138_v56 = vpop.f32.mrf.mxu0 }
0x1f0b   :  { %v6139_v28 = vadd.f32 %v6138_v56, %v20317_v7 }
0x1f0c   :  { %v17786_v62 = vpop.f32.mrf.mxu0 }
0x1f0d   :  { %v6528_v14 = vsel %vm364_vm4, %v6139_v28, -inf }
0x1f0e   :  { %6529 = vmax.xlane.f32.xlu0 %v6528_v14  ;;  %v6214_v26 = vpop.f32.mrf.mxu1  ;;  %v6290_v34 = vpop.f32.mrf.mxu0 }
0x1f0f   :  { %v6215_v1 = vadd.f32 %v6214_v26, %v20322_v38  ;;  %v6291_v47 = vadd.f32 %v6290_v34, %v20317_v7 }
0x1f10   :  { %v17791_v3 = vpop.f32.mrf.mxu1  ;;  %v17796_v4 = vpop.f32.mrf.mxu0 }
0x1f11   :  { %v6534_v57 = vsel %vm364_vm4, %v6291_v47, -inf  ;;  %v6531_v33 = vsel %vm364_vm4, %v6215_v1, -inf }
0x1f12   :  { %6535 = vmax.xlane.f32.xlu1 %v6534_v57  ;;  %v6442_v52 = vpop.f32.mrf.mxu0  ;;  %6532 = vmax.xlane.f32.xlu0 %v6531_v33 }
0x1f13   :  { %v6443_v42 = vadd.f32 %v6442_v52, %v20317_v7  ;;  %v6366_v39 = vpop.f32.mrf.mxu1 }
0x1f14   :  { %v6367_v58 = vadd.f32 %v6366_v39, %v20322_v38  ;;  %v17806_v59 = vpop.f32.mrf.mxu0 }
0x1f15   :  { %v17801_v63 = vpop.f32.mrf.mxu1  ;;  %v6540_v0 = vsel %vm364_vm4, %v6443_v42, -inf }
0x1f16   :  { %6541 = vmax.xlane.f32.xlu1 %v6540_v0  ;;  %v6537_v54 = vsel %vm364_vm4, %v6367_v58, -inf }
0x1f17   :  { %6538 = vmax.xlane.f32.xlu0 %v6537_v54  ;;  %v6518_v44 = vpop.f32.mrf.mxu1 }
0x1f18   :  { %v6519_v6 = vadd.f32 %v6518_v44, %v20322_v38 }
0x1f19   :  { %v17811_v37 = vpop.f32.mrf.mxu1 }
0x1f1a   :  { %v6543_v5 = vsel %vm364_vm4, %v6519_v6, -inf }
0x1f1b   :  { %6544 = vmax.xlane.f32.xlu0 %v6543_v5 }
0x1f27   :  { %6610 = vrot.lane.b32.xlu1 %v20216_v16, %s18983_s2 }
0x1f2b   :  { %6762 = vrot.lane.b32.xlu1 %v20238_v12, %s18983_s2 }
0x1f2c   :  { %v6524_v53 = vpop.xlane.xlu0 %6523 }
0x1f2d   :  { %v6546_v23 = vsub.f32 %v5987_v29, %v6524_v53 }
0x1f2f   :  { %6838 = vrot.lane.b32.xlu1 %v20244_v8, %s18983_s2  ;;  %v6554_v55 = vmul.f32 1.442695, %v6546_v23 }
0x1f31   :  { %6686 = vrot.lane.b32.xlu0 %v20222_v20, %s18983_s2 }
0x1f33   :  { %6990 = vrot.lane.b32.xlu1 %v20250_v46, %s18983_s2 }
0x1f34   :  { %v6527_v61 = vpop.xlane.xlu1 %6526 }
0x1f35   :  { %6914 = vrot.lane.b32.xlu0 %v20236_v9, %s18983_s2  ;;  %v6547_v25 = vsub.f32 %v6063_v31, %v6527_v61 }
0x1f37   :  { %v6556_v16 = vmul.f32 1.442695, %v6547_v25 }
0x1f39   :  { %18643 = vpow2.f32 %v6556_v16 }
0x1f3a   :  { %18645 = vpow2.f32 %v6554_v55 }
0x1f46   :  { %v20350_v12 = vpop.eup %18643 }
0x1f47   :  { %v20352_v8 = vpop.eup %18645  ;;  %v6573_v20 = vsel %vm364_vm4, %v20350_v12, 0.0 }
0x1f48   :  { %v6570_v46 = vsel %vm364_vm4, %v20352_v8, 0.0 }
0x1f54   :  { %6574 = vadd.xlane.f32.xlu0 %v6573_v20 }
0x1f57   :  { %6571 = vadd.xlane.f32.xlu1 %v6570_v46 }
0x1f97   :  { %v6530_v9 = vpop.xlane.xlu0 %6529 }
0x1f98   :  { %v6548_v45 = vsub.f32 %v6139_v28, %v6530_v9 }
0x1f9a   :  { %v6558_v31 = vmul.f32 1.442695, %v6548_v45 }
0x1f9b   :  { %v6533_v29 = vpop.xlane.xlu0 %6532  ;;  %v6536_v56 = vpop.xlane.xlu1 %6535 }
0x1f9c   :  { %18647 = vpow2.f32 %v6558_v31  ;;  %v6549_v62 = vsub.f32 %v6215_v1, %v6533_v29  ;;  %v6550_v14 = vsub.f32 %v6291_v47, %v6536_v56 }
0x1f9e   :  { %v6560_v26 = vmul.f32 1.442695, %v6549_v62  ;;  %v6562_v34 = vmul.f32 1.442695, %v6550_v14 }
0x1f9f   :  { %v6542_v3 = vpop.xlane.xlu1 %6541 }
0x1fa0   :  { %18649 = vpow2.f32 %v6560_v26  ;;  %v6539_v4 = vpop.xlane.xlu0 %6538  ;;  %v6552_v57 = vsub.f32 %v6443_v42, %v6542_v3 }
0x1fa1   :  { %18651 = vpow2.f32 %v6562_v34  ;;  %v6551_v33 = vsub.f32 %v6367_v58, %v6539_v4 }
0x1fa2   :  { %v6566_v52 = vmul.f32 1.442695, %v6552_v57 }
0x1fa3   :  { %v6564_v39 = vmul.f32 1.442695, %v6551_v33  ;;  %v6611_v59 = vpop.permute.xlu1 %6610 }
0x1fa4   :  { %18653 = vpow2.f32 %v6566_v52  ;;  %v6545_v63 = vpop.xlane.xlu0 %6544  ;;  %17813 = vmatpush3.msra.mxu0 %v6611_v59 }
0x1fa5   :  { %18655 = vpow2.f32 %v6564_v39  ;;  %v6553_v28 = vsub.f32 %v6519_v6, %v6545_v63  ;;  %17822 = vmatprep.subr.mxu0 %v18975_v21 }
0x1fa7   :  { %v6568_v1 = vmul.f32 1.442695, %v6553_v28  ;;  %v6763_v16 = vpop.permute.xlu1 %6762 }
0x1fa8   :  { %v6687_v47 = vpop.permute.xlu0 %6686 }
0x1fa9   :  { %v18648_v0 = vpop.eup %18647  ;;  %18657 = vpow2.f32 %v6568_v1  ;;  %17818 = vmatpush3.msra.mxu1 %v6687_v47 }
0x1faa   :  { %v6576_v54 = vsel %vm364_vm4, %v18648_v0, 0.0  ;;  %17827 = vmatprep.subr.mxu1 %v18975_v21 }
0x1fab   :  { %6577 = vadd.xlane.f32.xlu1 %v6576_v54  ;;  %v6839_v55 = vpop.permute.xlu1 %6838 }
0x1fac   :  { %v6915_v20 = vpop.permute.xlu0 %6914 }
0x1fad   :  { %v18650_v42 = vpop.eup %18649 }
0x1fae   :  { %v18652_v58 = vpop.eup %18651  ;;  %v6579_v44 = vsel %vm364_vm4, %v18650_v42, 0.0 }
0x1faf   :  { %6580 = vadd.xlane.f32.xlu0 %v6579_v44  ;;  %v6582_v37 = vsel %vm364_vm4, %v18652_v58, 0.0  ;;  %v6991_v46 = vpop.permute.xlu1 %6990 }
0x1fb0   :  { %6583 = vadd.xlane.f32.xlu1 %v6582_v37 }
0x1fb1   :  { %v20363_v6 = vpop.eup %18653 }
0x1fb2   :  { %v20365_v5 = vpop.eup %18655  ;;  %v6588_v61 = vsel %vm364_vm4, %v20363_v6, 0.0 }
0x1fb3   :  { %v6585_v53 = vsel %vm364_vm4, %v20365_v5, 0.0 }
0x1fb4   :  { %6586 = vadd.xlane.f32.xlu0 %v6585_v53  ;;  %6589 = vadd.xlane.f32.xlu1 %v6588_v61 }
0x1fb6   :  { %v20371_v25 = vpop.eup %18657 }
0x1fb7   :  { %v6591_v23 = vsel %vm364_vm4, %v20371_v25, 0.0 }
0x1fb8   :  { %6592 = vadd.xlane.f32.xlu0 %v6591_v23 }
0x1fc5   :  { %7142 = vrot.lane.b32.xlu1 %v20260_v50, %s18983_s2 }
0x1fc9   :  { %7260 = vrot.lane.b32.xlu1 %v20174_v35, %s18984_s17 }
0x1fcd   :  { %7258 = vrot.lane.b32.xlu1 %v20181_v30, %s18984_s17 }
0x1fce   :  { %7066 = vrot.lane.b32.xlu0 %v20242_v27, %s18983_s2 }
0x1fd2   :  { %7262 = vrot.lane.b32.xlu0 %v20165_v49, %s18984_s17 }
0x1fdd   :  { %v6575_v9 = vpop.xlane.xlu0 %6574 }
0x1fde   :  { %18659 = vrcp.f32 %v6575_v9 }
0x1fe0   :  { %v6572_v45 = vpop.xlane.xlu1 %6571 }
0x1fe1   :  { %18661 = vrcp.f32 %v6572_v45 }
0x1feb   :  { %v18660_v50 = vpop.eup %18659 }
0x1fec   :  { %v6603_v35 = vmul.f32 %v18660_v50, %v20350_v12  ;;  %v18899_v50 = vld [vmem:[#allocation2 + $0x10] sm:$0xff] }
0x1fee   :  { %v18662_v31 = vpop.eup %18661  ;;  %17820 = vmatmul.mubr.msk.f32.vlgmr.msra.gmra.mxu1 %vm364_vm4, %v6603_v35  ;;  %v5552_v35 = vrot.slane %v18899_v50, %v19474_v40 }
0x1fef   :  { %17828 = vmatpush3.msra.mxu1 %v6839_v55  ;;  %v6602_v30 = vmul.f32 %v18662_v31, %v20352_v8  ;;  %17829 = vmatprep.mubr.msk.f32.mxu1 %vm18977_vm3, %v18975_v21 }
0x1ff0   :  { %17837 = vmatprep.subr.mxu1 %v18975_v21  ;;  %v5626_v31 = vadd.f32 %v20207_v22, %v5552_v35 }
0x1ff1   :  { %17815 = vmatmul.mubr.msk.f32.vlgmr.msra.gmra.mxu0 %vm364_vm4, %v6602_v30  ;;  %v5631_v30 = vadd.f32 %v20205_v15, %v5552_v35 }
0x1ff2   :  { %17823 = vmatpush3.msra.mxu0 %v6763_v16  ;;  %17824 = vmatprep.mubr.msk.f32.mxu0 %vm18977_vm3, %v18975_v21 }
0x1ff3   :  { %17832 = vmatprep.subr.mxu0 %v18975_v21 }
0x2034   :  { %v6578_v49 = vpop.xlane.xlu1 %6577 }
0x2035   :  { %18663 = vrcp.f32 %v6578_v49  ;;  %v5634_v49 = vadd.f32 %v5626_v31, %v20090_v10 }
0x2038   :  { %v6581_v27 = vpop.xlane.xlu0 %6580 }
0x2039   :  { %18665 = vrcp.f32 %v6581_v27  ;;  %v6584_v12 = vpop.xlane.xlu1 %6583  ;;  %v5635_v27 = vadd.f32 %v5631_v30, %v20094_v11 }
0x203a   :  { %18667 = vrcp.f32 %v6584_v12  ;;  %v5636_v12 = vsel %vm266_vm2, %v5634_v49, 0.0 }
0x203d   :  { %v6587_v8 = vpop.xlane.xlu0 %6586  ;;  %v6590_v29 = vpop.xlane.xlu1 %6589 }
0x203e   :  { %18669 = vrcp.f32 %v6587_v8  ;;  %v5639_v8 = vsel %vm266_vm2, %v5635_v27, 0.0 }
0x203f   :  { %18671 = vrcp.f32 %v6590_v29 }
0x2041   :  { %v6593_v56 = vpop.xlane.xlu0 %6592  ;;  %v7143_v63 = vpop.permute.xlu1 %7142 }
0x2042   :  { %v18664_v62 = vpop.eup %18663  ;;  %18673 = vrcp.f32 %v6593_v56 }
0x2043   :  { %v6604_v14 = vmul.f32 %v18664_v62, %v18648_v0 }
0x2045   :  { %17825 = vmatmul.mubr.msk.f32.vlgmr.msra.gmra.mxu0 %vm364_vm4, %v6604_v14  ;;  %v7067_v57 = vpop.permute.xlu0 %7066 }
0x2046   :  { %v18666_v26 = vpop.eup %18665  ;;  %17833 = vmatpush3.msra.mxu0 %v6915_v20  ;;  %17834 = vmatprep.mubr.msk.f32.mxu0 %vm18977_vm3, %v18975_v21 }
0x2047   :  { %v18668_v34 = vpop.eup %18667  ;;  %17842 = vmatprep.subr.mxu0 %v18975_v21  ;;  %v6605_v3 = vmul.f32 %v18666_v26, %v18650_v42 }
0x2048   :  { %v6606_v4 = vmul.f32 %v18668_v34, %v18652_v58  ;;  %v7261_v58 = vpop.permute.xlu1 %7260 }
0x2049   :  { %17830 = vmatmul.mubr.msk.f32.vlgmr.msra.gmra.mxu1 %vm364_vm4, %v6605_v3  ;;  %v7263_v44 = vpop.permute.xlu0 %7262 }
0x204a   :  { %17835 = vmatmul.mubr.msk.f32.vlgmr.msra.gmra.mxu0 %vm364_vm4, %v6606_v4  ;;  %17838 = vmatpush3.msra.mxu1 %v6991_v46 }
0x204b   :  { %v18670_v33 = vpop.eup %18669  ;;  %17843 = vmatpush3.msra.mxu0 %v7067_v57  ;;  %17839 = vmatprep.mubr.msk.f32.mxu1 %vm18977_vm3, %v18975_v21 }
0x204c   :  { %v18672_v52 = vpop.eup %18671  ;;  %17844 = vmatprep.mubr.msk.f32.mxu0 %vm18977_vm3, %v18975_v21  ;;  %17847 = vmatprep.subr.mxu1 %v18975_v21  ;;  %v6607_v39 = vmul.f32 %v18670_v33, %v20365_v5  ;;  %v7259_v37 = vpop.permute.xlu1 %7258 }
0x204d   :  { %v6608_v59 = vmul.f32 %v18672_v52, %v20363_v6  ;;  %17852 = vmatprep.subr.mxu0 %v7263_v44 }
0x204e   :  { %17840 = vmatmul.mubr.msk.f32.vlgmr.msra.gmra.mxu1 %vm364_vm4, %v6607_v39 }
0x204f   :  { %v18674_v28 = vpop.eup %18673  ;;  %17845 = vmatmul.mubr.msk.f32.vlgmr.msra.gmra.mxu0 %vm364_vm4, %v6608_v59  ;;  %17848 = vmatpush3.msra.mxu1 %v7143_v63 }
0x2050   :  { %17849 = vmatprep.mubr.msk.f32.mxu1 %vm18977_vm3, %v18975_v21  ;;  %v6609_v1 = vmul.f32 %v18674_v28, %v20371_v25  ;;  %17853 = vmatpush3.msra.mxu0 %v7263_v44 }
0x2051   :  { %17854 = vmatprep.subr.mxu0 %v7261_v58 }
0x2052   :  { %17850 = vmatmul.mubr.msk.f32.vlgmr.msra.gmra.mxu1 %vm364_vm4, %v6609_v1  ;;  %17855 = vmatpush3.msra.mxu0 %v7261_v58 }
0x2053   :  { %17856 = vmatprep.subr.mxu0 %v7259_v37 }
0x2054   :  { %17857 = vmatpush3.msra.mxu0 %v7259_v37 }
0x20ae   :  { %v6758_v47 = vpop.f32.mrf.mxu1 }
0x20b0   :  { %v17821_v0 = vpop.f32.mrf.mxu1 }
0x20b1   :  { %v6682_v54 = vpop.f32.mrf.mxu0 }
0x20b3   :  { %v17816_v42 = vpop.f32.mrf.mxu0 }
0x2105   :  { %v6834_v6 = vpop.f32.mrf.mxu0 }
0x2107   :  { %v17826_v5 = vpop.f32.mrf.mxu0 }
0x2109   :  { %v6910_v61 = vpop.f32.mrf.mxu1 }
0x210a   :  { %v6986_v53 = vpop.f32.mrf.mxu0  ;;  %7222 = vrot.lane.b32.xlu0 %v6910_v61, %s18972_s29  ;;  %v5665_v61 = vrot.slane %v18899_v50, %v19512_v19 }
0x210b   :  { %7228 = vrot.lane.b32.xlu1 %v6986_v53, %s18985_s0  ;;  %v17831_v25 = vpop.f32.mrf.mxu1 }
0x210c   :  { %v17836_v23 = vpop.f32.mrf.mxu0 }
0x210d   :  { %v7251_v23 = vrot.slane %v20212_v48, %v19405_v41 }
0x210e   :  { %v7062_v16 = vpop.f32.mrf.mxu1  ;;  %7220 = vrot.lane.b32.xlu0 %v6834_v6, %s18972_s29 }
0x210f   :  { %v7138_v55 = vpop.f32.mrf.mxu0 }
0x2110   :  { %7236 = vrot.lane.b32.xlu1 %v7138_v55, %s18986_s18  ;;  %v17841_v20 = vpop.f32.mrf.mxu1  ;;  %v5671_v55 = vrot.slane %v18899_v50, %v19517_v24 }
0x2111   :  { %v17846_v46 = vpop.f32.mrf.mxu0 }
0x2112   :  { %v7214_v9 = vpop.f32.mrf.mxu1  ;;  %7230 = vrot.lane.b32.xlu0 %v7062_v16, %s18985_s0 }
0x2114   :  { %7238 = vrot.lane.b32.xlu1 %v7214_v9, %s18986_s18  ;;  %v17851_v45 = vpop.f32.mrf.mxu1 }
0x2116   :  { %7256 = vrot.lane.b32.xlu0 %v20188_v36, %s18984_s17 }
0x2135   :  { %5637 = vadd.xlane.f32.xlu0 %v5636_v12 }
0x2138   :  { %5640 = vadd.xlane.f32.xlu1 %v5639_v8 }
0x217c   :  { %v7223_v29 = vpop.permute.xlu0 %7222 }
0x217d   :  { %v7229_v56 = vpop.permute.xlu1 %7228  ;;  %v7243_v10 = vsel %vm364_vm4, %v6758_v47, %v7223_v29 }
0x2180   :  { %v7221_v36 = vpop.permute.xlu0 %7220 }
0x2181   :  { %v7242_v62 = vsel %vm364_vm4, %v6682_v54, %v7221_v36  ;;  %v20465_v36 = vld [vmem:[%s21970_s8 + $0x20] sm:$0xff] }
0x2182   :  { %v7244_v14 = vsel %vm1693_vm5, %v7242_v62, %v7229_v56  ;;  %v7237_v22 = vpop.permute.xlu1 %7236  ;;  %v20473_v62 = vld [vmem:[%s21970_s8 + $0x8] sm:$0xff] }
0x2183   :  { %v7246_v15 = vsel %vm1696_vm6, %v7244_v14, %v7237_v22 }
0x2184   :  { %v7231_v26 = vpop.permute.xlu0 %7230  ;;  %17860 = vmatprep.mubr.msk.f32.mxu0 %vm266_vm2, %v7246_v15 }
0x2185   :  { %v7245_v11 = vsel %vm1693_vm5, %v7243_v10, %v7231_v26 }
0x2186   :  { %v7239_v34 = vpop.permute.xlu1 %7238 }
0x2187   :  { %v7247_v4 = vsel %vm1696_vm6, %v7245_v11, %v7239_v34 }
0x2188   :  { %v7257_v3 = vpop.permute.xlu0 %7256 }
0x2189   :  { %17858 = vmatprep.subr.mxu0 %v7257_v3 }
0x218a   :  { %17859 = vmatpush3.msra.mxu0 %v7257_v3 }
0x218b   :  { %17861 = vmatmul.mubr.msk.f32.vlgmr.msra.gmra.mxu0 %vm266_vm2, %v7247_v4 }
0x21be   :  { %v5638_v57 = vpop.xlane.xlu0 %5637 }
0x21bf   :  { %v5642_v33 = vmul.f32 0.03125, %v5638_v57 }
0x21c1   :  { %v5644_v52 = vsub.f32 %v5634_v49, %v5642_v33  ;;  %v5641_v39 = vpop.xlane.xlu1 %5640 }
0x21c2   :  { %v5643_v59 = vmul.f32 0.03125, %v5641_v39 }
0x21c3   :  { %v5646_v63 = vmul.f32 %v5644_v52, %v5644_v52 }
0x21c4   :  { %v5645_v28 = vsub.f32 %v5635_v27, %v5643_v59 }
0x21c5   :  { %v5648_v1 = vsel %vm266_vm2, %v5646_v63, 0.0 }
0x21c6   :  { %5649 = vadd.xlane.f32.xlu0 %v5648_v1  ;;  %v5647_v47 = vmul.f32 %v5645_v28, %v5645_v28 }
0x21c8   :  { %v5651_v0 = vsel %vm266_vm2, %v5647_v47, 0.0 }
0x21ca   :  { %5652 = vadd.xlane.f32.xlu0 %v5651_v0 }
0x224b   :  { %v17862_v5 = vpop.f32.mrf.mxu0 }
0x224c   :  { %v7346_v31 = vadd.f32 %v17862_v5, %v7251_v23 }
0x224d   :  { %v7340_v25 = vpop.f32.mrf.mxu0 }
0x224e   :  { %v7341_v20 = vadd.f32 %v7340_v25, %v7251_v23  ;;  %v7350_v8 = vadd.f32 %v20195_v43, %v7346_v31  ;;  %v20459_v43 = vld [vmem:[%s21970_s8 + $0x38] sm:$0xff] }
0x224f   :  { %v5650_v54 = vpop.xlane.xlu0 %5649  ;;  %v163_v25 = vld [vmem:[#allocation5] sm:$0x1f] }
0x2250   :  { %v5654_v42 = vmul.f32 0.03125, %v5650_v54  ;;  %v7349_v30 = vadd.f32 %v7341_v20, %v20197_v13  ;;  %v7354_v50 = vsel %vm266_vm2, %v7350_v8, 0.0  ;;  %v20452_v13 = vld [vmem:[%s21970_s8 + $0x50] sm:$0xff]  ;;  %v5703_v23 = vrot.slane %v163_v25, %v19168_v32 }
0x2251   :  { %17863 = vmatprep.subr.mxu1 %v20452_v13  ;;  %v5709_v20 = vrot.slane %v163_v25, %v19405_v41 }
0x2252   :  { %v5656_v58 = vadd.f32 1e-05, %v5654_v42  ;;  %v7351_v29 = vsel %vm266_vm2, %v7349_v30, 0.0  ;;  %17864 = vmatpush3.msra.mxu1 %v20452_v13 }
0x2253   :  { %v5653_v44 = vpop.xlane.xlu0 %5652  ;;  %17865 = vmatprep.subr.mxu1 %v20459_v43 }
0x2254   :  { %18675 = vrsqrt.f32 %v5656_v58  ;;  %v5655_v37 = vmul.f32 0.03125, %v5653_v44  ;;  %17866 = vmatpush3.msra.mxu1 %v20459_v43 }
0x2255   :  { %17867 = vmatprep.subr.mxu1 %v20465_v36 }
0x2256   :  { %v5657_v6 = vadd.f32 1e-05, %v5655_v37  ;;  %17868 = vmatpush3.msra.mxu1 %v20465_v36 }
0x2257   :  { %17869 = vmatprep.subr.mxu1 %v20473_v62 }
0x2258   :  { %18677 = vrsqrt.f32 %v5657_v6  ;;  %17870 = vmatpush3.msra.mxu1 %v20473_v62 }
0x2259   :  { %17885 = vmatprep.subr.mxu1 %v18975_v21 }
0x2261   :  { %v18676_v53 = vpop.eup %18675 }
0x2262   :  { %v5660_v16 = vmul.f32 %v18676_v53, %v5644_v52 }
0x2264   :  { %v5666_v46 = vmul.f32 %v5665_v61, %v5660_v16 }
0x2265   :  { %v18678_v9 = vpop.eup %18677 }
0x2266   :  { %v5672_v45 = vadd.f32 %v5671_v55, %v5666_v46  ;;  %v5661_v35 = vmul.f32 %v18678_v9, %v5645_v28 }
0x2268   :  { %v5674_v49 = vsel %vm266_vm2, %v5672_v45, 0.0  ;;  %v5667_v27 = vmul.f32 %v5665_v61, %v5661_v35 }
0x2269   :  { %5675 = vadd.xlane.f32.xlu1 %v5674_v49 }
0x226a   :  { %v5673_v12 = vadd.f32 %v5671_v55, %v5667_v27 }
0x226c   :  { %v5677_v56 = vsel %vm266_vm2, %v5673_v12, 0.0 }
0x226d   :  { %7352 = vadd.xlane.f32.xlu1 %v7351_v29  ;;  %5678 = vadd.xlane.f32.xlu0 %v5677_v56 }
0x2271   :  { %7355 = vadd.xlane.f32.xlu0 %v7354_v50 }
0x22f2   :  { %v5676_v14 = vpop.xlane.xlu1 %5675 }
0x22f3   :  { %v5680_v22 = vmul.f32 0.03125, %v5676_v14 }
0x22f5   :  { %v5682_v15 = vsub.f32 %v5672_v45, %v5680_v22 }
0x22f6   :  { %v5679_v26 = vpop.xlane.xlu0 %5678  ;;  %v7353_v28 = vpop.xlane.xlu1 %7352 }
0x22f7   :  { %v5681_v10 = vmul.f32 0.03125, %v5679_v26  ;;  %v5684_v11 = vmul.f32 %v5682_v15, %v5682_v15  ;;  %v7357_v1 = vmul.f32 0.03125, %v7353_v28  ;;  %v7380_v26 = vrot.slane %v20212_v48, %v19517_v24 }
0x22f9   :  { %v5683_v34 = vsub.f32 %v5673_v12, %v5681_v10  ;;  %v5686_v3 = vsel %vm266_vm2, %v5684_v11, 0.0  ;;  %v7359_v47 = vsub.f32 %v7349_v30, %v7357_v1  ;;  %v20508_v10 = vld [vmem:[%s21972_s10 + $0x8] sm:$0x1f] }
0x22fa   :  { %v7356_v4 = vpop.xlane.xlu0 %7355  ;;  %5687 = vadd.xlane.f32.xlu1 %v5686_v3 }
0x22fb   :  { %v7358_v57 = vmul.f32 0.03125, %v7356_v4  ;;  %v5685_v33 = vmul.f32 %v5683_v34, %v5683_v34  ;;  %v7361_v0 = vmul.f32 %v7359_v47, %v7359_v47  ;;  %v7386_v4 = vrot.slane %v20508_v10, %v19168_v32 }
0x22fd   :  { %v7360_v52 = vsub.f32 %v7350_v8, %v7358_v57  ;;  %v5689_v39 = vsel %vm266_vm2, %v5685_v33, 0.0  ;;  %v7363_v54 = vsel %vm266_vm2, %v7361_v0, 0.0 }
0x22fe   :  { %5690 = vadd.xlane.f32.xlu0 %v5689_v39 }
0x22ff   :  { %v7362_v59 = vmul.f32 %v7360_v52, %v7360_v52 }
0x2301   :  { %v7366_v63 = vsel %vm266_vm2, %v7362_v59, 0.0 }
0x2302   :  { %7367 = vadd.xlane.f32.xlu0 %v7366_v63 }
0x230b   :  { %7488 = vrot.lane.b32.xlu1 %v20452_v13, %s18981_s14 }
0x230f   :  { %7484 = vrot.lane.b32.xlu1 %v20465_v36, %s18981_s14 }
0x2318   :  { %7486 = vrot.lane.b32.xlu0 %v20459_v43, %s18981_s14 }
0x2333   :  { %7364 = vadd.xlane.f32.xlu1 %v7363_v54 }
0x2344   :  { %7482 = vrot.lane.b32.xlu1 %v20473_v62, %s18981_s14 }
0x2383   :  { %v5688_v42 = vpop.xlane.xlu1 %5687 }
0x2384   :  { %v5692_v58 = vmul.f32 0.03125, %v5688_v42 }
0x2386   :  { %v5694_v44 = vadd.f32 1e-05, %v5692_v58 }
0x2387   :  { %v5691_v37 = vpop.xlane.xlu0 %5690  ;;  %v7489_v6 = vpop.permute.xlu1 %7488 }
0x2388   :  { %18679 = vrsqrt.f32 %v5694_v44  ;;  %17874 = vmatprep.subr.mxu0 %v7489_v6  ;;  %v5693_v45 = vmul.f32 0.03125, %v5691_v37 }
0x2389   :  { %17875 = vmatpush3.msra.mxu0 %v7489_v6 }
0x238a   :  { %v5695_v35 = vadd.f32 1e-05, %v5693_v45 }
0x238b   :  { %v7368_v5 = vpop.xlane.xlu0 %7367  ;;  %v7485_v53 = vpop.permute.xlu1 %7484 }
0x238c   :  { %18681 = vrsqrt.f32 %v5695_v35  ;;  %v7370_v31 = vmul.f32 0.03125, %v7368_v5 }
0x238e   :  { %v7372_v49 = vadd.f32 1e-05, %v7370_v31 }
0x238f   :  { %v7487_v61 = vpop.permute.xlu0 %7486 }
0x2390   :  { %17876 = vmatprep.subr.mxu0 %v7487_v61  ;;  %18683 = vrsqrt.f32 %v7372_v49 }
0x2391   :  { %17877 = vmatpush3.msra.mxu0 %v7487_v61 }
0x2392   :  { %17878 = vmatprep.subr.mxu0 %v7485_v53 }
0x2393   :  { %17879 = vmatpush3.msra.mxu0 %v7485_v53 }
0x2395   :  { %v18680_v16 = vpop.eup %18679 }
0x2396   :  { %v5698_v55 = vmul.f32 %v18680_v16, %v5682_v15 }
0x2398   :  { %v5704_v46 = vmul.f32 %v5703_v23, %v5698_v55 }
0x2399   :  { %v18682_v30 = vpop.eup %18681 }
0x239a   :  { %v20492_v9 = vadd.f32 %v5709_v20, %v5704_v46  ;;  %v5699_v27 = vmul.f32 %v18682_v30, %v5683_v34 }
0x239c   :  { %17882 = vmatprep.mubr.msk.f32.mxu0 %vm266_vm2, %v20492_v9  ;;  %v5705_v8 = vmul.f32 %v5703_v23, %v5699_v27 }
0x239d   :  { %v18684_v22 = vpop.eup %18683 }
0x239e   :  { %v20496_v14 = vadd.f32 %v5709_v20, %v5705_v8  ;;  %v7376_v15 = vmul.f32 %v18684_v22, %v7360_v52  ;;  %v7477_v52 = vrot.slane %v20212_v48, %v19474_v40 }
0x23a0   :  { %v7382_v3 = vmul.f32 %v7380_v26, %v7376_v15 }
0x23a2   :  { %v20514_v39 = vadd.f32 %v7386_v4, %v7382_v3 }
0x23bc   :  { %v7365_v12 = vpop.xlane.xlu1 %7364 }
0x23bd   :  { %v7369_v29 = vmul.f32 0.03125, %v7365_v12 }
0x23bf   :  { %v7371_v56 = vadd.f32 1e-05, %v7369_v29 }
0x23c0   :  { %v7483_v50 = vpop.permute.xlu1 %7482 }
0x23c1   :  { %18685 = vrsqrt.f32 %v7371_v56  ;;  %17880 = vmatprep.subr.mxu0 %v7483_v50 }
0x23c2   :  { %17881 = vmatpush3.msra.mxu0 %v7483_v50 }
0x23c3   :  { %17883 = vmatmul.mubr.msk.f32.vlgmr.msra.gmra.mxu0 %vm266_vm2, %v20496_v14  ;;  %17895 = vmatprep.subr.mxu0 %v18975_v21 }
0x23c4   :  { %17897 = vmatprep.mubr.msk.f32.mxu0 %vm18977_vm3, %v18975_v21 }
0x23ce   :  { %v18686_v11 = vpop.eup %18685 }
0x23cf   :  { %v7375_v34 = vmul.f32 %v18686_v11, %v7359_v47  ;;  %v7392_v47 = vrot.slane %v20212_v48, %v19465_v51 }
0x23d1   :  { %v7381_v57 = vmul.f32 %v7380_v26, %v7375_v34 }
0x23d3   :  { %v20512_v33 = vadd.f32 %v7386_v4, %v7381_v57 }
0x23d5   :  { %17871 = vmatprep.mubr.msk.f32.mxu1 %vm266_vm2, %v20512_v33 }
0x23d6   :  { %17872 = vmatmul.mubr.msk.f32.vlgmr.msra.gmra.mxu1 %vm266_vm2, %v20514_v39 }
0x23d7   :  { %17887 = vmatprep.mubr.msk.f32.mxu1 %vm18977_vm3, %v18975_v21 }
0x2483   :  { %v17884_v59 = vpop.f32.mrf.mxu0 }
0x2484   :  { %v20524_v63 = vadd.f32 %v17884_v59, %v7477_v52 }
0x2485   :  { %v7566_v28 = vpop.f32.mrf.mxu0 }
0x2486   :  { %v20526_v1 = vadd.f32 %v7566_v28, %v7477_v52  ;;  %7593 = vrot.lane.b32.xlu1 %v20524_v63, %s18979_s27 }
0x2488   :  { %7591 = vrot.lane.b32.xlu0 %v20526_v1, %s18979_s27  ;;  %17886 = vmatpush3.xpose.msk.msra.mxu1 %vm364_vm4, %v20526_v1 }
0x2489   :  { %17890 = vmatprep.subr.mxu1 %v18975_v21 }
0x248a   :  { %7597 = vrot.lane.b32.xlu1 %v20524_v63, %s18978_s26 }
0x248c   :  { %7595 = vrot.lane.b32.xlu0 %v20526_v1, %s18978_s26 }
0x248e   :  { %7601 = vrot.lane.b32.xlu1 %v20524_v63, %s18980_s30 }
0x2490   :  { %7599 = vrot.lane.b32.xlu0 %v20526_v1, %s18980_s30 }
0x2496   :  { %v17873_v0 = vpop.f32.mrf.mxu1 }
0x2497   :  { %v7471_v54 = vadd.f32 %v17873_v0, %v7392_v47 }
0x2498   :  { %v7465_v42 = vpop.f32.mrf.mxu1 }
0x2499   :  { %v7466_v58 = vadd.f32 %v7465_v42, %v7392_v47  ;;  %7579 = vrot.lane.b32.xlu1 %v7471_v54, %s18979_s27 }
0x249b   :  { %7577 = vrot.lane.b32.xlu0 %v7466_v58, %s18979_s27  ;;  %17888 = vmatmul.mubr.msk.f32.vlgmr.msra.gmra.mxu1 %vm364_vm4, %v7466_v58 }
0x249c   :  { %17891 = vmatpush3.xpose.msk.msra.mxu1 %vm364_vm4, %v20524_v63  ;;  %17892 = vmatprep.mubr.msk.f32.mxu1 %vm18977_vm3, %v18975_v21 }
0x249d   :  { %7583 = vrot.lane.b32.xlu1 %v7471_v54, %s18978_s26  ;;  %17900 = vmatprep.subr.mxu1 %v18975_v21 }
0x249f   :  { %7581 = vrot.lane.b32.xlu0 %v7466_v58, %s18978_s26  ;;  %17893 = vmatmul.mubr.msk.f32.vlgmr.msra.gmra.mxu1 %vm364_vm4, %v7471_v54 }
0x24a0   :  { %17902 = vmatprep.mubr.msk.f32.mxu1 %vm18977_vm3, %v18975_v21 }
0x24a1   :  { %7587 = vrot.lane.b32.xlu1 %v7471_v54, %s18980_s30 }
0x24a3   :  { %7585 = vrot.lane.b32.xlu0 %v7466_v58, %s18980_s30 }
0x24f8   :  { %v20560_v48 = vpop.permute.xlu1 %7593 }
0x24f9   :  { %17901 = vmatpush3.xpose.msk.msra.mxu1 %vm364_vm4, %v20560_v48 }
0x24fa   :  { %v20564_v44 = vpop.permute.xlu0 %7591  ;;  %17910 = vmatprep.subr.mxu1 %v18975_v21 }
0x24fb   :  { %17896 = vmatpush3.xpose.msk.msra.mxu0 %vm364_vm4, %v20564_v44 }
0x24fc   :  { %17905 = vmatprep.subr.mxu0 %v18975_v21  ;;  %v20570_v37 = vpop.permute.xlu1 %7597 }
0x24fe   :  { %v20572_v6 = vpop.permute.xlu0 %7595 }
0x2500   :  { %v20574_v5 = vpop.permute.xlu1 %7601 }
0x2502   :  { %v20576_v61 = vpop.permute.xlu0 %7599 }
0x250b   :  { %v7580_v53 = vpop.permute.xlu1 %7579 }
0x250c   :  { %17903 = vmatmul.mubr.msk.f32.vlgmr.msra.gmra.mxu1 %vm364_vm4, %v7580_v53 }
0x250d   :  { %17911 = vmatpush3.xpose.msk.msra.mxu1 %vm364_vm4, %v20570_v37  ;;  %v7578_v25 = vpop.permute.xlu0 %7577  ;;  %17912 = vmatprep.mubr.msk.f32.mxu1 %vm18977_vm3, %v18975_v21 }
0x250e   :  { %17898 = vmatmul.mubr.msk.f32.vlgmr.msra.gmra.mxu0 %vm364_vm4, %v7578_v25  ;;  %17920 = vmatprep.subr.mxu1 %v18975_v21 }
0x250f   :  { %17906 = vmatpush3.xpose.msk.msra.mxu0 %vm364_vm4, %v20572_v6  ;;  %v7584_v23 = vpop.permute.xlu1 %7583  ;;  %17907 = vmatprep.mubr.msk.f32.mxu0 %vm18977_vm3, %v18975_v21 }
0x2510   :  { %17913 = vmatmul.mubr.msk.f32.vlgmr.msra.gmra.mxu1 %vm364_vm4, %v7584_v23  ;;  %17915 = vmatprep.subr.mxu0 %v18975_v21 }
0x2511   :  { %17921 = vmatpush3.xpose.msk.msra.mxu1 %vm364_vm4, %v20574_v5  ;;  %v7582_v16 = vpop.permute.xlu0 %7581  ;;  %17922 = vmatprep.mubr.msk.f32.mxu1 %vm18977_vm3, %v18975_v21 }
0x2512   :  { %17908 = vmatmul.mubr.msk.f32.vlgmr.msra.gmra.mxu0 %vm364_vm4, %v7582_v16  ;;  %17930 = vmatprep.subr.mxu1 %v18975_v21 }
0x2513   :  { %17916 = vmatpush3.xpose.msk.msra.mxu0 %vm364_vm4, %v20576_v61  ;;  %v7588_v55 = vpop.permute.xlu1 %7587  ;;  %17917 = vmatprep.mubr.msk.f32.mxu0 %vm18977_vm3, %v18975_v21 }
0x2514   :  { %17923 = vmatmul.mubr.msk.f32.vlgmr.msra.gmra.mxu1 %vm364_vm4, %v7588_v55  ;;  %17925 = vmatprep.subr.mxu0 %v18975_v21 }
0x2515   :  { %v7586_v20 = vpop.permute.xlu0 %7585  ;;  %17932 = vmatprep.mubr.msk.f32.mxu1 %vm18977_vm3, %v18975_v21 }
0x2516   :  { %17918 = vmatmul.mubr.msk.f32.vlgmr.msra.gmra.mxu0 %vm364_vm4, %v7586_v20 }
0x2517   :  { %17927 = vmatprep.mubr.msk.f32.mxu0 %vm18977_vm3, %v18975_v21 }
0x255b   :  { %v7673_v46 = vpop.f32.mrf.mxu1 }
0x255c   :  { %v7674_v45 = vadd.f32 %v7673_v46, %v19278_v60 }
0x255d   :  { %v17889_v35 = vpop.f32.mrf.mxu1 }
0x255e   :  { %v8195_v31 = vsel %vm364_vm4, %v7674_v45, -inf }
0x255f   :  { %8196 = vmax.xlane.f32.xlu0 %v8195_v31  ;;  %v7747_v30 = vpop.f32.mrf.mxu1 }
0x2560   :  { %v7748_v49 = vadd.f32 %v7747_v30, %v19284_v2 }
0x2561   :  { %v17894_v27 = vpop.f32.mrf.mxu1 }
0x2562   :  { %v8198_v12 = vsel %vm364_vm4, %v7748_v49, -inf }
0x2563   :  { %8199 = vmax.xlane.f32.xlu1 %v8198_v12 }
0x25cc   :  { %v7895_v8 = vpop.f32.mrf.mxu1 }
0x25cd   :  { %v7896_v26 = vadd.f32 %v7895_v8, %v19284_v2 }
0x25ce   :  { %v7821_v29 = vpop.f32.mrf.mxu0  ;;  %v17904_v56 = vpop.f32.mrf.mxu1 }
0x25cf   :  { %v7822_v50 = vadd.f32 %v7821_v29, %v19278_v60  ;;  %v8204_v47 = vsel %vm364_vm4, %v7896_v26, -inf }
0x25d0   :  { %v17899_v22 = vpop.f32.mrf.mxu0  ;;  %v8043_v15 = vpop.f32.mrf.mxu1 }
0x25d1   :  { %v8201_v11 = vsel %vm364_vm4, %v7822_v50, -inf  ;;  %v8044_v59 = vadd.f32 %v8043_v15, %v19284_v2 }
0x25d2   :  { %v7969_v34 = vpop.f32.mrf.mxu0  ;;  %8202 = vmax.xlane.f32.xlu0 %v8201_v11  ;;  %v17914_v3 = vpop.f32.mrf.mxu1 }
0x25d3   :  { %v7970_v4 = vadd.f32 %v7969_v34, %v19278_v60  ;;  %v8210_v23 = vsel %vm364_vm4, %v8044_v59, -inf }
0x25d4   :  { %v17909_v57 = vpop.f32.mrf.mxu0  ;;  %v8191_v52 = vpop.f32.mrf.mxu1 }
0x25d5   :  { %v8207_v28 = vsel %vm364_vm4, %v7970_v4, -inf  ;;  %v8192_v53 = vadd.f32 %v8191_v52, %v19284_v2 }
0x25d6   :  { %v8117_v0 = vpop.f32.mrf.mxu0  ;;  %8208 = vmax.xlane.f32.xlu1 %v8207_v28  ;;  %8205 = vmax.xlane.f32.xlu0 %v8204_v47  ;;  %v17924_v54 = vpop.f32.mrf.mxu1 }
0x25d7   :  { %v8118_v42 = vadd.f32 %v8117_v0, %v19278_v60  ;;  %v8216_v16 = vsel %vm364_vm4, %v8192_v53, -inf }
0x25d8   :  { %v17919_v58 = vpop.f32.mrf.mxu0 }
0x25d9   :  { %v8213_v25 = vsel %vm364_vm4, %v8118_v42, -inf }
0x25da   :  { %8214 = vmax.xlane.f32.xlu1 %v8213_v25  ;;  %8211 = vmax.xlane.f32.xlu0 %v8210_v23 }
0x25de   :  { %8217 = vmax.xlane.f32.xlu0 %v8216_v16 }
0x25e8   :  { %v8197_v46 = vpop.xlane.xlu0 %8196 }
0x25e9   :  { %v8219_v35 = vsub.f32 %v7674_v45, %v8197_v46 }
0x25eb   :  { %8283 = vrot.lane.b32.xlu1 %v20526_v1, %s18981_s14  ;;  %v8227_v31 = vmul.f32 1.442695, %v8219_v35 }
0x25ec   :  { %v8200_v55 = vpop.xlane.xlu1 %8199 }
0x25ed   :  { %v8220_v20 = vsub.f32 %v7748_v49, %v8200_v55 }
0x25ef   :  { %8435 = vrot.lane.b32.xlu1 %v20564_v44, %s18981_s14  ;;  %v8229_v1 = vmul.f32 1.442695, %v8220_v20 }
0x25f1   :  { %18687 = vpow2.f32 %v8229_v1 }
0x25f2   :  { %18689 = vpow2.f32 %v8227_v31 }
0x25f3   :  { %8511 = vrot.lane.b32.xlu1 %v20560_v48, %s18981_s14 }
0x25f4   :  { %8359 = vrot.lane.b32.xlu0 %v20524_v63, %s18981_s14 }
0x25f7   :  { %8663 = vrot.lane.b32.xlu1 %v20570_v37, %s18981_s14 }
0x25f8   :  { %8587 = vrot.lane.b32.xlu0 %v20572_v6, %s18981_s14 }
0x25fe   :  { %v20636_v44 = vpop.eup %18687 }
0x25ff   :  { %v8246_v48 = vsel %vm364_vm4, %v20636_v44, 0.0  ;;  %v20640_v63 = vpop.eup %18689 }
0x2600   :  { %v8243_v37 = vsel %vm364_vm4, %v20640_v63, 0.0 }
0x2617   :  { %8247 = vadd.xlane.f32.xlu0 %v8246_v48 }
0x261b   :  { %8244 = vadd.xlane.f32.xlu1 %v8243_v37 }
0x265b   :  { %v8203_v6 = vpop.xlane.xlu0 %8202 }
0x265c   :  { %v8221_v30 = vsub.f32 %v7822_v50, %v8203_v6 }
0x265e   :  { %v8231_v49 = vmul.f32 1.442695, %v8221_v30 }
0x265f   :  { %v8209_v45 = vpop.xlane.xlu1 %8208  ;;  %v8206_v27 = vpop.xlane.xlu0 %8205 }
0x2660   :  { %18691 = vpow2.f32 %v8231_v49  ;;  %v8223_v12 = vsub.f32 %v7970_v4, %v8209_v45  ;;  %v8222_v8 = vsub.f32 %v7896_v26, %v8206_v27 }
0x2662   :  { %v8235_v29 = vmul.f32 1.442695, %v8223_v12  ;;  %v8233_v56 = vmul.f32 1.442695, %v8222_v8 }
0x2663   :  { %v8215_v22 = vpop.xlane.xlu1 %8214  ;;  %v8212_v15 = vpop.xlane.xlu0 %8211 }
0x2664   :  { %18693 = vpow2.f32 %v8235_v29  ;;  %v8225_v11 = vsub.f32 %v8118_v42, %v8215_v22  ;;  %v8224_v34 = vsub.f32 %v8044_v59, %v8212_v15 }
0x2665   :  { %18695 = vpow2.f32 %v8233_v56 }
0x2666   :  { %v8239_v3 = vmul.f32 1.442695, %v8225_v11  ;;  %v8237_v57 = vmul.f32 1.442695, %v8224_v34 }
0x2667   :  { %v8284_v52 = vpop.permute.xlu1 %8283  ;;  %v8218_v28 = vpop.xlane.xlu0 %8217 }
0x2668   :  { %18697 = vpow2.f32 %v8239_v3  ;;  %v8226_v50 = vsub.f32 %v8192_v53, %v8218_v28  ;;  %17926 = vmatpush3.msra.mxu0 %v8284_v52 }
0x2669   :  { %18699 = vpow2.f32 %v8237_v57  ;;  %17935 = vmatprep.subr.mxu0 %v18975_v21 }
0x266a   :  { %v8241_v4 = vmul.f32 1.442695, %v8226_v50 }
0x266b   :  { %v8360_v26 = vpop.permute.xlu0 %8359  ;;  %v8436_v46 = vpop.permute.xlu1 %8435 }
0x266c   :  { %18701 = vpow2.f32 %v8241_v4  ;;  %17931 = vmatpush3.msra.mxu1 %v8360_v26 }
0x266d   :  { %v18692_v47 = vpop.eup %18691  ;;  %17940 = vmatprep.subr.mxu1 %v18975_v21 }
0x266e   :  { %v8249_v59 = vsel %vm364_vm4, %v18692_v47, 0.0 }
0x266f   :  { %8250 = vadd.xlane.f32.xlu1 %v8249_v59  ;;  %v8512_v35 = vpop.permute.xlu1 %8511  ;;  %v8588_v1 = vpop.permute.xlu0 %8587 }
0x2671   :  { %v18694_v0 = vpop.eup %18693 }
0x2672   :  { %v18696_v54 = vpop.eup %18695  ;;  %v8255_v42 = vsel %vm364_vm4, %v18694_v0, 0.0 }
0x2673   :  { %8256 = vadd.xlane.f32.xlu1 %v8255_v42  ;;  %v8252_v58 = vsel %vm364_vm4, %v18696_v54, 0.0  ;;  %v8664_v31 = vpop.permute.xlu1 %8663 }
0x2674   :  { %8253 = vadd.xlane.f32.xlu0 %v8252_v58 }
0x2675   :  { %v20649_v53 = vpop.eup %18697 }
0x2676   :  { %v20651_v25 = vpop.eup %18699  ;;  %v8261_v23 = vsel %vm364_vm4, %v20649_v53, 0.0 }
0x2677   :  { %8262 = vadd.xlane.f32.xlu1 %v8261_v23  ;;  %v8258_v16 = vsel %vm364_vm4, %v20651_v25, 0.0 }
0x2678   :  { %8259 = vadd.xlane.f32.xlu0 %v8258_v16 }
0x2679   :  { %v20657_v55 = vpop.eup %18701 }
0x267a   :  { %v8264_v20 = vsel %vm364_vm4, %v20657_v55, 0.0 }
0x267c   :  { %8265 = vadd.xlane.f32.xlu0 %v8264_v20 }
0x2688   :  { %8815 = vrot.lane.b32.xlu1 %v20574_v5, %s18981_s14 }
0x268c   :  { %8929 = vrot.lane.b32.xlu1 %v20459_v43, %s18984_s17 }
0x2690   :  { %8927 = vrot.lane.b32.xlu1 %v20465_v36, %s18984_s17 }
0x2692   :  { %8739 = vrot.lane.b32.xlu0 %v20576_v61, %s18981_s14 }
0x2696   :  { %8931 = vrot.lane.b32.xlu0 %v20452_v13, %s18984_s17 }
0x26a0   :  { %v8248_v48 = vpop.xlane.xlu0 %8247 }
0x26a1   :  { %18703 = vrcp.f32 %v8248_v48 }
0x26a4   :  { %v8245_v37 = vpop.xlane.xlu1 %8244 }
0x26a5   :  { %18705 = vrcp.f32 %v8245_v37 }
0x26ae   :  { %v18704_v5 = vpop.eup %18703 }
0x26af   :  { %v8276_v43 = vmul.f32 %v18704_v5, %v20636_v44 }
0x26b1   :  { %17933 = vmatmul.mubr.msk.f32.vlgmr.msra.gmra.mxu1 %vm364_vm4, %v8276_v43 }
0x26b2   :  { %v18706_v36 = vpop.eup %18705  ;;  %17941 = vmatpush3.msra.mxu1 %v8512_v35  ;;  %17942 = vmatprep.mubr.msk.f32.mxu1 %vm18977_vm3, %v18975_v21 }
0x26b3   :  { %v8275_v61 = vmul.f32 %v18706_v36, %v20640_v63  ;;  %17950 = vmatprep.subr.mxu1 %v18975_v21 }
0x26b5   :  { %17928 = vmatmul.mubr.msk.f32.vlgmr.msra.gmra.mxu0 %vm364_vm4, %v8275_v61 }
0x26b6   :  { %17936 = vmatpush3.msra.mxu0 %v8436_v46  ;;  %17937 = vmatprep.mubr.msk.f32.mxu0 %vm18977_vm3, %v18975_v21 }
0x26b7   :  { %17945 = vmatprep.subr.mxu0 %v18975_v21 }
0x26f8   :  { %v8251_v13 = vpop.xlane.xlu1 %8250 }
0x26f9   :  { %18707 = vrcp.f32 %v8251_v13 }
0x26fc   :  { %v8257_v44 = vpop.xlane.xlu1 %8256 }
0x26fd   :  { %18709 = vrcp.f32 %v8257_v44  ;;  %v8254_v6 = vpop.xlane.xlu0 %8253 }
0x26fe   :  { %18711 = vrcp.f32 %v8254_v6 }
0x2700   :  { %v8263_v30 = vpop.xlane.xlu1 %8262 }
0x2701   :  { %18713 = vrcp.f32 %v8263_v30  ;;  %v8260_v49 = vpop.xlane.xlu0 %8259 }
0x2702   :  { %18715 = vrcp.f32 %v8260_v49 }
0x2704   :  { %v8816_v57 = vpop.permute.xlu1 %8815 }
0x2705   :  { %v8266_v63 = vpop.xlane.xlu0 %8265 }
0x2706   :  { %v18708_v45 = vpop.eup %18707  ;;  %18717 = vrcp.f32 %v8266_v63 }
0x2707   :  { %v8277_v27 = vmul.f32 %v18708_v45, %v18692_v47  ;;  %v20719_v45 = vld [vmem:[%s21972_s10] sm:$0xff] }
0x2708   :  { %v8930_v50 = vpop.permute.xlu1 %8929 }
0x2709   :  { %17938 = vmatmul.mubr.msk.f32.vlgmr.msra.gmra.mxu0 %vm364_vm4, %v8277_v27  ;;  %v8740_v22 = vpop.permute.xlu0 %8739  ;;  %v8924_v27 = vrot.slane %v20719_v45, %v19440_v17 }
0x270a   :  { %v18710_v12 = vpop.eup %18709  ;;  %17946 = vmatpush3.msra.mxu0 %v8588_v1  ;;  %17947 = vmatprep.mubr.msk.f32.mxu0 %vm18977_vm3, %v18975_v21 }
0x270b   :  { %v18712_v8 = vpop.eup %18711  ;;  %17955 = vmatprep.subr.mxu0 %v18975_v21  ;;  %v8279_v29 = vmul.f32 %v18710_v12, %v18694_v0 }
0x270c   :  { %v8278_v56 = vmul.f32 %v18712_v8, %v18696_v54  ;;  %v8928_v26 = vpop.permute.xlu1 %8927 }
0x270d   :  { %17948 = vmatmul.mubr.msk.f32.vlgmr.msra.gmra.mxu0 %vm364_vm4, %v8279_v29  ;;  %v8932_v4 = vpop.permute.xlu0 %8931 }
0x270e   :  { %v18714_v15 = vpop.eup %18713  ;;  %17943 = vmatmul.mubr.msk.f32.vlgmr.msra.gmra.mxu1 %vm364_vm4, %v8278_v56  ;;  %17956 = vmatpush3.msra.mxu0 %v8740_v22 }
0x270f   :  { %v18716_v11 = vpop.eup %18715  ;;  %17951 = vmatpush3.msra.mxu1 %v8664_v31  ;;  %17952 = vmatprep.mubr.msk.f32.mxu1 %vm18977_vm3, %v18975_v21  ;;  %v8281_v34 = vmul.f32 %v18714_v15, %v20649_v53 }
0x2710   :  { %17957 = vmatprep.mubr.msk.f32.mxu0 %vm18977_vm3, %v18975_v21  ;;  %17960 = vmatprep.subr.mxu1 %v18975_v21  ;;  %v8280_v3 = vmul.f32 %v18716_v11, %v20651_v25 }
0x2711   :  { %17958 = vmatmul.mubr.msk.f32.vlgmr.msra.gmra.mxu0 %vm364_vm4, %v8281_v34  ;;  %17965 = vmatprep.subr.mxu0 %v8932_v4 }
0x2712   :  { %17953 = vmatmul.mubr.msk.f32.vlgmr.msra.gmra.mxu1 %vm364_vm4, %v8280_v3  ;;  %17966 = vmatpush3.msra.mxu0 %v8932_v4 }
0x2713   :  { %v18718_v52 = vpop.eup %18717  ;;  %17961 = vmatpush3.msra.mxu1 %v8816_v57  ;;  %17962 = vmatprep.mubr.msk.f32.mxu1 %vm18977_vm3, %v18975_v21 }
0x2714   :  { %v8282_v28 = vmul.f32 %v18718_v52, %v20657_v55  ;;  %17967 = vmatprep.subr.mxu0 %v8930_v50 }
0x2715   :  { %17968 = vmatpush3.msra.mxu0 %v8930_v50 }
0x2716   :  { %17963 = vmatmul.mubr.msk.f32.vlgmr.msra.gmra.mxu1 %vm364_vm4, %v8282_v28  ;;  %17969 = vmatprep.subr.mxu0 %v8928_v26 }
0x2717   :  { %17970 = vmatpush3.msra.mxu0 %v8928_v26 }
0x2771   :  { %v8431_v47 = vpop.f32.mrf.mxu1 }
0x2773   :  { %v17934_v59 = vpop.f32.mrf.mxu1 }
0x2775   :  { %v8355_v0 = vpop.f32.mrf.mxu0 }
0x2777   :  { %v17929_v54 = vpop.f32.mrf.mxu0 }
0x2778   :  { %v5806_v54 = vld [vmem:[%s21970_s8 + $0x28] sm:$0xff] }
0x27c9   :  { %v8507_v42 = vpop.f32.mrf.mxu0 }
0x27cb   :  { %v17939_v58 = vpop.f32.mrf.mxu0 }
0x27cc   :  { %v9152_v58 = vld [vmem:[%s21971_s9 + $0x38] sm:$0xff] }
0x27cd   :  { %v8659_v53 = vpop.f32.mrf.mxu0 }
0x27ce   :  { %v8583_v25 = vpop.f32.mrf.mxu1  ;;  %8901 = vrot.lane.b32.xlu1 %v8659_v53, %s18985_s0  ;;  %v9151_v53 = vld [vmem:[%s21971_s9 + $0x30] sm:$0xff] }
0x27cf   :  { %8895 = vrot.lane.b32.xlu0 %v8583_v25, %s18972_s29  ;;  %v17949_v23 = vpop.f32.mrf.mxu0  ;;  %v9150_v25 = vld [vmem:[%s21971_s9 + $0x28] sm:$0xff] }
0x27d0   :  { %v17944_v16 = vpop.f32.mrf.mxu1  ;;  %v9149_v23 = vld [vmem:[%s21971_s9 + $0x20] sm:$0xff] }
0x27d1   :  { %v8811_v55 = vpop.f32.mrf.mxu0 }
0x27d2   :  { %v8735_v20 = vpop.f32.mrf.mxu1  ;;  %8909 = vrot.lane.b32.xlu1 %v8811_v55, %s18986_s18 }
0x27d3   :  { %8893 = vrot.lane.b32.xlu0 %v8507_v42, %s18972_s29  ;;  %v17959_v46 = vpop.f32.mrf.mxu0  ;;  %v5803_v42 = vld [vmem:[%s21970_s8 + $0x10] sm:$0xff] }
0x27d4   :  { %v17954_v35 = vpop.f32.mrf.mxu1 }
0x27d6   :  { %v8887_v1 = vpop.f32.mrf.mxu1 }
0x27d7   :  { %8903 = vrot.lane.b32.xlu0 %v8735_v20, %s18985_s0  ;;  %8911 = vrot.lane.b32.xlu1 %v8887_v1, %s18986_s18 }
0x27d8   :  { %v17964_v31 = vpop.f32.mrf.mxu1 }
0x27d9   :  { %v9049_v31 = vrot.slane %v20508_v10, %v19405_v41 }
0x27db   :  { %8925 = vrot.lane.b32.xlu0 %v20473_v62, %s18984_s17 }
0x2840   :  { %v8902_v48 = vpop.permute.xlu1 %8901 }
0x2841   :  { %v8896_v37 = vpop.permute.xlu0 %8895 }
0x2842   :  { %v8916_v6 = vsel %vm364_vm4, %v8431_v47, %v8896_v37 }
0x2844   :  { %v8910_v43 = vpop.permute.xlu1 %8909 }
0x2845   :  { %v8894_v5 = vpop.permute.xlu0 %8893 }
0x2846   :  { %v8915_v36 = vsel %vm364_vm4, %v8355_v0, %v8894_v5  ;;  %v5809_v0 = vld [vmem:[%s21970_s8 + $0x40] sm:$0xff]  ;;  %v9055_v5 = vrot.slane %v20508_v10, %v19465_v51 }
0x2847   :  { %v8917_v61 = vsel %vm1693_vm5, %v8915_v36, %v8902_v48 }
0x2848   :  { %v8919_v13 = vsel %vm1696_vm6, %v8917_v61, %v8910_v43 }
0x2849   :  { %17973 = vmatprep.mubr.msk.f32.mxu0 %vm266_vm2, %v8919_v13  ;;  %v8904_v44 = vpop.permute.xlu0 %8903  ;;  %v8912_v49 = vpop.permute.xlu1 %8911 }
0x284a   :  { %v8918_v30 = vsel %vm1693_vm5, %v8916_v6, %v8904_v44 }
0x284b   :  { %v8920_v62 = vsel %vm1696_vm6, %v8918_v30, %v8912_v49  ;;  %v9148_v30 = vld [vmem:[%s21971_s9 + $0x18] sm:$0xff]  ;;  %v9147_v49 = vld [vmem:[%s21971_s9 + $0x10] sm:$0xff] }
0x284d   :  { %v8926_v63 = vpop.permute.xlu0 %8925 }
0x284e   :  { %17971 = vmatprep.subr.mxu0 %v8926_v63 }
0x284f   :  { %17972 = vmatpush3.msra.mxu0 %v8926_v63  ;;  %v9146_v63 = vld [vmem:[%s21971_s9 + $0x8] sm:$0xff] }
0x2850   :  { %17974 = vmatmul.mubr.msk.f32.vlgmr.msra.gmra.mxu0 %vm266_vm2, %v8920_v62  ;;  %17987 = vmatprep.subr.mxu0 %v9152_v58  ;;  %v9145_v62 = vld [vmem:[%s21971_s9] sm:$0xff] }
0x2851   :  { %17988 = vmatpush3.msra.mxu0 %v9152_v58 }
0x2852   :  { %17989 = vmatprep.subr.mxu0 %v9151_v53 }
0x2853   :  { %17990 = vmatpush3.msra.mxu0 %v9151_v53 }
0x2854   :  { %17991 = vmatprep.subr.mxu0 %v9150_v25 }
0x2855   :  { %17992 = vmatpush3.msra.mxu0 %v9150_v25  ;;  %v20787_v25 = vld [vmem:[%s21970_s8 + $0xa8] sm:$0xff] }
0x2856   :  { %17993 = vmatprep.subr.mxu0 %v9149_v23 }
0x2857   :  { %17994 = vmatpush3.msra.mxu0 %v9149_v23  ;;  %v20792_v23 = vld [vmem:[%s21970_s8 + $0x90] sm:$0xff] }
0x2858   :  { %17995 = vmatprep.subr.mxu0 %v9148_v30 }
0x2859   :  { %17996 = vmatpush3.msra.mxu0 %v9148_v30 }
0x285a   :  { %17997 = vmatprep.subr.mxu0 %v9147_v49 }
0x285b   :  { %17998 = vmatpush3.msra.mxu0 %v9147_v49 }
0x285c   :  { %17999 = vmatprep.subr.mxu0 %v9146_v63 }
0x285d   :  { %18000 = vmatpush3.msra.mxu0 %v9146_v63  ;;  %v20830_v63 = vld [vmem:[%s21972_s10 + $0x10] sm:$0xff] }
0x285e   :  { %18001 = vmatprep.subr.mxu0 %v9145_v62 }
0x285f   :  { %18002 = vmatpush3.msra.mxu0 %v9145_v62 }
0x2860   :  { %18027 = vmatprep.subr.mxu0 %v18975_v21 }
0x2910   :  { %v17975_v12 = vpop.f32.mrf.mxu0 }
0x2911   :  { %v9015_v8 = vadd.f32 %v17975_v12, %v8924_v27 }
0x2912   :  { %v9009_v29 = vpop.f32.mrf.mxu0 }
0x2913   :  { %v9019_v56 = vadd.f32 %v9015_v8, %v20514_v39  ;;  %v9010_v22 = vadd.f32 %v9009_v29, %v8924_v27  ;;  %v9061_v27 = vrot.slane %v20719_v45, %v19443_v18 }
0x2915   :  { %v9018_v15 = vadd.f32 %v9010_v22, %v20512_v33  ;;  %v9023_v11 = vsel %vm266_vm2, %v9019_v56, 0.0  ;;  %v5812_v33 = vld [vmem:[%s21970_s8 + $0x58] sm:$0xff] }
0x2916   :  { %9024 = vadd.xlane.f32.xlu1 %v9023_v11  ;;  %17976 = vmatprep.subr.mxu1 %v5812_v33  ;;  %v9156_v11 = vrot.slane %v20719_v45, %v19512_v19 }
0x2917   :  { %v9020_v34 = vsel %vm266_vm2, %v9018_v15, 0.0  ;;  %17977 = vmatpush3.msra.mxu1 %v5812_v33 }
0x2918   :  { %9021 = vadd.xlane.f32.xlu0 %v9020_v34  ;;  %17978 = vmatprep.subr.mxu1 %v5809_v0 }
0x2919   :  { %17979 = vmatpush3.msra.mxu1 %v5809_v0 }
0x291a   :  { %17980 = vmatprep.subr.mxu1 %v5806_v54 }
0x291b   :  { %17981 = vmatpush3.msra.mxu1 %v5806_v54 }
0x291c   :  { %17982 = vmatprep.subr.mxu1 %v5803_v42 }
0x291d   :  { %17983 = vmatpush3.msra.mxu1 %v5803_v42 }
0x291e   :  { %18006 = vmatprep.subr.mxu1 %v20787_v25 }
0x299f   :  { %v9025_v3 = vpop.xlane.xlu1 %9024 }
0x29a0   :  { %v9027_v57 = vmul.f32 0.03125, %v9025_v3 }
0x29a1   :  { %v9022_v52 = vpop.xlane.xlu0 %9021 }
0x29a2   :  { %v9026_v28 = vmul.f32 0.03125, %v9022_v52  ;;  %v9029_v50 = vsub.f32 %v9019_v56, %v9027_v57 }
0x29a4   :  { %v9028_v4 = vsub.f32 %v9018_v15, %v9026_v28  ;;  %v9031_v59 = vmul.f32 %v9029_v50, %v9029_v50 }
0x29a6   :  { %v9030_v26 = vmul.f32 %v9028_v4, %v9028_v4  ;;  %v9035_v39 = vsel %vm266_vm2, %v9031_v59, 0.0 }
0x29a8   :  { %v9032_v47 = vsel %vm266_vm2, %v9030_v26, 0.0 }
0x29a9   :  { %9033 = vadd.xlane.f32.xlu0 %v9032_v47 }
0x29ad   :  { %9036 = vadd.xlane.f32.xlu0 %v9035_v39 }
0x2a32   :  { %v9034_v16 = vpop.xlane.xlu0 %9033 }
0x2a33   :  { %v9038_v55 = vmul.f32 0.03125, %v9034_v16  ;;  %v20799_v16 = vld [vmem:[%s21970_s8 + $0x78] sm:$0xff] }
0x2a35   :  { %v9040_v20 = vadd.f32 1e-05, %v9038_v55  ;;  %v20806_v55 = vld [vmem:[%s21970_s8 + $0x60] sm:$0xff] }
0x2a36   :  { %v9037_v46 = vpop.xlane.xlu0 %9036 }
0x2a37   :  { %18719 = vrsqrt.f32 %v9040_v20  ;;  %v9039_v35 = vmul.f32 0.03125, %v9037_v46 }
0x2a39   :  { %v9041_v1 = vadd.f32 1e-05, %v9039_v35 }
0x2a3b   :  { %18721 = vrsqrt.f32 %v9041_v1 }
0x2a44   :  { %v18720_v48 = vpop.eup %18719 }
0x2a45   :  { %v9044_v37 = vmul.f32 %v18720_v48, %v9028_v4 }
0x2a47   :  { %v9050_v43 = vmul.f32 %v9049_v31, %v9044_v37 }
0x2a48   :  { %v18722_v36 = vpop.eup %18721 }
0x2a49   :  { %v9045_v61 = vmul.f32 %v18722_v36, %v9029_v50  ;;  %v9056_v13 = vadd.f32 %v9055_v5, %v9050_v43 }
0x2a4b   :  { %v9051_v44 = vmul.f32 %v9049_v31, %v9045_v61  ;;  %17984 = vmatprep.mubr.msk.f32.mxu1 %vm266_vm2, %v9056_v13 }
0x2a4d   :  { %v9057_v6 = vadd.f32 %v9055_v5, %v9051_v44  ;;  %v9269_v5 = vrot.slane %v20508_v10, %v19474_v40  ;;  %v9275_v44 = vrot.slane %v20508_v10, %v19440_v17  ;;  %v9297_v10 = vrot.slane %v20830_v63, %v19168_v32 }
0x2a4f   :  { %17985 = vmatmul.mubr.msk.f32.vlgmr.msra.gmra.mxu1 %vm266_vm2, %v9057_v6 }
0x2a50   :  { %18007 = vmatpush3.msra.mxu1 %v20787_v25 }
0x2a51   :  { %18008 = vmatprep.subr.mxu1 %v20792_v23 }
0x2a52   :  { %18009 = vmatpush3.msra.mxu1 %v20792_v23 }
0x2a53   :  { %18010 = vmatprep.subr.mxu1 %v20799_v16 }
0x2a54   :  { %18011 = vmatpush3.msra.mxu1 %v20799_v16 }
0x2a55   :  { %18012 = vmatprep.subr.mxu1 %v20806_v55 }
0x2a56   :  { %18013 = vmatpush3.msra.mxu1 %v20806_v55 }
0x2a57   :  { %18017 = vmatprep.subr.mxu1 %v18975_v21 }
0x2b0f   :  { %v17986_v12 = vpop.f32.mrf.mxu1 }
0x2b10   :  { %v9140_v8 = vadd.f32 %v17986_v12, %v9061_v27 }
0x2b11   :  { %v9134_v29 = vpop.f32.mrf.mxu1 }
0x2b12   :  { %v9135_v56 = vadd.f32 %v9134_v29, %v9061_v27  ;;  %v9144_v15 = vmax.f32 %v9140_v8, 0.0 }
0x2b14   :  { %v9143_v22 = vmax.f32 %v9135_v56, 0.0 }
0x2b16   :  { %18003 = vmatprep.mubr.msk.f32.mxu0 %vm1940_vm7, %v9143_v22 }
0x2b17   :  { %18004 = vmatmul.mubr.msk.f32.vlgmr.msra.gmra.mxu0 %vm1940_vm7, %v9144_v15 }
0x2b18   :  { %18029 = vmatprep.mubr.msk.f32.mxu0 %vm18977_vm3, %v18975_v21 }
0x2bd7   :  { %v18005_v34 = vpop.f32.mrf.mxu0 }
0x2bd8   :  { %v9235_v3 = vadd.f32 %v18005_v34, %v9156_v11 }
0x2bd9   :  { %v9229_v57 = vpop.f32.mrf.mxu0 }
0x2bda   :  { %v9239_v52 = vadd.f32 %v9235_v3, %v9057_v6  ;;  %v9230_v28 = vadd.f32 %v9229_v57, %v9156_v11 }
0x2bdc   :  { %v9238_v50 = vadd.f32 %v9230_v28, %v9056_v13  ;;  %v9243_v4 = vsel %vm266_vm2, %v9239_v52, 0.0 }
0x2bdd   :  { %9244 = vadd.xlane.f32.xlu0 %v9243_v4 }
0x2bde   :  { %v9240_v26 = vsel %vm266_vm2, %v9238_v50, 0.0 }
0x2bdf   :  { %9241 = vadd.xlane.f32.xlu1 %v9240_v26 }
0x2c66   :  { %v9245_v47 = vpop.xlane.xlu0 %9244 }
0x2c67   :  { %v9247_v59 = vmul.f32 0.03125, %v9245_v47 }
0x2c68   :  { %v9242_v39 = vpop.xlane.xlu1 %9241 }
0x2c69   :  { %v9249_v33 = vsub.f32 %v9239_v52, %v9247_v59  ;;  %v9246_v0 = vmul.f32 0.03125, %v9242_v39 }
0x2c6b   :  { %v9248_v54 = vsub.f32 %v9238_v50, %v9246_v0  ;;  %v9251_v42 = vmul.f32 %v9249_v33, %v9249_v33 }
0x2c6d   :  { %v9255_v45 = vsel %vm266_vm2, %v9251_v42, 0.0  ;;  %v9250_v58 = vmul.f32 %v9248_v54, %v9248_v54 }
0x2c6e   :  { %9256 = vadd.xlane.f32.xlu0 %v9255_v45 }
0x2c6f   :  { %v9252_v53 = vsel %vm266_vm2, %v9250_v58, 0.0 }
0x2c70   :  { %9253 = vadd.xlane.f32.xlu1 %v9252_v53 }
0x2cf7   :  { %v9257_v20 = vpop.xlane.xlu0 %9256 }
0x2cf8   :  { %v9259_v46 = vmul.f32 0.03125, %v9257_v20 }
0x2cf9   :  { %v9254_v35 = vpop.xlane.xlu1 %9253 }
0x2cfa   :  { %v9261_v1 = vadd.f32 1e-05, %v9259_v46  ;;  %v9258_v31 = vmul.f32 0.03125, %v9254_v35 }
0x2cfc   :  { %18723 = vrsqrt.f32 %v9261_v1  ;;  %v9260_v48 = vadd.f32 1e-05, %v9258_v31 }
0x2cfe   :  { %18725 = vrsqrt.f32 %v9260_v48 }
0x2d09   :  { %v18724_v37 = vpop.eup %18723 }
0x2d0a   :  { %v9265_v43 = vmul.f32 %v18724_v37, %v9249_v33 }
0x2d0b   :  { %v18726_v36 = vpop.eup %18725 }
0x2d0c   :  { %v9264_v61 = vmul.f32 %v18726_v36, %v9248_v54  ;;  %v9271_v13 = vmul.f32 %v9269_v5, %v9265_v43 }
0x2d0e   :  { %v9270_v6 = vmul.f32 %v9269_v5, %v9264_v61  ;;  %v20819_v49 = vadd.f32 %v9275_v44, %v9271_v13 }
0x2d10   :  { %v20817_v30 = vadd.f32 %v9275_v44, %v9270_v6 }
0x2d12   :  { %18014 = vmatprep.mubr.msk.f32.mxu1 %vm266_vm2, %v20817_v30 }
0x2d13   :  { %18015 = vmatmul.mubr.msk.f32.vlgmr.msra.gmra.mxu1 %vm266_vm2, %v20819_v49 }
0x2d14   :  { %18019 = vmatprep.mubr.msk.f32.mxu1 %vm18977_vm3, %v18975_v21 }
0x2dd3   :  { %v18016_v62 = vpop.f32.mrf.mxu1 }
0x2dd4   :  { %v20834_v27 = vadd.f32 %v18016_v62, %v9297_v10 }
0x2dd5   :  { %v9370_v12 = vpop.f32.mrf.mxu1 }
0x2dd6   :  { %v20836_v8 = vadd.f32 %v9370_v12, %v9297_v10  ;;  %9383 = vrot.lane.b32.xlu0 %v20834_v27, %s18979_s27 }
0x2dd8   :  { %9381 = vrot.lane.b32.xlu1 %v20836_v8, %s18979_s27 }
0x2dda   :  { %9389 = vrot.lane.b32.xlu0 %v20836_v8, %s18980_s30 }
0x2ddc   :  { %9385 = vrot.lane.b32.xlu1 %v20836_v8, %s18978_s26 }
0x2dde   :  { %9393 = vrot.lane.b32.xlu0 %v20836_v8, %s18981_s14 }
0x2de0   :  { %9387 = vrot.lane.b32.xlu1 %v20834_v27, %s18978_s26 }
0x2de4   :  { %9391 = vrot.lane.b32.xlu1 %v20834_v27, %s18980_s30 }
0x2de8   :  { %9469 = vrot.lane.b32.xlu1 %v20834_v27, %s18981_s14 }
0x2e48   :  { %v20854_v29 = vpop.permute.xlu0 %9383 }
0x2e49   :  { %9621 = vrot.lane.b32.xlu1 %v20854_v29, %s18981_s14 }
0x2e4a   :  { %v20858_v56 = vpop.permute.xlu1 %9381 }
0x2e4b   :  { %9545 = vrot.lane.b32.xlu0 %v20858_v56, %s18981_s14 }
0x2e4c   :  { %v20862_v22 = vpop.permute.xlu0 %9389 }
0x2e4e   :  { %v20864_v15 = vpop.permute.xlu1 %9385 }
0x2e4f   :  { %9697 = vrot.lane.b32.xlu0 %v20864_v15, %s18981_s14 }
0x2e50   :  { %v9394_v11 = vpop.permute.xlu0 %9393 }
0x2e51   :  { %18018 = vmatpush3.xpose.msk.msra.mxu1 %vm364_vm4, %v9394_v11 }
0x2e52   :  { %v20869_v34 = vpop.permute.xlu1 %9387  ;;  %18022 = vmatprep.subr.mxu1 %v18975_v21 }
0x2e53   :  { %9849 = vrot.lane.b32.xlu0 %v20862_v22, %s18981_s14  ;;  %9773 = vrot.lane.b32.xlu1 %v20869_v34, %s18981_s14 }
0x2e54   :  { %18020 = vmatmul.mubr.msk.f32.vlgmr.msra.gmra.mxu1 %vm364_vm4, %v20836_v8 }
0x2e55   :  { %18024 = vmatprep.mubr.msk.f32.mxu1 %vm18977_vm3, %v18975_v21 }
0x2e56   :  { %v20880_v3 = vpop.permute.xlu1 %9391 }
0x2e57   :  { %9925 = vrot.lane.b32.xlu1 %v20880_v3, %s18981_s14 }
0x2e5a   :  { %v9470_v57 = vpop.permute.xlu1 %9469 }
0x2e5b   :  { %18023 = vmatpush3.xpose.msk.msra.mxu1 %vm364_vm4, %v9470_v57 }
0x2e5c   :  { %18032 = vmatprep.subr.mxu1 %v18975_v21 }
0x2e5e   :  { %18025 = vmatmul.mubr.msk.f32.vlgmr.msra.gmra.mxu1 %vm364_vm4, %v20834_v27 }
0x2e5f   :  { %18034 = vmatprep.mubr.msk.f32.mxu1 %vm18977_vm3, %v18975_v21 }
0x2ebb   :  { %v9622_v52 = vpop.permute.xlu1 %9621 }
0x2ebc   :  { %18033 = vmatpush3.xpose.msk.msra.mxu1 %vm364_vm4, %v9622_v52 }
0x2ebd   :  { %v9546_v28 = vpop.permute.xlu0 %9545  ;;  %18042 = vmatprep.subr.mxu1 %v18975_v21 }
0x2ebe   :  { %18028 = vmatpush3.xpose.msk.msra.mxu0 %vm364_vm4, %v9546_v28 }
0x2ebf   :  { %18035 = vmatmul.mubr.msk.f32.vlgmr.msra.gmra.mxu1 %vm364_vm4, %v20854_v29  ;;  %18037 = vmatprep.subr.mxu0 %v18975_v21 }
0x2ec0   :  { %18044 = vmatprep.mubr.msk.f32.mxu1 %vm18977_vm3, %v18975_v21 }
0x2ec1   :  { %18030 = vmatmul.mubr.msk.f32.vlgmr.msra.gmra.mxu0 %vm364_vm4, %v20858_v56  ;;  %v9698_v50 = vpop.permute.xlu0 %9697 }
0x2ec2   :  { %18038 = vmatpush3.xpose.msk.msra.mxu0 %vm364_vm4, %v9698_v50  ;;  %18039 = vmatprep.mubr.msk.f32.mxu0 %vm18977_vm3, %v18975_v21 }
0x2ec3   :  { %18047 = vmatprep.subr.mxu0 %v18975_v21 }
0x2ec5   :  { %18040 = vmatmul.mubr.msk.f32.vlgmr.msra.gmra.mxu0 %vm364_vm4, %v20864_v15  ;;  %v9850_v4 = vpop.permute.xlu0 %9849  ;;  %v9774_v26 = vpop.permute.xlu1 %9773 }
0x2ec6   :  { %18043 = vmatpush3.xpose.msk.msra.mxu1 %vm364_vm4, %v9774_v26  ;;  %18048 = vmatpush3.xpose.msk.msra.mxu0 %vm364_vm4, %v9850_v4 }
0x2ec7   :  { %18049 = vmatprep.mubr.msk.f32.mxu0 %vm18977_vm3, %v18975_v21  ;;  %18052 = vmatprep.subr.mxu1 %v18975_v21 }
0x2ec8   :  { %18057 = vmatprep.subr.mxu0 %v18975_v21 }
0x2ec9   :  { %18045 = vmatmul.mubr.msk.f32.vlgmr.msra.gmra.mxu1 %vm364_vm4, %v20869_v34  ;;  %18050 = vmatmul.mubr.msk.f32.vlgmr.msra.gmra.mxu0 %vm364_vm4, %v20862_v22  ;;  %v9926_v47 = vpop.permute.xlu1 %9925 }
0x2eca   :  { %18053 = vmatpush3.xpose.msk.msra.mxu1 %vm364_vm4, %v9926_v47  ;;  %18054 = vmatprep.mubr.msk.f32.mxu1 %vm18977_vm3, %v18975_v21 }
0x2ecb   :  { %18062 = vmatprep.subr.mxu1 %v18975_v21  ;;  %18059 = vmatprep.mubr.msk.f32.mxu0 %vm18977_vm3, %v18975_v21 }
0x2ecd   :  { %18055 = vmatmul.mubr.msk.f32.vlgmr.msra.gmra.mxu1 %vm364_vm4, %v20880_v3 }
0x2ece   :  { %18064 = vmatprep.mubr.msk.f32.mxu1 %vm18977_vm3, %v18975_v21 }
0x2f14   :  { %v9465_v59 = vpop.f32.mrf.mxu1 }
0x2f15   :  { %v9466_v39 = vadd.f32 %v9465_v59, %v20317_v7 }
0x2f16   :  { %v18021_v33 = vpop.f32.mrf.mxu1 }
0x2f17   :  { %v10001_v0 = vsel %vm364_vm4, %v9466_v39, -inf }
0x2f18   :  { %10002 = vmax.xlane.f32.xlu0 %v10001_v0 }
0x2f1e   :  { %v9541_v54 = vpop.f32.mrf.mxu1 }
0x2f1f   :  { %v9542_v42 = vadd.f32 %v9541_v54, %v20322_v38 }
0x2f20   :  { %v18026_v45 = vpop.f32.mrf.mxu1 }
0x2f21   :  { %v10004_v58 = vsel %vm364_vm4, %v9542_v42, -inf }
0x2f22   :  { %10005 = vmax.xlane.f32.xlu1 %v10004_v58 }
0x2f7f   :  { %v9693_v53 = vpop.f32.mrf.mxu1 }
0x2f80   :  { %v9694_v31 = vadd.f32 %v9693_v53, %v20322_v38 }
0x2f81   :  { %v9617_v20 = vpop.f32.mrf.mxu0  ;;  %v18036_v46 = vpop.f32.mrf.mxu1 }
0x2f82   :  { %v9618_v35 = vadd.f32 %v9617_v20, %v20317_v7  ;;  %v10010_v61 = vsel %vm364_vm4, %v9694_v31, -inf }
0x2f83   :  { %v18031_v1 = vpop.f32.mrf.mxu0 }
0x2f84   :  { %v10007_v48 = vsel %vm364_vm4, %v9618_v35, -inf }
0x2f85   :  { %10008 = vmax.xlane.f32.xlu0 %v10007_v48  ;;  %v9769_v37 = vpop.f32.mrf.mxu0 }
0x2f86   :  { %v9770_v5 = vadd.f32 %v9769_v37, %v20317_v7 }
0x2f87   :  { %v18041_v43 = vpop.f32.mrf.mxu0 }
0x2f88   :  { %v10013_v36 = vsel %vm364_vm4, %v9770_v5, -inf }
0x2f89   :  { %v9921_v13 = vpop.f32.mrf.mxu0  ;;  %10014 = vmax.xlane.f32.xlu1 %v10013_v36  ;;  %10011 = vmax.xlane.f32.xlu0 %v10010_v61  ;;  %v9845_v44 = vpop.f32.mrf.mxu1 }
0x2f8a   :  { %v9922_v6 = vadd.f32 %v9921_v13, %v20317_v7  ;;  %v9846_v10 = vadd.f32 %v9845_v44, %v20322_v38 }
0x2f8b   :  { %v18046_v62 = vpop.f32.mrf.mxu1  ;;  %v18051_v12 = vpop.f32.mrf.mxu0 }
0x2f8c   :  { %v10019_v11 = vsel %vm364_vm4, %v9922_v6, -inf  ;;  %v10016_v57 = vsel %vm364_vm4, %v9846_v10, -inf }
0x2f8d   :  { %10020 = vmax.xlane.f32.xlu1 %v10019_v11  ;;  %10017 = vmax.xlane.f32.xlu0 %v10016_v57  ;;  %v9997_v52 = vpop.f32.mrf.mxu1 }
0x2f8e   :  { %v9998_v28 = vadd.f32 %v9997_v52, %v20322_v38 }
0x2f8f   :  { %v18056_v50 = vpop.f32.mrf.mxu1 }
0x2f90   :  { %v10022_v4 = vsel %vm364_vm4, %v9998_v28, -inf }
0x2f91   :  { %10023 = vmax.xlane.f32.xlu0 %v10022_v4 }
0x2f9e   :  { %10089 = vrot.lane.b32.xlu1 %v20836_v8, %s18983_s2 }
0x2fa1   :  { %v10003_v59 = vpop.xlane.xlu0 %10002 }
0x2fa2   :  { %10241 = vrot.lane.b32.xlu1 %v20858_v56, %s18983_s2  ;;  %v10025_v33 = vsub.f32 %v9466_v39, %v10003_v59 }
0x2fa4   :  { %v10033_v0 = vmul.f32 1.442695, %v10025_v33 }
0x2fa6   :  { %10317 = vrot.lane.b32.xlu1 %v20854_v29, %s18983_s2 }
0x2fa7   :  { %10165 = vrot.lane.b32.xlu0 %v20834_v27, %s18983_s2 }
0x2faa   :  { %10469 = vrot.lane.b32.xlu1 %v20869_v34, %s18983_s2 }
0x2fab   :  { %10393 = vrot.lane.b32.xlu0 %v20864_v15, %s18983_s2  ;;  %v10006_v26 = vpop.xlane.xlu1 %10005 }
0x2fac   :  { %v10026_v47 = vsub.f32 %v9542_v42, %v10006_v26 }
0x2fae   :  { %v10035_v8 = vmul.f32 1.442695, %v10026_v47 }
0x2fb0   :  { %18727 = vpow2.f32 %v10035_v8 }
0x2fb1   :  { %18729 = vpow2.f32 %v10033_v0 }
0x2fbd   :  { %v20954_v56 = vpop.eup %18727 }
0x2fbe   :  { %v10052_v29 = vsel %vm364_vm4, %v20954_v56, 0.0  ;;  %v20958_v27 = vpop.eup %18729 }
0x2fbf   :  { %v10049_v34 = vsel %vm364_vm4, %v20958_v27, 0.0 }
0x2fca   :  { %10053 = vadd.xlane.f32.xlu0 %v10052_v29 }
0x2fce   :  { %10050 = vadd.xlane.f32.xlu1 %v10049_v34 }
0x300e   :  { %v10009_v15 = vpop.xlane.xlu0 %10008 }
0x300f   :  { %v10027_v54 = vsub.f32 %v9618_v35, %v10009_v15 }
0x3011   :  { %v10037_v42 = vmul.f32 1.442695, %v10027_v54 }
0x3012   :  { %v10012_v39 = vpop.xlane.xlu0 %10011  ;;  %v10015_v45 = vpop.xlane.xlu1 %10014 }
0x3013   :  { %18731 = vpow2.f32 %v10037_v42  ;;  %v10028_v58 = vsub.f32 %v9694_v31, %v10012_v39  ;;  %v10029_v53 = vsub.f32 %v9770_v5, %v10015_v45 }
0x3015   :  { %v10039_v20 = vmul.f32 1.442695, %v10028_v58  ;;  %v10041_v46 = vmul.f32 1.442695, %v10029_v53 }
0x3016   :  { %v10018_v1 = vpop.xlane.xlu0 %10017  ;;  %v10021_v48 = vpop.xlane.xlu1 %10020 }
0x3017   :  { %18733 = vpow2.f32 %v10039_v20  ;;  %v10030_v37 = vsub.f32 %v9846_v10, %v10018_v1  ;;  %v10031_v43 = vsub.f32 %v9922_v6, %v10021_v48 }
0x3018   :  { %18735 = vpow2.f32 %v10041_v46 }
0x3019   :  { %v10043_v36 = vmul.f32 1.442695, %v10030_v37  ;;  %v10045_v61 = vmul.f32 1.442695, %v10031_v43 }
0x301a   :  { %v10024_v13 = vpop.xlane.xlu0 %10023  ;;  %v10090_v44 = vpop.permute.xlu1 %10089 }
0x301b   :  { %18737 = vpow2.f32 %v10043_v36  ;;  %v10032_v35 = vsub.f32 %v9998_v28, %v10024_v13  ;;  %18058 = vmatpush3.msra.mxu0 %v10090_v44 }
0x301c   :  { %18739 = vpow2.f32 %v10045_v61  ;;  %18067 = vmatprep.subr.mxu0 %v18975_v21 }
0x301d   :  { %v10047_v31 = vmul.f32 1.442695, %v10032_v35 }
0x301e   :  { %v10166_v5 = vpop.permute.xlu0 %10165  ;;  %v10242_v59 = vpop.permute.xlu1 %10241 }
0x301f   :  { %18741 = vpow2.f32 %v10047_v31  ;;  %18063 = vmatpush3.msra.mxu1 %v10166_v5 }
0x3020   :  { %v18732_v62 = vpop.eup %18731  ;;  %18072 = vmatprep.subr.mxu1 %v18975_v21 }
0x3021   :  { %v10055_v6 = vsel %vm364_vm4, %v18732_v62, 0.0 }
0x3022   :  { %10056 = vadd.xlane.f32.xlu1 %v10055_v6  ;;  %v10318_v33 = vpop.permute.xlu1 %10317  ;;  %v10394_v8 = vpop.permute.xlu0 %10393 }
0x3024   :  { %v18734_v10 = vpop.eup %18733 }
0x3025   :  { %v18736_v12 = vpop.eup %18735  ;;  %v10058_v11 = vsel %vm364_vm4, %v18734_v10, 0.0 }
0x3026   :  { %10059 = vadd.xlane.f32.xlu0 %v10058_v11  ;;  %v10061_v57 = vsel %vm364_vm4, %v18736_v12, 0.0  ;;  %v10470_v0 = vpop.permute.xlu1 %10469 }
0x3027   :  { %10062 = vadd.xlane.f32.xlu1 %v10061_v57 }
0x3028   :  { %v18738_v52 = vpop.eup %18737 }
0x3029   :  { %v20967_v28 = vpop.eup %18739  ;;  %v10064_v50 = vsel %vm364_vm4, %v18738_v52, 0.0 }
0x302a   :  { %10065 = vadd.xlane.f32.xlu0 %v10064_v50  ;;  %v10067_v4 = vsel %vm364_vm4, %v20967_v28, 0.0 }
0x302b   :  { %10068 = vadd.xlane.f32.xlu1 %v10067_v4 }
0x302c   :  { %v20972_v26 = vpop.eup %18741 }
0x302d   :  { %v10070_v47 = vsel %vm364_vm4, %v20972_v26, 0.0 }
0x302e   :  { %10071 = vadd.xlane.f32.xlu0 %v10070_v47 }
0x303c   :  { %10621 = vrot.lane.b32.xlu1 %v20880_v3, %s18983_s2 }
0x3040   :  { %10739 = vrot.lane.b32.xlu1 %v20792_v23, %s18984_s17 }
0x3044   :  { %10545 = vrot.lane.b32.xlu0 %v20862_v22, %s18983_s2  ;;  %10737 = vrot.lane.b32.xlu1 %v20799_v16, %s18984_s17 }
0x3048   :  { %10741 = vrot.lane.b32.xlu0 %v20787_v25, %s18984_s17 }
0x3053   :  { %v10054_v29 = vpop.xlane.xlu0 %10053 }
0x3054   :  { %18743 = vrcp.f32 %v10054_v29 }
0x3057   :  { %v10051_v34 = vpop.xlane.xlu1 %10050 }
0x3058   :  { %18745 = vrcp.f32 %v10051_v34 }
0x3061   :  { %v18744_v3 = vpop.eup %18743 }
0x3062   :  { %v10082_v23 = vmul.f32 %v18744_v3, %v20954_v56 }
0x3064   :  { %18065 = vmatmul.mubr.msk.f32.vlgmr.msra.gmra.mxu1 %vm364_vm4, %v10082_v23 }
0x3065   :  { %v18746_v22 = vpop.eup %18745  ;;  %18073 = vmatpush3.msra.mxu1 %v10318_v33  ;;  %18074 = vmatprep.mubr.msk.f32.mxu1 %vm18977_vm3, %v18975_v21 }
0x3066   :  { %v10081_v16 = vmul.f32 %v18746_v22, %v20958_v27  ;;  %18082 = vmatprep.subr.mxu1 %v18975_v21 }
0x3068   :  { %18060 = vmatmul.mubr.msk.f32.vlgmr.msra.gmra.mxu0 %vm364_vm4, %v10081_v16 }
0x3069   :  { %18068 = vmatpush3.msra.mxu0 %v10242_v59  ;;  %18069 = vmatprep.mubr.msk.f32.mxu0 %vm18977_vm3, %v18975_v21 }
0x306a   :  { %18077 = vmatprep.subr.mxu0 %v18975_v21 }
0x30ab   :  { %v10057_v25 = vpop.xlane.xlu1 %10056 }
0x30ac   :  { %18747 = vrcp.f32 %v10057_v25 }
0x30af   :  { %v10060_v56 = vpop.xlane.xlu0 %10059 }
0x30b0   :  { %18749 = vrcp.f32 %v10060_v56  ;;  %v10063_v15 = vpop.xlane.xlu1 %10062 }
0x30b1   :  { %18751 = vrcp.f32 %v10063_v15 }
0x30b3   :  { %v10066_v54 = vpop.xlane.xlu0 %10065 }
0x30b4   :  { %18753 = vrcp.f32 %v10066_v54  ;;  %v10069_v42 = vpop.xlane.xlu1 %10068 }
0x30b5   :  { %18755 = vrcp.f32 %v10069_v42 }
0x30b7   :  { %v10072_v27 = vpop.xlane.xlu0 %10071 }
0x30b8   :  { %18757 = vrcp.f32 %v10072_v27  ;;  %v10622_v61 = vpop.permute.xlu1 %10621 }
0x30b9   :  { %v18748_v39 = vpop.eup %18747 }
0x30ba   :  { %v10083_v45 = vmul.f32 %v18748_v39, %v18732_v62  ;;  %v10730_v39 = vrot.slane %v20830_v63, %v19405_v41 }
0x30bb   :  { %v10546_v48 = vpop.permute.xlu0 %10545 }
0x30bc   :  { %18070 = vmatmul.mubr.msk.f32.vlgmr.msra.gmra.mxu0 %vm364_vm4, %v10083_v45  ;;  %v10740_v35 = vpop.permute.xlu1 %10739 }
0x30bd   :  { %v18750_v58 = vpop.eup %18749  ;;  %18078 = vmatpush3.msra.mxu0 %v10394_v8  ;;  %18079 = vmatprep.mubr.msk.f32.mxu0 %vm18977_vm3, %v18975_v21 }
0x30be   :  { %v18752_v53 = vpop.eup %18751  ;;  %v10084_v20 = vmul.f32 %v18750_v58, %v18734_v10  ;;  %18087 = vmatprep.subr.mxu0 %v18975_v21 }
0x30bf   :  { %v10085_v46 = vmul.f32 %v18752_v53, %v18736_v12  ;;  %v10742_v31 = vpop.permute.xlu0 %10741 }
0x30c0   :  { %18075 = vmatmul.mubr.msk.f32.vlgmr.msra.gmra.mxu1 %vm364_vm4, %v10084_v20  ;;  %v10738_v5 = vpop.permute.xlu1 %10737 }
0x30c1   :  { %v18754_v1 = vpop.eup %18753  ;;  %18080 = vmatmul.mubr.msk.f32.vlgmr.msra.gmra.mxu0 %vm364_vm4, %v10085_v46  ;;  %18083 = vmatpush3.msra.mxu1 %v10470_v0 }
0x30c2   :  { %v18756_v37 = vpop.eup %18755  ;;  %v10086_v43 = vmul.f32 %v18754_v1, %v18738_v52  ;;  %18088 = vmatpush3.msra.mxu0 %v10546_v48  ;;  %18084 = vmatprep.mubr.msk.f32.mxu1 %vm18977_vm3, %v18975_v21 }
0x30c3   :  { %18089 = vmatprep.mubr.msk.f32.mxu0 %vm18977_vm3, %v18975_v21  ;;  %18092 = vmatprep.subr.mxu1 %v18975_v21  ;;  %v10087_v36 = vmul.f32 %v18756_v37, %v20967_v28 }
0x30c4   :  { %18085 = vmatmul.mubr.msk.f32.vlgmr.msra.gmra.mxu1 %vm364_vm4, %v10086_v43  ;;  %18097 = vmatprep.subr.mxu0 %v10742_v31  ;;  %v21041_v43 = vld [vmem:[%s21970_s8 + $0xb0] sm:$0xff] }
0x30c5   :  { %v18758_v13 = vpop.eup %18757  ;;  %18090 = vmatmul.mubr.msk.f32.vlgmr.msra.gmra.mxu0 %vm364_vm4, %v10087_v36  ;;  %18093 = vmatpush3.msra.mxu1 %v10622_v61  ;;  %v21066_v36 = vld [vmem:[%s21970_s8 + $0x68] sm:$0xff] }
0x30c6   :  { %v10088_v44 = vmul.f32 %v18758_v13, %v20972_v26  ;;  %18094 = vmatprep.mubr.msk.f32.mxu1 %vm18977_vm3, %v18975_v21  ;;  %18098 = vmatpush3.msra.mxu0 %v10742_v31 }
0x30c7   :  { %18099 = vmatprep.subr.mxu0 %v10740_v35  ;;  %18108 = vmatprep.subr.mxu1 %v21041_v43 }
0x30c8   :  { %18095 = vmatmul.mubr.msk.f32.vlgmr.msra.gmra.mxu1 %vm364_vm4, %v10088_v44  ;;  %18100 = vmatpush3.msra.mxu0 %v10740_v35 }
0x30c9   :  { %18101 = vmatprep.subr.mxu0 %v10738_v5  ;;  %18109 = vmatpush3.msra.mxu1 %v21041_v43 }
0x30ca   :  { %18102 = vmatpush3.msra.mxu0 %v10738_v5 }
0x3124   :  { %v10237_v62 = vpop.f32.mrf.mxu1 }
0x3126   :  { %v18066_v6 = vpop.f32.mrf.mxu1 }
0x3128   :  { %v10161_v10 = vpop.f32.mrf.mxu0 }
0x312a   :  { %v18061_v12 = vpop.f32.mrf.mxu0 }
0x317c   :  { %v10313_v11 = vpop.f32.mrf.mxu0 }
0x317e   :  { %v18071_v57 = vpop.f32.mrf.mxu0 }
0x3180   :  { %v10389_v52 = vpop.f32.mrf.mxu1 }
0x3181   :  { %v10465_v28 = vpop.f32.mrf.mxu0  ;;  %10701 = vrot.lane.b32.xlu0 %v10389_v52, %s18972_s29 }
0x3182   :  { %10707 = vrot.lane.b32.xlu1 %v10465_v28, %s18985_s0  ;;  %v18076_v50 = vpop.f32.mrf.mxu1 }
0x3183   :  { %v18081_v4 = vpop.f32.mrf.mxu0 }
0x3184   :  { %v10541_v26 = vpop.f32.mrf.mxu1 }
0x3185   :  { %v10617_v47 = vpop.f32.mrf.mxu0  ;;  %10699 = vrot.lane.b32.xlu0 %v10313_v11, %s18972_s29 }
0x3186   :  { %10715 = vrot.lane.b32.xlu1 %v10617_v47, %s18986_s18  ;;  %v18086_v59 = vpop.f32.mrf.mxu1 }
0x3187   :  { %v18091_v33 = vpop.f32.mrf.mxu0 }
0x3188   :  { %v10693_v8 = vpop.f32.mrf.mxu1 }
0x3189   :  { %10709 = vrot.lane.b32.xlu0 %v10541_v26, %s18985_s0 }
0x318a   :  { %10717 = vrot.lane.b32.xlu1 %v10693_v8, %s18986_s18  ;;  %v18096_v0 = vpop.f32.mrf.mxu1 }
0x318d   :  { %10735 = vrot.lane.b32.xlu0 %v20806_v55, %s18984_s17 }
0x31f3   :  { %v10702_v29 = vpop.permute.xlu0 %10701 }
0x31f4   :  { %v10708_v34 = vpop.permute.xlu1 %10707  ;;  %v10722_v15 = vsel %vm364_vm4, %v10237_v62, %v10702_v29  ;;  %v10859_v29 = vrot.slane %v20830_v63, %v19517_v24 }
0x31f7   :  { %v10700_v3 = vpop.permute.xlu0 %10699 }
0x31f8   :  { %v10721_v23 = vsel %vm364_vm4, %v10161_v10, %v10700_v3  ;;  %v10716_v22 = vpop.permute.xlu1 %10715 }
0x31f9   :  { %v10723_v16 = vsel %vm1693_vm5, %v10721_v23, %v10708_v34  ;;  %v21087_v34 = vld [vmem:[%s21972_s10 + $0x18] sm:$0x1f] }
0x31fa   :  { %v10725_v25 = vsel %vm1696_vm6, %v10723_v16, %v10716_v22  ;;  %v10865_v16 = vrot.slane %v21087_v34, %v19168_v32 }
0x31fb   :  { %v10710_v56 = vpop.permute.xlu0 %10709  ;;  %18105 = vmatprep.mubr.msk.f32.mxu0 %vm266_vm2, %v10725_v25 }
0x31fc   :  { %v10724_v54 = vsel %vm1693_vm5, %v10722_v15, %v10710_v56  ;;  %v10718_v42 = vpop.permute.xlu1 %10717 }
0x31fd   :  { %v10726_v55 = vsel %vm1696_vm6, %v10724_v54, %v10718_v42  ;;  %v10956_v54 = vrot.slane %v20830_v63, %v19474_v40 }
0x31ff   :  { %v10736_v27 = vpop.permute.xlu0 %10735 }
0x3200   :  { %18103 = vmatprep.subr.mxu0 %v10736_v27 }
0x3201   :  { %18104 = vmatpush3.msra.mxu0 %v10736_v27 }
0x3202   :  { %18106 = vmatmul.mubr.msk.f32.vlgmr.msra.gmra.mxu0 %vm266_vm2, %v10726_v55 }
0x3203   :  { %18127 = vmatprep.mubr.msk.f32.mxu0 %vm266_vm2, %v20492_v9 }
0x32c2   :  { %v18107_v45 = vpop.f32.mrf.mxu0 }
0x32c3   :  { %v10825_v58 = vadd.f32 %v18107_v45, %v10730_v39  ;;  %v10871_v45 = vrot.slane %v20830_v63, %v19465_v51 }
0x32c4   :  { %v10819_v53 = vpop.f32.mrf.mxu0 }
0x32c5   :  { %v10829_v20 = vadd.f32 %v10825_v58, %v20819_v49  ;;  %v10820_v46 = vadd.f32 %v10819_v53, %v10730_v39  ;;  %v21054_v49 = vld [vmem:[%s21970_s8 + $0x98] sm:$0xff] }
0x32c6   :  { %18110 = vmatprep.subr.mxu1 %v21054_v49 }
0x32c7   :  { %v10828_v1 = vadd.f32 %v10820_v46, %v20817_v30  ;;  %v10833_v48 = vsel %vm266_vm2, %v10829_v20, 0.0  ;;  %v21049_v30 = vld [vmem:[%s21970_s8 + $0x80] sm:$0xff]  ;;  %18111 = vmatpush3.msra.mxu1 %v21054_v49 }
0x32c8   :  { %10834 = vadd.xlane.f32.xlu1 %v10833_v48  ;;  %18112 = vmatprep.subr.mxu1 %v21049_v30 }
0x32c9   :  { %v10830_v37 = vsel %vm266_vm2, %v10828_v1, 0.0  ;;  %18113 = vmatpush3.msra.mxu1 %v21049_v30 }
0x32ca   :  { %10831 = vadd.xlane.f32.xlu0 %v10830_v37  ;;  %18114 = vmatprep.subr.mxu1 %v21066_v36 }
0x32cb   :  { %18115 = vmatpush3.msra.mxu1 %v21066_v36 }
0x32cc   :  { %18130 = vmatprep.subr.mxu1 %v18975_v21 }
0x32d9   :  { %10967 = vrot.lane.b32.xlu1 %v21041_v43, %s18981_s14 }
0x32dd   :  { %10963 = vrot.lane.b32.xlu1 %v21049_v30, %s18981_s14 }
0x32e1   :  { %10961 = vrot.lane.b32.xlu1 %v21066_v36, %s18981_s14 }
0x3351   :  { %v10835_v61 = vpop.xlane.xlu1 %10834 }
0x3352   :  { %v10837_v13 = vmul.f32 0.03125, %v10835_v61 }
0x3353   :  { %v10832_v44 = vpop.xlane.xlu0 %10831 }
0x3354   :  { %v10839_v35 = vsub.f32 %v10829_v20, %v10837_v13  ;;  %v10836_v31 = vmul.f32 0.03125, %v10832_v44 }
0x3355   :  { %v10968_v11 = vpop.permute.xlu1 %10967 }
0x3356   :  { %v10838_v5 = vsub.f32 %v10828_v1, %v10836_v31  ;;  %v10841_v62 = vmul.f32 %v10839_v35, %v10839_v35  ;;  %18119 = vmatprep.subr.mxu0 %v10968_v11 }
0x3357   :  { %18120 = vmatpush3.msra.mxu0 %v10968_v11 }
0x3358   :  { %v10845_v6 = vsel %vm266_vm2, %v10841_v62, 0.0  ;;  %v10840_v10 = vmul.f32 %v10838_v5, %v10838_v5 }
0x3359   :  { %10846 = vadd.xlane.f32.xlu0 %v10845_v6  ;;  %v10964_v4 = vpop.permute.xlu1 %10963 }
0x335a   :  { %v10842_v12 = vsel %vm266_vm2, %v10840_v10, 0.0 }
0x335d   :  { %10843 = vadd.xlane.f32.xlu0 %v10842_v12  ;;  %v10962_v33 = vpop.permute.xlu1 %10961 }
0x3373   :  { %10965 = vrot.lane.b32.xlu0 %v21054_v49, %s18981_s14 }
0x33e2   :  { %v10847_v57 = vpop.xlane.xlu0 %10846 }
0x33e3   :  { %v10849_v52 = vmul.f32 0.03125, %v10847_v57 }
0x33e5   :  { %v10851_v28 = vadd.f32 1e-05, %v10849_v52 }
0x33e6   :  { %v10844_v50 = vpop.xlane.xlu0 %10843 }
0x33e7   :  { %18759 = vrsqrt.f32 %v10851_v28  ;;  %v10848_v26 = vmul.f32 0.03125, %v10844_v50 }
0x33e9   :  { %v10850_v47 = vadd.f32 1e-05, %v10848_v26 }
0x33ea   :  { %v10966_v59 = vpop.permute.xlu0 %10965 }
0x33eb   :  { %18761 = vrsqrt.f32 %v10850_v47  ;;  %18121 = vmatprep.subr.mxu0 %v10966_v59 }
0x33ec   :  { %18122 = vmatpush3.msra.mxu0 %v10966_v59 }
0x33ed   :  { %18123 = vmatprep.subr.mxu0 %v10964_v4 }
0x33ee   :  { %18124 = vmatpush3.msra.mxu0 %v10964_v4 }
0x33ef   :  { %18125 = vmatprep.subr.mxu0 %v10962_v33 }
0x33f0   :  { %18126 = vmatpush3.msra.mxu0 %v10962_v33 }
0x33f1   :  { %18128 = vmatmul.mubr.msk.f32.vlgmr.msra.gmra.mxu0 %vm266_vm2, %v20496_v14  ;;  %18140 = vmatprep.subr.mxu0 %v18975_v21 }
0x33f2   :  { %18142 = vmatprep.mubr.msk.f32.mxu0 %vm18977_vm3, %v18975_v21 }
0x33f4   :  { %v18760_v8 = vpop.eup %18759 }
0x33f5   :  { %v10855_v0 = vmul.f32 %v18760_v8, %v10839_v35 }
0x33f7   :  { %v10861_v22 = vmul.f32 %v10859_v29, %v10855_v0 }
0x33f8   :  { %v18762_v3 = vpop.eup %18761 }
0x33f9   :  { %v10854_v23 = vmul.f32 %v18762_v3, %v10838_v5  ;;  %v21093_v15 = vadd.f32 %v10865_v16, %v10861_v22 }
0x33fb   :  { %v10860_v25 = vmul.f32 %v10859_v29, %v10854_v23 }
0x33fd   :  { %v21091_v56 = vadd.f32 %v10865_v16, %v10860_v25 }
0x33ff   :  { %18116 = vmatprep.mubr.msk.f32.mxu1 %vm266_vm2, %v21091_v56 }
0x3400   :  { %18117 = vmatmul.mubr.msk.f32.vlgmr.msra.gmra.mxu1 %vm266_vm2, %v21093_v15 }
0x3401   :  { %18132 = vmatprep.mubr.msk.f32.mxu1 %vm18977_vm3, %v18975_v21 }
0x34b1   :  { %v18129_v42 = vpop.f32.mrf.mxu0 }
0x34b2   :  { %v21103_v27 = vadd.f32 %v18129_v42, %v10956_v54 }
0x34b3   :  { %v11039_v55 = vpop.f32.mrf.mxu0 }
0x34b4   :  { %v21105_v39 = vadd.f32 %v11039_v55, %v10956_v54  ;;  %11066 = vrot.lane.b32.xlu1 %v21103_v27, %s18979_s27 }
0x34b6   :  { %11064 = vrot.lane.b32.xlu0 %v21105_v39, %s18979_s27  ;;  %18131 = vmatpush3.xpose.msk.msra.mxu1 %vm364_vm4, %v21105_v39 }
0x34b7   :  { %18135 = vmatprep.subr.mxu1 %v18975_v21 }
0x34b8   :  { %11070 = vrot.lane.b32.xlu1 %v21103_v27, %s18978_s26 }
0x34ba   :  { %11068 = vrot.lane.b32.xlu0 %v21105_v39, %s18978_s26 }
0x34bc   :  { %11074 = vrot.lane.b32.xlu1 %v21103_v27, %s18980_s30 }
0x34be   :  { %11072 = vrot.lane.b32.xlu0 %v21105_v39, %s18980_s30 }
0x34c0   :  { %v18118_v58 = vpop.f32.mrf.mxu1 }
0x34c1   :  { %v10950_v53 = vadd.f32 %v18118_v58, %v10871_v45 }
0x34c2   :  { %v10944_v20 = vpop.f32.mrf.mxu1 }
0x34c3   :  { %v10945_v46 = vadd.f32 %v10944_v20, %v10871_v45  ;;  %11052 = vrot.lane.b32.xlu1 %v10950_v53, %s18979_s27 }
0x34c5   :  { %11050 = vrot.lane.b32.xlu0 %v10945_v46, %s18979_s27  ;;  %18133 = vmatmul.mubr.msk.f32.vlgmr.msra.gmra.mxu1 %vm364_vm4, %v10945_v46 }
0x34c6   :  { %18136 = vmatpush3.xpose.msk.msra.mxu1 %vm364_vm4, %v21103_v27  ;;  %18137 = vmatprep.mubr.msk.f32.mxu1 %vm18977_vm3, %v18975_v21 }
0x34c7   :  { %11056 = vrot.lane.b32.xlu1 %v10950_v53, %s18978_s26  ;;  %18145 = vmatprep.subr.mxu1 %v18975_v21 }
0x34c9   :  { %11054 = vrot.lane.b32.xlu0 %v10945_v46, %s18978_s26  ;;  %18138 = vmatmul.mubr.msk.f32.vlgmr.msra.gmra.mxu1 %vm364_vm4, %v10950_v53 }
0x34ca   :  { %18147 = vmatprep.mubr.msk.f32.mxu1 %vm18977_vm3, %v18975_v21 }
0x34cb   :  { %11060 = vrot.lane.b32.xlu1 %v10950_v53, %s18980_s30 }
0x34cd   :  { %11058 = vrot.lane.b32.xlu0 %v10945_v46, %s18980_s30 }
0x3526   :  { %v21139_v63 = vpop.permute.xlu1 %11066 }
0x3527   :  { %18146 = vmatpush3.xpose.msk.msra.mxu1 %vm364_vm4, %v21139_v63 }
0x3528   :  { %v21143_v1 = vpop.permute.xlu0 %11064  ;;  %18155 = vmatprep.subr.mxu1 %v18975_v21 }
0x3529   :  { %18141 = vmatpush3.xpose.msk.msra.mxu0 %vm364_vm4, %v21143_v1 }
0x352a   :  { %18150 = vmatprep.subr.mxu0 %v18975_v21  ;;  %v21149_v48 = vpop.permute.xlu1 %11070 }
0x352c   :  { %v21151_v37 = vpop.permute.xlu0 %11068 }
0x352e   :  { %v21153_v61 = vpop.permute.xlu1 %11074 }
0x3530   :  { %v21155_v13 = vpop.permute.xlu0 %11072 }
0x3535   :  { %v11053_v44 = vpop.permute.xlu1 %11052 }
0x3536   :  { %18148 = vmatmul.mubr.msk.f32.vlgmr.msra.gmra.mxu1 %vm364_vm4, %v11053_v44 }
0x3537   :  { %18156 = vmatpush3.xpose.msk.msra.mxu1 %vm364_vm4, %v21149_v48  ;;  %v11051_v35 = vpop.permute.xlu0 %11050  ;;  %18157 = vmatprep.mubr.msk.f32.mxu1 %vm18977_vm3, %v18975_v21 }
0x3538   :  { %18143 = vmatmul.mubr.msk.f32.vlgmr.msra.gmra.mxu0 %vm364_vm4, %v11051_v35  ;;  %18165 = vmatprep.subr.mxu1 %v18975_v21 }
0x3539   :  { %18151 = vmatpush3.xpose.msk.msra.mxu0 %vm364_vm4, %v21151_v37  ;;  %v11057_v31 = vpop.permute.xlu1 %11056  ;;  %18152 = vmatprep.mubr.msk.f32.mxu0 %vm18977_vm3, %v18975_v21 }
0x353a   :  { %18158 = vmatmul.mubr.msk.f32.vlgmr.msra.gmra.mxu1 %vm364_vm4, %v11057_v31  ;;  %18160 = vmatprep.subr.mxu0 %v18975_v21 }
0x353b   :  { %18166 = vmatpush3.xpose.msk.msra.mxu1 %vm364_vm4, %v21153_v61  ;;  %v11055_v5 = vpop.permute.xlu0 %11054  ;;  %18167 = vmatprep.mubr.msk.f32.mxu1 %vm18977_vm3, %v18975_v21 }
0x353c   :  { %18153 = vmatmul.mubr.msk.f32.vlgmr.msra.gmra.mxu0 %vm364_vm4, %v11055_v5  ;;  %18175 = vmatprep.subr.mxu1 %v18975_v21 }
0x353d   :  { %18161 = vmatpush3.xpose.msk.msra.mxu0 %vm364_vm4, %v21155_v13  ;;  %v11061_v62 = vpop.permute.xlu1 %11060  ;;  %18162 = vmatprep.mubr.msk.f32.mxu0 %vm18977_vm3, %v18975_v21 }
0x353e   :  { %18168 = vmatmul.mubr.msk.f32.vlgmr.msra.gmra.mxu1 %vm364_vm4, %v11061_v62  ;;  %18170 = vmatprep.subr.mxu0 %v18975_v21 }
0x353f   :  { %v11059_v6 = vpop.permute.xlu0 %11058  ;;  %18177 = vmatprep.mubr.msk.f32.mxu1 %vm18977_vm3, %v18975_v21 }
0x3540   :  { %18163 = vmatmul.mubr.msk.f32.vlgmr.msra.gmra.mxu0 %vm364_vm4, %v11059_v6 }
0x3541   :  { %18172 = vmatprep.mubr.msk.f32.mxu0 %vm18977_vm3, %v18975_v21 }
0x3585   :  { %v11146_v10 = vpop.f32.mrf.mxu1 }
0x3586   :  { %v11147_v12 = vadd.f32 %v11146_v10, %v19278_v60 }
0x3587   :  { %v18134_v11 = vpop.f32.mrf.mxu1 }
0x3588   :  { %v11668_v57 = vsel %vm364_vm4, %v11147_v12, -inf }
0x3589   :  { %11669 = vmax.xlane.f32.xlu0 %v11668_v57  ;;  %v11220_v52 = vpop.f32.mrf.mxu1 }
0x358a   :  { %v11221_v28 = vadd.f32 %v11220_v52, %v19284_v2 }
0x358b   :  { %v18139_v50 = vpop.f32.mrf.mxu1 }
0x358c   :  { %v11671_v4 = vsel %vm364_vm4, %v11221_v28, -inf }
0x358d   :  { %11672 = vmax.xlane.f32.xlu1 %v11671_v4 }
0x35f6   :  { %v11368_v26 = vpop.f32.mrf.mxu1 }
0x35f7   :  { %v11369_v29 = vadd.f32 %v11368_v26, %v19284_v2 }
0x35f8   :  { %v11294_v47 = vpop.f32.mrf.mxu0  ;;  %v18149_v59 = vpop.f32.mrf.mxu1 }
0x35f9   :  { %v11295_v33 = vadd.f32 %v11294_v47, %v19278_v60  ;;  %v11677_v45 = vsel %vm364_vm4, %v11369_v29, -inf }
0x35fa   :  { %v18144_v8 = vpop.f32.mrf.mxu0  ;;  %v11516_v0 = vpop.f32.mrf.mxu1 }
0x35fb   :  { %v11674_v3 = vsel %vm364_vm4, %v11295_v33, -inf  ;;  %v11517_v42 = vadd.f32 %v11516_v0, %v19284_v2 }
0x35fc   :  { %v11442_v23 = vpop.f32.mrf.mxu0  ;;  %11675 = vmax.xlane.f32.xlu0 %v11674_v3  ;;  %v18159_v22 = vpop.f32.mrf.mxu1 }
0x35fd   :  { %v11443_v16 = vadd.f32 %v11442_v23, %v19278_v60  ;;  %v11683_v31 = vsel %vm364_vm4, %v11517_v42, -inf }
0x35fe   :  { %v18154_v25 = vpop.f32.mrf.mxu0  ;;  %v11664_v54 = vpop.f32.mrf.mxu1 }
0x35ff   :  { %v11680_v55 = vsel %vm364_vm4, %v11443_v16, -inf  ;;  %v11665_v44 = vadd.f32 %v11664_v54, %v19284_v2 }
0x3600   :  { %v11590_v58 = vpop.f32.mrf.mxu0  ;;  %11681 = vmax.xlane.f32.xlu1 %v11680_v55  ;;  %11678 = vmax.xlane.f32.xlu0 %v11677_v45  ;;  %v18169_v53 = vpop.f32.mrf.mxu1 }
0x3601   :  { %v11591_v20 = vadd.f32 %v11590_v58, %v19278_v60  ;;  %v11689_v5 = vsel %vm364_vm4, %v11665_v44, -inf }
0x3602   :  { %v18164_v46 = vpop.f32.mrf.mxu0 }
0x3603   :  { %v11686_v35 = vsel %vm364_vm4, %v11591_v20, -inf }
0x3604   :  { %11687 = vmax.xlane.f32.xlu1 %v11686_v35  ;;  %11684 = vmax.xlane.f32.xlu0 %v11683_v31 }
0x3608   :  { %11690 = vmax.xlane.f32.xlu0 %v11689_v5 }
0x3612   :  { %v11670_v10 = vpop.xlane.xlu0 %11669 }
0x3613   :  { %v11692_v11 = vsub.f32 %v11147_v12, %v11670_v10 }
0x3615   :  { %11756 = vrot.lane.b32.xlu1 %v21105_v39, %s18981_s14  ;;  %v11700_v57 = vmul.f32 1.442695, %v11692_v11 }
0x3616   :  { %v11673_v62 = vpop.xlane.xlu1 %11672 }
0x3617   :  { %v11693_v6 = vsub.f32 %v11221_v28, %v11673_v62 }
0x3619   :  { %11908 = vrot.lane.b32.xlu1 %v21143_v1, %s18981_s14  ;;  %v11702_v39 = vmul.f32 1.442695, %v11693_v6 }
0x361b   :  { %18763 = vpow2.f32 %v11702_v39 }
0x361c   :  { %18765 = vpow2.f32 %v11700_v57 }
0x361d   :  { %11984 = vrot.lane.b32.xlu1 %v21139_v63, %s18981_s14 }
0x361e   :  { %11832 = vrot.lane.b32.xlu0 %v21103_v27, %s18981_s14 }
0x3621   :  { %12136 = vrot.lane.b32.xlu1 %v21149_v48, %s18981_s14 }
0x3622   :  { %12060 = vrot.lane.b32.xlu0 %v21151_v37, %s18981_s14 }
0x3628   :  { %v21215_v1 = vpop.eup %18763 }
0x3629   :  { %v11719_v63 = vsel %vm364_vm4, %v21215_v1, 0.0  ;;  %v21219_v27 = vpop.eup %18765 }
0x362a   :  { %v11716_v48 = vsel %vm364_vm4, %v21219_v27, 0.0 }
0x3641   :  { %11720 = vadd.xlane.f32.xlu0 %v11719_v63 }
0x3645   :  { %11717 = vadd.xlane.f32.xlu1 %v11716_v48 }
0x3685   :  { %v11676_v37 = vpop.xlane.xlu0 %11675 }
0x3686   :  { %v11694_v52 = vsub.f32 %v11295_v33, %v11676_v37 }
0x3688   :  { %v11704_v28 = vmul.f32 1.442695, %v11694_v52 }
0x3689   :  { %v11682_v12 = vpop.xlane.xlu1 %11681  ;;  %v11679_v50 = vpop.xlane.xlu0 %11678 }
0x368a   :  { %18767 = vpow2.f32 %v11704_v28  ;;  %v11696_v4 = vsub.f32 %v11443_v16, %v11682_v12  ;;  %v11695_v26 = vsub.f32 %v11369_v29, %v11679_v50 }
0x368c   :  { %v11708_v47 = vmul.f32 1.442695, %v11696_v4  ;;  %v11706_v59 = vmul.f32 1.442695, %v11695_v26 }
0x368d   :  { %v11688_v8 = vpop.xlane.xlu1 %11687  ;;  %v11685_v0 = vpop.xlane.xlu0 %11684 }
0x368e   :  { %18769 = vpow2.f32 %v11708_v47  ;;  %v11698_v3 = vsub.f32 %v11591_v20, %v11688_v8  ;;  %v11697_v23 = vsub.f32 %v11517_v42, %v11685_v0 }
0x368f   :  { %18771 = vpow2.f32 %v11706_v59 }
0x3690   :  { %v11712_v22 = vmul.f32 1.442695, %v11698_v3  ;;  %v11710_v25 = vmul.f32 1.442695, %v11697_v23 }
0x3691   :  { %v11757_v54 = vpop.permute.xlu1 %11756  ;;  %v11691_v55 = vpop.xlane.xlu0 %11690 }
0x3692   :  { %18773 = vpow2.f32 %v11712_v22  ;;  %v11699_v33 = vsub.f32 %v11665_v44, %v11691_v55  ;;  %18171 = vmatpush3.msra.mxu0 %v11757_v54 }
0x3693   :  { %18775 = vpow2.f32 %v11710_v25  ;;  %18180 = vmatprep.subr.mxu0 %v18975_v21 }
0x3694   :  { %v11714_v16 = vmul.f32 1.442695, %v11699_v33 }
0x3695   :  { %v11833_v29 = vpop.permute.xlu0 %11832  ;;  %v11909_v10 = vpop.permute.xlu1 %11908 }
0x3696   :  { %18777 = vpow2.f32 %v11714_v16  ;;  %18176 = vmatpush3.msra.mxu1 %v11833_v29 }
0x3697   :  { %v18768_v45 = vpop.eup %18767  ;;  %18185 = vmatprep.subr.mxu1 %v18975_v21 }
0x3698   :  { %v11722_v42 = vsel %vm364_vm4, %v18768_v45, 0.0 }
0x3699   :  { %11723 = vadd.xlane.f32.xlu1 %v11722_v42  ;;  %v11985_v11 = vpop.permute.xlu1 %11984  ;;  %v12061_v39 = vpop.permute.xlu0 %12060 }
0x369b   :  { %v18770_v58 = vpop.eup %18769 }
0x369c   :  { %v18772_v53 = vpop.eup %18771  ;;  %v11728_v20 = vsel %vm364_vm4, %v18770_v58, 0.0 }
0x369d   :  { %11729 = vadd.xlane.f32.xlu1 %v11728_v20  ;;  %v11725_v46 = vsel %vm364_vm4, %v18772_v53, 0.0  ;;  %v12137_v57 = vpop.permute.xlu1 %12136 }
0x369e   :  { %11726 = vadd.xlane.f32.xlu0 %v11725_v46 }
0x369f   :  { %v18774_v44 = vpop.eup %18773 }
0x36a0   :  { %v21228_v35 = vpop.eup %18775  ;;  %v11734_v31 = vsel %vm364_vm4, %v18774_v44, 0.0 }
0x36a1   :  { %11735 = vadd.xlane.f32.xlu1 %v11734_v31  ;;  %v11731_v5 = vsel %vm364_vm4, %v21228_v35, 0.0 }
0x36a2   :  { %11732 = vadd.xlane.f32.xlu0 %v11731_v5 }
0x36a3   :  { %v21233_v62 = vpop.eup %18777 }
0x36a4   :  { %v11737_v6 = vsel %vm364_vm4, %v21233_v62, 0.0 }
0x36a6   :  { %11738 = vadd.xlane.f32.xlu0 %v11737_v6 }
0x36b2   :  { %12288 = vrot.lane.b32.xlu1 %v21153_v61, %s18981_s14 }
0x36b6   :  { %12402 = vrot.lane.b32.xlu1 %v21054_v49, %s18984_s17 }
0x36ba   :  { %12400 = vrot.lane.b32.xlu1 %v21049_v30, %s18984_s17 }
0x36bc   :  { %12212 = vrot.lane.b32.xlu0 %v21155_v13, %s18981_s14 }
0x36c0   :  { %12404 = vrot.lane.b32.xlu0 %v21041_v43, %s18984_s17 }
0x36ca   :  { %v11721_v63 = vpop.xlane.xlu0 %11720 }
0x36cb   :  { %18779 = vrcp.f32 %v11721_v63 }
0x36ce   :  { %v11718_v48 = vpop.xlane.xlu1 %11717 }
0x36cf   :  { %18781 = vrcp.f32 %v11718_v48 }
0x36d8   :  { %v18780_v61 = vpop.eup %18779 }
0x36d9   :  { %v11749_v49 = vmul.f32 %v18780_v61, %v21215_v1 }
0x36db   :  { %18178 = vmatmul.mubr.msk.f32.vlgmr.msra.gmra.mxu1 %vm364_vm4, %v11749_v49 }
0x36dc   :  { %v18782_v30 = vpop.eup %18781  ;;  %18186 = vmatpush3.msra.mxu1 %v11985_v11  ;;  %18187 = vmatprep.mubr.msk.f32.mxu1 %vm18977_vm3, %v18975_v21 }
0x36dd   :  { %v11748_v13 = vmul.f32 %v18782_v30, %v21219_v27  ;;  %18195 = vmatprep.subr.mxu1 %v18975_v21 }
0x36df   :  { %18173 = vmatmul.mubr.msk.f32.vlgmr.msra.gmra.mxu0 %vm364_vm4, %v11748_v13 }
0x36e0   :  { %18181 = vmatpush3.msra.mxu0 %v11909_v10  ;;  %18182 = vmatprep.mubr.msk.f32.mxu0 %vm18977_vm3, %v18975_v21 }
0x36e1   :  { %18190 = vmatprep.subr.mxu0 %v18975_v21 }
0x3722   :  { %v11724_v43 = vpop.xlane.xlu1 %11723 }
0x3723   :  { %18783 = vrcp.f32 %v11724_v43 }
0x3726   :  { %v11730_v1 = vpop.xlane.xlu1 %11729 }
0x3727   :  { %18785 = vrcp.f32 %v11730_v1  ;;  %v11727_v37 = vpop.xlane.xlu0 %11726 }
0x3728   :  { %18787 = vrcp.f32 %v11727_v37 }
0x372a   :  { %v11736_v52 = vpop.xlane.xlu1 %11735 }
0x372b   :  { %18789 = vrcp.f32 %v11736_v52  ;;  %v11733_v28 = vpop.xlane.xlu0 %11732 }
0x372c   :  { %18791 = vrcp.f32 %v11733_v28 }
0x372e   :  { %v12289_v25 = vpop.permute.xlu1 %12288 }
0x372f   :  { %v11739_v27 = vpop.xlane.xlu0 %11738 }
0x3730   :  { %v18784_v12 = vpop.eup %18783  ;;  %18793 = vrcp.f32 %v11739_v27 }
0x3731   :  { %v11750_v50 = vmul.f32 %v18784_v12, %v18768_v45  ;;  %v21294_v12 = vld [vmem:[%s21972_s10 + $0x10] sm:$0xff] }
0x3732   :  { %v12403_v33 = vpop.permute.xlu1 %12402 }
0x3733   :  { %18183 = vmatmul.mubr.msk.f32.vlgmr.msra.gmra.mxu0 %vm364_vm4, %v11750_v50  ;;  %v12213_v8 = vpop.permute.xlu0 %12212  ;;  %v12397_v50 = vrot.slane %v21294_v12, %v19440_v17 }
0x3734   :  { %v18786_v4 = vpop.eup %18785  ;;  %18191 = vmatpush3.msra.mxu0 %v12061_v39  ;;  %18192 = vmatprep.mubr.msk.f32.mxu0 %vm18977_vm3, %v18975_v21 }
0x3735   :  { %v18788_v26 = vpop.eup %18787  ;;  %v11752_v47 = vmul.f32 %v18786_v4, %v18770_v58  ;;  %18200 = vmatprep.subr.mxu0 %v18975_v21 }
0x3736   :  { %v11751_v59 = vmul.f32 %v18788_v26, %v18772_v53  ;;  %v12401_v29 = vpop.permute.xlu1 %12400 }
0x3737   :  { %18193 = vmatmul.mubr.msk.f32.vlgmr.msra.gmra.mxu0 %vm364_vm4, %v11752_v47  ;;  %v12405_v16 = vpop.permute.xlu0 %12404 }
0x3738   :  { %v18790_v0 = vpop.eup %18789  ;;  %18188 = vmatmul.mubr.msk.f32.vlgmr.msra.gmra.mxu1 %vm364_vm4, %v11751_v59  ;;  %18201 = vmatpush3.msra.mxu0 %v12213_v8 }
0x3739   :  { %v18792_v3 = vpop.eup %18791  ;;  %v11754_v23 = vmul.f32 %v18790_v0, %v18774_v44  ;;  %18196 = vmatpush3.msra.mxu1 %v12137_v57  ;;  %18197 = vmatprep.mubr.msk.f32.mxu1 %vm18977_vm3, %v18975_v21 }
0x373a   :  { %v11753_v22 = vmul.f32 %v18792_v3, %v21228_v35  ;;  %18202 = vmatprep.mubr.msk.f32.mxu0 %vm18977_vm3, %v18975_v21  ;;  %18205 = vmatprep.subr.mxu1 %v18975_v21 }
0x373b   :  { %18203 = vmatmul.mubr.msk.f32.vlgmr.msra.gmra.mxu0 %vm364_vm4, %v11754_v23  ;;  %18210 = vmatprep.subr.mxu0 %v12405_v16 }
0x373c   :  { %18198 = vmatmul.mubr.msk.f32.vlgmr.msra.gmra.mxu1 %vm364_vm4, %v11753_v22  ;;  %18211 = vmatpush3.msra.mxu0 %v12405_v16 }
0x373d   :  { %v18794_v54 = vpop.eup %18793  ;;  %18206 = vmatpush3.msra.mxu1 %v12289_v25  ;;  %18207 = vmatprep.mubr.msk.f32.mxu1 %vm18977_vm3, %v18975_v21 }
0x373e   :  { %v11755_v55 = vmul.f32 %v18794_v54, %v21233_v62  ;;  %18212 = vmatprep.subr.mxu0 %v12403_v33 }
0x373f   :  { %18213 = vmatpush3.msra.mxu0 %v12403_v33 }
0x3740   :  { %18208 = vmatmul.mubr.msk.f32.vlgmr.msra.gmra.mxu1 %vm364_vm4, %v11755_v55  ;;  %18214 = vmatprep.subr.mxu0 %v12401_v29 }
0x3741   :  { %18215 = vmatpush3.msra.mxu0 %v12401_v29 }
0x379b   :  { %v11904_v45 = vpop.f32.mrf.mxu1 }
0x379d   :  { %v18179_v42 = vpop.f32.mrf.mxu1 }
0x379f   :  { %v11828_v58 = vpop.f32.mrf.mxu0 }
0x37a1   :  { %v18174_v53 = vpop.f32.mrf.mxu0 }
0x37a2   :  { %v16578_v53 = vld [vmem:[%s21970_s8 + $0x88] sm:$0xff] }
0x37f3   :  { %v11980_v20 = vpop.f32.mrf.mxu0 }
0x37f5   :  { %v18184_v46 = vpop.f32.mrf.mxu0 }
0x37f6   :  { %v16654_v46 = vld [vmem:[%s21971_s9 + $0x78] sm:$0xff] }
0x37f7   :  { %v12132_v44 = vpop.f32.mrf.mxu0 }
0x37f8   :  { %v12056_v35 = vpop.f32.mrf.mxu1  ;;  %12374 = vrot.lane.b32.xlu1 %v12132_v44, %s18985_s0  ;;  %v16653_v44 = vld [vmem:[%s21971_s9 + $0x70] sm:$0xff] }
0x37f9   :  { %12368 = vrot.lane.b32.xlu0 %v12056_v35, %s18972_s29  ;;  %v18194_v31 = vpop.f32.mrf.mxu0  ;;  %v16652_v35 = vld [vmem:[%s21971_s9 + $0x68] sm:$0xff] }
0x37fa   :  { %v18189_v5 = vpop.f32.mrf.mxu1  ;;  %v16651_v31 = vld [vmem:[%s21971_s9 + $0x60] sm:$0xff] }
0x37fb   :  { %v12284_v62 = vpop.f32.mrf.mxu0 }
0x37fc   :  { %v12208_v6 = vpop.f32.mrf.mxu1  ;;  %12382 = vrot.lane.b32.xlu1 %v12284_v62, %s18986_s18 }
0x37fd   :  { %12366 = vrot.lane.b32.xlu0 %v11980_v20, %s18972_s29  ;;  %v18204_v10 = vpop.f32.mrf.mxu0  ;;  %v16575_v20 = vld [vmem:[%s21970_s8 + $0x70] sm:$0xff] }
0x37fe   :  { %v18199_v11 = vpop.f32.mrf.mxu1 }
0x3800   :  { %v12360_v39 = vpop.f32.mrf.mxu1 }
0x3801   :  { %12376 = vrot.lane.b32.xlu0 %v12208_v6, %s18985_s0  ;;  %12384 = vrot.lane.b32.xlu1 %v12360_v39, %s18986_s18 }
0x3802   :  { %v18209_v57 = vpop.f32.mrf.mxu1 }
0x3803   :  { %v12522_v57 = vrot.slane %v21087_v34, %v19405_v41 }
0x3805   :  { %12398 = vrot.lane.b32.xlu0 %v21066_v36, %s18984_s17 }
0x386a   :  { %v12375_v63 = vpop.permute.xlu1 %12374 }
0x386b   :  { %v12369_v48 = vpop.permute.xlu0 %12368 }
0x386c   :  { %v12389_v37 = vsel %vm364_vm4, %v11904_v45, %v12369_v48 }
0x386e   :  { %v12383_v49 = vpop.permute.xlu1 %12382 }
0x386f   :  { %v12367_v61 = vpop.permute.xlu0 %12366 }
0x3870   :  { %v12388_v30 = vsel %vm364_vm4, %v11828_v58, %v12367_v61  ;;  %v16581_v58 = vld [vmem:[%s21970_s8 + $0xa0] sm:$0xff]  ;;  %v12528_v61 = vrot.slane %v21087_v34, %v19465_v51 }
0x3871   :  { %v12390_v13 = vsel %vm1693_vm5, %v12388_v30, %v12375_v63 }
0x3872   :  { %v12392_v43 = vsel %vm1696_vm6, %v12390_v13, %v12383_v49 }
0x3873   :  { %18218 = vmatprep.mubr.msk.f32.mxu0 %vm266_vm2, %v12392_v43  ;;  %v12377_v1 = vpop.permute.xlu0 %12376  ;;  %v12385_v28 = vpop.permute.xlu1 %12384 }
0x3874   :  { %v12391_v52 = vsel %vm1693_vm5, %v12389_v37, %v12377_v1 }
0x3875   :  { %v12393_v36 = vsel %vm1696_vm6, %v12391_v52, %v12385_v28  ;;  %v16650_v52 = vld [vmem:[%s21971_s9 + $0x58] sm:$0xff]  ;;  %v16649_v28 = vld [vmem:[%s21971_s9 + $0x50] sm:$0xff] }
0x3877   :  { %v12399_v27 = vpop.permute.xlu0 %12398 }
0x3878   :  { %18216 = vmatprep.subr.mxu0 %v12399_v27 }
0x3879   :  { %18217 = vmatpush3.msra.mxu0 %v12399_v27  ;;  %v16648_v27 = vld [vmem:[%s21971_s9 + $0x48] sm:$0xff] }
0x387a   :  { %18219 = vmatmul.mubr.msk.f32.vlgmr.msra.gmra.mxu0 %vm266_vm2, %v12393_v36  ;;  %18232 = vmatprep.subr.mxu0 %v16654_v46  ;;  %v16647_v36 = vld [vmem:[%s21971_s9 + $0x40] sm:$0xff] }
0x387b   :  { %18233 = vmatpush3.msra.mxu0 %v16654_v46 }
0x387c   :  { %18234 = vmatprep.subr.mxu0 %v16653_v44 }
0x387d   :  { %18235 = vmatpush3.msra.mxu0 %v16653_v44 }
0x387e   :  { %18236 = vmatprep.subr.mxu0 %v16652_v35 }
0x387f   :  { %18237 = vmatpush3.msra.mxu0 %v16652_v35  ;;  %v21362_v35 = vld [vmem:[%s21970_s8 + $0x108] sm:$0xff] }
0x3880   :  { %18238 = vmatprep.subr.mxu0 %v16651_v31 }
0x3881   :  { %18239 = vmatpush3.msra.mxu0 %v16651_v31  ;;  %v21367_v31 = vld [vmem:[%s21970_s8 + $0xf0] sm:$0xff] }
0x3882   :  { %18240 = vmatprep.subr.mxu0 %v16650_v52 }
0x3883   :  { %18241 = vmatpush3.msra.mxu0 %v16650_v52 }
0x3884   :  { %18242 = vmatprep.subr.mxu0 %v16649_v28 }
0x3885   :  { %18243 = vmatpush3.msra.mxu0 %v16649_v28 }
0x3886   :  { %18244 = vmatprep.subr.mxu0 %v16648_v27 }
0x3887   :  { %18245 = vmatpush3.msra.mxu0 %v16648_v27  ;;  %v21405_v27 = vld [vmem:[%s21972_s10 + $0x20] sm:$0xff] }
0x3888   :  { %18246 = vmatprep.subr.mxu0 %v16647_v36 }
0x3889   :  { %18247 = vmatpush3.msra.mxu0 %v16647_v36 }
0x388a   :  { %18272 = vmatprep.subr.mxu0 %v18975_v21 }
0x393a   :  { %v18220_v4 = vpop.f32.mrf.mxu0 }
0x393b   :  { %v12488_v26 = vadd.f32 %v18220_v4, %v12397_v50 }
0x393c   :  { %v12482_v47 = vpop.f32.mrf.mxu0 }
0x393d   :  { %v12492_v59 = vadd.f32 %v12488_v26, %v21093_v15  ;;  %v12483_v8 = vadd.f32 %v12482_v47, %v12397_v50  ;;  %v12534_v50 = vrot.slane %v21294_v12, %v19443_v18 }
0x393f   :  { %v12491_v0 = vadd.f32 %v12483_v8, %v21091_v56  ;;  %v12496_v3 = vsel %vm266_vm2, %v12492_v59, 0.0  ;;  %v16584_v56 = vld [vmem:[%s21970_s8 + $0xb8] sm:$0xff] }
0x3940   :  { %12497 = vadd.xlane.f32.xlu1 %v12496_v3  ;;  %18221 = vmatprep.subr.mxu1 %v16584_v56  ;;  %v12630_v3 = vrot.slane %v21294_v12, %v19512_v19 }
0x3941   :  { %v12493_v23 = vsel %vm266_vm2, %v12491_v0, 0.0  ;;  %18222 = vmatpush3.msra.mxu1 %v16584_v56 }
0x3942   :  { %12494 = vadd.xlane.f32.xlu0 %v12493_v23  ;;  %18223 = vmatprep.subr.mxu1 %v16581_v58 }
0x3943   :  { %18224 = vmatpush3.msra.mxu1 %v16581_v58 }
0x3944   :  { %18225 = vmatprep.subr.mxu1 %v16578_v53 }
0x3945   :  { %18226 = vmatpush3.msra.mxu1 %v16578_v53 }
0x3946   :  { %18227 = vmatprep.subr.mxu1 %v16575_v20 }
0x3947   :  { %18228 = vmatpush3.msra.mxu1 %v16575_v20 }
0x3948   :  { %18251 = vmatprep.subr.mxu1 %v21362_v35 }
0x39c9   :  { %v12498_v22 = vpop.xlane.xlu1 %12497 }
0x39ca   :  { %v12500_v25 = vmul.f32 0.03125, %v12498_v22 }
0x39cb   :  { %v12495_v54 = vpop.xlane.xlu0 %12494 }
0x39cc   :  { %v12499_v55 = vmul.f32 0.03125, %v12495_v54  ;;  %v12502_v33 = vsub.f32 %v12492_v59, %v12500_v25 }
0x39ce   :  { %v12501_v16 = vsub.f32 %v12491_v0, %v12499_v55  ;;  %v12504_v42 = vmul.f32 %v12502_v33, %v12502_v33 }
0x39d0   :  { %v12503_v29 = vmul.f32 %v12501_v16, %v12501_v16  ;;  %v12508_v15 = vsel %vm266_vm2, %v12504_v42, 0.0 }
0x39d2   :  { %v12505_v45 = vsel %vm266_vm2, %v12503_v29, 0.0 }
0x39d3   :  { %12506 = vadd.xlane.f32.xlu0 %v12505_v45 }
0x39d7   :  { %12509 = vadd.xlane.f32.xlu0 %v12508_v15 }
0x3a5c   :  { %v12507_v5 = vpop.xlane.xlu0 %12506 }
0x3a5d   :  { %v12511_v62 = vmul.f32 0.03125, %v12507_v5  ;;  %v21374_v5 = vld [vmem:[%s21970_s8 + $0xd8] sm:$0xff] }
0x3a5f   :  { %v12513_v6 = vadd.f32 1e-05, %v12511_v62  ;;  %v21381_v62 = vld [vmem:[%s21970_s8 + $0xc0] sm:$0xff] }
0x3a60   :  { %v12510_v10 = vpop.xlane.xlu0 %12509 }
0x3a61   :  { %18795 = vrsqrt.f32 %v12513_v6  ;;  %v12512_v11 = vmul.f32 0.03125, %v12510_v10 }
0x3a63   :  { %v12514_v39 = vadd.f32 1e-05, %v12512_v11 }
0x3a65   :  { %18797 = vrsqrt.f32 %v12514_v39 }
0x3a6e   :  { %v18796_v63 = vpop.eup %18795 }
0x3a6f   :  { %v12517_v48 = vmul.f32 %v18796_v63, %v12501_v16 }
0x3a71   :  { %v12523_v49 = vmul.f32 %v12522_v57, %v12517_v48 }
0x3a72   :  { %v18798_v30 = vpop.eup %18797 }
0x3a73   :  { %v12518_v13 = vmul.f32 %v18798_v30, %v12502_v33  ;;  %v12529_v43 = vadd.f32 %v12528_v61, %v12523_v49 }
0x3a75   :  { %v12524_v1 = vmul.f32 %v12522_v57, %v12518_v13  ;;  %18229 = vmatprep.mubr.msk.f32.mxu1 %vm266_vm2, %v12529_v43 }
0x3a77   :  { %v12530_v37 = vadd.f32 %v12528_v61, %v12524_v1  ;;  %v12743_v61 = vrot.slane %v21087_v34, %v19474_v40  ;;  %v12749_v1 = vrot.slane %v21087_v34, %v19440_v17  ;;  %v12771_v34 = vrot.slane %v21405_v27, %v19168_v32 }
0x3a79   :  { %18230 = vmatmul.mubr.msk.f32.vlgmr.msra.gmra.mxu1 %vm266_vm2, %v12530_v37 }
0x3a7a   :  { %18252 = vmatpush3.msra.mxu1 %v21362_v35 }
0x3a7b   :  { %18253 = vmatprep.subr.mxu1 %v21367_v31 }
0x3a7c   :  { %18254 = vmatpush3.msra.mxu1 %v21367_v31 }
0x3a7d   :  { %18255 = vmatprep.subr.mxu1 %v21374_v5 }
0x3a7e   :  { %18256 = vmatpush3.msra.mxu1 %v21374_v5 }
0x3a7f   :  { %18257 = vmatprep.subr.mxu1 %v21381_v62 }
0x3a80   :  { %18258 = vmatpush3.msra.mxu1 %v21381_v62 }
0x3a81   :  { %18262 = vmatprep.subr.mxu1 %v18975_v21 }
0x3b39   :  { %v18231_v4 = vpop.f32.mrf.mxu1 }
0x3b3a   :  { %v12613_v26 = vadd.f32 %v18231_v4, %v12534_v50 }
0x3b3b   :  { %v12607_v47 = vpop.f32.mrf.mxu1 }
0x3b3c   :  { %v12608_v59 = vadd.f32 %v12607_v47, %v12534_v50  ;;  %v12617_v0 = vmax.f32 %v12613_v26, 0.0 }
0x3b3e   :  { %v12616_v8 = vmax.f32 %v12608_v59, 0.0 }
0x3b40   :  { %18248 = vmatprep.mubr.msk.f32.mxu0 %vm1940_vm7, %v12616_v8 }
0x3b41   :  { %18249 = vmatmul.mubr.msk.f32.vlgmr.msra.gmra.mxu0 %vm1940_vm7, %v12617_v0 }
0x3b42   :  { %18274 = vmatprep.mubr.msk.f32.mxu0 %vm18977_vm3, %v18975_v21 }
0x3c01   :  { %v18250_v23 = vpop.f32.mrf.mxu0 }
0x3c02   :  { %v12709_v22 = vadd.f32 %v18250_v23, %v12630_v3 }
0x3c03   :  { %v12703_v25 = vpop.f32.mrf.mxu0 }
0x3c04   :  { %v12713_v54 = vadd.f32 %v12709_v22, %v12530_v37  ;;  %v12704_v55 = vadd.f32 %v12703_v25, %v12630_v3 }
0x3c06   :  { %v12712_v33 = vadd.f32 %v12704_v55, %v12529_v43  ;;  %v12717_v16 = vsel %vm266_vm2, %v12713_v54, 0.0 }
0x3c07   :  { %12718 = vadd.xlane.f32.xlu0 %v12717_v16 }
0x3c08   :  { %v12714_v29 = vsel %vm266_vm2, %v12712_v33, 0.0 }
0x3c09   :  { %12715 = vadd.xlane.f32.xlu1 %v12714_v29 }
0x3c90   :  { %v12719_v45 = vpop.xlane.xlu0 %12718 }
0x3c91   :  { %v12721_v42 = vmul.f32 0.03125, %v12719_v45 }
0x3c92   :  { %v12716_v15 = vpop.xlane.xlu1 %12715 }
0x3c93   :  { %v12723_v56 = vsub.f32 %v12713_v54, %v12721_v42  ;;  %v12720_v58 = vmul.f32 0.03125, %v12716_v15 }
0x3c95   :  { %v12722_v53 = vsub.f32 %v12712_v33, %v12720_v58  ;;  %v12725_v20 = vmul.f32 %v12723_v56, %v12723_v56 }
0x3c97   :  { %v12729_v12 = vsel %vm266_vm2, %v12725_v20, 0.0  ;;  %v12724_v46 = vmul.f32 %v12722_v53, %v12722_v53 }
0x3c98   :  { %12730 = vadd.xlane.f32.xlu0 %v12729_v12 }
0x3c99   :  { %v12726_v44 = vsel %vm266_vm2, %v12724_v46, 0.0 }
0x3c9a   :  { %12727 = vadd.xlane.f32.xlu1 %v12726_v44 }
0x3d21   :  { %v12731_v6 = vpop.xlane.xlu0 %12730 }
0x3d22   :  { %v12733_v10 = vmul.f32 0.03125, %v12731_v6 }
0x3d23   :  { %v12728_v11 = vpop.xlane.xlu1 %12727 }
0x3d24   :  { %v12735_v39 = vadd.f32 1e-05, %v12733_v10  ;;  %v12732_v57 = vmul.f32 0.03125, %v12728_v11 }
0x3d26   :  { %18799 = vrsqrt.f32 %v12735_v39  ;;  %v12734_v63 = vadd.f32 1e-05, %v12732_v57 }
0x3d28   :  { %18801 = vrsqrt.f32 %v12734_v63 }
0x3d33   :  { %v18800_v48 = vpop.eup %18799 }
0x3d34   :  { %v12739_v49 = vmul.f32 %v18800_v48, %v12723_v56 }
0x3d35   :  { %v18802_v30 = vpop.eup %18801 }
0x3d36   :  { %v12738_v13 = vmul.f32 %v18802_v30, %v12722_v53  ;;  %v12745_v43 = vmul.f32 %v12743_v61, %v12739_v49 }
0x3d38   :  { %v12744_v37 = vmul.f32 %v12743_v61, %v12738_v13  ;;  %v21394_v28 = vadd.f32 %v12749_v1, %v12745_v43 }
0x3d3a   :  { %v21392_v52 = vadd.f32 %v12749_v1, %v12744_v37 }
0x3d3c   :  { %18259 = vmatprep.mubr.msk.f32.mxu1 %vm266_vm2, %v21392_v52 }
0x3d3d   :  { %18260 = vmatmul.mubr.msk.f32.vlgmr.msra.gmra.mxu1 %vm266_vm2, %v21394_v28 }
0x3d3e   :  { %18264 = vmatprep.mubr.msk.f32.mxu1 %vm18977_vm3, %v18975_v21 }
0x3dfd   :  { %v18261_v36 = vpop.f32.mrf.mxu1 }
0x3dfe   :  { %v21409_v50 = vadd.f32 %v18261_v36, %v12771_v34 }
0x3dff   :  { %v12844_v4 = vpop.f32.mrf.mxu1 }
0x3e00   :  { %v21411_v26 = vadd.f32 %v12844_v4, %v12771_v34  ;;  %12857 = vrot.lane.b32.xlu0 %v21409_v50, %s18979_s27 }
0x3e02   :  { %12855 = vrot.lane.b32.xlu1 %v21411_v26, %s18979_s27 }
0x3e04   :  { %12863 = vrot.lane.b32.xlu0 %v21411_v26, %s18980_s30 }
0x3e06   :  { %12859 = vrot.lane.b32.xlu1 %v21411_v26, %s18978_s26 }
0x3e08   :  { %12867 = vrot.lane.b32.xlu0 %v21411_v26, %s18981_s14 }
0x3e0a   :  { %12861 = vrot.lane.b32.xlu1 %v21409_v50, %s18978_s26 }
0x3e0e   :  { %12865 = vrot.lane.b32.xlu1 %v21409_v50, %s18980_s30 }
0x3e12   :  { %12943 = vrot.lane.b32.xlu1 %v21409_v50, %s18981_s14 }
0x3e72   :  { %v21429_v47 = vpop.permute.xlu0 %12857 }
0x3e73   :  { %13095 = vrot.lane.b32.xlu1 %v21429_v47, %s18981_s14 }
0x3e74   :  { %v21433_v59 = vpop.permute.xlu1 %12855 }
0x3e75   :  { %13019 = vrot.lane.b32.xlu0 %v21433_v59, %s18981_s14 }
0x3e76   :  { %v21437_v8 = vpop.permute.xlu0 %12863 }
0x3e78   :  { %v21439_v0 = vpop.permute.xlu1 %12859 }
0x3e79   :  { %13171 = vrot.lane.b32.xlu0 %v21439_v0, %s18981_s14 }
0x3e7a   :  { %v12868_v3 = vpop.permute.xlu0 %12867 }
0x3e7b   :  { %18263 = vmatpush3.xpose.msk.msra.mxu1 %vm364_vm4, %v12868_v3 }
0x3e7c   :  { %v21444_v23 = vpop.permute.xlu1 %12861  ;;  %18267 = vmatprep.subr.mxu1 %v18975_v21 }
0x3e7d   :  { %13323 = vrot.lane.b32.xlu0 %v21437_v8, %s18981_s14  ;;  %13247 = vrot.lane.b32.xlu1 %v21444_v23, %s18981_s14 }
0x3e7e   :  { %18265 = vmatmul.mubr.msk.f32.vlgmr.msra.gmra.mxu1 %vm364_vm4, %v21411_v26 }
0x3e7f   :  { %18269 = vmatprep.mubr.msk.f32.mxu1 %vm18977_vm3, %v18975_v21 }
0x3e80   :  { %v21455_v22 = vpop.permute.xlu1 %12865 }
0x3e81   :  { %13399 = vrot.lane.b32.xlu1 %v21455_v22, %s18981_s14 }
0x3e84   :  { %v12944_v25 = vpop.permute.xlu1 %12943 }
0x3e85   :  { %18268 = vmatpush3.xpose.msk.msra.mxu1 %vm364_vm4, %v12944_v25 }
0x3e86   :  { %18277 = vmatprep.subr.mxu1 %v18975_v21 }
0x3e88   :  { %18270 = vmatmul.mubr.msk.f32.vlgmr.msra.gmra.mxu1 %vm364_vm4, %v21409_v50 }
0x3e89   :  { %18279 = vmatprep.mubr.msk.f32.mxu1 %vm18977_vm3, %v18975_v21 }
0x3ee5   :  { %v13096_v54 = vpop.permute.xlu1 %13095 }
0x3ee6   :  { %18278 = vmatpush3.xpose.msk.msra.mxu1 %vm364_vm4, %v13096_v54 }
0x3ee7   :  { %v13020_v55 = vpop.permute.xlu0 %13019  ;;  %18287 = vmatprep.subr.mxu1 %v18975_v21 }
0x3ee8   :  { %18273 = vmatpush3.xpose.msk.msra.mxu0 %vm364_vm4, %v13020_v55 }
0x3ee9   :  { %18280 = vmatmul.mubr.msk.f32.vlgmr.msra.gmra.mxu1 %vm364_vm4, %v21429_v47  ;;  %18282 = vmatprep.subr.mxu0 %v18975_v21 }
0x3eea   :  { %18289 = vmatprep.mubr.msk.f32.mxu1 %vm18977_vm3, %v18975_v21 }
0x3eeb   :  { %18275 = vmatmul.mubr.msk.f32.vlgmr.msra.gmra.mxu0 %vm364_vm4, %v21433_v59  ;;  %v13172_v33 = vpop.permute.xlu0 %13171 }
0x3eec   :  { %18283 = vmatpush3.xpose.msk.msra.mxu0 %vm364_vm4, %v13172_v33  ;;  %18284 = vmatprep.mubr.msk.f32.mxu0 %vm18977_vm3, %v18975_v21 }
0x3eed   :  { %18292 = vmatprep.subr.mxu0 %v18975_v21 }
0x3eef   :  { %18285 = vmatmul.mubr.msk.f32.vlgmr.msra.gmra.mxu0 %vm364_vm4, %v21439_v0  ;;  %v13324_v16 = vpop.permute.xlu0 %13323  ;;  %v13248_v29 = vpop.permute.xlu1 %13247 }
0x3ef0   :  { %18288 = vmatpush3.xpose.msk.msra.mxu1 %vm364_vm4, %v13248_v29  ;;  %18293 = vmatpush3.xpose.msk.msra.mxu0 %vm364_vm4, %v13324_v16 }
0x3ef1   :  { %18294 = vmatprep.mubr.msk.f32.mxu0 %vm18977_vm3, %v18975_v21  ;;  %18297 = vmatprep.subr.mxu1 %v18975_v21 }
0x3ef2   :  { %18302 = vmatprep.subr.mxu0 %v18975_v21 }
0x3ef3   :  { %18290 = vmatmul.mubr.msk.f32.vlgmr.msra.gmra.mxu1 %vm364_vm4, %v21444_v23  ;;  %18295 = vmatmul.mubr.msk.f32.vlgmr.msra.gmra.mxu0 %vm364_vm4, %v21437_v8  ;;  %v13400_v45 = vpop.permute.xlu1 %13399 }
0x3ef4   :  { %18298 = vmatpush3.xpose.msk.msra.mxu1 %vm364_vm4, %v13400_v45  ;;  %18299 = vmatprep.mubr.msk.f32.mxu1 %vm18977_vm3, %v18975_v21 }
0x3ef5   :  { %18307 = vmatprep.subr.mxu1 %v18975_v21  ;;  %18304 = vmatprep.mubr.msk.f32.mxu0 %vm18977_vm3, %v18975_v21 }
0x3ef7   :  { %18300 = vmatmul.mubr.msk.f32.vlgmr.msra.gmra.mxu1 %vm364_vm4, %v21455_v22 }
0x3ef8   :  { %18309 = vmatprep.mubr.msk.f32.mxu1 %vm18977_vm3, %v18975_v21 }
0x3f3e   :  { %v12939_v42 = vpop.f32.mrf.mxu1 }
0x3f3f   :  { %v12940_v15 = vadd.f32 %v12939_v42, %v20317_v7 }
0x3f40   :  { %v18266_v56 = vpop.f32.mrf.mxu1 }
0x3f41   :  { %v13475_v58 = vsel %vm364_vm4, %v12940_v15, -inf }
0x3f42   :  { %13476 = vmax.xlane.f32.xlu0 %v13475_v58 }
0x3f48   :  { %v13015_v53 = vpop.f32.mrf.mxu1 }
0x3f49   :  { %v13016_v20 = vadd.f32 %v13015_v53, %v20322_v38 }
0x3f4a   :  { %v18271_v12 = vpop.f32.mrf.mxu1 }
0x3f4b   :  { %v13478_v46 = vsel %vm364_vm4, %v13016_v20, -inf }
0x3f4c   :  { %13479 = vmax.xlane.f32.xlu1 %v13478_v46 }
0x3fa9   :  { %v13167_v44 = vpop.f32.mrf.mxu1 }
0x3faa   :  { %v13168_v57 = vadd.f32 %v13167_v44, %v20322_v38 }
0x3fab   :  { %v13091_v6 = vpop.f32.mrf.mxu0  ;;  %v18281_v10 = vpop.f32.mrf.mxu1 }
0x3fac   :  { %v13092_v11 = vadd.f32 %v13091_v6, %v20317_v7  ;;  %v13484_v13 = vsel %vm364_vm4, %v13168_v57, -inf }
0x3fad   :  { %v18276_v39 = vpop.f32.mrf.mxu0 }
0x3fae   :  { %v13481_v63 = vsel %vm364_vm4, %v13092_v11, -inf }
0x3faf   :  { %13482 = vmax.xlane.f32.xlu0 %v13481_v63  ;;  %v13243_v48 = vpop.f32.mrf.mxu0 }
0x3fb0   :  { %v13244_v61 = vadd.f32 %v13243_v48, %v20317_v7 }
0x3fb1   :  { %v18286_v49 = vpop.f32.mrf.mxu0 }
0x3fb2   :  { %v13487_v30 = vsel %vm364_vm4, %v13244_v61, -inf }
0x3fb3   :  { %v13395_v43 = vpop.f32.mrf.mxu0  ;;  %13488 = vmax.xlane.f32.xlu1 %v13487_v30  ;;  %13485 = vmax.xlane.f32.xlu0 %v13484_v13  ;;  %v13319_v1 = vpop.f32.mrf.mxu1 }
0x3fb4   :  { %v13396_v37 = vadd.f32 %v13395_v43, %v20317_v7  ;;  %v13320_v34 = vadd.f32 %v13319_v1, %v20322_v38 }
0x3fb5   :  { %v18291_v36 = vpop.f32.mrf.mxu1  ;;  %v18296_v4 = vpop.f32.mrf.mxu0 }
0x3fb6   :  { %v13493_v3 = vsel %vm364_vm4, %v13396_v37, -inf  ;;  %v13490_v25 = vsel %vm364_vm4, %v13320_v34, -inf }
0x3fb7   :  { %13494 = vmax.xlane.f32.xlu1 %v13493_v3  ;;  %13491 = vmax.xlane.f32.xlu0 %v13490_v25  ;;  %v13471_v54 = vpop.f32.mrf.mxu1 }
0x3fb8   :  { %v13472_v55 = vadd.f32 %v13471_v54, %v20322_v38 }
0x3fb9   :  { %v18301_v33 = vpop.f32.mrf.mxu1 }
0x3fba   :  { %v13496_v16 = vsel %vm364_vm4, %v13472_v55, -inf }
0x3fbb   :  { %13497 = vmax.xlane.f32.xlu0 %v13496_v16 }
0x3fc8   :  { %13563 = vrot.lane.b32.xlu1 %v21411_v26, %s18983_s2 }
0x3fcb   :  { %v13477_v29 = vpop.xlane.xlu0 %13476 }
0x3fcc   :  { %13715 = vrot.lane.b32.xlu1 %v21433_v59, %s18983_s2  ;;  %v13499_v45 = vsub.f32 %v12940_v15, %v13477_v29 }
0x3fce   :  { %v13507_v42 = vmul.f32 1.442695, %v13499_v45 }
0x3fd0   :  { %13791 = vrot.lane.b32.xlu1 %v21429_v47, %s18983_s2 }
0x3fd1   :  { %13639 = vrot.lane.b32.xlu0 %v21409_v50, %s18983_s2 }
0x3fd4   :  { %13943 = vrot.lane.b32.xlu1 %v21444_v23, %s18983_s2 }
0x3fd5   :  { %13867 = vrot.lane.b32.xlu0 %v21439_v0, %s18983_s2  ;;  %v13480_v7 = vpop.xlane.xlu1 %13479 }
0x3fd6   :  { %v13500_v38 = vsub.f32 %v13016_v20, %v13480_v7 }
0x3fd8   :  { %v13509_v26 = vmul.f32 1.442695, %v13500_v38 }
0x3fda   :  { %18803 = vpow2.f32 %v13509_v26 }
0x3fdb   :  { %18805 = vpow2.f32 %v13507_v42 }
0x3fe7   :  { %v21529_v59 = vpop.eup %18803 }
0x3fe8   :  { %v13526_v47 = vsel %vm364_vm4, %v21529_v59, 0.0  ;;  %v21533_v50 = vpop.eup %18805 }
0x3fe9   :  { %v13523_v23 = vsel %vm364_vm4, %v21533_v50, 0.0 }
0x3ff4   :  { %13527 = vadd.xlane.f32.xlu0 %v13526_v47 }
0x3ff8   :  { %13524 = vadd.xlane.f32.xlu1 %v13523_v23 }
0x4038   :  { %v13483_v0 = vpop.xlane.xlu0 %13482 }
0x4039   :  { %v13501_v56 = vsub.f32 %v13092_v11, %v13483_v0 }
0x403b   :  { %v13511_v58 = vmul.f32 1.442695, %v13501_v56 }
0x403c   :  { %v13486_v15 = vpop.xlane.xlu0 %13485  ;;  %v13489_v53 = vpop.xlane.xlu1 %13488 }
0x403d   :  { %18807 = vpow2.f32 %v13511_v58  ;;  %v13502_v20 = vsub.f32 %v13168_v57, %v13486_v15  ;;  %v13503_v12 = vsub.f32 %v13244_v61, %v13489_v53 }
0x403f   :  { %v13513_v46 = vmul.f32 1.442695, %v13502_v20  ;;  %v13515_v44 = vmul.f32 1.442695, %v13503_v12 }
0x4040   :  { %v13492_v6 = vpop.xlane.xlu0 %13491  ;;  %v13495_v10 = vpop.xlane.xlu1 %13494 }
0x4041   :  { %18809 = vpow2.f32 %v13513_v46  ;;  %v13504_v39 = vsub.f32 %v13320_v34, %v13492_v6  ;;  %v13505_v63 = vsub.f32 %v13396_v37, %v13495_v10 }
0x4042   :  { %18811 = vpow2.f32 %v13515_v44 }
0x4043   :  { %v13517_v48 = vmul.f32 1.442695, %v13504_v39  ;;  %v13519_v49 = vmul.f32 1.442695, %v13505_v63 }
0x4044   :  { %v13498_v30 = vpop.xlane.xlu0 %13497  ;;  %v13564_v13 = vpop.permute.xlu1 %13563 }
0x4045   :  { %18813 = vpow2.f32 %v13517_v48  ;;  %v13506_v11 = vsub.f32 %v13472_v55, %v13498_v30  ;;  %18303 = vmatpush3.msra.mxu0 %v13564_v13 }
0x4046   :  { %18815 = vpow2.f32 %v13519_v49  ;;  %18312 = vmatprep.subr.mxu0 %v18975_v21 }
0x4047   :  { %v13521_v57 = vmul.f32 1.442695, %v13506_v11 }
0x4048   :  { %v13640_v61 = vpop.permute.xlu0 %13639  ;;  %v13716_v7 = vpop.permute.xlu1 %13715 }
0x4049   :  { %18817 = vpow2.f32 %v13521_v57  ;;  %18308 = vmatpush3.msra.mxu1 %v13640_v61 }
0x404a   :  { %v18808_v43 = vpop.eup %18807  ;;  %18317 = vmatprep.subr.mxu1 %v18975_v21 }
0x404b   :  { %v13529_v1 = vsel %vm364_vm4, %v18808_v43, 0.0 }
0x404c   :  { %13530 = vadd.xlane.f32.xlu1 %v13529_v1  ;;  %v13792_v38 = vpop.permute.xlu1 %13791  ;;  %v13868_v29 = vpop.permute.xlu0 %13867 }
0x404e   :  { %v18810_v37 = vpop.eup %18809 }
0x404f   :  { %v18812_v34 = vpop.eup %18811  ;;  %v13532_v36 = vsel %vm364_vm4, %v18810_v37, 0.0 }
0x4050   :  { %13533 = vadd.xlane.f32.xlu0 %v13532_v36  ;;  %v13535_v4 = vsel %vm364_vm4, %v18812_v34, 0.0  ;;  %v13944_v45 = vpop.permute.xlu1 %13943 }
0x4051   :  { %13536 = vadd.xlane.f32.xlu1 %v13535_v4 }
0x4052   :  { %v18814_v3 = vpop.eup %18813 }
0x4053   :  { %v21542_v25 = vpop.eup %18815  ;;  %v13538_v54 = vsel %vm364_vm4, %v18814_v3, 0.0 }
0x4054   :  { %13539 = vadd.xlane.f32.xlu0 %v13538_v54  ;;  %v13541_v55 = vsel %vm364_vm4, %v21542_v25, 0.0 }
0x4055   :  { %13542 = vadd.xlane.f32.xlu1 %v13541_v55 }
0x4056   :  { %v21547_v33 = vpop.eup %18817 }
0x4057   :  { %v13544_v16 = vsel %vm364_vm4, %v21547_v33, 0.0 }
0x4058   :  { %13545 = vadd.xlane.f32.xlu0 %v13544_v16 }
0x4066   :  { %14095 = vrot.lane.b32.xlu1 %v21455_v22, %s18983_s2 }
0x406a   :  { %14213 = vrot.lane.b32.xlu1 %v21367_v31, %s18984_s17 }
0x406e   :  { %14019 = vrot.lane.b32.xlu0 %v21437_v8, %s18983_s2  ;;  %14211 = vrot.lane.b32.xlu1 %v21374_v5, %s18984_s17 }
0x4072   :  { %14215 = vrot.lane.b32.xlu0 %v21362_v35, %s18984_s17 }
0x407d   :  { %v13528_v26 = vpop.xlane.xlu0 %13527 }
0x407e   :  { %18819 = vrcp.f32 %v13528_v26 }
0x4081   :  { %v13525_v42 = vpop.xlane.xlu1 %13524 }
0x4082   :  { %18821 = vrcp.f32 %v13525_v42 }
0x408b   :  { %v18820_v22 = vpop.eup %18819 }
0x408c   :  { %v13556_v31 = vmul.f32 %v18820_v22, %v21529_v59 }
0x408e   :  { %18310 = vmatmul.mubr.msk.f32.vlgmr.msra.gmra.mxu1 %vm364_vm4, %v13556_v31 }
0x408f   :  { %v18822_v8 = vpop.eup %18821  ;;  %18318 = vmatpush3.msra.mxu1 %v13792_v38  ;;  %18319 = vmatprep.mubr.msk.f32.mxu1 %vm18977_vm3, %v18975_v21 }
0x4090   :  { %v13555_v5 = vmul.f32 %v18822_v8, %v21533_v50  ;;  %18327 = vmatprep.subr.mxu1 %v18975_v21 }
0x4092   :  { %18305 = vmatmul.mubr.msk.f32.vlgmr.msra.gmra.mxu0 %vm364_vm4, %v13555_v5 }
0x4093   :  { %18313 = vmatpush3.msra.mxu0 %v13716_v7  ;;  %18314 = vmatprep.mubr.msk.f32.mxu0 %vm18977_vm3, %v18975_v21 }
0x4094   :  { %18322 = vmatprep.subr.mxu0 %v18975_v21 }
0x40d5   :  { %v13531_v35 = vpop.xlane.xlu1 %13530 }
0x40d6   :  { %18823 = vrcp.f32 %v13531_v35 }
0x40d9   :  { %v13534_v59 = vpop.xlane.xlu0 %13533 }
0x40da   :  { %18825 = vrcp.f32 %v13534_v59  ;;  %v13537_v47 = vpop.xlane.xlu1 %13536 }
0x40db   :  { %18827 = vrcp.f32 %v13537_v47 }
0x40dd   :  { %v13540_v23 = vpop.xlane.xlu0 %13539 }
0x40de   :  { %18829 = vrcp.f32 %v13540_v23  ;;  %v13543_v0 = vpop.xlane.xlu1 %13542 }
0x40df   :  { %18831 = vrcp.f32 %v13543_v0  ;;  %v14204_v0 = vrot.slane %v21405_v27, %v19405_v41 }
0x40e1   :  { %v13546_v50 = vpop.xlane.xlu0 %13545 }
0x40e2   :  { %18833 = vrcp.f32 %v13546_v50  ;;  %v14096_v63 = vpop.permute.xlu1 %14095 }
0x40e3   :  { %v18824_v56 = vpop.eup %18823 }
0x40e4   :  { %v13557_v58 = vmul.f32 %v18824_v56, %v18808_v43 }
0x40e5   :  { %v14020_v44 = vpop.permute.xlu0 %14019 }
0x40e6   :  { %18315 = vmatmul.mubr.msk.f32.vlgmr.msra.gmra.mxu0 %vm364_vm4, %v13557_v58  ;;  %v14214_v30 = vpop.permute.xlu1 %14213 }
0x40e7   :  { %v18826_v15 = vpop.eup %18825  ;;  %18323 = vmatpush3.msra.mxu0 %v13868_v29  ;;  %18324 = vmatprep.mubr.msk.f32.mxu0 %vm18977_vm3, %v18975_v21 }
0x40e8   :  { %v18828_v53 = vpop.eup %18827  ;;  %v13558_v20 = vmul.f32 %v18826_v15, %v18810_v37  ;;  %18332 = vmatprep.subr.mxu0 %v18975_v21 }
0x40e9   :  { %v13559_v12 = vmul.f32 %v18828_v53, %v18812_v34  ;;  %v14216_v13 = vpop.permute.xlu0 %14215 }
0x40ea   :  { %18320 = vmatmul.mubr.msk.f32.vlgmr.msra.gmra.mxu1 %vm364_vm4, %v13558_v20  ;;  %v14212_v11 = vpop.permute.xlu1 %14211 }
0x40eb   :  { %v18830_v46 = vpop.eup %18829  ;;  %18325 = vmatmul.mubr.msk.f32.vlgmr.msra.gmra.mxu0 %vm364_vm4, %v13559_v12  ;;  %18328 = vmatpush3.msra.mxu1 %v13944_v45 }
0x40ec   :  { %v18832_v6 = vpop.eup %18831  ;;  %v13560_v10 = vmul.f32 %v18830_v46, %v18814_v3  ;;  %18333 = vmatpush3.msra.mxu0 %v14020_v44  ;;  %18329 = vmatprep.mubr.msk.f32.mxu1 %vm18977_vm3, %v18975_v21  ;;  %v21641_v44 = vld [vmem:[%s21970_s8 + $0xc8] sm:$0xff] }
0x40ed   :  { %v13561_v39 = vmul.f32 %v18832_v6, %v21542_v25  ;;  %18334 = vmatprep.mubr.msk.f32.mxu0 %vm18977_vm3, %v18975_v21  ;;  %18337 = vmatprep.subr.mxu1 %v18975_v21 }
0x40ee   :  { %18330 = vmatmul.mubr.msk.f32.vlgmr.msra.gmra.mxu1 %vm364_vm4, %v13560_v10  ;;  %18342 = vmatprep.subr.mxu0 %v14216_v13 }
0x40ef   :  { %v18834_v48 = vpop.eup %18833  ;;  %18335 = vmatmul.mubr.msk.f32.vlgmr.msra.gmra.mxu0 %vm364_vm4, %v13561_v39  ;;  %18338 = vmatpush3.msra.mxu1 %v14096_v63 }
0x40f0   :  { %v13562_v49 = vmul.f32 %v18834_v48, %v21547_v33  ;;  %18339 = vmatprep.mubr.msk.f32.mxu1 %vm18977_vm3, %v18975_v21  ;;  %18343 = vmatpush3.msra.mxu0 %v14216_v13 }
0x40f1   :  { %18344 = vmatprep.subr.mxu0 %v14214_v30 }
0x40f2   :  { %18340 = vmatmul.mubr.msk.f32.vlgmr.msra.gmra.mxu1 %vm364_vm4, %v13562_v49  ;;  %18345 = vmatpush3.msra.mxu0 %v14214_v30 }
0x40f3   :  { %18346 = vmatprep.subr.mxu0 %v14212_v11 }
0x40f4   :  { %18347 = vmatpush3.msra.mxu0 %v14212_v11 }
0x414e   :  { %v13711_v57 = vpop.f32.mrf.mxu1 }
0x4150   :  { %v18311_v61 = vpop.f32.mrf.mxu1 }
0x4152   :  { %v13635_v43 = vpop.f32.mrf.mxu0 }
0x4154   :  { %v18306_v1 = vpop.f32.mrf.mxu0 }
0x41a6   :  { %v13787_v37 = vpop.f32.mrf.mxu0 }
0x41a8   :  { %v18316_v34 = vpop.f32.mrf.mxu0 }
0x41aa   :  { %v13863_v36 = vpop.f32.mrf.mxu1 }
0x41ab   :  { %v13939_v4 = vpop.f32.mrf.mxu0  ;;  %14175 = vrot.lane.b32.xlu0 %v13863_v36, %s18972_s29 }
0x41ac   :  { %14181 = vrot.lane.b32.xlu1 %v13939_v4, %s18985_s0  ;;  %v18321_v3 = vpop.f32.mrf.mxu1 }
0x41ad   :  { %v18326_v25 = vpop.f32.mrf.mxu0 }
0x41ae   :  { %v14015_v54 = vpop.f32.mrf.mxu1 }
0x41af   :  { %v14091_v55 = vpop.f32.mrf.mxu0  ;;  %14173 = vrot.lane.b32.xlu0 %v13787_v37, %s18972_s29 }
0x41b0   :  { %14189 = vrot.lane.b32.xlu1 %v14091_v55, %s18986_s18  ;;  %v18331_v33 = vpop.f32.mrf.mxu1 }
0x41b1   :  { %v18336_v16 = vpop.f32.mrf.mxu0 }
0x41b2   :  { %v14167_v7 = vpop.f32.mrf.mxu1  ;;  %v14333_v16 = vrot.slane %v21405_v27, %v19517_v24  ;;  %v14430_v24 = vrot.slane %v21405_v27, %v19474_v40 }
0x41b3   :  { %14183 = vrot.lane.b32.xlu0 %v14015_v54, %s18985_s0 }
0x41b4   :  { %14191 = vrot.lane.b32.xlu1 %v14167_v7, %s18986_s18  ;;  %v18341_v38 = vpop.f32.mrf.mxu1  ;;  %v21662_v7 = vld [vmem:[%s21972_s10 + $0x28] sm:$0x1f] }
0x41b7   :  { %14209 = vrot.lane.b32.xlu0 %v21381_v62, %s18984_s17 }
0x421d   :  { %v14176_v29 = vpop.permute.xlu0 %14175 }
0x421e   :  { %v14182_v45 = vpop.permute.xlu1 %14181  ;;  %v14196_v35 = vsel %vm364_vm4, %v13711_v57, %v14176_v29 }
0x4221   :  { %v14174_v26 = vpop.permute.xlu0 %14173 }
0x4222   :  { %v14195_v42 = vsel %vm364_vm4, %v13635_v43, %v14174_v26  ;;  %v14190_v22 = vpop.permute.xlu1 %14189 }
0x4223   :  { %v14197_v31 = vsel %vm1693_vm5, %v14195_v42, %v14182_v45 }
0x4224   :  { %v14199_v8 = vsel %vm1696_vm6, %v14197_v31, %v14190_v22 }
0x4225   :  { %v14184_v5 = vpop.permute.xlu0 %14183  ;;  %18350 = vmatprep.mubr.msk.f32.mxu0 %vm266_vm2, %v14199_v8 }
0x4226   :  { %v14198_v59 = vsel %vm1693_vm5, %v14196_v35, %v14184_v5  ;;  %v14192_v47 = vpop.permute.xlu1 %14191  ;;  %v14345_v35 = vrot.slane %v21405_v27, %v19465_v51 }
0x4227   :  { %v14200_v62 = vsel %vm1696_vm6, %v14198_v59, %v14192_v47 }
0x4229   :  { %v14210_v23 = vpop.permute.xlu0 %14209 }
0x422a   :  { %18348 = vmatprep.subr.mxu0 %v14210_v23 }
0x422b   :  { %18349 = vmatpush3.msra.mxu0 %v14210_v23 }
0x422c   :  { %18351 = vmatmul.mubr.msk.f32.vlgmr.msra.gmra.mxu0 %vm266_vm2, %v14200_v62 }
0x422d   :  { %18372 = vmatprep.mubr.msk.f32.mxu0 %vm266_vm2, %v20492_v9  ;;  %v21616_v9 = vld [vmem:[%s21970_s8 + $0x110] sm:$0xff] }
0x422e   :  { %18353 = vmatprep.subr.mxu1 %v21616_v9 }
0x422f   :  { %18354 = vmatpush3.msra.mxu1 %v21616_v9 }
0x42ec   :  { %v18352_v50 = vpop.f32.mrf.mxu0 }
0x42ed   :  { %v14299_v56 = vadd.f32 %v18352_v50, %v14204_v0 }
0x42ee   :  { %v14293_v58 = vpop.f32.mrf.mxu0 }
0x42ef   :  { %v14303_v15 = vadd.f32 %v14299_v56, %v21394_v28  ;;  %v14294_v53 = vadd.f32 %v14293_v58, %v14204_v0  ;;  %v21629_v28 = vld [vmem:[%s21970_s8 + $0xf8] sm:$0xff] }
0x42f0   :  { %18355 = vmatprep.subr.mxu1 %v21629_v28 }
0x42f1   :  { %v14302_v20 = vadd.f32 %v14294_v53, %v21392_v52  ;;  %v14307_v12 = vsel %vm266_vm2, %v14303_v15, 0.0  ;;  %v21624_v52 = vld [vmem:[%s21970_s8 + $0xe0] sm:$0xff]  ;;  %18356 = vmatpush3.msra.mxu1 %v21629_v28 }
0x42f2   :  { %14308 = vadd.xlane.f32.xlu1 %v14307_v12  ;;  %18357 = vmatprep.subr.mxu1 %v21624_v52 }
0x42f3   :  { %v14304_v46 = vsel %vm266_vm2, %v14302_v20, 0.0  ;;  %18358 = vmatpush3.msra.mxu1 %v21624_v52 }
0x42f4   :  { %14305 = vadd.xlane.f32.xlu0 %v14304_v46  ;;  %18359 = vmatprep.subr.mxu1 %v21641_v44 }
0x42f5   :  { %18360 = vmatpush3.msra.mxu1 %v21641_v44 }
0x42f6   :  { %18375 = vmatprep.subr.mxu1 %v18975_v21 }
0x4303   :  { %14441 = vrot.lane.b32.xlu1 %v21616_v9, %s18981_s14 }
0x4307   :  { %14437 = vrot.lane.b32.xlu1 %v21624_v52, %s18981_s14 }
0x430b   :  { %14435 = vrot.lane.b32.xlu1 %v21641_v44, %s18981_s14 }
0x437b   :  { %v14309_v6 = vpop.xlane.xlu1 %14308 }
0x437c   :  { %v14311_v10 = vmul.f32 0.03125, %v14309_v6 }
0x437d   :  { %v14306_v39 = vpop.xlane.xlu0 %14305 }
0x437e   :  { %v14313_v63 = vsub.f32 %v14303_v15, %v14311_v10  ;;  %v14310_v48 = vmul.f32 0.03125, %v14306_v39 }
0x437f   :  { %v14442_v61 = vpop.permute.xlu1 %14441 }
0x4380   :  { %v14312_v49 = vsub.f32 %v14302_v20, %v14310_v48  ;;  %v14315_v30 = vmul.f32 %v14313_v63, %v14313_v63  ;;  %18364 = vmatprep.subr.mxu0 %v14442_v61 }
0x4381   :  { %18365 = vmatpush3.msra.mxu0 %v14442_v61 }
0x4382   :  { %v14319_v13 = vsel %vm266_vm2, %v14315_v30, 0.0  ;;  %v14314_v11 = vmul.f32 %v14312_v49, %v14312_v49 }
0x4383   :  { %14320 = vadd.xlane.f32.xlu0 %v14319_v13  ;;  %v14438_v36 = vpop.permute.xlu1 %14437 }
0x4384   :  { %v14316_v57 = vsel %vm266_vm2, %v14314_v11, 0.0 }
0x4387   :  { %14317 = vadd.xlane.f32.xlu0 %v14316_v57  ;;  %v14436_v54 = vpop.permute.xlu1 %14435 }
0x439d   :  { %14439 = vrot.lane.b32.xlu0 %v21629_v28, %s18981_s14 }
0x440c   :  { %v14321_v43 = vpop.xlane.xlu0 %14320 }
0x440d   :  { %v14323_v1 = vmul.f32 0.03125, %v14321_v43 }
0x440f   :  { %v14325_v37 = vadd.f32 1e-05, %v14323_v1 }
0x4410   :  { %v14318_v34 = vpop.xlane.xlu0 %14317 }
0x4411   :  { %18835 = vrsqrt.f32 %v14325_v37  ;;  %v14322_v4 = vmul.f32 0.03125, %v14318_v34 }
0x4413   :  { %v14324_v3 = vadd.f32 1e-05, %v14322_v4 }
0x4414   :  { %v14440_v25 = vpop.permute.xlu0 %14439 }
0x4415   :  { %18837 = vrsqrt.f32 %v14324_v3  ;;  %18366 = vmatprep.subr.mxu0 %v14440_v25 }
0x4416   :  { %18367 = vmatpush3.msra.mxu0 %v14440_v25 }
0x4417   :  { %18368 = vmatprep.subr.mxu0 %v14438_v36 }
0x4418   :  { %18369 = vmatpush3.msra.mxu0 %v14438_v36 }
0x4419   :  { %18370 = vmatprep.subr.mxu0 %v14436_v54 }
0x441a   :  { %18371 = vmatpush3.msra.mxu0 %v14436_v54 }
0x441b   :  { %18373 = vmatmul.mubr.msk.f32.vlgmr.msra.gmra.mxu0 %vm266_vm2, %v20496_v14  ;;  %18385 = vmatprep.subr.mxu0 %v18975_v21  ;;  %v14339_v14 = vrot.slane %v21662_v7, %v19168_v32 }
0x441c   :  { %18387 = vmatprep.mubr.msk.f32.mxu0 %vm18977_vm3, %v18975_v21 }
0x441e   :  { %v18836_v55 = vpop.eup %18835 }
0x441f   :  { %v14329_v33 = vmul.f32 %v18836_v55, %v14313_v63 }
0x4421   :  { %v14335_v45 = vmul.f32 %v14333_v16, %v14329_v33 }
0x4422   :  { %v18838_v38 = vpop.eup %18837 }
0x4423   :  { %v14328_v29 = vmul.f32 %v18838_v38, %v14312_v49  ;;  %v21668_v22 = vadd.f32 %v14339_v14, %v14335_v45 }
0x4425   :  { %v14334_v26 = vmul.f32 %v14333_v16, %v14328_v29 }
0x4427   :  { %v21666_v42 = vadd.f32 %v14339_v14, %v14334_v26 }
0x4429   :  { %18361 = vmatprep.mubr.msk.f32.mxu1 %vm266_vm2, %v21666_v42 }
0x442a   :  { %18362 = vmatmul.mubr.msk.f32.vlgmr.msra.gmra.mxu1 %vm266_vm2, %v21668_v22 }
0x442b   :  { %18377 = vmatprep.mubr.msk.f32.mxu1 %vm18977_vm3, %v18975_v21 }
0x44db   :  { %v18374_v31 = vpop.f32.mrf.mxu0 }
0x44dc   :  { %v21678_v8 = vadd.f32 %v18374_v31, %v14430_v24 }
0x44dd   :  { %v14513_v32 = vpop.f32.mrf.mxu0 }
0x44de   :  { %v21680_v5 = vadd.f32 %v14513_v32, %v14430_v24  ;;  %14540 = vrot.lane.b32.xlu1 %v21678_v8, %s18979_s27 }
0x44e0   :  { %14538 = vrot.lane.b32.xlu0 %v21680_v5, %s18979_s27  ;;  %18376 = vmatpush3.xpose.msk.msra.mxu1 %vm364_vm4, %v21680_v5 }
0x44e1   :  { %18380 = vmatprep.subr.mxu1 %v18975_v21 }
0x44e2   :  { %14544 = vrot.lane.b32.xlu1 %v21678_v8, %s18978_s26 }
0x44e4   :  { %14542 = vrot.lane.b32.xlu0 %v21680_v5, %s18978_s26 }
0x44e6   :  { %14548 = vrot.lane.b32.xlu1 %v21678_v8, %s18980_s30 }
0x44e8   :  { %14546 = vrot.lane.b32.xlu0 %v21680_v5, %s18980_s30 }
0x44ea   :  { %v18363_v59 = vpop.f32.mrf.mxu1 }
0x44eb   :  { %v14424_v47 = vadd.f32 %v18363_v59, %v14345_v35 }
0x44ec   :  { %v14418_v23 = vpop.f32.mrf.mxu1 }
0x44ed   :  { %v14419_v62 = vadd.f32 %v14418_v23, %v14345_v35  ;;  %14526 = vrot.lane.b32.xlu1 %v14424_v47, %s18979_s27 }
0x44ef   :  { %14524 = vrot.lane.b32.xlu0 %v14419_v62, %s18979_s27  ;;  %18378 = vmatmul.mubr.msk.f32.vlgmr.msra.gmra.mxu1 %vm364_vm4, %v14419_v62 }
0x44f0   :  { %18381 = vmatpush3.xpose.msk.msra.mxu1 %vm364_vm4, %v21678_v8  ;;  %18382 = vmatprep.mubr.msk.f32.mxu1 %vm18977_vm3, %v18975_v21 }
0x44f1   :  { %14530 = vrot.lane.b32.xlu1 %v14424_v47, %s18978_s26  ;;  %18390 = vmatprep.subr.mxu1 %v18975_v21 }
0x44f3   :  { %14528 = vrot.lane.b32.xlu0 %v14419_v62, %s18978_s26  ;;  %18383 = vmatmul.mubr.msk.f32.vlgmr.msra.gmra.mxu1 %vm364_vm4, %v14424_v47 }
0x44f4   :  { %18392 = vmatprep.mubr.msk.f32.mxu1 %vm18977_vm3, %v18975_v21 }
0x44f5   :  { %14534 = vrot.lane.b32.xlu1 %v14424_v47, %s18980_s30 }
0x44f7   :  { %14532 = vrot.lane.b32.xlu0 %v14419_v62, %s18980_s30 }
0x4550   :  { %v21714_v27 = vpop.permute.xlu1 %14540 }
0x4551   :  { %18391 = vmatpush3.xpose.msk.msra.mxu1 %vm364_vm4, %v21714_v27 }
0x4552   :  { %v21718_v0 = vpop.permute.xlu0 %14538  ;;  %18400 = vmatprep.subr.mxu1 %v18975_v21 }
0x4553   :  { %18386 = vmatpush3.xpose.msk.msra.mxu0 %vm364_vm4, %v21718_v0 }
0x4554   :  { %18395 = vmatprep.subr.mxu0 %v18975_v21  ;;  %v21724_v50 = vpop.permute.xlu1 %14544 }
0x4556   :  { %v21726_v56 = vpop.permute.xlu0 %14542 }
0x4558   :  { %v21728_v58 = vpop.permute.xlu1 %14548 }
0x455a   :  { %v21730_v15 = vpop.permute.xlu0 %14546 }
0x455f   :  { %v14527_v53 = vpop.permute.xlu1 %14526 }
0x4560   :  { %18393 = vmatmul.mubr.msk.f32.vlgmr.msra.gmra.mxu1 %vm364_vm4, %v14527_v53 }
0x4561   :  { %18401 = vmatpush3.xpose.msk.msra.mxu1 %vm364_vm4, %v21724_v50  ;;  %v14525_v20 = vpop.permute.xlu0 %14524  ;;  %18402 = vmatprep.mubr.msk.f32.mxu1 %vm18977_vm3, %v18975_v21 }
0x4562   :  { %18388 = vmatmul.mubr.msk.f32.vlgmr.msra.gmra.mxu0 %vm364_vm4, %v14525_v20  ;;  %18410 = vmatprep.subr.mxu1 %v18975_v21 }
0x4563   :  { %18396 = vmatpush3.xpose.msk.msra.mxu0 %vm364_vm4, %v21726_v56  ;;  %v14531_v12 = vpop.permute.xlu1 %14530  ;;  %18397 = vmatprep.mubr.msk.f32.mxu0 %vm18977_vm3, %v18975_v21 }
0x4564   :  { %18403 = vmatmul.mubr.msk.f32.vlgmr.msra.gmra.mxu1 %vm364_vm4, %v14531_v12  ;;  %18405 = vmatprep.subr.mxu0 %v18975_v21 }
0x4565   :  { %18411 = vmatpush3.xpose.msk.msra.mxu1 %vm364_vm4, %v21728_v58  ;;  %v14529_v46 = vpop.permute.xlu0 %14528  ;;  %18412 = vmatprep.mubr.msk.f32.mxu1 %vm18977_vm3, %v18975_v21 }
0x4566   :  { %18398 = vmatmul.mubr.msk.f32.vlgmr.msra.gmra.mxu0 %vm364_vm4, %v14529_v46  ;;  %18420 = vmatprep.subr.mxu1 %v18975_v21 }
0x4567   :  { %18406 = vmatpush3.xpose.msk.msra.mxu0 %vm364_vm4, %v21730_v15  ;;  %v14535_v6 = vpop.permute.xlu1 %14534  ;;  %18407 = vmatprep.mubr.msk.f32.mxu0 %vm18977_vm3, %v18975_v21 }
0x4568   :  { %18413 = vmatmul.mubr.msk.f32.vlgmr.msra.gmra.mxu1 %vm364_vm4, %v14535_v6  ;;  %18415 = vmatprep.subr.mxu0 %v18975_v21 }
0x4569   :  { %v14533_v10 = vpop.permute.xlu0 %14532  ;;  %18422 = vmatprep.mubr.msk.f32.mxu1 %vm18977_vm3, %v18975_v21 }
0x456a   :  { %18408 = vmatmul.mubr.msk.f32.vlgmr.msra.gmra.mxu0 %vm364_vm4, %v14533_v10 }
0x456b   :  { %18417 = vmatprep.mubr.msk.f32.mxu0 %vm18977_vm3, %v18975_v21 }
0x45af   :  { %v14620_v39 = vpop.f32.mrf.mxu1 }
0x45b0   :  { %v14621_v63 = vadd.f32 %v14620_v39, %v19278_v60 }
0x45b1   :  { %v18379_v48 = vpop.f32.mrf.mxu1 }
0x45b2   :  { %v15142_v49 = vsel %vm364_vm4, %v14621_v63, -inf }
0x45b3   :  { %15143 = vmax.xlane.f32.xlu0 %v15142_v49  ;;  %v14694_v30 = vpop.f32.mrf.mxu1 }
0x45b4   :  { %v14695_v13 = vadd.f32 %v14694_v30, %v19284_v2 }
0x45b5   :  { %v18384_v11 = vpop.f32.mrf.mxu1 }
0x45b6   :  { %v15145_v57 = vsel %vm364_vm4, %v14695_v13, -inf }
0x45b7   :  { %15146 = vmax.xlane.f32.xlu1 %v15145_v57 }
0x4620   :  { %v14842_v61 = vpop.f32.mrf.mxu1 }
0x4621   :  { %v14843_v4 = vadd.f32 %v14842_v61, %v19284_v2 }
0x4622   :  { %v14768_v43 = vpop.f32.mrf.mxu0  ;;  %v18394_v1 = vpop.f32.mrf.mxu1 }
0x4623   :  { %v14769_v37 = vadd.f32 %v14768_v43, %v19278_v60  ;;  %v15151_v45 = vsel %vm364_vm4, %v14843_v4, -inf }
0x4624   :  { %v18389_v34 = vpop.f32.mrf.mxu0  ;;  %v14990_v36 = vpop.f32.mrf.mxu1 }
0x4625   :  { %v15148_v3 = vsel %vm364_vm4, %v14769_v37, -inf  ;;  %v14991_v38 = vadd.f32 %v14990_v36, %v19284_v2 }
0x4626   :  { %v14916_v25 = vpop.f32.mrf.mxu0  ;;  %15149 = vmax.xlane.f32.xlu0 %v15148_v3  ;;  %v18404_v54 = vpop.f32.mrf.mxu1 }
0x4627   :  { %v14917_v55 = vadd.f32 %v14916_v25, %v19278_v60  ;;  %v15157_v59 = vsel %vm364_vm4, %v14991_v38, -inf }
0x4628   :  { %v18399_v33 = vpop.f32.mrf.mxu0  ;;  %v15138_v16 = vpop.f32.mrf.mxu1 }
0x4629   :  { %v15154_v29 = vsel %vm364_vm4, %v14917_v55, -inf  ;;  %v15139_v32 = vadd.f32 %v15138_v16, %v19284_v2 }
0x462a   :  { %v15064_v14 = vpop.f32.mrf.mxu0  ;;  %15155 = vmax.xlane.f32.xlu1 %v15154_v29  ;;  %15152 = vmax.xlane.f32.xlu0 %v15151_v45  ;;  %v18414_v26 = vpop.f32.mrf.mxu1 }
0x462b   :  { %v15065_v24 = vadd.f32 %v15064_v14, %v19278_v60  ;;  %v15163_v47 = vsel %vm364_vm4, %v15139_v32, -inf }
0x462c   :  { %v18409_v31 = vpop.f32.mrf.mxu0 }
0x462d   :  { %v15160_v35 = vsel %vm364_vm4, %v15065_v24, -inf }
0x462e   :  { %15161 = vmax.xlane.f32.xlu1 %v15160_v35  ;;  %15158 = vmax.xlane.f32.xlu0 %v15157_v59 }
0x4632   :  { %15164 = vmax.xlane.f32.xlu0 %v15163_v47 }
0x463c   :  { %v15144_v23 = vpop.xlane.xlu0 %15143 }
0x463d   :  { %v15166_v62 = vsub.f32 %v14621_v63, %v15144_v23 }
0x463f   :  { %15230 = vrot.lane.b32.xlu1 %v21680_v5, %s18981_s14  ;;  %v15174_v53 = vmul.f32 1.442695, %v15166_v62 }
0x4640   :  { %v15147_v60 = vpop.xlane.xlu1 %15146 }
0x4641   :  { %v15167_v2 = vsub.f32 %v14695_v13, %v15147_v60 }
0x4643   :  { %15382 = vrot.lane.b32.xlu1 %v21718_v0, %s18981_s14  ;;  %v15176_v5 = vmul.f32 1.442695, %v15167_v2 }
0x4645   :  { %18839 = vpow2.f32 %v15176_v5 }
0x4646   :  { %18841 = vpow2.f32 %v15174_v53 }
0x4647   :  { %15458 = vrot.lane.b32.xlu1 %v21714_v27, %s18981_s14 }
0x4648   :  { %15306 = vrot.lane.b32.xlu0 %v21678_v8, %s18981_s14 }
0x464b   :  { %15610 = vrot.lane.b32.xlu1 %v21724_v50, %s18981_s14 }
0x464c   :  { %15534 = vrot.lane.b32.xlu0 %v21726_v56, %s18981_s14 }
0x4652   :  { %v21790_v0 = vpop.eup %18839 }
0x4653   :  { %v15193_v27 = vsel %vm364_vm4, %v21790_v0, 0.0  ;;  %v21794_v8 = vpop.eup %18841 }
0x4654   :  { %v15190_v50 = vsel %vm364_vm4, %v21794_v8, 0.0 }
0x466b   :  { %15194 = vadd.xlane.f32.xlu0 %v15193_v27 }
0x466f   :  { %15191 = vadd.xlane.f32.xlu1 %v15190_v50 }
0x46af   :  { %v15150_v56 = vpop.xlane.xlu0 %15149 }
0x46b0   :  { %v15168_v20 = vsub.f32 %v14769_v37, %v15150_v56 }
0x46b2   :  { %v15178_v12 = vmul.f32 1.442695, %v15168_v20 }
0x46b3   :  { %v15156_v46 = vpop.xlane.xlu1 %15155  ;;  %v15153_v6 = vpop.xlane.xlu0 %15152 }
0x46b4   :  { %18843 = vpow2.f32 %v15178_v12  ;;  %v15170_v10 = vsub.f32 %v14917_v55, %v15156_v46  ;;  %v15169_v39 = vsub.f32 %v14843_v4, %v15153_v6 }
0x46b6   :  { %v15182_v63 = vmul.f32 1.442695, %v15170_v10  ;;  %v15180_v48 = vmul.f32 1.442695, %v15169_v39 }
0x46b7   :  { %v15162_v49 = vpop.xlane.xlu1 %15161  ;;  %v15159_v30 = vpop.xlane.xlu0 %15158 }
0x46b8   :  { %18845 = vpow2.f32 %v15182_v63  ;;  %v15172_v13 = vsub.f32 %v15065_v24, %v15162_v49  ;;  %v15171_v11 = vsub.f32 %v14991_v38, %v15159_v30 }
0x46b9   :  { %18847 = vpow2.f32 %v15180_v48 }
0x46ba   :  { %v15186_v57 = vmul.f32 1.442695, %v15172_v13  ;;  %v15184_v61 = vmul.f32 1.442695, %v15171_v11 }
0x46bb   :  { %v15231_v43 = vpop.permute.xlu1 %15230  ;;  %v15165_v1 = vpop.xlane.xlu0 %15164 }
0x46bc   :  { %18849 = vpow2.f32 %v15186_v57  ;;  %v15173_v37 = vsub.f32 %v15139_v32, %v15165_v1  ;;  %18416 = vmatpush3.msra.mxu0 %v15231_v43 }
0x46bd   :  { %18851 = vpow2.f32 %v15184_v61  ;;  %18425 = vmatprep.subr.mxu0 %v18975_v21 }
0x46be   :  { %v15188_v34 = vmul.f32 1.442695, %v15173_v37 }
0x46bf   :  { %v15307_v36 = vpop.permute.xlu0 %15306  ;;  %v15383_v24 = vpop.permute.xlu1 %15382 }
0x46c0   :  { %18853 = vpow2.f32 %v15188_v34  ;;  %18421 = vmatpush3.msra.mxu1 %v15307_v36 }
0x46c1   :  { %v18844_v4 = vpop.eup %18843  ;;  %18430 = vmatprep.subr.mxu1 %v18975_v21 }
0x46c2   :  { %v15196_v3 = vsel %vm364_vm4, %v18844_v4, 0.0 }
0x46c3   :  { %15197 = vadd.xlane.f32.xlu1 %v15196_v3  ;;  %v15459_v31 = vpop.permute.xlu1 %15458  ;;  %v15535_v32 = vpop.permute.xlu0 %15534 }
0x46c5   :  { %v18846_v25 = vpop.eup %18845 }
0x46c6   :  { %v18848_v54 = vpop.eup %18847  ;;  %v15202_v55 = vsel %vm364_vm4, %v18846_v25, 0.0 }
0x46c7   :  { %15203 = vadd.xlane.f32.xlu1 %v15202_v55  ;;  %v15199_v33 = vsel %vm364_vm4, %v18848_v54, 0.0  ;;  %v15611_v35 = vpop.permute.xlu1 %15610 }
0x46c8   :  { %15200 = vadd.xlane.f32.xlu0 %v15199_v33 }
0x46c9   :  { %v18850_v16 = vpop.eup %18849 }
0x46ca   :  { %v21803_v38 = vpop.eup %18851  ;;  %v15208_v29 = vsel %vm364_vm4, %v18850_v16, 0.0 }
0x46cb   :  { %15209 = vadd.xlane.f32.xlu1 %v15208_v29  ;;  %v15205_v45 = vsel %vm364_vm4, %v21803_v38, 0.0 }
0x46cc   :  { %15206 = vadd.xlane.f32.xlu0 %v15205_v45 }
0x46cd   :  { %v21808_v14 = vpop.eup %18853 }
0x46ce   :  { %v15211_v26 = vsel %vm364_vm4, %v21808_v14, 0.0 }
0x46d0   :  { %15212 = vadd.xlane.f32.xlu0 %v15211_v26 }
0x46dc   :  { %15762 = vrot.lane.b32.xlu1 %v21728_v58, %s18981_s14 }
0x46e0   :  { %15876 = vrot.lane.b32.xlu1 %v21629_v28, %s18984_s17 }
0x46e4   :  { %15874 = vrot.lane.b32.xlu1 %v21624_v52, %s18984_s17 }
0x46e6   :  { %15686 = vrot.lane.b32.xlu0 %v21730_v15, %s18981_s14 }
0x46ea   :  { %15878 = vrot.lane.b32.xlu0 %v21616_v9, %s18984_s17 }
0x46f4   :  { %v15195_v59 = vpop.xlane.xlu0 %15194 }
0x46f5   :  { %18855 = vrcp.f32 %v15195_v59 }
0x46f8   :  { %v15192_v47 = vpop.xlane.xlu1 %15191 }
0x46f9   :  { %18857 = vrcp.f32 %v15192_v47 }
0x4702   :  { %v18856_v58 = vpop.eup %18855 }
0x4703   :  { %v15223_v28 = vmul.f32 %v18856_v58, %v21790_v0 }
0x4705   :  { %18423 = vmatmul.mubr.msk.f32.vlgmr.msra.gmra.mxu1 %vm364_vm4, %v15223_v28  ;;  %v21869_v28 = vld [vmem:[%s21972_s10 + $0x20] sm:$0xff] }
0x4706   :  { %v18858_v52 = vpop.eup %18857  ;;  %18431 = vmatpush3.msra.mxu1 %v15459_v31  ;;  %18432 = vmatprep.mubr.msk.f32.mxu1 %vm18977_vm3, %v18975_v21 }
0x4707   :  { %v15222_v15 = vmul.f32 %v18858_v52, %v21794_v8  ;;  %18440 = vmatprep.subr.mxu1 %v18975_v21  ;;  %v15871_v52 = vrot.slane %v21869_v28, %v19440_v17 }
0x4709   :  { %18418 = vmatmul.mubr.msk.f32.vlgmr.msra.gmra.mxu0 %vm364_vm4, %v15222_v15 }
0x470a   :  { %18426 = vmatpush3.msra.mxu0 %v15383_v24  ;;  %18427 = vmatprep.mubr.msk.f32.mxu0 %vm18977_vm3, %v18975_v21 }
0x470b   :  { %18435 = vmatprep.subr.mxu0 %v18975_v21 }
0x474c   :  { %v15198_v9 = vpop.xlane.xlu1 %15197 }
0x474d   :  { %18859 = vrcp.f32 %v15198_v9 }
0x4750   :  { %v15204_v60 = vpop.xlane.xlu1 %15203 }
0x4751   :  { %18861 = vrcp.f32 %v15204_v60  ;;  %v15201_v2 = vpop.xlane.xlu0 %15200 }
0x4752   :  { %18863 = vrcp.f32 %v15201_v2 }
0x4754   :  { %v15210_v23 = vpop.xlane.xlu1 %15209 }
0x4755   :  { %18865 = vrcp.f32 %v15210_v23  ;;  %v15207_v62 = vpop.xlane.xlu0 %15206 }
0x4756   :  { %18867 = vrcp.f32 %v15207_v62 }
0x4758   :  { %v15763_v39 = vpop.permute.xlu1 %15762 }
0x4759   :  { %v15213_v5 = vpop.xlane.xlu0 %15212 }
0x475a   :  { %v18860_v53 = vpop.eup %18859  ;;  %18869 = vrcp.f32 %v15213_v5 }
0x475b   :  { %v15224_v0 = vmul.f32 %v18860_v53, %v18844_v4 }
0x475c   :  { %v15877_v49 = vpop.permute.xlu1 %15876 }
0x475d   :  { %18428 = vmatmul.mubr.msk.f32.vlgmr.msra.gmra.mxu0 %vm364_vm4, %v15224_v0  ;;  %v15687_v20 = vpop.permute.xlu0 %15686 }
0x475e   :  { %v18862_v27 = vpop.eup %18861  ;;  %18436 = vmatpush3.msra.mxu0 %v15535_v32  ;;  %18437 = vmatprep.mubr.msk.f32.mxu0 %vm18977_vm3, %v18975_v21 }
0x475f   :  { %v18864_v8 = vpop.eup %18863  ;;  %v15226_v50 = vmul.f32 %v18862_v27, %v18846_v25  ;;  %18445 = vmatprep.subr.mxu0 %v18975_v21 }
0x4760   :  { %v15225_v56 = vmul.f32 %v18864_v8, %v18848_v54  ;;  %v15875_v13 = vpop.permute.xlu1 %15874 }
0x4761   :  { %18438 = vmatmul.mubr.msk.f32.vlgmr.msra.gmra.mxu0 %vm364_vm4, %v15226_v50  ;;  %v15879_v30 = vpop.permute.xlu0 %15878 }
0x4762   :  { %v18866_v12 = vpop.eup %18865  ;;  %18433 = vmatmul.mubr.msk.f32.vlgmr.msra.gmra.mxu1 %vm364_vm4, %v15225_v56  ;;  %18446 = vmatpush3.msra.mxu0 %v15687_v20 }
0x4763   :  { %v18868_v46 = vpop.eup %18867  ;;  %v15228_v6 = vmul.f32 %v18866_v12, %v18850_v16  ;;  %18441 = vmatpush3.msra.mxu1 %v15611_v35  ;;  %18442 = vmatprep.mubr.msk.f32.mxu1 %vm18977_vm3, %v18975_v21 }
0x4764   :  { %v15227_v10 = vmul.f32 %v18868_v46, %v21803_v38  ;;  %18447 = vmatprep.mubr.msk.f32.mxu0 %vm18977_vm3, %v18975_v21  ;;  %18450 = vmatprep.subr.mxu1 %v18975_v21 }
0x4765   :  { %18448 = vmatmul.mubr.msk.f32.vlgmr.msra.gmra.mxu0 %vm364_vm4, %v15228_v6  ;;  %18455 = vmatprep.subr.mxu0 %v15879_v30 }
0x4766   :  { %18443 = vmatmul.mubr.msk.f32.vlgmr.msra.gmra.mxu1 %vm364_vm4, %v15227_v10  ;;  %18456 = vmatpush3.msra.mxu0 %v15879_v30  ;;  %v16665_v10 = vld [vmem:[%s21970_s8 + $0x100] sm:$0xff]  ;;  %v16736_v30 = vld [vmem:[%s21971_s9 + $0xa8] sm:$0xff] }
0x4767   :  { %v18870_v63 = vpop.eup %18869  ;;  %18451 = vmatpush3.msra.mxu1 %v15763_v39  ;;  %18452 = vmatprep.mubr.msk.f32.mxu1 %vm18977_vm3, %v18975_v21  ;;  %v16662_v39 = vld [vmem:[%s21970_s8 + $0xe8] sm:$0xff] }
0x4768   :  { %v15229_v48 = vmul.f32 %v18870_v63, %v21808_v14  ;;  %18457 = vmatprep.subr.mxu0 %v15877_v49  ;;  %v16659_v63 = vld [vmem:[%s21970_s8 + $0xd0] sm:$0xff] }
0x4769   :  { %18458 = vmatpush3.msra.mxu0 %v15877_v49  ;;  %v16737_v49 = vld [vmem:[%s21971_s9 + $0xb0] sm:$0xff] }
0x476a   :  { %18453 = vmatmul.mubr.msk.f32.vlgmr.msra.gmra.mxu1 %vm364_vm4, %v15229_v48  ;;  %18459 = vmatprep.subr.mxu0 %v15875_v13  ;;  %v16738_v48 = vld [vmem:[%s21971_s9 + $0xb8] sm:$0xff] }
0x476b   :  { %18460 = vmatpush3.msra.mxu0 %v15875_v13  ;;  %v16735_v13 = vld [vmem:[%s21971_s9 + $0xa0] sm:$0xff] }
0x47c5   :  { %v15378_v11 = vpop.f32.mrf.mxu1 }
0x47c7   :  { %v18424_v57 = vpop.f32.mrf.mxu1 }
0x47c9   :  { %v15302_v61 = vpop.f32.mrf.mxu0 }
0x47cb   :  { %v18419_v43 = vpop.f32.mrf.mxu0 }
0x481d   :  { %v15454_v1 = vpop.f32.mrf.mxu0 }
0x481f   :  { %v18429_v37 = vpop.f32.mrf.mxu0 }
0x4821   :  { %v15606_v21 = vpop.f32.mrf.mxu0 }
0x4822   :  { %v15530_v34 = vpop.f32.mrf.mxu1  ;;  %15848 = vrot.lane.b32.xlu1 %v15606_v21, %s18985_s0  ;;  %v15996_v21 = vrot.slane %v21662_v7, %v19405_v41  ;;  %v16733_v41 = vld [vmem:[%s21971_s9 + $0x90] sm:$0xff] }
0x4823   :  { %15842 = vrot.lane.b32.xlu0 %v15530_v34, %s18972_s29  ;;  %v18439_v36 = vpop.f32.mrf.mxu0 }
0x4824   :  { %v18434_v4 = vpop.f32.mrf.mxu1 }
0x4825   :  { %v15758_v3 = vpop.f32.mrf.mxu0  ;;  %v16002_v4 = vrot.slane %v21662_v7, %v19465_v51 }
0x4826   :  { %v15682_v25 = vpop.f32.mrf.mxu1  ;;  %15856 = vrot.lane.b32.xlu1 %v15758_v3, %s18986_s18 }
0x4827   :  { %15840 = vrot.lane.b32.xlu0 %v15454_v1, %s18972_s29  ;;  %v18449_v54 = vpop.f32.mrf.mxu0 }
0x4828   :  { %v18444_v55 = vpop.f32.mrf.mxu1 }
0x482a   :  { %v15834_v33 = vpop.f32.mrf.mxu1 }
0x482b   :  { %15850 = vrot.lane.b32.xlu0 %v15682_v25, %s18985_s0  ;;  %15858 = vrot.lane.b32.xlu1 %v15834_v33, %s18986_s18 }
0x482c   :  { %v18454_v16 = vpop.f32.mrf.mxu1 }
0x482f   :  { %15872 = vrot.lane.b32.xlu0 %v21641_v44, %s18984_s17 }
0x4894   :  { %v15849_v38 = vpop.permute.xlu1 %15848 }
0x4895   :  { %v15843_v29 = vpop.permute.xlu0 %15842 }
0x4896   :  { %v15863_v35 = vsel %vm364_vm4, %v15378_v11, %v15843_v29  ;;  %v16732_v29 = vld [vmem:[%s21971_s9 + $0x88] sm:$0xff] }
0x4898   :  { %v15857_v14 = vpop.permute.xlu1 %15856 }
0x4899   :  { %v15841_v45 = vpop.permute.xlu0 %15840 }
0x489a   :  { %v15862_v26 = vsel %vm364_vm4, %v15302_v61, %v15841_v45  ;;  %v16731_v45 = vld [vmem:[%s21971_s9 + $0x80] sm:$0xff] }
0x489b   :  { %v15864_v24 = vsel %vm1693_vm5, %v15862_v26, %v15849_v38  ;;  %v16734_v38 = vld [vmem:[%s21971_s9 + $0x98] sm:$0xff] }
0x489c   :  { %v15866_v31 = vsel %vm1696_vm6, %v15864_v24, %v15857_v14  ;;  %v16008_v14 = vrot.slane %v21869_v28, %v19443_v18 }
0x489d   :  { %18463 = vmatprep.mubr.msk.f32.mxu0 %vm266_vm2, %v15866_v31  ;;  %v15851_v32 = vpop.permute.xlu0 %15850  ;;  %v15859_v47 = vpop.permute.xlu1 %15858 }
0x489e   :  { %v15865_v59 = vsel %vm1693_vm5, %v15863_v35, %v15851_v32 }
0x489f   :  { %v15867_v44 = vsel %vm1696_vm6, %v15865_v59, %v15859_v47  ;;  %v16104_v47 = vrot.slane %v21869_v28, %v19512_v19 }
0x48a1   :  { %v15873_v58 = vpop.permute.xlu0 %15872 }
0x48a2   :  { %18461 = vmatprep.subr.mxu0 %v15873_v58 }
0x48a3   :  { %18462 = vmatpush3.msra.mxu0 %v15873_v58 }
0x48a4   :  { %18464 = vmatmul.mubr.msk.f32.vlgmr.msra.gmra.mxu0 %vm266_vm2, %v15867_v44  ;;  %18477 = vmatprep.subr.mxu0 %v16738_v48 }
0x48a5   :  { %18478 = vmatpush3.msra.mxu0 %v16738_v48 }
0x48a6   :  { %18479 = vmatprep.subr.mxu0 %v16737_v49 }
0x48a7   :  { %18480 = vmatpush3.msra.mxu0 %v16737_v49 }
0x48a8   :  { %18481 = vmatprep.subr.mxu0 %v16736_v30 }
0x48a9   :  { %18482 = vmatpush3.msra.mxu0 %v16736_v30 }
0x48aa   :  { %18483 = vmatprep.subr.mxu0 %v16735_v13 }
0x48ab   :  { %18484 = vmatpush3.msra.mxu0 %v16735_v13 }
0x48ac   :  { %18485 = vmatprep.subr.mxu0 %v16734_v38 }
0x48ad   :  { %18486 = vmatpush3.msra.mxu0 %v16734_v38  ;;  %v16264_v38 = vld [vmem:[%s21973_s11] sm:$0xff] }
0x48ae   :  { %18487 = vmatprep.subr.mxu0 %v16733_v41 }
0x48af   :  { %18488 = vmatpush3.msra.mxu0 %v16733_v41 }
0x48b0   :  { %18489 = vmatprep.subr.mxu0 %v16732_v29 }
0x48b1   :  { %18490 = vmatpush3.msra.mxu0 %v16732_v29 }
0x48b2   :  { %18491 = vmatprep.subr.mxu0 %v16731_v45 }
0x48b3   :  { %18492 = vmatpush3.msra.mxu0 %v16731_v45 }
0x4964   :  { %v18465_v15 = vpop.f32.mrf.mxu0 }
0x4965   :  { %v15962_v9 = vadd.f32 %v18465_v15, %v15871_v52 }
0x4966   :  { %v15956_v60 = vpop.f32.mrf.mxu0 }
0x4967   :  { %v15966_v2 = vadd.f32 %v15962_v9, %v21668_v22  ;;  %v15957_v23 = vadd.f32 %v15956_v60, %v15871_v52 }
0x4969   :  { %v15965_v62 = vadd.f32 %v15957_v23, %v21666_v42  ;;  %v15970_v5 = vsel %vm266_vm2, %v15966_v2, 0.0  ;;  %v16668_v42 = vld [vmem:[%s21970_s8 + $0x118] sm:$0xff] }
0x496a   :  { %15971 = vadd.xlane.f32.xlu1 %v15970_v5  ;;  %18466 = vmatprep.subr.mxu1 %v16668_v42 }
0x496b   :  { %v15967_v53 = vsel %vm266_vm2, %v15965_v62, 0.0  ;;  %18467 = vmatpush3.msra.mxu1 %v16668_v42  ;;  %v16217_v42 = vrot.slane %v21662_v7, %v19474_v40 }
0x496c   :  { %15968 = vadd.xlane.f32.xlu0 %v15967_v53  ;;  %18468 = vmatprep.subr.mxu1 %v16665_v10 }
0x496d   :  { %18469 = vmatpush3.msra.mxu1 %v16665_v10 }
0x496e   :  { %18470 = vmatprep.subr.mxu1 %v16662_v39 }
0x496f   :  { %18471 = vmatpush3.msra.mxu1 %v16662_v39 }
0x4970   :  { %18472 = vmatprep.subr.mxu1 %v16659_v63 }
0x4971   :  { %18473 = vmatpush3.msra.mxu1 %v16659_v63  ;;  %v16223_v63 = vrot.slane %v21662_v7, %v19440_v17 }
0x49f3   :  { %v15972_v0 = vpop.xlane.xlu1 %15971 }
0x49f4   :  { %v15974_v27 = vmul.f32 0.03125, %v15972_v0 }
0x49f5   :  { %v15969_v8 = vpop.xlane.xlu0 %15968 }
0x49f6   :  { %v15973_v50 = vmul.f32 0.03125, %v15969_v8  ;;  %v15976_v56 = vsub.f32 %v15966_v2, %v15974_v27 }
0x49f8   :  { %v15975_v20 = vsub.f32 %v15965_v62, %v15973_v50  ;;  %v15978_v6 = vmul.f32 %v15976_v56, %v15976_v56 }
0x49fa   :  { %v15977_v12 = vmul.f32 %v15975_v20, %v15975_v20  ;;  %v15982_v22 = vsel %vm266_vm2, %v15978_v6, 0.0 }
0x49fc   :  { %v15979_v46 = vsel %vm266_vm2, %v15977_v12, 0.0 }
0x49fd   :  { %15980 = vadd.xlane.f32.xlu0 %v15979_v46 }
0x4a01   :  { %15983 = vadd.xlane.f32.xlu0 %v15982_v22 }
0x4a86   :  { %v15981_v11 = vpop.xlane.xlu0 %15980 }
0x4a87   :  { %v15985_v57 = vmul.f32 0.03125, %v15981_v11 }
0x4a89   :  { %v15987_v61 = vadd.f32 1e-05, %v15985_v57 }
0x4a8a   :  { %v15984_v43 = vpop.xlane.xlu0 %15983 }
0x4a8b   :  { %18871 = vrsqrt.f32 %v15987_v61  ;;  %v15986_v1 = vmul.f32 0.03125, %v15984_v43 }
0x4a8d   :  { %v15988_v37 = vadd.f32 1e-05, %v15986_v1 }
0x4a8f   :  { %18873 = vrsqrt.f32 %v15988_v37 }
0x4a98   :  { %v18872_v34 = vpop.eup %18871 }
0x4a99   :  { %v15991_v36 = vmul.f32 %v18872_v34, %v15975_v20 }
0x4a9b   :  { %v15997_v3 = vmul.f32 %v15996_v21, %v15991_v36 }
0x4a9c   :  { %v18874_v25 = vpop.eup %18873 }
0x4a9d   :  { %v15992_v54 = vmul.f32 %v18874_v25, %v15976_v56  ;;  %v16003_v55 = vadd.f32 %v16002_v4, %v15997_v3 }
0x4a9f   :  { %v15998_v33 = vmul.f32 %v15996_v21, %v15992_v54  ;;  %18474 = vmatprep.mubr.msk.f32.mxu1 %vm266_vm2, %v16003_v55 }
0x4aa1   :  { %v16004_v16 = vadd.f32 %v16002_v4, %v15998_v33  ;;  %v16266_v33 = vld [vmem:[%s21973_s11 + $0x10] sm:$0xff] }
0x4aa3   :  { %18475 = vmatmul.mubr.msk.f32.vlgmr.msra.gmra.mxu1 %vm266_vm2, %v16004_v16 }
0x4b63   :  { %v18476_v26 = vpop.f32.mrf.mxu1 }
0x4b64   :  { %v16087_v24 = vadd.f32 %v18476_v26, %v16008_v14 }
0x4b65   :  { %v16081_v31 = vpop.f32.mrf.mxu1 }
0x4b66   :  { %v16082_v32 = vadd.f32 %v16081_v31, %v16008_v14  ;;  %v16091_v59 = vmax.f32 %v16087_v24, 0.0 }
0x4b68   :  { %v16090_v35 = vmax.f32 %v16082_v32, 0.0  ;;  %v18903_v32 = vld [vmem:[#allocation5] sm:$0x1f] }
0x4b6a   :  { %18493 = vmatprep.mubr.msk.f32.mxu0 %vm1940_vm7, %v16090_v35  ;;  %v16255_v35 = vrot.slane %v18903_v32, %v19465_v51 }
0x4b6b   :  { %18494 = vmatmul.mubr.msk.f32.vlgmr.msra.gmra.mxu0 %vm1940_vm7, %v16091_v59 }
0x4c2b   :  { %v18495_v58 = vpop.f32.mrf.mxu0 }
0x4c2c   :  { %v16183_v44 = vadd.f32 %v18495_v58, %v16104_v47 }
0x4c2d   :  { %v16177_v52 = vpop.f32.mrf.mxu0 }
0x4c2e   :  { %v16187_v15 = vadd.f32 %v16183_v44, %v16004_v16  ;;  %v16178_v9 = vadd.f32 %v16177_v52, %v16104_v47  ;;  %v16265_v16 = vld [vmem:[%s21973_s11 + $0x8] sm:$0xff]  ;;  %v16261_v52 = vrot.slane %v18903_v32, %v19474_v40 }
0x4c30   :  { %v16186_v60 = vadd.f32 %v16178_v9, %v16003_v55  ;;  %v16191_v18 = vsel %vm266_vm2, %v16187_v15, 0.0  ;;  %v16267_v55 = vld [vmem:[%s21973_s11 + $0x18] sm:$0xff]  ;;  %s18987_s11 = smov [#allocation7]  }
0x4c31   :  { %16192 = vadd.xlane.f32.xlu0 %v16191_v18  ;;  %18496 = vmatprep.subr.mxu1 %v16267_v55  ;;  %v16271_v18 = vrot.slane %v18903_v32, %v19440_v17  ;;  %s16360_s18 = sshll.u32 %s18987_s11, 4  ;;  %s16361_s18 = int_to_ptr.vmem [resolvable:$true] %s16360_s18 }
0x4c32   :  { %v16188_v2 = vsel %vm266_vm2, %v16186_v60, 0.0  ;;  %18497 = vmatpush3.msra.mxu1 %v16267_v55  ;;  %s18944_s24 = scalar_lea.vmem %s16361_s18, 256  ;;  %p18949_p11 = scmp.lt.s32.totalorder %s16361_s18, %s16361_s18 }
0x4c33   :  { %16189 = vadd.xlane.f32.xlu1 %v16188_v2  ;;  %18498 = vmatprep.subr.mxu1 %v16266_v33  ;;  %p18945_p10 = scmp.ne.s32.totalorder %s16361_s18, %s18944_s24  ;;  %p18950_p12 = scmp.lt.s32.totalorder %s18944_s24, %s18944_s24 }
0x4c34   :  { %18499 = vmatpush3.msra.mxu1 %v16266_v33 }
0x4c35   :  { %18500 = vmatprep.subr.mxu1 %v16265_v16  ;;  %p18951_p13 = por %p18950_p12, %p18949_p11 }
0x4c36   :  { %18501 = vmatpush3.msra.mxu1 %v16265_v16 }
0x4c37   :  { %18502 = vmatprep.subr.mxu1 %v16264_v38  ;;  %p18952_p0 = pnand %p18951_p13, %p18945_p10 }
0x4c38   :  { %18503 = vmatpush3.msra.mxu1 %v16264_v38 }
0x4cba   :  { %v16193_v23 = vpop.xlane.xlu0 %16192 }
0x4cbb   :  { %v16195_v62 = vmul.f32 0.03125, %v16193_v23 }
0x4cbc   :  { %v16190_v5 = vpop.xlane.xlu1 %16189 }
0x4cbd   :  { %v16197_v53 = vsub.f32 %v16187_v15, %v16195_v62  ;;  %v16194_v0 = vmul.f32 0.03125, %v16190_v5 }
0x4cbf   :  { %v16196_v27 = vsub.f32 %v16186_v60, %v16194_v0  ;;  %v16199_v8 = vmul.f32 %v16197_v53, %v16197_v53 }
0x4cc1   :  { %v16203_v19 = vsel %vm266_vm2, %v16199_v8, 0.0  ;;  %v16198_v28 = vmul.f32 %v16196_v27, %v16196_v27 }
0x4cc2   :  { %16204 = vadd.xlane.f32.xlu0 %v16203_v19 }
0x4cc3   :  { %v16200_v50 = vsel %vm266_vm2, %v16198_v28, 0.0 }
0x4cc4   :  { %16201 = vadd.xlane.f32.xlu1 %v16200_v50 }
0x4d4b   :  { %v16205_v56 = vpop.xlane.xlu0 %16204 }
0x4d4c   :  { %v16207_v20 = vmul.f32 0.03125, %v16205_v56 }
0x4d4d   :  { %v16202_v12 = vpop.xlane.xlu1 %16201 }
0x4d4e   :  { %v16209_v46 = vadd.f32 1e-05, %v16207_v20  ;;  %v16206_v6 = vmul.f32 0.03125, %v16202_v12 }
0x4d50   :  { %18875 = vrsqrt.f32 %v16209_v46  ;;  %v16208_v22 = vadd.f32 1e-05, %v16206_v6 }
0x4d52   :  { %18877 = vrsqrt.f32 %v16208_v22 }
0x4d5d   :  { %v18876_v10 = vpop.eup %18875 }
0x4d5e   :  { %v16213_v39 = vmul.f32 %v18876_v10, %v16197_v53 }
0x4d5f   :  { %v18878_v48 = vpop.eup %18877 }
0x4d60   :  { %v16219_v49 = vmul.f32 %v16217_v42, %v16213_v39  ;;  %v16212_v30 = vmul.f32 %v18878_v48, %v16196_v27 }
0x4d62   :  { %v16225_v13 = vadd.f32 %v16223_v63, %v16219_v49  ;;  %v16218_v11 = vmul.f32 %v16217_v42, %v16212_v30 }
0x4d64   :  { %v16229_v57 = vsel %vm266_vm2, %v16225_v13, 0.0  ;;  %v16224_v61 = vadd.f32 %v16223_v63, %v16218_v11 }
0x4d65   :  { %16230 = vadd.xlane.f32.xlu0 %v16229_v57 }
0x4d66   :  { %v16226_v43 = vsel %vm266_vm2, %v16224_v61, 0.0 }
0x4d67   :  { %16227 = vadd.xlane.f32.xlu1 %v16226_v43 }
0x4dee   :  { %v16231_v1 = vpop.xlane.xlu0 %16230 }
0x4def   :  { %v16233_v37 = vmul.f32 0.03125, %v16231_v1 }
0x4df0   :  { %v16228_v21 = vpop.xlane.xlu1 %16227 }
0x4df1   :  { %v16235_v34 = vsub.f32 %v16225_v13, %v16233_v37  ;;  %v16232_v36 = vmul.f32 0.03125, %v16228_v21 }
0x4df3   :  { %v16234_v4 = vsub.f32 %v16224_v61, %v16232_v36  ;;  %v16237_v3 = vmul.f32 %v16235_v34, %v16235_v34 }
0x4df5   :  { %v16241_v7 = vsel %vm266_vm2, %v16237_v3, 0.0  ;;  %v16236_v25 = vmul.f32 %v16234_v4, %v16234_v4 }
0x4df6   :  { %16242 = vadd.xlane.f32.xlu0 %v16241_v7 }
0x4df7   :  { %v16238_v54 = vsel %vm266_vm2, %v16236_v25, 0.0 }
0x4df8   :  { %16239 = vadd.xlane.f32.xlu1 %v16238_v54 }
0x4e7f   :  { %v16243_v41 = vpop.xlane.xlu0 %16242 }
0x4e80   :  { %v16245_v29 = vmul.f32 0.03125, %v16243_v41 }
0x4e81   :  { %v16240_v45 = vpop.xlane.xlu1 %16239 }
0x4e82   :  { %v16247_v14 = vadd.f32 1e-05, %v16245_v29  ;;  %v16244_v26 = vmul.f32 0.03125, %v16240_v45 }
0x4e84   :  { %18879 = vrsqrt.f32 %v16247_v14  ;;  %v16246_v24 = vadd.f32 1e-05, %v16244_v26 }
0x4e86   :  { %18881 = vrsqrt.f32 %v16246_v24 }
0x4e91   :  { %v18880_v31 = vpop.eup %18879 }
0x4e92   :  { %v16251_v59 = vmul.f32 %v18880_v31, %v16235_v34 }
0x4e93   :  { %v18882_v47 = vpop.eup %18881 }
0x4e94   :  { %v16250_v58 = vmul.f32 %v18882_v47, %v16234_v4  ;;  %v16257_v44 = vmul.f32 %v16255_v35, %v16251_v59 }
0x4e96   :  { %v16256_v15 = vmul.f32 %v16255_v35, %v16250_v58  ;;  %v16263_v60 = vadd.f32 %v16261_v52, %v16257_v44 }
0x4e98   :  { %v16262_v9 = vadd.f32 %v16261_v52, %v16256_v15 }
0x4e9a   :  { %18504 = vmatprep.mubr.msk.f32.mxu1 %vm266_vm2, %v16262_v9 }
0x4e9b   :  { %18505 = vmatmul.mubr.msk.f32.vlgmr.msra.gmra.mxu1 %vm266_vm2, %v16263_v60 }
0x4f5b   :  { %v18506_v2 = vpop.f32.mrf.mxu1 }
0x4f5c   :  { %v16350_v23 = vadd.f32 %v18506_v2, %v16271_v18 }
0x4f5d   :  { %v16344_v51 = vpop.f32.mrf.mxu1 }
0x4f5e   :  { %16354 = vst [vmem:[#allocation7 + $0x8] sm:$0xff] %v16350_v23  ;;  %v16345_v62 = vadd.f32 %v16344_v51, %v16271_v18 }
0x4f60   :  { %16353 = vst [vmem:[#allocation7] sm:$0xff] %v16345_v62 }
0x4f61   :  { %18955 = shalt.err (!%p18952_p0)
}
0x4f62   :  { %16366 = dma.vmem_to_hbm [thread:$0]  %s16361_s18, 256, %s21975_s13, [#allocation4], %s18971_s28, %s18971_s28, %s18972_s29  }
0x4f63   :  { %18968 = dma.done.wait [#allocation4], 256  }
0x4f64   :  { %18969 = vsyncadd [#allocation4], 4294967040 }
0x4f65   :  { %16370 = vsyncpa [#allocation3], 1 }
0x4f66   :  { %16371 = vsyncpa [#allocation6], 1 }
0x4f67   :  { %16372 = vsyncpa [#allocation4], 1 }

</bundles_post_ra>
